<compile_context>
chip_gen: v7x
topology: tpu7x:2x2x1
jax: 0.10.0
libtpu: 0.0.40
codegen_flags: <defaults>
</compile_context>

<pallas_src>
import functools

import jax
import jax.numpy as jnp
from jax.experimental import pallas as pl
from jax.experimental.pallas import tpu as pltpu


def _round_up(x, m):
    return ((x + m - 1) // m) * m


def postnet_fused_kernel(x_ref, w_ref, shift_ref, out_ref, buf_a, buf_b, *,
                         n_layers, K, pad, t_tile, halo, rems, seq_len,
                         c_in_pad, c_out_pad):
    """All Postnet layers fused; one (batch, time-tile) grid step.

    x_ref     : (R, c_in_pad)        bf16  overlapping input tile, R = t_tile + 2*halo
    w_ref     : (L, K*cpad, cpad)    bf16  BN-folded conv weights (tap-major rows);
                                           layer 0 packed into rows [:K*c_in_pad],
                                           last layer packed into cols [:c_out_pad]
    shift_ref : (L, 1, cpad)         f32   fused conv-bias + BN shift
    out_ref   : (t_tile, c_out_pad)  f32   final-layer output tile
    buf_a/b   : (R, cpad)            bf16  VMEM ping-pong activation buffers
    """
    t = pl.program_id(1)
    cpad = buf_a.shape[-1]
    tile_start = t * t_tile                       # global time of out_ref row 0

    # Boundary masking is only needed when this tile's halo pokes outside
    # [0, seq_len) (first / last tiles, or short sequences).
    needs_mask = (tile_start < halo) | (tile_start + t_tile + halo > seq_len)

    bufs = (buf_a, buf_b)
    src = x_ref
    for l in range(n_layers):                     # static unroll over layers
        rem = rems[l]                             # 8-aligned halo kept after this layer
        out_start = halo - rem                    # first produced row (multiple of 8)
        out_len = t_tile + 2 * rem
        cin = c_in_pad if l == 0 else cpad
        cout = c_out_pad if l == n_layers - 1 else cpad

        # im2col: lane-concat of the K shifted windows, then a single MXU dot
        # with contraction K*cin (accumulates inside the MXU -- no per-tap f32
        # accumulator round-tripping VMEM).
        base = out_start - pad
        lhs = jnp.concatenate(
            [src[base + k:base + k + out_len, :] for k in range(K)], axis=-1)
        rhs = w_ref[l, :K * cin, :cout]
        y = jnp.dot(lhs, rhs, preferred_element_type=jnp.float32)
        y = y + shift_ref[l, :, :cout]            # fused bias + BN shift

        if l < n_layers - 1:
            y = jnp.tanh(y)
            dst = bufs[l % 2]
            dst[out_start:out_start + out_len, :] = y.astype(dst.dtype)

            # Conv zero-padding of the NEXT layer: rows whose global time index
            # falls outside [0, seq_len) must be exactly zero.  Only boundary
            # tiles pay for this (interior tiles skip it entirely).
            @pl.when(needs_mask)
            def _(y=y, dst=dst, out_start=out_start, out_len=out_len):
                row = jax.lax.broadcasted_iota(jnp.int32, (out_len, 1), 0)
                g = tile_start - halo + out_start + row
                keep = (g >= 0) & (g < seq_len)
                dst[out_start:out_start + out_len, :] = jnp.where(
                    keep, y, 0.0).astype(dst.dtype)

            src = dst
        else:
            out_ref[...] = y                      # last layer: no tanh, f32 out


def postnet_forward(x_ncw, params, *, t_tile=512, eps=1e-5,
                    single_buffer_consts=True):
    """x_ncw: (B, n_mel, T) -> (B, n_mel, T), eval-mode forward."""
    B, n_mel, T = x_ncw.shape
    L = len(params)
    K = params[0]["w"].shape[2]
    pad = (K - 1) // 2

    # 8-aligned per-layer halos (recursive so every layer's input window is
    # covered by what the previous layer wrote, and every intermediate store
    # starts on a sublane boundary).  Costs a few extra computed rows.
    rems = [0] * L
    for l in range(L - 2, -1, -1):
        rems[l] = _round_up(rems[l + 1] + pad, 8)
    halo = _round_up(rems[0] + pad, 8)

    # Lane-dense channel padding: input / output channels pad only to 128;
    # hidden (embedding) channels pad to the common width cpad.
    c_in_pad = _round_up(params[0]["w"].shape[1], 128)
    c_out_pad = _round_up(params[-1]["w"].shape[0], 128)
    cpad = max([c_in_pad, c_out_pad]
               + [_round_up(p["w"].shape[0], 128) for p in params]
               + [_round_up(p["w"].shape[1], 128) for p in params])

    # Fold conv bias + eval BatchNorm into (scaled weights, shift); pack each
    # layer's weight into a uniform (K*cpad, cpad) slab (layer 0 in the top
    # rows, last layer in the left columns) so the kernel can slice away the
    # zero-padded contraction / output columns.
    w_list, s_list = [], []
    for l, p in enumerate(params):
        cout, cin, _ = p["w"].shape
        cin_pad_l = c_in_pad if l == 0 else cpad
        cout_pad_l = c_out_pad if l == L - 1 else cpad
        scale = p["gamma"] / jnp.sqrt(p["rvar"] + eps)
        shift = (p["b"] - p["rmean"]) * scale + p["beta"]
        w = jnp.transpose(p["w"], (2, 1, 0)) * scale[None, None, :]   # (K,Cin,Cout)
        w = jnp.pad(w, ((0, 0), (0, cin_pad_l - cin), (0, cout_pad_l - cout)))
        slab = jnp.zeros((K * cpad, cpad), jnp.float32)
        slab = slab.at[:K * cin_pad_l, :cout_pad_l].set(
            w.reshape(K * cin_pad_l, cout_pad_l))
        w_list.append(slab)
        s_list.append(jnp.pad(shift, (0, cpad - cout)))
    w_all = jnp.stack(w_list).astype(jnp.bfloat16)                    # (L,K*cpad,cpad)
    shift_all = jnp.stack(s_list).astype(jnp.float32).reshape(L, 1, cpad)

    # Time tiling.  (For v7x megacore with B == 1, pick t_tile so nT >= 2.)
    tT = t_tile if T >= t_tile else _round_up(T, 8)
    nT = -(-T // tT)
    R = tT + 2 * halo

    # NCW -> (B, T, c_in_pad) bf16; single pad for halo + tile remainder, then
    # overlapping time windows (small now that channels pad only to 128).
    x = jnp.transpose(x_ncw, (0, 2, 1)).astype(jnp.bfloat16)
    x = jnp.pad(x, ((0, 0), (halo, halo + nT * tT - T), (0, c_in_pad - n_mel)))
    tiles = jnp.stack([x[:, t * tT:t * tT + R, :] for t in range(nT)], axis=1)

    kernel = functools.partial(
        postnet_fused_kernel, n_layers=L, K=K, pad=pad, t_tile=tT, halo=halo,
        rems=tuple(rems), seq_len=T, c_in_pad=c_in_pad, c_out_pad=c_out_pad)

    # Weights / shifts never change across the grid -> single-buffer them.
    const_mode = pl.Buffered(1) if single_buffer_consts else None

    out = pl.pallas_call(
        kernel,
        out_shape=jax.ShapeDtypeStruct((B, nT, tT, c_out_pad), jnp.float32),
        grid=(B, nT),
        in_specs=[
            pl.BlockSpec((None, None, R, c_in_pad), lambda b, t: (b, t, 0, 0)),
            pl.BlockSpec((L, K * cpad, cpad), lambda b, t: (0, 0, 0),
                         pipeline_mode=const_mode),
            pl.BlockSpec((L, 1, cpad), lambda b, t: (0, 0, 0),
                         pipeline_mode=const_mode),
        ],
        out_specs=pl.BlockSpec((None, None, tT, c_out_pad),
                               lambda b, t: (b, t, 0, 0)),
        scratch_shapes=[pltpu.VMEM((R, cpad), jnp.bfloat16),
                        pltpu.VMEM((R, cpad), jnp.bfloat16)],
        compiler_params=pltpu.CompilerParams(
            dimension_semantics=("parallel", "parallel"),
            vmem_limit_bytes=32 * 1024 * 1024),
    )(tiles, w_all, shift_all)

    out = out.reshape(B, nT * tT, c_out_pad)[:, :T, :n_mel]
    return jnp.transpose(out, (0, 2, 1))          # back to (B, n_mel, T)


def make_postnet_params(key, n_mel, emb_dim, kernel_size, n_convs):
    """Deterministic synthetic parameters (same shapes as the PyTorch module)."""
    dims = [n_mel] + [emb_dim] * (n_convs - 1) + [n_mel]
    params = []
    for i in range(n_convs):
        cin, cout = dims[i], dims[i + 1]
        key, k1, k2, k3, k4, k5, k6 = jax.random.split(key, 7)
        w = jax.random.normal(k1, (cout, cin, kernel_size), jnp.float32) * 0.05
        b = jax.random.normal(k2, (cout,), jnp.float32) * 0.05
        gamma = 1.0 + 0.1 * jax.random.normal(k3, (cout,), jnp.float32)
        beta = 0.1 * jax.random.normal(k4, (cout,), jnp.float32)
        rmean = 0.1 * jax.random.normal(k5, (cout,), jnp.float32)
        rvar = jnp.abs(jax.random.normal(k6, (cout,), jnp.float32)) + 0.5
        params.append(dict(w=w, b=b, gamma=gamma, beta=beta,
                           rmean=rmean, rvar=rvar))
    return params


def postnet_reference(x_ncw, params, eps=1e-5):
    """Pure-JAX f32 reference (lax.conv) for correctness checking."""
    x = x_ncw
    n = len(params)
    for i, p in enumerate(params):
        pad = (p["w"].shape[2] - 1) // 2
        y = jax.lax.conv_general_dilated(
            x, p["w"], window_strides=(1,), padding=[(pad, pad)],
            dimension_numbers=("NCH", "OIH", "NCH"))
        y = y + p["b"][None, :, None]
        y = (y - p["rmean"][None, :, None]) / jnp.sqrt(
            p["rvar"][None, :, None] + eps)
        y = y * p["gamma"][None, :, None] + p["beta"][None, :, None]
        if i < n - 1:
            y = jnp.tanh(y)
        x = y
    return x


if __name__ == "__main__":
    # Small hparams: n_mel_channels=16, postnet_embedding_dim=32,
    # postnet_kernel_size=5, postnet_n_convolutions=5.  T=40 with t_tile=16
    # exercises the multi-tile (halo + boundary-mask) path.
    B, N_MEL, T = 2, 16, 40
    EMB, KSIZE, NCONV = 32, 5, 5

    key = jax.random.PRNGKey(0)
    key, xk = jax.random.split(key)
    x = jax.random.normal(xk, (B, N_MEL, T), jnp.float32)
    params = make_postnet_params(key, N_MEL, EMB, KSIZE, NCONV)

    fwd = jax.jit(functools.partial(postnet_forward, t_tile=16))
    try:
        out = jax.block_until_ready(fwd(x, params))
    except Exception:
        # Fallback for JAX builds where pl.Buffered(1) single-buffering of the
        # grid-invariant weight/shift inputs is not supported.
        fwd = jax.jit(functools.partial(postnet_forward, t_tile=16,
                                        single_buffer_consts=False))
        out = jax.block_until_ready(fwd(x, params))
    ref = jax.block_until_ready(postnet_reference(x, params))

    assert out.shape == (B, N_MEL, T), out.shape
    # bf16 activations/weights (f32 accumulation) -> looser tolerance vs f32 ref.
    err = float(jnp.max(jnp.abs(out - ref)))
    assert jnp.allclose(out, ref, atol=5e-2, rtol=5e-2), err
    print("KERNEL_OK")
</pallas_src>

<mosaic_0001>
module attributes {stable_mosaic.version = 11 : i64} {
  func.func @postnet_fused_kernel(%arg0: i32, %arg1: i32, %arg2: memref<1x1x96x128xbf16, #tpu.memory_space<vmem>>, %arg3: memref<5x640x128xbf16, #tpu.memory_space<vmem>>, %arg4: memref<5x1x128xf32, #tpu.memory_space<vmem>>, %arg5: memref<1x1x16x128xf32, #tpu.memory_space<vmem>>, %arg6: memref<96x128xbf16, #tpu.memory_space<vmem>>, %arg7: memref<96x128xbf16, #tpu.memory_space<vmem>>) attributes {dimension_semantics = [#tpu.dimension_semantics<parallel>, #tpu.dimension_semantics<parallel>], iteration_bounds = array<i64: 2, 3>, scalar_prefetch = 0 : i64, scratch_operands = 2 : i64, tpu.core_type = #tpu.core_type<tc>, window_params = [{transform_indices = @transform_0, window_bounds = array<i64: 1, 1, 96, 128>}, {pipeline_mode = #tpu.pipeline_mode<synchronous>, transform_indices = @transform_1, window_bounds = array<i64: 5, 640, 128>}, {pipeline_mode = #tpu.pipeline_mode<synchronous>, transform_indices = @transform_2, window_bounds = array<i64: 5, 1, 128>}, {transform_indices = @transform_3, window_bounds = array<i64: 1, 1, 16, 128>}]} {
    %c16_i32 = arith.constant 16 : i32
    %0 = arith.muli %arg1, %c16_i32 : i32
    %c40_i32 = arith.constant 40 : i32
    %1 = arith.cmpi slt, %0, %c40_i32 : i32
    %c16_i32_0 = arith.constant 16 : i32
    %2 = arith.addi %0, %c16_i32_0 : i32
    %c40_i32_1 = arith.constant 40 : i32
    %3 = arith.addi %2, %c40_i32_1 : i32
    %c40_i32_2 = arith.constant 40 : i32
    %4 = arith.cmpi sgt, %3, %c40_i32_2 : i32
    %5 = arith.ori %1, %4 : i1
    %c0 = arith.constant 0 : index
    %c0_3 = arith.constant 0 : index
    %c6 = arith.constant 6 : index
    %c0_4 = arith.constant 0 : index
    %6 = vector.load %arg2[%c0, %c0_3, %c6, %c0_4] : memref<1x1x96x128xbf16, #tpu.memory_space<vmem>>, vector<1x1x80x128xbf16>
    %7 = vector.shape_cast %6 : vector<1x1x80x128xbf16> to vector<80x128xbf16>
    %c0_5 = arith.constant 0 : index
    %c0_6 = arith.constant 0 : index
    %c7 = arith.constant 7 : index
    %c0_7 = arith.constant 0 : index
    %8 = vector.load %arg2[%c0_5, %c0_6, %c7, %c0_7] : memref<1x1x96x128xbf16, #tpu.memory_space<vmem>>, vector<1x1x80x128xbf16>
    %9 = vector.shape_cast %8 : vector<1x1x80x128xbf16> to vector<80x128xbf16>
    %c0_8 = arith.constant 0 : index
    %c0_9 = arith.constant 0 : index
    %c8 = arith.constant 8 : index
    %c0_10 = arith.constant 0 : index
    %10 = vector.load %arg2[%c0_8, %c0_9, %c8, %c0_10] : memref<1x1x96x128xbf16, #tpu.memory_space<vmem>>, vector<1x1x80x128xbf16>
    %11 = vector.shape_cast %10 : vector<1x1x80x128xbf16> to vector<80x128xbf16>
    %c0_11 = arith.constant 0 : index
    %c0_12 = arith.constant 0 : index
    %c9 = arith.constant 9 : index
    %c0_13 = arith.constant 0 : index
    %12 = vector.load %arg2[%c0_11, %c0_12, %c9, %c0_13] : memref<1x1x96x128xbf16, #tpu.memory_space<vmem>>, vector<1x1x80x128xbf16>
    %13 = vector.shape_cast %12 : vector<1x1x80x128xbf16> to vector<80x128xbf16>
    %c0_14 = arith.constant 0 : index
    %c0_15 = arith.constant 0 : index
    %c10 = arith.constant 10 : index
    %c0_16 = arith.constant 0 : index
    %14 = vector.load %arg2[%c0_14, %c0_15, %c10, %c0_16] : memref<1x1x96x128xbf16, #tpu.memory_space<vmem>>, vector<1x1x80x128xbf16>
    %15 = vector.shape_cast %14 : vector<1x1x80x128xbf16> to vector<80x128xbf16>
    %16 = tpu.concatenate %7, %9, %11, %13, %15 in 1 : vector<80x128xbf16>, vector<80x128xbf16>, vector<80x128xbf16>, vector<80x128xbf16>, vector<80x128xbf16> -> vector<80x640xbf16>
    %c0_17 = arith.constant 0 : index
    %c0_18 = arith.constant 0 : index
    %c0_19 = arith.constant 0 : index
    %17 = vector.load %arg3[%c0_17, %c0_18, %c0_19] : memref<5x640x128xbf16, #tpu.memory_space<vmem>>, vector<1x640x128xbf16>
    %18 = vector.shape_cast %17 : vector<1x640x128xbf16> to vector<640x128xbf16>
    %cst = arith.constant dense<0.000000e+00> : vector<80x128xf32>
    %19 = tpu.matmul %16, %18, %cst {dimension_numbers = #tpu.dot_dimension_numbers<[1], [0], [0], [1], [0, 0, 1, 1], [], []>} : vector<80x640xbf16>, vector<640x128xbf16>, vector<80x128xf32> -> vector<80x128xf32>
    %c0_20 = arith.constant 0 : index
    %c0_21 = arith.constant 0 : index
    %c0_22 = arith.constant 0 : index
    %20 = vector.load %arg4[%c0_20, %c0_21, %c0_22] : memref<5x1x128xf32, #tpu.memory_space<vmem>>, vector<1x1x128xf32>
    %21 = vector.shape_cast %20 : vector<1x1x128xf32> to vector<1x128xf32>
    %22 = vector.broadcast %21 : vector<1x128xf32> to vector<80x128xf32>
    %23 = arith.addf %19, %22 : vector<80x128xf32>
    %24 = math.tanh %23 : vector<80x128xf32>
    %25 = arith.truncf %24 : vector<80x128xf32> to vector<80x128xbf16>
    %c8_23 = arith.constant 8 : index
    %c0_24 = arith.constant 0 : index
    %26 = vector.load %arg6[%c8_23, %c0_24] : memref<96x128xbf16, #tpu.memory_space<vmem>>, vector<80x128xbf16>
    tpu.vector_store %arg6[%c8_23, %c0_24], %25 {strides = array<i32>} : memref<96x128xbf16, #tpu.memory_space<vmem>>, vector<80x128xbf16>,
    %27 = arith.extui %5 : i1 to i32
    %c0_i32 = arith.constant 0 : i32
    %28 = arith.cmpi ne, %27, %c0_i32 : i32
    scf.if %28 {
      %99 = tpu.iota {dimensions = array<i32: 0>} : vector<80x1xi32>
      %c40_i32_82 = arith.constant 40 : i32
      %100 = arith.subi %0, %c40_i32_82 : i32
      %c8_i32 = arith.constant 8 : i32
      %101 = arith.addi %100, %c8_i32 : i32
      %102 = vector.broadcast %101 : i32 to vector<80x1xi32>
      %103 = arith.addi %102, %99 : vector<80x1xi32>
      %c0_i32_83 = arith.constant 0 : i32
      %104 = vector.broadcast %c0_i32_83 : i32 to vector<80x1xi32>
      %105 = arith.cmpi sge, %103, %104 : vector<80x1xi32>
      %c40_i32_84 = arith.constant 40 : i32
      %106 = vector.broadcast %c40_i32_84 : i32 to vector<80x1xi32>
      %107 = arith.cmpi slt, %103, %106 : vector<80x1xi32>
      %108 = arith.andi %105, %107 : vector<80x1xi1>
      %cst_85 = arith.constant 0.000000e+00 : f32
      %109 = vector.shape_cast %108 : vector<80x1xi1> to vector<80x1xi1>
      %110 = vector.broadcast %109 : vector<80x1xi1> to vector<80x128xi1>
      %111 = vector.broadcast %cst_85 : f32 to vector<80x128xf32>
      %112 = arith.select %110, %24, %111 : vector<80x128xi1>, vector<80x128xf32>
      %113 = arith.truncf %112 : vector<80x128xf32> to vector<80x128xbf16>
      %c8_86 = arith.constant 8 : index
      %c0_87 = arith.constant 0 : index
      %114 = vector.load %arg6[%c8_86, %c0_87] : memref<96x128xbf16, #tpu.memory_space<vmem>>, vector<80x128xbf16>
      tpu.vector_store %arg6[%c8_86, %c0_87], %113 {strides = array<i32>} : memref<96x128xbf16, #tpu.memory_space<vmem>>, vector<80x128xbf16>,
    } else {
    }
    %c14 = arith.constant 14 : index
    %c0_25 = arith.constant 0 : index
    %29 = vector.load %arg6[%c14, %c0_25] : memref<96x128xbf16, #tpu.memory_space<vmem>>, vector<64x128xbf16>
    %c15 = arith.constant 15 : index
    %c0_26 = arith.constant 0 : index
    %30 = vector.load %arg6[%c15, %c0_26] : memref<96x128xbf16, #tpu.memory_space<vmem>>, vector<64x128xbf16>
    %c16 = arith.constant 16 : index
    %c0_27 = arith.constant 0 : index
    %31 = vector.load %arg6[%c16, %c0_27] : memref<96x128xbf16, #tpu.memory_space<vmem>>, vector<64x128xbf16>
    %c17 = arith.constant 17 : index
    %c0_28 = arith.constant 0 : index
    %32 = vector.load %arg6[%c17, %c0_28] : memref<96x128xbf16, #tpu.memory_space<vmem>>, vector<64x128xbf16>
    %c18 = arith.constant 18 : index
    %c0_29 = arith.constant 0 : index
    %33 = vector.load %arg6[%c18, %c0_29] : memref<96x128xbf16, #tpu.memory_space<vmem>>, vector<64x128xbf16>
    %34 = tpu.concatenate %29, %30, %31, %32, %33 in 1 : vector<64x128xbf16>, vector<64x128xbf16>, vector<64x128xbf16>, vector<64x128xbf16>, vector<64x128xbf16> -> vector<64x640xbf16>
    %c1 = arith.constant 1 : index
    %c0_30 = arith.constant 0 : index
    %c0_31 = arith.constant 0 : index
    %35 = vector.load %arg3[%c1, %c0_30, %c0_31] : memref<5x640x128xbf16, #tpu.memory_space<vmem>>, vector<1x640x128xbf16>
    %36 = vector.shape_cast %35 : vector<1x640x128xbf16> to vector<640x128xbf16>
    %cst_32 = arith.constant dense<0.000000e+00> : vector<64x128xf32>
    %37 = tpu.matmul %34, %36, %cst_32 {dimension_numbers = #tpu.dot_dimension_numbers<[1], [0], [0], [1], [0, 0, 1, 1], [], []>} : vector<64x640xbf16>, vector<640x128xbf16>, vector<64x128xf32> -> vector<64x128xf32>
    %c1_33 = arith.constant 1 : index
    %c0_34 = arith.constant 0 : index
    %c0_35 = arith.constant 0 : index
    %38 = vector.load %arg4[%c1_33, %c0_34, %c0_35] : memref<5x1x128xf32, #tpu.memory_space<vmem>>, vector<1x1x128xf32>
    %39 = vector.shape_cast %38 : vector<1x1x128xf32> to vector<1x128xf32>
    %40 = vector.broadcast %39 : vector<1x128xf32> to vector<64x128xf32>
    %41 = arith.addf %37, %40 : vector<64x128xf32>
    %42 = math.tanh %41 : vector<64x128xf32>
    %43 = arith.truncf %42 : vector<64x128xf32> to vector<64x128xbf16>
    %c16_36 = arith.constant 16 : index
    %c0_37 = arith.constant 0 : index
    %44 = vector.load %arg7[%c16_36, %c0_37] : memref<96x128xbf16, #tpu.memory_space<vmem>>, vector<64x128xbf16>
    tpu.vector_store %arg7[%c16_36, %c0_37], %43 {strides = array<i32>} : memref<96x128xbf16, #tpu.memory_space<vmem>>, vector<64x128xbf16>,
    %45 = arith.extui %5 : i1 to i32
    %c0_i32_38 = arith.constant 0 : i32
    %46 = arith.cmpi ne, %45, %c0_i32_38 : i32
    scf.if %46 {
      %99 = tpu.iota {dimensions = array<i32: 0>} : vector<64x1xi32>
      %c40_i32_82 = arith.constant 40 : i32
      %100 = arith.subi %0, %c40_i32_82 : i32
      %c16_i32_83 = arith.constant 16 : i32
      %101 = arith.addi %100, %c16_i32_83 : i32
      %102 = vector.broadcast %101 : i32 to vector<64x1xi32>
      %103 = arith.addi %102, %99 : vector<64x1xi32>
      %c0_i32_84 = arith.constant 0 : i32
      %104 = vector.broadcast %c0_i32_84 : i32 to vector<64x1xi32>
      %105 = arith.cmpi sge, %103, %104 : vector<64x1xi32>
      %c40_i32_85 = arith.constant 40 : i32
      %106 = vector.broadcast %c40_i32_85 : i32 to vector<64x1xi32>
      %107 = arith.cmpi slt, %103, %106 : vector<64x1xi32>
      %108 = arith.andi %105, %107 : vector<64x1xi1>
      %cst_86 = arith.constant 0.000000e+00 : f32
      %109 = vector.shape_cast %108 : vector<64x1xi1> to vector<64x1xi1>
      %110 = vector.broadcast %109 : vector<64x1xi1> to vector<64x128xi1>
      %111 = vector.broadcast %cst_86 : f32 to vector<64x128xf32>
      %112 = arith.select %110, %42, %111 : vector<64x128xi1>, vector<64x128xf32>
      %113 = arith.truncf %112 : vector<64x128xf32> to vector<64x128xbf16>
      %c16_87 = arith.constant 16 : index
      %c0_88 = arith.constant 0 : index
      %114 = vector.load %arg7[%c16_87, %c0_88] : memref<96x128xbf16, #tpu.memory_space<vmem>>, vector<64x128xbf16>
      tpu.vector_store %arg7[%c16_87, %c0_88], %113 {strides = array<i32>} : memref<96x128xbf16, #tpu.memory_space<vmem>>, vector<64x128xbf16>,
    } else {
    }
    %c22 = arith.constant 22 : index
    %c0_39 = arith.constant 0 : index
    %47 = vector.load %arg7[%c22, %c0_39] : memref<96x128xbf16, #tpu.memory_space<vmem>>, vector<48x128xbf16>
    %c23 = arith.constant 23 : index
    %c0_40 = arith.constant 0 : index
    %48 = vector.load %arg7[%c23, %c0_40] : memref<96x128xbf16, #tpu.memory_space<vmem>>, vector<48x128xbf16>
    %c24 = arith.constant 24 : index
    %c0_41 = arith.constant 0 : index
    %49 = vector.load %arg7[%c24, %c0_41] : memref<96x128xbf16, #tpu.memory_space<vmem>>, vector<48x128xbf16>
    %c25 = arith.constant 25 : index
    %c0_42 = arith.constant 0 : index
    %50 = vector.load %arg7[%c25, %c0_42] : memref<96x128xbf16, #tpu.memory_space<vmem>>, vector<48x128xbf16>
    %c26 = arith.constant 26 : index
    %c0_43 = arith.constant 0 : index
    %51 = vector.load %arg7[%c26, %c0_43] : memref<96x128xbf16, #tpu.memory_space<vmem>>, vector<48x128xbf16>
    %52 = tpu.concatenate %47, %48, %49, %50, %51 in 1 : vector<48x128xbf16>, vector<48x128xbf16>, vector<48x128xbf16>, vector<48x128xbf16>, vector<48x128xbf16> -> vector<48x640xbf16>
    %c2 = arith.constant 2 : index
    %c0_44 = arith.constant 0 : index
    %c0_45 = arith.constant 0 : index
    %53 = vector.load %arg3[%c2, %c0_44, %c0_45] : memref<5x640x128xbf16, #tpu.memory_space<vmem>>, vector<1x640x128xbf16>
    %54 = vector.shape_cast %53 : vector<1x640x128xbf16> to vector<640x128xbf16>
    %cst_46 = arith.constant dense<0.000000e+00> : vector<48x128xf32>
    %55 = tpu.matmul %52, %54, %cst_46 {dimension_numbers = #tpu.dot_dimension_numbers<[1], [0], [0], [1], [0, 0, 1, 1], [], []>} : vector<48x640xbf16>, vector<640x128xbf16>, vector<48x128xf32> -> vector<48x128xf32>
    %c2_47 = arith.constant 2 : index
    %c0_48 = arith.constant 0 : index
    %c0_49 = arith.constant 0 : index
    %56 = vector.load %arg4[%c2_47, %c0_48, %c0_49] : memref<5x1x128xf32, #tpu.memory_space<vmem>>, vector<1x1x128xf32>
    %57 = vector.shape_cast %56 : vector<1x1x128xf32> to vector<1x128xf32>
    %58 = vector.broadcast %57 : vector<1x128xf32> to vector<48x128xf32>
    %59 = arith.addf %55, %58 : vector<48x128xf32>
    %60 = math.tanh %59 : vector<48x128xf32>
    %61 = arith.truncf %60 : vector<48x128xf32> to vector<48x128xbf16>
    %c24_50 = arith.constant 24 : index
    %c0_51 = arith.constant 0 : index
    %62 = vector.load %arg6[%c24_50, %c0_51] : memref<96x128xbf16, #tpu.memory_space<vmem>>, vector<48x128xbf16>
    tpu.vector_store %arg6[%c24_50, %c0_51], %61 {strides = array<i32>} : memref<96x128xbf16, #tpu.memory_space<vmem>>, vector<48x128xbf16>,
    %63 = arith.extui %5 : i1 to i32
    %c0_i32_52 = arith.constant 0 : i32
    %64 = arith.cmpi ne, %63, %c0_i32_52 : i32
    scf.if %64 {
      %99 = tpu.iota {dimensions = array<i32: 0>} : vector<48x1xi32>
      %c40_i32_82 = arith.constant 40 : i32
      %100 = arith.subi %0, %c40_i32_82 : i32
      %c24_i32 = arith.constant 24 : i32
      %101 = arith.addi %100, %c24_i32 : i32
      %102 = vector.broadcast %101 : i32 to vector<48x1xi32>
      %103 = arith.addi %102, %99 : vector<48x1xi32>
      %c0_i32_83 = arith.constant 0 : i32
      %104 = vector.broadcast %c0_i32_83 : i32 to vector<48x1xi32>
      %105 = arith.cmpi sge, %103, %104 : vector<48x1xi32>
      %c40_i32_84 = arith.constant 40 : i32
      %106 = vector.broadcast %c40_i32_84 : i32 to vector<48x1xi32>
      %107 = arith.cmpi slt, %103, %106 : vector<48x1xi32>
      %108 = arith.andi %105, %107 : vector<48x1xi1>
      %cst_85 = arith.constant 0.000000e+00 : f32
      %109 = vector.shape_cast %108 : vector<48x1xi1> to vector<48x1xi1>
      %110 = vector.broadcast %109 : vector<48x1xi1> to vector<48x128xi1>
      %111 = vector.broadcast %cst_85 : f32 to vector<48x128xf32>
      %112 = arith.select %110, %60, %111 : vector<48x128xi1>, vector<48x128xf32>
      %113 = arith.truncf %112 : vector<48x128xf32> to vector<48x128xbf16>
      %c24_86 = arith.constant 24 : index
      %c0_87 = arith.constant 0 : index
      %114 = vector.load %arg6[%c24_86, %c0_87] : memref<96x128xbf16, #tpu.memory_space<vmem>>, vector<48x128xbf16>
      tpu.vector_store %arg6[%c24_86, %c0_87], %113 {strides = array<i32>} : memref<96x128xbf16, #tpu.memory_space<vmem>>, vector<48x128xbf16>,
    } else {
    }
    %c30 = arith.constant 30 : index
    %c0_53 = arith.constant 0 : index
    %65 = vector.load %arg6[%c30, %c0_53] : memref<96x128xbf16, #tpu.memory_space<vmem>>, vector<32x128xbf16>
    %c31 = arith.constant 31 : index
    %c0_54 = arith.constant 0 : index
    %66 = vector.load %arg6[%c31, %c0_54] : memref<96x128xbf16, #tpu.memory_space<vmem>>, vector<32x128xbf16>
    %c32 = arith.constant 32 : index
    %c0_55 = arith.constant 0 : index
    %67 = vector.load %arg6[%c32, %c0_55] : memref<96x128xbf16, #tpu.memory_space<vmem>>, vector<32x128xbf16>
    %c33 = arith.constant 33 : index
    %c0_56 = arith.constant 0 : index
    %68 = vector.load %arg6[%c33, %c0_56] : memref<96x128xbf16, #tpu.memory_space<vmem>>, vector<32x128xbf16>
    %c34 = arith.constant 34 : index
    %c0_57 = arith.constant 0 : index
    %69 = vector.load %arg6[%c34, %c0_57] : memref<96x128xbf16, #tpu.memory_space<vmem>>, vector<32x128xbf16>
    %70 = tpu.concatenate %65, %66, %67, %68, %69 in 1 : vector<32x128xbf16>, vector<32x128xbf16>, vector<32x128xbf16>, vector<32x128xbf16>, vector<32x128xbf16> -> vector<32x640xbf16>
    %c3 = arith.constant 3 : index
    %c0_58 = arith.constant 0 : index
    %c0_59 = arith.constant 0 : index
    %71 = vector.load %arg3[%c3, %c0_58, %c0_59] : memref<5x640x128xbf16, #tpu.memory_space<vmem>>, vector<1x640x128xbf16>
    %72 = vector.shape_cast %71 : vector<1x640x128xbf16> to vector<640x128xbf16>
    %cst_60 = arith.constant dense<0.000000e+00> : vector<32x128xf32>
    %73 = tpu.matmul %70, %72, %cst_60 {dimension_numbers = #tpu.dot_dimension_numbers<[1], [0], [0], [1], [0, 0, 1, 1], [], []>} : vector<32x640xbf16>, vector<640x128xbf16>, vector<32x128xf32> -> vector<32x128xf32>
    %c3_61 = arith.constant 3 : index
    %c0_62 = arith.constant 0 : index
    %c0_63 = arith.constant 0 : index
    %74 = vector.load %arg4[%c3_61, %c0_62, %c0_63] : memref<5x1x128xf32, #tpu.memory_space<vmem>>, vector<1x1x128xf32>
    %75 = vector.shape_cast %74 : vector<1x1x128xf32> to vector<1x128xf32>
    %76 = vector.broadcast %75 : vector<1x128xf32> to vector<32x128xf32>
    %77 = arith.addf %73, %76 : vector<32x128xf32>
    %78 = math.tanh %77 : vector<32x128xf32>
    %79 = arith.truncf %78 : vector<32x128xf32> to vector<32x128xbf16>
    %c32_64 = arith.constant 32 : index
    %c0_65 = arith.constant 0 : index
    %80 = vector.load %arg7[%c32_64, %c0_65] : memref<96x128xbf16, #tpu.memory_space<vmem>>, vector<32x128xbf16>
    tpu.vector_store %arg7[%c32_64, %c0_65], %79 {strides = array<i32>} : memref<96x128xbf16, #tpu.memory_space<vmem>>, vector<32x128xbf16>,
    %81 = arith.extui %5 : i1 to i32
    %c0_i32_66 = arith.constant 0 : i32
    %82 = arith.cmpi ne, %81, %c0_i32_66 : i32
    scf.if %82 {
      %99 = tpu.iota {dimensions = array<i32: 0>} : vector<32x1xi32>
      %c40_i32_82 = arith.constant 40 : i32
      %100 = arith.subi %0, %c40_i32_82 : i32
      %c32_i32 = arith.constant 32 : i32
      %101 = arith.addi %100, %c32_i32 : i32
      %102 = vector.broadcast %101 : i32 to vector<32x1xi32>
      %103 = arith.addi %102, %99 : vector<32x1xi32>
      %c0_i32_83 = arith.constant 0 : i32
      %104 = vector.broadcast %c0_i32_83 : i32 to vector<32x1xi32>
      %105 = arith.cmpi sge, %103, %104 : vector<32x1xi32>
      %c40_i32_84 = arith.constant 40 : i32
      %106 = vector.broadcast %c40_i32_84 : i32 to vector<32x1xi32>
      %107 = arith.cmpi slt, %103, %106 : vector<32x1xi32>
      %108 = arith.andi %105, %107 : vector<32x1xi1>
      %cst_85 = arith.constant 0.000000e+00 : f32
      %109 = vector.shape_cast %108 : vector<32x1xi1> to vector<32x1xi1>
      %110 = vector.broadcast %109 : vector<32x1xi1> to vector<32x128xi1>
      %111 = vector.broadcast %cst_85 : f32 to vector<32x128xf32>
      %112 = arith.select %110, %78, %111 : vector<32x128xi1>, vector<32x128xf32>
      %113 = arith.truncf %112 : vector<32x128xf32> to vector<32x128xbf16>
      %c32_86 = arith.constant 32 : index
      %c0_87 = arith.constant 0 : index
      %114 = vector.load %arg7[%c32_86, %c0_87] : memref<96x128xbf16, #tpu.memory_space<vmem>>, vector<32x128xbf16>
      tpu.vector_store %arg7[%c32_86, %c0_87], %113 {strides = array<i32>} : memref<96x128xbf16, #tpu.memory_space<vmem>>, vector<32x128xbf16>,
    } else {
    }
    %c38 = arith.constant 38 : index
    %c0_67 = arith.constant 0 : index
    %83 = vector.load %arg7[%c38, %c0_67] : memref<96x128xbf16, #tpu.memory_space<vmem>>, vector<16x128xbf16>
    %c39 = arith.constant 39 : index
    %c0_68 = arith.constant 0 : index
    %84 = vector.load %arg7[%c39, %c0_68] : memref<96x128xbf16, #tpu.memory_space<vmem>>, vector<16x128xbf16>
    %c40 = arith.constant 40 : index
    %c0_69 = arith.constant 0 : index
    %85 = vector.load %arg7[%c40, %c0_69] : memref<96x128xbf16, #tpu.memory_space<vmem>>, vector<16x128xbf16>
    %c41 = arith.constant 41 : index
    %c0_70 = arith.constant 0 : index
    %86 = vector.load %arg7[%c41, %c0_70] : memref<96x128xbf16, #tpu.memory_space<vmem>>, vector<16x128xbf16>
    %c42 = arith.constant 42 : index
    %c0_71 = arith.constant 0 : index
    %87 = vector.load %arg7[%c42, %c0_71] : memref<96x128xbf16, #tpu.memory_space<vmem>>, vector<16x128xbf16>
    %88 = tpu.concatenate %83, %84, %85, %86, %87 in 1 : vector<16x128xbf16>, vector<16x128xbf16>, vector<16x128xbf16>, vector<16x128xbf16>, vector<16x128xbf16> -> vector<16x640xbf16>
    %c4 = arith.constant 4 : index
    %c0_72 = arith.constant 0 : index
    %c0_73 = arith.constant 0 : index
    %89 = vector.load %arg3[%c4, %c0_72, %c0_73] : memref<5x640x128xbf16, #tpu.memory_space<vmem>>, vector<1x640x128xbf16>
    %90 = vector.shape_cast %89 : vector<1x640x128xbf16> to vector<640x128xbf16>
    %cst_74 = arith.constant dense<0.000000e+00> : vector<16x128xf32>
    %91 = tpu.matmul %88, %90, %cst_74 {dimension_numbers = #tpu.dot_dimension_numbers<[1], [0], [0], [1], [0, 0, 1, 1], [], []>} : vector<16x640xbf16>, vector<640x128xbf16>, vector<16x128xf32> -> vector<16x128xf32>
    %c4_75 = arith.constant 4 : index
    %c0_76 = arith.constant 0 : index
    %c0_77 = arith.constant 0 : index
    %92 = vector.load %arg4[%c4_75, %c0_76, %c0_77] : memref<5x1x128xf32, #tpu.memory_space<vmem>>, vector<1x1x128xf32>
    %93 = vector.shape_cast %92 : vector<1x1x128xf32> to vector<1x128xf32>
    %94 = vector.broadcast %93 : vector<1x128xf32> to vector<16x128xf32>
    %95 = arith.addf %91, %94 : vector<16x128xf32>
    %c0_78 = arith.constant 0 : index
    %c0_79 = arith.constant 0 : index
    %c0_80 = arith.constant 0 : index
    %c0_81 = arith.constant 0 : index
    %96 = vector.load %arg5[%c0_78, %c0_79, %c0_80, %c0_81] : memref<1x1x16x128xf32, #tpu.memory_space<vmem>>, vector<1x1x16x128xf32>
    %97 = vector.shape_cast %96 : vector<1x1x16x128xf32> to vector<16x128xf32>
    %98 = vector.shape_cast %95 : vector<16x128xf32> to vector<1x1x16x128xf32>
    tpu.vector_store %arg5[%c0_78, %c0_79, %c0_80, %c0_81], %98 {strides = array<i32>} : memref<1x1x16x128xf32, #tpu.memory_space<vmem>>, vector<1x1x16x128xf32>,
    return
  }
  func.func @transform_0(%arg0: i32, %arg1: i32) -> (i32, i32, i32, i32) {
    %c0_i32 = arith.constant 0 : i32
    %c0_i32_0 = arith.constant 0 : i32
    %c0_i32_1 = arith.constant 0 : i32
    return %arg0, %arg1, %c0_i32, %c0_i32_0 : i32, i32, i32, i32
  }
  func.func @transform_1(%arg0: i32, %arg1: i32) -> (i32, i32, i32) {
    %c0_i32 = arith.constant 0 : i32
    %c0_i32_0 = arith.constant 0 : i32
    %c0_i32_1 = arith.constant 0 : i32
    %c0_i32_2 = arith.constant 0 : i32
    return %c0_i32, %c0_i32_0, %c0_i32_1 : i32, i32, i32
  }
  func.func @transform_2(%arg0: i32, %arg1: i32) -> (i32, i32, i32) {
    %c0_i32 = arith.constant 0 : i32
    %c0_i32_0 = arith.constant 0 : i32
    %c0_i32_1 = arith.constant 0 : i32
    %c0_i32_2 = arith.constant 0 : i32
    return %c0_i32, %c0_i32_0, %c0_i32_1 : i32, i32, i32
  }
  func.func @transform_3(%arg0: i32, %arg1: i32) -> (i32, i32, i32, i32) {
    %c0_i32 = arith.constant 0 : i32
    %c0_i32_0 = arith.constant 0 : i32
    %c0_i32_1 = arith.constant 0 : i32
    return %arg0, %arg1, %c0_i32, %c0_i32_0 : i32, i32, i32, i32
  }
}

module attributes {stable_mosaic.version = 11 : i64} {
  func.func @postnet_fused_kernel(%arg0: i32, %arg1: i32, %arg2: memref<1x1x96x128xbf16, #tpu.memory_space<vmem>>, %arg3: memref<5x640x128xbf16, #tpu.memory_space<vmem>>, %arg4: memref<5x1x128xf32, #tpu.memory_space<vmem>>, %arg5: memref<1x1x16x128xf32, #tpu.memory_space<vmem>>, %arg6: memref<96x128xbf16, #tpu.memory_space<vmem>>, %arg7: memref<96x128xbf16, #tpu.memory_space<vmem>>) attributes {dimension_semantics = [#tpu.dimension_semantics<parallel>, #tpu.dimension_semantics<parallel>], iteration_bounds = array<i64: 2, 3>, scalar_prefetch = 0 : i64, scratch_operands = 2 : i64, tpu.core_type = #tpu.core_type<tc>, window_params = [{transform_indices = @transform_0, window_bounds = array<i64: 1, 1, 96, 128>}, {pipeline_mode = #tpu.pipeline_mode<synchronous>, transform_indices = @transform_1, window_bounds = array<i64: 5, 640, 128>}, {pipeline_mode = #tpu.pipeline_mode<synchronous>, transform_indices = @transform_2, window_bounds = array<i64: 5, 1, 128>}, {transform_indices = @transform_3, window_bounds = array<i64: 1, 1, 16, 128>}]} {
    %c16_i32 = arith.constant 16 : i32
    %0 = arith.muli %arg1, %c16_i32 : i32
    %c40_i32 = arith.constant 40 : i32
    %1 = arith.cmpi slt, %0, %c40_i32 : i32
    %c16_i32_0 = arith.constant 16 : i32
    %2 = arith.addi %0, %c16_i32_0 : i32
    %c40_i32_1 = arith.constant 40 : i32
    %3 = arith.addi %2, %c40_i32_1 : i32
    %c40_i32_2 = arith.constant 40 : i32
    %4 = arith.cmpi sgt, %3, %c40_i32_2 : i32
    %5 = arith.ori %1, %4 : i1
    %c0 = arith.constant 0 : index
    %c0_3 = arith.constant 0 : index
    %c6 = arith.constant 6 : index
    %c0_4 = arith.constant 0 : index
    %6 = vector.load %arg2[%c0, %c0_3, %c6, %c0_4] : memref<1x1x96x128xbf16, #tpu.memory_space<vmem>>, vector<1x1x80x128xbf16>
    %7 = vector.shape_cast %6 : vector<1x1x80x128xbf16> to vector<80x128xbf16>
    %c0_5 = arith.constant 0 : index
    %c0_6 = arith.constant 0 : index
    %c7 = arith.constant 7 : index
    %c0_7 = arith.constant 0 : index
    %8 = vector.load %arg2[%c0_5, %c0_6, %c7, %c0_7] : memref<1x1x96x128xbf16, #tpu.memory_space<vmem>>, vector<1x1x80x128xbf16>
    %9 = vector.shape_cast %8 : vector<1x1x80x128xbf16> to vector<80x128xbf16>
    %c0_8 = arith.constant 0 : index
    %c0_9 = arith.constant 0 : index
    %c8 = arith.constant 8 : index
    %c0_10 = arith.constant 0 : index
    %10 = vector.load %arg2[%c0_8, %c0_9, %c8, %c0_10] : memref<1x1x96x128xbf16, #tpu.memory_space<vmem>>, vector<1x1x80x128xbf16>
    %11 = vector.shape_cast %10 : vector<1x1x80x128xbf16> to vector<80x128xbf16>
    %c0_11 = arith.constant 0 : index
    %c0_12 = arith.constant 0 : index
    %c9 = arith.constant 9 : index
    %c0_13 = arith.constant 0 : index
    %12 = vector.load %arg2[%c0_11, %c0_12, %c9, %c0_13] : memref<1x1x96x128xbf16, #tpu.memory_space<vmem>>, vector<1x1x80x128xbf16>
    %13 = vector.shape_cast %12 : vector<1x1x80x128xbf16> to vector<80x128xbf16>
    %c0_14 = arith.constant 0 : index
    %c0_15 = arith.constant 0 : index
    %c10 = arith.constant 10 : index
    %c0_16 = arith.constant 0 : index
    %14 = vector.load %arg2[%c0_14, %c0_15, %c10, %c0_16] : memref<1x1x96x128xbf16, #tpu.memory_space<vmem>>, vector<1x1x80x128xbf16>
    %15 = vector.shape_cast %14 : vector<1x1x80x128xbf16> to vector<80x128xbf16>
    %16 = tpu.concatenate %7, %9, %11, %13, %15 in 1 : vector<80x128xbf16>, vector<80x128xbf16>, vector<80x128xbf16>, vector<80x128xbf16>, vector<80x128xbf16> -> vector<80x640xbf16>
    %c0_17 = arith.constant 0 : index
    %c0_18 = arith.constant 0 : index
    %c0_19 = arith.constant 0 : index
    %17 = vector.load %arg3[%c0_17, %c0_18, %c0_19] : memref<5x640x128xbf16, #tpu.memory_space<vmem>>, vector<1x640x128xbf16>
    %18 = vector.shape_cast %17 : vector<1x640x128xbf16> to vector<640x128xbf16>
    %cst = arith.constant dense<0.000000e+00> : vector<80x128xf32>
    %19 = tpu.matmul %16, %18, %cst {dimension_numbers = #tpu.dot_dimension_numbers<[1], [0], [0], [1], [0, 0, 1, 1], [], []>} : vector<80x640xbf16>, vector<640x128xbf16>, vector<80x128xf32> -> vector<80x128xf32>
    %c0_20 = arith.constant 0 : index
    %c0_21 = arith.constant 0 : index
    %c0_22 = arith.constant 0 : index
    %20 = vector.load %arg4[%c0_20, %c0_21, %c0_22] : memref<5x1x128xf32, #tpu.memory_space<vmem>>, vector<1x1x128xf32>
    %21 = vector.shape_cast %20 : vector<1x1x128xf32> to vector<1x128xf32>
    %22 = vector.broadcast %21 : vector<1x128xf32> to vector<80x128xf32>
    %23 = arith.addf %19, %22 : vector<80x128xf32>
    %24 = math.tanh %23 : vector<80x128xf32>
    %25 = arith.truncf %24 : vector<80x128xf32> to vector<80x128xbf16>
    %c8_23 = arith.constant 8 : index
    %c0_24 = arith.constant 0 : index
    %26 = vector.load %arg6[%c8_23, %c0_24] : memref<96x128xbf16, #tpu.memory_space<vmem>>, vector<80x128xbf16>
    tpu.vector_store %arg6[%c8_23, %c0_24], %25 {strides = array<i32>} : memref<96x128xbf16, #tpu.memory_space<vmem>>, vector<80x128xbf16>,
    %27 = arith.extui %5 : i1 to i32
    %c0_i32 = arith.constant 0 : i32
    %28 = arith.cmpi ne, %27, %c0_i32 : i32
    scf.if %28 {
      %99 = tpu.iota {dimensions = array<i32: 0>} : vector<80x1xi32>
      %c40_i32_82 = arith.constant 40 : i32
      %100 = arith.subi %0, %c40_i32_82 : i32
      %c8_i32 = arith.constant 8 : i32
      %101 = arith.addi %100, %c8_i32 : i32
      %102 = vector.broadcast %101 : i32 to vector<80x1xi32>
      %103 = arith.addi %102, %99 : vector<80x1xi32>
      %c0_i32_83 = arith.constant 0 : i32
      %104 = vector.broadcast %c0_i32_83 : i32 to vector<80x1xi32>
      %105 = arith.cmpi sge, %103, %104 : vector<80x1xi32>
      %c40_i32_84 = arith.constant 40 : i32
      %106 = vector.broadcast %c40_i32_84 : i32 to vector<80x1xi32>
      %107 = arith.cmpi slt, %103, %106 : vector<80x1xi32>
      %108 = arith.andi %105, %107 : vector<80x1xi1>
      %cst_85 = arith.constant 0.000000e+00 : f32
      %109 = vector.shape_cast %108 : vector<80x1xi1> to vector<80x1xi1>
      %110 = vector.broadcast %109 : vector<80x1xi1> to vector<80x128xi1>
      %111 = vector.broadcast %cst_85 : f32 to vector<80x128xf32>
      %112 = arith.select %110, %24, %111 : vector<80x128xi1>, vector<80x128xf32>
      %113 = arith.truncf %112 : vector<80x128xf32> to vector<80x128xbf16>
      %c8_86 = arith.constant 8 : index
      %c0_87 = arith.constant 0 : index
      %114 = vector.load %arg6[%c8_86, %c0_87] : memref<96x128xbf16, #tpu.memory_space<vmem>>, vector<80x128xbf16>
      tpu.vector_store %arg6[%c8_86, %c0_87], %113 {strides = array<i32>} : memref<96x128xbf16, #tpu.memory_space<vmem>>, vector<80x128xbf16>,
    } else {
    }
    %c14 = arith.constant 14 : index
    %c0_25 = arith.constant 0 : index
    %29 = vector.load %arg6[%c14, %c0_25] : memref<96x128xbf16, #tpu.memory_space<vmem>>, vector<64x128xbf16>
    %c15 = arith.constant 15 : index
    %c0_26 = arith.constant 0 : index
    %30 = vector.load %arg6[%c15, %c0_26] : memref<96x128xbf16, #tpu.memory_space<vmem>>, vector<64x128xbf16>
    %c16 = arith.constant 16 : index
    %c0_27 = arith.constant 0 : index
    %31 = vector.load %arg6[%c16, %c0_27] : memref<96x128xbf16, #tpu.memory_space<vmem>>, vector<64x128xbf16>
    %c17 = arith.constant 17 : index
    %c0_28 = arith.constant 0 : index
    %32 = vector.load %arg6[%c17, %c0_28] : memref<96x128xbf16, #tpu.memory_space<vmem>>, vector<64x128xbf16>
    %c18 = arith.constant 18 : index
    %c0_29 = arith.constant 0 : index
    %33 = vector.load %arg6[%c18, %c0_29] : memref<96x128xbf16, #tpu.memory_space<vmem>>, vector<64x128xbf16>
    %34 = tpu.concatenate %29, %30, %31, %32, %33 in 1 : vector<64x128xbf16>, vector<64x128xbf16>, vector<64x128xbf16>, vector<64x128xbf16>, vector<64x128xbf16> -> vector<64x640xbf16>
    %c1 = arith.constant 1 : index
    %c0_30 = arith.constant 0 : index
    %c0_31 = arith.constant 0 : index
    %35 = vector.load %arg3[%c1, %c0_30, %c0_31] : memref<5x640x128xbf16, #tpu.memory_space<vmem>>, vector<1x640x128xbf16>
    %36 = vector.shape_cast %35 : vector<1x640x128xbf16> to vector<640x128xbf16>
    %cst_32 = arith.constant dense<0.000000e+00> : vector<64x128xf32>
    %37 = tpu.matmul %34, %36, %cst_32 {dimension_numbers = #tpu.dot_dimension_numbers<[1], [0], [0], [1], [0, 0, 1, 1], [], []>} : vector<64x640xbf16>, vector<640x128xbf16>, vector<64x128xf32> -> vector<64x128xf32>
    %c1_33 = arith.constant 1 : index
    %c0_34 = arith.constant 0 : index
    %c0_35 = arith.constant 0 : index
    %38 = vector.load %arg4[%c1_33, %c0_34, %c0_35] : memref<5x1x128xf32, #tpu.memory_space<vmem>>, vector<1x1x128xf32>
    %39 = vector.shape_cast %38 : vector<1x1x128xf32> to vector<1x128xf32>
    %40 = vector.broadcast %39 : vector<1x128xf32> to vector<64x128xf32>
    %41 = arith.addf %37, %40 : vector<64x128xf32>
    %42 = math.tanh %41 : vector<64x128xf32>
    %43 = arith.truncf %42 : vector<64x128xf32> to vector<64x128xbf16>
    %c16_36 = arith.constant 16 : index
    %c0_37 = arith.constant 0 : index
    %44 = vector.load %arg7[%c16_36, %c0_37] : memref<96x128xbf16, #tpu.memory_space<vmem>>, vector<64x128xbf16>
    tpu.vector_store %arg7[%c16_36, %c0_37], %43 {strides = array<i32>} : memref<96x128xbf16, #tpu.memory_space<vmem>>, vector<64x128xbf16>,
    %45 = arith.extui %5 : i1 to i32
    %c0_i32_38 = arith.constant 0 : i32
    %46 = arith.cmpi ne, %45, %c0_i32_38 : i32
    scf.if %46 {
      %99 = tpu.iota {dimensions = array<i32: 0>} : vector<64x1xi32>
      %c40_i32_82 = arith.constant 40 : i32
      %100 = arith.subi %0, %c40_i32_82 : i32
      %c16_i32_83 = arith.constant 16 : i32
      %101 = arith.addi %100, %c16_i32_83 : i32
      %102 = vector.broadcast %101 : i32 to vector<64x1xi32>
      %103 = arith.addi %102, %99 : vector<64x1xi32>
      %c0_i32_84 = arith.constant 0 : i32
      %104 = vector.broadcast %c0_i32_84 : i32 to vector<64x1xi32>
      %105 = arith.cmpi sge, %103, %104 : vector<64x1xi32>
      %c40_i32_85 = arith.constant 40 : i32
      %106 = vector.broadcast %c40_i32_85 : i32 to vector<64x1xi32>
      %107 = arith.cmpi slt, %103, %106 : vector<64x1xi32>
      %108 = arith.andi %105, %107 : vector<64x1xi1>
      %cst_86 = arith.constant 0.000000e+00 : f32
      %109 = vector.shape_cast %108 : vector<64x1xi1> to vector<64x1xi1>
      %110 = vector.broadcast %109 : vector<64x1xi1> to vector<64x128xi1>
      %111 = vector.broadcast %cst_86 : f32 to vector<64x128xf32>
      %112 = arith.select %110, %42, %111 : vector<64x128xi1>, vector<64x128xf32>
      %113 = arith.truncf %112 : vector<64x128xf32> to vector<64x128xbf16>
      %c16_87 = arith.constant 16 : index
      %c0_88 = arith.constant 0 : index
      %114 = vector.load %arg7[%c16_87, %c0_88] : memref<96x128xbf16, #tpu.memory_space<vmem>>, vector<64x128xbf16>
      tpu.vector_store %arg7[%c16_87, %c0_88], %113 {strides = array<i32>} : memref<96x128xbf16, #tpu.memory_space<vmem>>, vector<64x128xbf16>,
    } else {
    }
    %c22 = arith.constant 22 : index
    %c0_39 = arith.constant 0 : index
    %47 = vector.load %arg7[%c22, %c0_39] : memref<96x128xbf16, #tpu.memory_space<vmem>>, vector<48x128xbf16>
    %c23 = arith.constant 23 : index
    %c0_40 = arith.constant 0 : index
    %48 = vector.load %arg7[%c23, %c0_40] : memref<96x128xbf16, #tpu.memory_space<vmem>>, vector<48x128xbf16>
    %c24 = arith.constant 24 : index
    %c0_41 = arith.constant 0 : index
    %49 = vector.load %arg7[%c24, %c0_41] : memref<96x128xbf16, #tpu.memory_space<vmem>>, vector<48x128xbf16>
    %c25 = arith.constant 25 : index
    %c0_42 = arith.constant 0 : index
    %50 = vector.load %arg7[%c25, %c0_42] : memref<96x128xbf16, #tpu.memory_space<vmem>>, vector<48x128xbf16>
    %c26 = arith.constant 26 : index
    %c0_43 = arith.constant 0 : index
    %51 = vector.load %arg7[%c26, %c0_43] : memref<96x128xbf16, #tpu.memory_space<vmem>>, vector<48x128xbf16>
    %52 = tpu.concatenate %47, %48, %49, %50, %51 in 1 : vector<48x128xbf16>, vector<48x128xbf16>, vector<48x128xbf16>, vector<48x128xbf16>, vector<48x128xbf16> -> vector<48x640xbf16>
    %c2 = arith.constant 2 : index
    %c0_44 = arith.constant 0 : index
    %c0_45 = arith.constant 0 : index
    %53 = vector.load %arg3[%c2, %c0_44, %c0_45] : memref<5x640x128xbf16, #tpu.memory_space<vmem>>, vector<1x640x128xbf16>
    %54 = vector.shape_cast %53 : vector<1x640x128xbf16> to vector<640x128xbf16>
    %cst_46 = arith.constant dense<0.000000e+00> : vector<48x128xf32>
    %55 = tpu.matmul %52, %54, %cst_46 {dimension_numbers = #tpu.dot_dimension_numbers<[1], [0], [0], [1], [0, 0, 1, 1], [], []>} : vector<48x640xbf16>, vector<640x128xbf16>, vector<48x128xf32> -> vector<48x128xf32>
    %c2_47 = arith.constant 2 : index
    %c0_48 = arith.constant 0 : index
    %c0_49 = arith.constant 0 : index
    %56 = vector.load %arg4[%c2_47, %c0_48, %c0_49] : memref<5x1x128xf32, #tpu.memory_space<vmem>>, vector<1x1x128xf32>
    %57 = vector.shape_cast %56 : vector<1x1x128xf32> to vector<1x128xf32>
    %58 = vector.broadcast %57 : vector<1x128xf32> to vector<48x128xf32>
    %59 = arith.addf %55, %58 : vector<48x128xf32>
    %60 = math.tanh %59 : vector<48x128xf32>
    %61 = arith.truncf %60 : vector<48x128xf32> to vector<48x128xbf16>
    %c24_50 = arith.constant 24 : index
    %c0_51 = arith.constant 0 : index
    %62 = vector.load %arg6[%c24_50, %c0_51] : memref<96x128xbf16, #tpu.memory_space<vmem>>, vector<48x128xbf16>
    tpu.vector_store %arg6[%c24_50, %c0_51], %61 {strides = array<i32>} : memref<96x128xbf16, #tpu.memory_space<vmem>>, vector<48x128xbf16>,
    %63 = arith.extui %5 : i1 to i32
    %c0_i32_52 = arith.constant 0 : i32
    %64 = arith.cmpi ne, %63, %c0_i32_52 : i32
    scf.if %64 {
      %99 = tpu.iota {dimensions = array<i32: 0>} : vector<48x1xi32>
      %c40_i32_82 = arith.constant 40 : i32
      %100 = arith.subi %0, %c40_i32_82 : i32
      %c24_i32 = arith.constant 24 : i32
      %101 = arith.addi %100, %c24_i32 : i32
      %102 = vector.broadcast %101 : i32 to vector<48x1xi32>
      %103 = arith.addi %102, %99 : vector<48x1xi32>
      %c0_i32_83 = arith.constant 0 : i32
      %104 = vector.broadcast %c0_i32_83 : i32 to vector<48x1xi32>
      %105 = arith.cmpi sge, %103, %104 : vector<48x1xi32>
      %c40_i32_84 = arith.constant 40 : i32
      %106 = vector.broadcast %c40_i32_84 : i32 to vector<48x1xi32>
      %107 = arith.cmpi slt, %103, %106 : vector<48x1xi32>
      %108 = arith.andi %105, %107 : vector<48x1xi1>
      %cst_85 = arith.constant 0.000000e+00 : f32
      %109 = vector.shape_cast %108 : vector<48x1xi1> to vector<48x1xi1>
      %110 = vector.broadcast %109 : vector<48x1xi1> to vector<48x128xi1>
      %111 = vector.broadcast %cst_85 : f32 to vector<48x128xf32>
      %112 = arith.select %110, %60, %111 : vector<48x128xi1>, vector<48x128xf32>
      %113 = arith.truncf %112 : vector<48x128xf32> to vector<48x128xbf16>
      %c24_86 = arith.constant 24 : index
      %c0_87 = arith.constant 0 : index
      %114 = vector.load %arg6[%c24_86, %c0_87] : memref<96x128xbf16, #tpu.memory_space<vmem>>, vector<48x128xbf16>
      tpu.vector_store %arg6[%c24_86, %c0_87], %113 {strides = array<i32>} : memref<96x128xbf16, #tpu.memory_space<vmem>>, vector<48x128xbf16>,
    } else {
    }
    %c30 = arith.constant 30 : index
    %c0_53 = arith.constant 0 : index
    %65 = vector.load %arg6[%c30, %c0_53] : memref<96x128xbf16, #tpu.memory_space<vmem>>, vector<32x128xbf16>
    %c31 = arith.constant 31 : index
    %c0_54 = arith.constant 0 : index
    %66 = vector.load %arg6[%c31, %c0_54] : memref<96x128xbf16, #tpu.memory_space<vmem>>, vector<32x128xbf16>
    %c32 = arith.constant 32 : index
    %c0_55 = arith.constant 0 : index
    %67 = vector.load %arg6[%c32, %c0_55] : memref<96x128xbf16, #tpu.memory_space<vmem>>, vector<32x128xbf16>
    %c33 = arith.constant 33 : index
    %c0_56 = arith.constant 0 : index
    %68 = vector.load %arg6[%c33, %c0_56] : memref<96x128xbf16, #tpu.memory_space<vmem>>, vector<32x128xbf16>
    %c34 = arith.constant 34 : index
    %c0_57 = arith.constant 0 : index
    %69 = vector.load %arg6[%c34, %c0_57] : memref<96x128xbf16, #tpu.memory_space<vmem>>, vector<32x128xbf16>
    %70 = tpu.concatenate %65, %66, %67, %68, %69 in 1 : vector<32x128xbf16>, vector<32x128xbf16>, vector<32x128xbf16>, vector<32x128xbf16>, vector<32x128xbf16> -> vector<32x640xbf16>
    %c3 = arith.constant 3 : index
    %c0_58 = arith.constant 0 : index
    %c0_59 = arith.constant 0 : index
    %71 = vector.load %arg3[%c3, %c0_58, %c0_59] : memref<5x640x128xbf16, #tpu.memory_space<vmem>>, vector<1x640x128xbf16>
    %72 = vector.shape_cast %71 : vector<1x640x128xbf16> to vector<640x128xbf16>
    %cst_60 = arith.constant dense<0.000000e+00> : vector<32x128xf32>
    %73 = tpu.matmul %70, %72, %cst_60 {dimension_numbers = #tpu.dot_dimension_numbers<[1], [0], [0], [1], [0, 0, 1, 1], [], []>} : vector<32x640xbf16>, vector<640x128xbf16>, vector<32x128xf32> -> vector<32x128xf32>
    %c3_61 = arith.constant 3 : index
    %c0_62 = arith.constant 0 : index
    %c0_63 = arith.constant 0 : index
    %74 = vector.load %arg4[%c3_61, %c0_62, %c0_63] : memref<5x1x128xf32, #tpu.memory_space<vmem>>, vector<1x1x128xf32>
    %75 = vector.shape_cast %74 : vector<1x1x128xf32> to vector<1x128xf32>
    %76 = vector.broadcast %75 : vector<1x128xf32> to vector<32x128xf32>
    %77 = arith.addf %73, %76 : vector<32x128xf32>
    %78 = math.tanh %77 : vector<32x128xf32>
    %79 = arith.truncf %78 : vector<32x128xf32> to vector<32x128xbf16>
    %c32_64 = arith.constant 32 : index
    %c0_65 = arith.constant 0 : index
    %80 = vector.load %arg7[%c32_64, %c0_65] : memref<96x128xbf16, #tpu.memory_space<vmem>>, vector<32x128xbf16>
    tpu.vector_store %arg7[%c32_64, %c0_65], %79 {strides = array<i32>} : memref<96x128xbf16, #tpu.memory_space<vmem>>, vector<32x128xbf16>,
    %81 = arith.extui %5 : i1 to i32
    %c0_i32_66 = arith.constant 0 : i32
    %82 = arith.cmpi ne, %81, %c0_i32_66 : i32
    scf.if %82 {
      %99 = tpu.iota {dimensions = array<i32: 0>} : vector<32x1xi32>
      %c40_i32_82 = arith.constant 40 : i32
      %100 = arith.subi %0, %c40_i32_82 : i32
      %c32_i32 = arith.constant 32 : i32
      %101 = arith.addi %100, %c32_i32 : i32
      %102 = vector.broadcast %101 : i32 to vector<32x1xi32>
      %103 = arith.addi %102, %99 : vector<32x1xi32>
      %c0_i32_83 = arith.constant 0 : i32
      %104 = vector.broadcast %c0_i32_83 : i32 to vector<32x1xi32>
      %105 = arith.cmpi sge, %103, %104 : vector<32x1xi32>
      %c40_i32_84 = arith.constant 40 : i32
      %106 = vector.broadcast %c40_i32_84 : i32 to vector<32x1xi32>
      %107 = arith.cmpi slt, %103, %106 : vector<32x1xi32>
      %108 = arith.andi %105, %107 : vector<32x1xi1>
      %cst_85 = arith.constant 0.000000e+00 : f32
      %109 = vector.shape_cast %108 : vector<32x1xi1> to vector<32x1xi1>
      %110 = vector.broadcast %109 : vector<32x1xi1> to vector<32x128xi1>
      %111 = vector.broadcast %cst_85 : f32 to vector<32x128xf32>
      %112 = arith.select %110, %78, %111 : vector<32x128xi1>, vector<32x128xf32>
      %113 = arith.truncf %112 : vector<32x128xf32> to vector<32x128xbf16>
      %c32_86 = arith.constant 32 : index
      %c0_87 = arith.constant 0 : index
      %114 = vector.load %arg7[%c32_86, %c0_87] : memref<96x128xbf16, #tpu.memory_space<vmem>>, vector<32x128xbf16>
      tpu.vector_store %arg7[%c32_86, %c0_87], %113 {strides = array<i32>} : memref<96x128xbf16, #tpu.memory_space<vmem>>, vector<32x128xbf16>,
    } else {
    }
    %c38 = arith.constant 38 : index
    %c0_67 = arith.constant 0 : index
    %83 = vector.load %arg7[%c38, %c0_67] : memref<96x128xbf16, #tpu.memory_space<vmem>>, vector<16x128xbf16>
    %c39 = arith.constant 39 : index
    %c0_68 = arith.constant 0 : index
    %84 = vector.load %arg7[%c39, %c0_68] : memref<96x128xbf16, #tpu.memory_space<vmem>>, vector<16x128xbf16>
    %c40 = arith.constant 40 : index
    %c0_69 = arith.constant 0 : index
    %85 = vector.load %arg7[%c40, %c0_69] : memref<96x128xbf16, #tpu.memory_space<vmem>>, vector<16x128xbf16>
    %c41 = arith.constant 41 : index
    %c0_70 = arith.constant 0 : index
    %86 = vector.load %arg7[%c41, %c0_70] : memref<96x128xbf16, #tpu.memory_space<vmem>>, vector<16x128xbf16>
    %c42 = arith.constant 42 : index
    %c0_71 = arith.constant 0 : index
    %87 = vector.load %arg7[%c42, %c0_71] : memref<96x128xbf16, #tpu.memory_space<vmem>>, vector<16x128xbf16>
    %88 = tpu.concatenate %83, %84, %85, %86, %87 in 1 : vector<16x128xbf16>, vector<16x128xbf16>, vector<16x128xbf16>, vector<16x128xbf16>, vector<16x128xbf16> -> vector<16x640xbf16>
    %c4 = arith.constant 4 : index
    %c0_72 = arith.constant 0 : index
    %c0_73 = arith.constant 0 : index
    %89 = vector.load %arg3[%c4, %c0_72, %c0_73] : memref<5x640x128xbf16, #tpu.memory_space<vmem>>, vector<1x640x128xbf16>
    %90 = vector.shape_cast %89 : vector<1x640x128xbf16> to vector<640x128xbf16>
    %cst_74 = arith.constant dense<0.000000e+00> : vector<16x128xf32>
    %91 = tpu.matmul %88, %90, %cst_74 {dimension_numbers = #tpu.dot_dimension_numbers<[1], [0], [0], [1], [0, 0, 1, 1], [], []>} : vector<16x640xbf16>, vector<640x128xbf16>, vector<16x128xf32> -> vector<16x128xf32>
    %c4_75 = arith.constant 4 : index
    %c0_76 = arith.constant 0 : index
    %c0_77 = arith.constant 0 : index
    %92 = vector.load %arg4[%c4_75, %c0_76, %c0_77] : memref<5x1x128xf32, #tpu.memory_space<vmem>>, vector<1x1x128xf32>
    %93 = vector.shape_cast %92 : vector<1x1x128xf32> to vector<1x128xf32>
    %94 = vector.broadcast %93 : vector<1x128xf32> to vector<16x128xf32>
    %95 = arith.addf %91, %94 : vector<16x128xf32>
    %c0_78 = arith.constant 0 : index
    %c0_79 = arith.constant 0 : index
    %c0_80 = arith.constant 0 : index
    %c0_81 = arith.constant 0 : index
    %96 = vector.load %arg5[%c0_78, %c0_79, %c0_80, %c0_81] : memref<1x1x16x128xf32, #tpu.memory_space<vmem>>, vector<1x1x16x128xf32>
    %97 = vector.shape_cast %96 : vector<1x1x16x128xf32> to vector<16x128xf32>
    %98 = vector.shape_cast %95 : vector<16x128xf32> to vector<1x1x16x128xf32>
    tpu.vector_store %arg5[%c0_78, %c0_79, %c0_80, %c0_81], %98 {strides = array<i32>} : memref<1x1x16x128xf32, #tpu.memory_space<vmem>>, vector<1x1x16x128xf32>,
    return
  }
  func.func @transform_0(%arg0: i32, %arg1: i32) -> (i32, i32, i32, i32) {
    %c0_i32 = arith.constant 0 : i32
    %c0_i32_0 = arith.constant 0 : i32
    %c0_i32_1 = arith.constant 0 : i32
    return %arg0, %arg1, %c0_i32, %c0_i32_0 : i32, i32, i32, i32
  }
  func.func @transform_1(%arg0: i32, %arg1: i32) -> (i32, i32, i32) {
    %c0_i32 = arith.constant 0 : i32
    %c0_i32_0 = arith.constant 0 : i32
    %c0_i32_1 = arith.constant 0 : i32
    %c0_i32_2 = arith.constant 0 : i32
    return %c0_i32, %c0_i32_0, %c0_i32_1 : i32, i32, i32
  }
  func.func @transform_2(%arg0: i32, %arg1: i32) -> (i32, i32, i32) {
    %c0_i32 = arith.constant 0 : i32
    %c0_i32_0 = arith.constant 0 : i32
    %c0_i32_1 = arith.constant 0 : i32
    %c0_i32_2 = arith.constant 0 : i32
    return %c0_i32, %c0_i32_0, %c0_i32_1 : i32, i32, i32
  }
  func.func @transform_3(%arg0: i32, %arg1: i32) -> (i32, i32, i32, i32) {
    %c0_i32 = arith.constant 0 : i32
    %c0_i32_0 = arith.constant 0 : i32
    %c0_i32_1 = arith.constant 0 : i32
    return %arg0, %arg1, %c0_i32, %c0_i32_0 : i32, i32, i32, i32
  }
}

</mosaic_0001>

<bundles_post_ra>
// kernel: postnet_forward.1
= control target key start
LH: loop header
LB: loop body
LE: loop exit
PB: predicated region body
PF: predicated region fallthrough
CT: control target
= control target key end

     0   :  { %s5440_s12 = smov 0   ;;  %s5442_s13 = smov 0   ;;  %s6642_s0 = inlined_call_operand.vmem [shape: bf16[2,3,96,128], index: 0, kind: input, shape index: {}]   ;;  %s6643_s1 = inlined_call_operand.vmem [shape: bf16[5,640,128], index: 1, kind: input, shape index: {}]   ;;  %s6644_s2 = inlined_call_operand.vmem [shape: f32[5,1,128], index: 2, kind: input, shape index: {}]   ;;  %s6645_s3 = inlined_call_operand.vmem [shape: f32[2,3,16,128], index: 3, kind: output, shape index: {}]  }
   0x1   :  { %s5444_s14 = smov 0   ;;  %s5446_s15 = smov 0  }
   0x2   :  { %s5448_s16 = smov 0  }
   0x3 LB: > { %s22_s17 = sadd.s32 1, %s5408_s14  ;;  %s25_s18 = sadd.s32 1, %s5412_s15  ;;  %s5416_s16 = sphi %s5448_s16, %s13_s16   ;;  %s5412_s15 = sphi %s5446_s15, %s6729_s15   ;;  %s5408_s14 = sphi %s5444_s14, %s6728_s14   ;;  %s5404_s13 = sphi %s5442_s13, %s6727_s13   ;;  %s5400_s12 = sphi %s5440_s12, %s6726_s12  }
   0x4   : > { %p23_p0 = scmp.ge.s32.totalorder %s22_s17, 3  ;;  %p3980_p1 = scmp.ge.s32.totalorder %s5416_s16, 1 }
   0x5   : > { %p157_p2 = scmp.lt.s32.totalorder %s5416_s16, 7 }
   0x6   : > { %s6731_s17 = smov (%p23_p0, %s22_s17), 0  ;;  %s6733_s18 = smov (!%p23_p0, %s25_s18), %s5412_s15 }
   0x7   : > { %p158_p3 = pnand %p3980_p1, %p157_p2  ;;  %p27_p4 = scmp.ge.s32.totalorder %s6733_s18, 2 }
   0x8   : > { %s5475_s19 = sshll.u32 (!%p158_p3), %s5400_s12, 4  ;;  %v5103_v0 = vld [vmem:[%s6643_s1 + $0x40] sm:$0xff] (!%p158_p3)   ;;  %p189_p7 = scmp.lt.s32.totalorder (!%p158_p3), %s5404_s13, 1  ;;  %v5107_v4 = vld [vmem:[%s6643_s1 + $0x48] sm:$0xff] (!%p158_p3)   ;;  %v5111_v8 = vld [vmem:[%s6643_s1 + $0x50] sm:$0xff] (!%p158_p3)   ;;  %vm6648_vm0 = vcmask (!%p158_p3), 1044480  }
   0x9   : > { %s6735_s18 = smov (%p27_p4, %s6733_s18), 0  ;;  %161 = sbr.rel (%p158_p3) target bundleno = 1573 (0x625), region = 32 }
   0xa   : > { %p209_p5 = scmp.lt.s32.totalorder (!%p158_p3), %s5475_s19, 40  ;;  %s210_s22 = sadd.s32 (!%p158_p3), 56, %s5475_s19  ;;  %4535 = vmatprep.subr.bf16.mxu0 (!%p158_p3), %v5103_v0  ;;  %v5104_v1 = vld [vmem:[%s6643_s1] sm:$0xff] (!%p158_p3)   ;;  %v5108_v5 = vld [vmem:[%s6643_s1 + $0x8] sm:$0xff] (!%p158_p3)   ;;  %v5112_v9 = vld [vmem:[%s6643_s1 + $0x10] sm:$0xff] (!%p158_p3)   ;;  %vm321_vm1 = vcmask (!%p158_p3), 1042432  }
   0xb   : > { %p211_p6 = scmp.gt.s32.totalorder (!%p158_p3), %s210_s22, 40  ;;  %v5105_v2 = vld [vmem:[%s6643_s1 + $0xc0] sm:$0xff] (!%p158_p3)   ;;  %4536 = vmatpush3.bf16.msra.mxu0 (!%p158_p3), %v5104_v1  ;;  %p191_p9 = scmp.lt.s32.totalorder (!%p158_p3), %s5400_s12, 2  ;;  %v5109_v6 = vld [vmem:[%s6643_s1 + $0xc8] sm:$0xff] (!%p158_p3)   ;;  %v5113_v10 = vld [vmem:[%s6643_s1 + $0xd0] sm:$0xff] (!%p158_p3)   ;;  %v5418_v39 = vmov (!%p158_p3), 0.0  }
   0xc   : > { %v5106_v3 = vld [vmem:[%s6643_s1 + $0x80] sm:$0xff] (!%p158_p3)   ;;  %4581 = vmatprep.subr.bf16.mxu1 (!%p158_p3), %v5105_v2  ;;  %4537 = vmatprep.subr.bf16.mxu0 (!%p158_p3), %v5107_v4  ;;  %v5110_v7 = vld [vmem:[%s6643_s1 + $0x88] sm:$0xff] (!%p158_p3)   ;;  %v5114_v11 = vld [vmem:[%s6643_s1 + $0x90] sm:$0xff] (!%p158_p3)   ;;  %vm6649_vm2 = vsmask.f32 (!%p158_p3), 7424  ;;  %vm412_vm4 = vcmask (!%p158_p3), 1041408  }
   0xd   : > { %p5489_p8 = por (!%p158_p3), %p211_p6, %p209_p5  ;;  %4582 = vmatpush3.bf16.msra.mxu1 (!%p158_p3), %v5106_v3  ;;  %v5115_v12 = vld [vmem:[%s6643_s1 + $0x58] sm:$0xff] (!%p158_p3)   ;;  %v5119_v16 = vld [vmem:[%s6643_s1 + $0x60] sm:$0xff] (!%p158_p3)   ;;  %v5123_v20 = vld [vmem:[%s6643_s1 + $0x68] sm:$0xff] (!%p158_p3)   ;;  %vm359_vm3 = vsmask.f32 (!%p158_p3), 2304  ;;  %vm6646_vm5 = vmmov (!%p158_p3), 0  }
   0xe   : > { %4583 = vmatprep.subr.bf16.mxu1 (!%p158_p3), %v5109_v6  ;;  %v5116_v13 = vld [vmem:[%s6643_s1 + $0x18] sm:$0xff] (!%p158_p3)   ;;  %v5120_v17 = vld [vmem:[%s6643_s1 + $0x20] sm:$0xff] (!%p158_p3)   ;;  %v5124_v21 = vld [vmem:[%s6643_s1 + $0x28] sm:$0xff] (!%p158_p3)   ;;  %vm6651_vm6 = vcmask (!%p158_p3), 1043456  }
   0xf   : > { %4538 = vmatpush3.bf16.msra.mxu0 (!%p158_p3), %v5108_v5  ;;  %v5117_v14 = vld [vmem:[%s6643_s1 + $0xd8] sm:$0xff] (!%p158_p3)   ;;  %v5121_v18 = vld [vmem:[%s6643_s1 + $0xe0] sm:$0xff] (!%p158_p3)   ;;  %v5125_v22 = vld [vmem:[%s6643_s1 + $0xe8] sm:$0xff] (!%p158_p3)  }
  0x10   : > { %s6737_s12 = smov (!%p191_p9, %s5400_s12), 2  ;;  %s6739_s13 = smov (!%p189_p7, %s5404_s13), 1  ;;  %4539 = vmatprep.subr.bf16.mxu0 %v5111_v8  ;;  %v5118_v15 = vld [vmem:[%s6643_s1 + $0x98] sm:$0xff]   ;;  %v5122_v19 = vld [vmem:[%s6643_s1 + $0xa0] sm:$0xff]   ;;  %v5126_v23 = vld [vmem:[%s6643_s1 + $0xa8] sm:$0xff]  }
  0x11   : > { %s3982_s21 = sshll.u32 %s6737_s12, 1  ;;  %4584 = vmatpush3.bf16.msra.mxu1 %v5110_v7  ;;  %s5060_s24 = smul.u32 6, %s6739_s13  ;;  %v5127_v24 = vld [vmem:[%s6643_s1 + $0x70] sm:$0xff]   ;;  %v5131_v28 = vld [vmem:[%s6643_s1 + $0x78] sm:$0xff]  }
  0x12   : > { %4585 = vmatprep.subr.bf16.mxu1 %v5113_v10  ;;  %s5059_s26 = smul.u32 36, %s6739_s13  ;;  %v5128_v25 = vld [vmem:[%s6643_s1 + $0x30] sm:$0xff]   ;;  %v5132_v29 = vld [vmem:[%s6643_s1 + $0x38] sm:$0xff]  }
  0x13   : > { %4540 = vmatpush3.bf16.msra.mxu0 %v5112_v9  ;;  %s204_s30 = sadd.s32 %s5060_s24, %s3982_s21  ;;  %v5129_v26 = vld [vmem:[%s6643_s1 + $0xf0] sm:$0xff]   ;;  %v5133_v30 = vld [vmem:[%s6643_s1 + $0xf8] sm:$0xff]   ;;  %s1107_s24 = sadd.s32 (%p5489_p8), 4294967264, %s5475_s19 }
  0x14   : > { %s3983_s6 = sshll.u32 %s204_s30, 3  ;;  %4541 = vmatprep.subr.bf16.mxu0 %v5115_v12  ;;  %s5058_s30 = smul.u32 12, %s6737_s12  ;;  %v5130_v27 = vld [vmem:[%s6643_s1 + $0xb0] sm:$0xff]   ;;  %v5137_v43 = vld [vmem:[%s6643_s1 + $0xb8] sm:$0xff]  }
  0x15   : > { %4586 = vmatpush3.bf16.msra.mxu1 %v5114_v11  ;;  %s5540_s11 = scalar_lea.vmem %s6645_s3, %s3983_s6  ;;  %v5140_v11 = vld [vmem:[%s6643_s1 + $0x100] sm:$0xff]  }
  0x16   : > { %4587 = vmatprep.subr.bf16.mxu1 %v5117_v14  ;;  %s195_s12 = sadd.s32 %s5059_s26, %s5058_s30 }
  0x17   : > { %4542 = vmatpush3.bf16.msra.mxu0 %v5116_v13  ;;  %s3981_s28 = sshll.u32 %s195_s12, 2 }
  0x18   : > { %4543 = vmatprep.subr.bf16.mxu0 %v5119_v16  ;;  %s5589_s9 = scalar_lea.vmem %s6642_s0, %s3981_s28 }
  0x19   : > { %4588 = vmatpush3.bf16.msra.mxu1 %v5118_v15  ;;  %v213_v31 = vld [vmem:[%s5589_s9] sm:$0x8]  ;;  %v214_v32 = vld [vmem:[%s5589_s9 + $0x4] sm:$0xf]  ;;  %v215_v33 = vld [vmem:[%s5589_s9 + $0x8] sm:$0xf] }
  0x1a   : > { %4589 = vmatprep.subr.bf16.mxu1 %v5121_v18  ;;  %v216_v34 = vld [vmem:[%s5589_s9 + $0xc] sm:$0xf]  ;;  %v217_v35 = vld [vmem:[%s5589_s9 + $0x10] sm:$0xf]  ;;  %v3985_v36 = vcombine.low %v213_v31, %v214_v32  ;;  %v5606_v37 = vld [vmem:[%s5589_s9 + $0x14] sm:$0xf]  ;;  %v3992_v50 = vcombine.low %v214_v32, %v215_v33 }
  0x1b   : > { %4544 = vmatpush3.bf16.msra.mxu0 %v5120_v17  ;;  %v5608_v38 = vcombine.low %v215_v33, %v216_v34  ;;  %v5612_v40 = vcombine.low %v217_v35, %v5606_v37  ;;  %v225_v48 = vld [vmem:[%s5589_s9 + $0x4] sm:$0xf]  ;;  %v5622_v49 = vld [vmem:[%s5589_s9 + $0xc] sm:$0xff]   ;;  %v5626_v53 = vld [vmem:[%s5589_s9 + $0x8] sm:$0xf]  ;;  %v3993_v54 = vcombine.low %v216_v34, %v217_v35 }
  0x1c   : > { %4545 = vmatprep.subr.bf16.mxu0 %v5123_v20  ;;  %v270_v41 = vshrl.u32 %v3985_v36, 16  ;;  %v272_v42 = vshll.u32 %v3985_v36, 16  ;;  %v512_v44 = vrot.slane %v3985_v36, 3  ;;  %v3997_v57 = vcombine.low %v225_v48, %v5626_v53  ;;  %v5636_v6 = vld [vmem:[%s5589_s9 + $0x14] sm:$0xff]   ;;  %v220_v17 = vld [vmem:[%s5589_s9 + $0x1c] sm:$0xf] }
  0x1d   : > { %4590 = vmatpush3.bf16.msra.mxu1 %v5122_v19  ;;  %v277_v45 = vshll.u32 %v5608_v38, 16  ;;  %v281_v46 = vshrl.u32 %v5608_v38, 16  ;;  %v513_v47 = vrot.slane %v5608_v38, 3  ;;  %v285_v52 = vshll.u32 %v5612_v40, 16  ;;  %v219_v16 = vld [vmem:[%s5589_s9 + $0x18] sm:$0xf] }
  0x1e   : > { %4591 = vmatprep.subr.bf16.mxu1 %v5125_v22  ;;  %v274_v51 = vrot.slane %v272_v42, 1  ;;  %v369_v60 = vshrl.u32 %v5622_v49, 16  ;;  %v372_v61 = vshll.u32 %v5622_v49, 16  ;;  %v361_v63 = vshrl.u32 %v3997_v57, 16  ;;  %v5143_v32 = vld [vmem:[%s6643_s1 + $0x108] sm:$0xff]  }
  0x1f   : > { %4546 = vmatpush3.bf16.msra.mxu0 %v5124_v21  ;;  %v279_v55 = vrot.slane %v277_v45, 1  ;;  %v514_v56 = vsel %vm6648_vm0, %v512_v44, %v513_v47  ;;  %v287_v59 = vrot.slane %v285_v52, 1  ;;  %v364_v0 = vshll.u32 %v3997_v57, 16  ;;  %v5671_v36 = vld [vmem:[%s5589_s9 + $0x24] sm:$0xf] }
  0x20   : > { %4547 = vmatprep.subr.bf16.mxu0 %v5127_v24  ;;  %v275_v58 = vor.u32 %v274_v51, %v270_v41  ;;  %v322_v1 = vrot.slane %v3992_v50, 5  ;;  %v371_v3 = vrot.slane %v369_v60, 5  ;;  %v374_v4 = vrot.slane %v372_v61, 6  ;;  %v5694_v60 = vld [vmem:[%s5589_s9 + $0x24] sm:$0xff]  }
  0x21   : > { %4592 = vmatpush3.bf16.msra.mxu1 %v5126_v23  ;;  %v283_v62 = vor.u32 %v281_v46, %v279_v55  ;;  %v323_v5 = vrot.slane %v3993_v54, 5  ;;  %v363_v9 = vrot.slane %v361_v63, 5  ;;  %v366_v10 = vrot.slane %v364_v0, 6 }
  0x22   : > { %4593 = vmatprep.subr.bf16.mxu1 %v5129_v26  ;;  %v280_v2 = vsel %vm6649_vm2, %v275_v58, %v279_v55  ;;  %v375_v13 = vor.u32 %v374_v4, %v371_v3  ;;  %v518_v15 = vrot.slane %v322_v1, 3  ;;  %v5651_v20 = vcombine.low %v219_v16, %v220_v17 }
  0x23   : > { %4548 = vmatpush3.bf16.msra.mxu0 %v5128_v25  ;;  %v5639_v7 = vsel %vm6649_vm2, %v283_v62, %v287_v59  ;;  %v515_v8 = vrot.slane %v280_v2, 3  ;;  %v5646_v14 = vsel %vm321_vm1, %v322_v1, %v323_v5  ;;  %v367_v18 = vor.u32 %v366_v10, %v363_v9 }
  0x24   : > { %4549 = vmatprep.subr.bf16.mxu0 %v5131_v28  ;;  %v516_v12 = vrot.slane %v5639_v7, 3  ;;  %v519_v19 = vrot.slane %v5646_v14, 3  ;;  %v289_v21 = vshrl.u32 %v5612_v40, 16  ;;  %v527_v23 = vrot.slane %v5612_v40, 3 }
  0x25   : > { %4594 = vmatpush3.bf16.msra.mxu1 %v5130_v27  ;;  %v378_v24 = vshrl.u32 %v5636_v6, 16  ;;  %v381_v25 = vshll.u32 %v5636_v6, 16  ;;  %v376_v26 = vsel %vm359_vm3, %v367_v18, %v375_v13  ;;  %v521_v27 = vrot.slane %v367_v18, 3 }
  0x26   : > { %4595 = vmatprep.subr.bf16.mxu1 %v5133_v30  ;;  %v517_v22 = vsel %vm6648_vm0, %v515_v8, %v516_v12  ;;  %v520_v28 = vsel %vm6648_vm0, %v518_v15, %v519_v19  ;;  %v5664_v30 = vld [vmem:[%s5589_s9 + $0x1c] sm:$0xff]   ;;  %v522_v31 = vrot.slane %v376_v26, 3  ;;  %v291_v33 = vor.u32 %v289_v21, %v287_v59  ;;  %v224_v59 = vld [vmem:[%s5589_s9 + $0x28] sm:$0xf] }
  0x27   : > { %4550 = vmatpush3.bf16.msra.mxu0 %v5132_v29  ;;  %864 = vmatprep.mubr.bf16.mxu0 %v517_v22  ;;  %v221_v29 = vld [vmem:[%s5589_s9 + $0x20] sm:$0xf]  ;;  %v293_v34 = vshll.u32 %v5651_v20, 16  ;;  %v380_v35 = vrot.slane %v378_v24, 5  ;;  %v383_v41 = vrot.slane %v381_v25, 6  ;;  %v3994_v42 = vcombine.low %v5606_v37, %v219_v16 }
  0x28   : > { %4930 = vmatprep.subr.bf16.mxu0 %v5418_v39  ;;  %v297_v44 = vshrl.u32 %v5651_v20, 16  ;;  %v523_v45 = vsel %vm6648_vm0, %v521_v27, %v522_v31  ;;  %v3995_v48 = vcombine.low %v220_v17, %v221_v29  ;;  %v387_v37 = vshrl.u32 %v5664_v30, 16  ;;  %v5149_v17 = vld [vmem:[%s6643_s1 + $0x118] sm:$0xff]   ;;  %v5716_v24 = vld [vmem:[%s5589_s9 + $0x2c] ss:$0 sps:$4 sm:$0x11]  }
  0x29   : > { %4596 = vmatpush3.bf16.msra.mxu1 %v5137_v43  ;;  %v5675_v43 = vcombine.low %v221_v29, %v5671_v36  ;;  %v295_v46 = vrot.slane %v293_v34, 1  ;;  %937 = vmatprep.mubr.bf16.mxu1 %v523_v45  ;;  %v384_v50 = vor.u32 %v383_v41, %v380_v35  ;;  %v325_v51 = vrot.slane %v3994_v42, 5  ;;  %v5152_v34 = vld [vmem:[%s6643_s1 + $0x120] sm:$0xff]  }
  0x2a   : > { %865 = vmatmul.mubr.bf16.vlgmr.msra.gmra.mrb[0].mxu0 %v514_v56  ;;  %v528_v55 = vsel %vm6648_vm0, %v513_v47, %v527_v23  ;;  %v5147_v56 = vld [vmem:[%s6643_s1 + $0x110] sm:$0xff]   ;;  %v390_v58 = vshll.u32 %v5664_v30, 16  ;;  %v389_v47 = vrot.slane %v387_v37, 5  ;;  %v327_v7 = vrot.slane %v3995_v48, 5 }
  0x2b   : > { %4931 = vmatpush3.bf16.msra.mxu0 %v5140_v11  ;;  %v301_v52 = vshll.u32 %v5675_v43, 16  ;;  %v296_v54 = vsel %vm6649_vm2, %v291_v33, %v295_v46  ;;  %v299_v57 = vor.u32 %v297_v44, %v295_v46  ;;  %v385_v62 = vsel %vm359_vm3, %v375_v13, %v384_v50 }
  0x2c   : > { %4932 = vmatprep.subr.bf16.mxu0 %v5418_v39  ;;  %938 = vmatmul.mubr.bf16.vlgmr.msra.gmra.mrb[0].mxu1 %v520_v28  ;;  %v529_v61 = vrot.slane %v296_v54, 3  ;;  %v326_v63 = vsel %vm321_vm1, %v323_v5, %v325_v51  ;;  %v533_v38 = vrot.slane %v385_v62, 3  ;;  %v392_v2 = vrot.slane %v390_v58, 6 }
  0x2d   : > { %v303_v0 = vrot.slane %v301_v52, 1  ;;  %v531_v1 = vrot.slane %v326_v63, 3  ;;  %v3991_v8 = vcombine.low %v224_v59, %v224_v59  ;;  %v537_v11 = vrot.slane %v5651_v20, 3  ;;  %v5156_v52 = vld [vmem:[%s6643_s1 + $0x128] sm:$0xff]  }
  0x2e   : > { %v530_v3 = vsel %vm6648_vm0, %v516_v12, %v529_v61  ;;  %v534_v9 = vsel %vm6648_vm0, %v522_v31, %v533_v38  ;;  %v393_v5 = vor.u32 %v392_v2, %v389_v47  ;;  %v305_v12 = vshrl.u32 %v5675_v43, 16  ;;  %v5160_v2 = vld [vmem:[%s6643_s1 + $0x138] sm:$0xff]  }
  0x2f   : > { %4933 = vmatpush3.bf16.msra.mxu0 %v5143_v32  ;;  %v304_v4 = vsel %vm6649_vm2, %v299_v57, %v303_v0  ;;  %872 = vmatprep.mubr.bf16.mxu0 %v530_v3  ;;  %v532_v13 = vsel %vm6648_vm0, %v519_v19, %v531_v1  ;;  %v309_v15 = vshll.u32 %v3991_v8, 16  ;;  %v328_v20 = vsel %vm321_vm1, %v325_v51, %v327_v7 }
  0x30   : > { %4934 = vmatprep.subr.bf16.mxu0 %v5418_v39  ;;  %v539_v10 = vrot.slane %v304_v4, 3  ;;  %945 = vmatprep.mubr.bf16.mxu1 %v534_v9  ;;  %v394_v18 = vsel %vm359_vm3, %v384_v50, %v393_v5  ;;  %v396_v21 = vshrl.u32 %v5694_v60, 16  ;;  %v307_v19 = vor.u32 %v305_v12, %v303_v0 }
  0x31   : > { %v543_v14 = vrot.slane %v394_v18, 3  ;;  %v311_v22 = vrot.slane %v309_v15, 1  ;;  %v538_v25 = vsel %vm6648_vm0, %v527_v23, %v537_v11  ;;  %v399_v27 = vshll.u32 %v5694_v60, 16 }
  0x32   : > { %873 = vmatmul.mubr.bf16.gmra.mrb[4].mxu0 %v528_v55  ;;  %v540_v16 = vsel %vm6648_vm0, %v529_v61, %v539_v10  ;;  %v398_v26 = vrot.slane %v396_v21, 5  ;;  %v3996_v28 = vcombine.low %v5671_v36, %v224_v59  ;;  %v541_v31 = vrot.slane %v328_v20, 3  ;;  %v5157_v59 = vld [vmem:[%s6643_s1 + $0x130] sm:$0xff]   ;;  %v5158_v61 = vld [vmem:[%s5589_s9 + $0x28] ss:$0 sps:$4 sm:$0x77]  }
  0x33   : > { %4935 = vmatpush3.bf16.msra.mxu0 %v5147_v56  ;;  %880 = vmatprep.mubr.bf16.mxu0 %v540_v16  ;;  %v544_v29 = vsel %vm6648_vm0, %v533_v38, %v543_v14  ;;  %v312_v32 = vsel %vm6649_vm2, %v307_v19, %v311_v22  ;;  %v313_v33 = vshrl.u32 %v3991_v8, 16  ;;  %v401_v35 = vrot.slane %v399_v27, 6  ;;  %v236_v56 = vld [vmem:[%s5589_s9 + $0x4] sm:$0xe]  ;;  %v5786_v27 = vld [vmem:[%s6644_s2] ss:$0 sm:$0xff] }
  0x34   : > { %4936 = vmatprep.subr.bf16.mxu0 %v5418_v39  ;;  %946 = vmatmul.mubr.bf16.gmra.mrb[4].mxu1 %v532_v13  ;;  %v549_v40 = vrot.slane %v312_v32, 3  ;;  %v329_v23 = vrot.slane %v3996_v28, 5  ;;  %v405_v41 = vshll.u32 %v5716_v24, 16  ;;  %v542_v46 = vsel %vm6648_vm0, %v531_v1, %v541_v31 }
  0x35   : > { %953 = vmatprep.mubr.bf16.mxu1 %v544_v29  ;;  %v315_v36 = vor.u32 %v313_v33, %v311_v22  ;;  %v402_v44 = vor.u32 %v401_v35, %v398_v26  ;;  %v547_v48 = vrot.slane %v5675_v43, 3  ;;  %v4003_v0 = vcombine.low %v236_v56, %v5626_v53 }
  0x36   : > { %v550_v42 = vsel %vm6648_vm0, %v539_v10, %v549_v40  ;;  %v407_v45 = vrot.slane %v405_v41, 6  ;;  %v330_v51 = vsel %vm321_vm1, %v327_v7, %v329_v23  ;;  %v557_v1 = vrot.slane %v5158_v61, 3 }
  0x37   : > { %4937 = vmatpush3.bf16.msra.mxu0 %v5149_v17  ;;  %v403_v50 = vsel %vm359_vm3, %v393_v5, %v402_v44  ;;  %v559_v54 = vrot.slane %v315_v36, 3  ;;  %v551_v43 = vrot.slane %v330_v51, 3  ;;  %v548_v58 = vsel %vm6648_vm0, %v537_v11, %v547_v48 }
  0x38   : > { %4938 = vmatprep.subr.bf16.mxu0 %v5418_v39  ;;  %v553_v37 = vrot.slane %v403_v50, 3  ;;  %v408_v55 = vsel %vm359_vm3, %v402_v44, %v407_v45  ;;  %v413_v3 = vrot.slane %v4003_v0, 6  ;;  %v414_v4 = vrot.slane %v5622_v49, 6 }
  0x39   : > { %v563_v62 = vrot.slane %v408_v55, 3  ;;  %v560_v63 = vsel %vm6648_vm0, %v549_v40, %v559_v54  ;;  %v552_v38 = vsel %vm6648_vm0, %v541_v31, %v551_v43  ;;  %v561_v53 = vrot.slane %v329_v23, 3 }
  0x3a   : > { %881 = vmatmul.mubr.bf16.gmra.mrb[8].mxu0 %v538_v25  ;;  %v554_v57 = vsel %vm6648_vm0, %v543_v14, %v553_v37  ;;  %v558_v7 = vsel %vm6648_vm0, %v547_v48, %v557_v1  ;;  %v415_v8 = vsel %vm412_vm4, %v413_v3, %v414_v4  ;;  %v524_v10 = vrot.slane %v413_v3, 3 }
  0x3b   : > { %4939 = vmatpush3.bf16.msra.mxu0 %v5152_v34  ;;  %888 = vmatprep.mubr.bf16.mxu0 %v550_v42  ;;  %v564_v47 = vsel %vm6648_vm0, %v553_v37, %v563_v62  ;;  %v562_v9 = vsel %vm6648_vm0, %v551_v43, %v561_v53  ;;  %v525_v11 = vrot.slane %v415_v8, 3  ;;  %v416_v49 = vrot.slane %v5636_v6, 6 }
  0x3c   : > { %4940 = vmatprep.subr.bf16.mxu0 %v5418_v39  ;;  %954 = vmatmul.mubr.bf16.gmra.mrb[8].mxu1 %v542_v46  ;;  %v418_v15 = vrot.slane %v5664_v30, 6  ;;  %v420_v18 = vrot.slane %v5694_v60, 6  ;;  %v422_v14 = vrot.slane %v5716_v24, 6 }
  0x3d   : > { %961 = vmatprep.mubr.bf16.mxu1 %v554_v57  ;;  %v526_v5 = vsel %vm6648_vm0, %v524_v10, %v525_v11  ;;  %v417_v13 = vsel %vm412_vm4, %v414_v4, %v416_v49 }
  0x3e   : > { %v535_v12 = vrot.slane %v417_v13, 3  ;;  %v419_v17 = vsel %vm412_vm4, %v416_v49, %v418_v15  ;;  %v421_v21 = vsel %vm412_vm4, %v418_v15, %v420_v18  ;;  %v423_v22 = vsel %vm412_vm4, %v420_v18, %v422_v14 }
  0x3f   : > { %4941 = vmatpush3.bf16.msra.mxu0 %v5156_v52  ;;  %v545_v6 = vrot.slane %v419_v17, 3  ;;  %v555_v30 = vrot.slane %v421_v21, 3  ;;  %v565_v60 = vrot.slane %v423_v22, 3 }
  0x40   : > { %4942 = vmatprep.subr.bf16.mxu0 %v5418_v39  ;;  %v536_v16 = vsel %vm6648_vm0, %v525_v11, %v535_v12 }
  0x41   : > { %v546_v20 = vsel %vm6648_vm0, %v535_v12, %v545_v6  ;;  %v556_v19 = vsel %vm6648_vm0, %v545_v6, %v555_v30  ;;  %v566_v25 = vsel %vm6648_vm0, %v555_v30, %v565_v60 }
  0x42   : > { %889 = vmatmul.mubr.bf16.gmra.mrb[12].mxu0 %v548_v58 }
  0x43   : > { %896 = vmatprep.mubr.bf16.mxu0 %v560_v63  ;;  %4943 = vmatpush3.bf16.msra.mxu0 %v5157_v59 }
  0x44   : > { %4944 = vmatprep.subr.bf16.mxu0 %v5418_v39  ;;  %962 = vmatmul.mubr.bf16.gmra.mrb[12].mxu1 %v552_v38 }
  0x45   : > { %969 = vmatprep.mubr.bf16.mxu1 %v564_v47 }
  0x47   : > { %4945 = vmatpush3.bf16.msra.mxu0 %v5160_v2 }
  0x4a   : > { %897 = vmatmul.mubr.bf16.gmra.mrb[16].mxu0 %v558_v7 }
  0x4b   : > { %4946 = vmatprep.mubr.msk.bf16.mxu0 %vm6646_vm5, %v5418_v39 }
  0x4c   : > { %970 = vmatmul.mubr.bf16.gmra.mrb[16].mxu1 %v562_v9 }
  0x52   : > { %4947 = vmatmul.mubr.bf16.vlgmr.msra.gmra.mrb[20].mxu0 %v526_v5 }
  0x53   : > { %4950 = vmatprep.mubr.msk.bf16.mxu0 %vm6646_vm5, %v5418_v39 }
  0x5a   : > { %4951 = vmatmul.mubr.bf16.gmra.mrb[24].mxu0 %v536_v16 }
  0x5b   : > { %4954 = vmatprep.mubr.msk.bf16.mxu0 %vm6646_vm5, %v5418_v39 }
  0x62   : > { %4955 = vmatmul.mubr.bf16.gmra.mrb[28].mxu0 %v546_v20 }
  0x63   : > { %4958 = vmatprep.mubr.msk.bf16.mxu0 %vm6646_vm5, %v5418_v39 }
  0x6a   : > { %4959 = vmatmul.mubr.bf16.gmra.mrb[32].mxu0 %v556_v19 }
  0x6b   : > { %4962 = vmatprep.mubr.msk.bf16.mxu0 %vm6646_vm5, %v5418_v39 }
  0x72   : > { %4963 = vmatmul.mubr.bf16.gmra.mrb[36].mxu0 %v566_v25 }
  0xfd   : > { %v4551_v26 = vpop.f32.mrb[0].mxu0 }
  0xfe   : > { %v4552_v28 = vpop.f32.mrb[1].mxu0 }
  0xff   : > { %v4553_v24 = vadd.f32 %v4552_v28, %v4551_v26  ;;  %v4554_v29 = vpop.f32.mrb[2].mxu0  ;;  %v4597_v33 = vpop.f32.mrb[0].mxu1 }
 0x100   : > { %v4555_v31 = vpop.f32.mrb[3].mxu0  ;;  %v4598_v40 = vpop.f32.mrb[1].mxu1 }
 0x101   : > { %v867_v32 = vadd.f32 %v4553_v24, %v5786_v27  ;;  %v4556_v34 = vadd.f32 %v4555_v31, %v4554_v29  ;;  %v4599_v23 = vadd.f32 %v4598_v40, %v4597_v33  ;;  %v4600_v41 = vpop.f32.mrb[2].mxu1 }
 0x102   : > { %v4601_v36 = vpop.f32.mrb[3].mxu1 }
 0x103   : > { %v870_v35 = vadd.f32 %v4556_v34, %v5786_v27  ;;  %v4602_v42 = vadd.f32 %v4601_v36, %v4600_v41  ;;  %v5790_v44 = vadd.f32 %v4599_v23, %v867_v32 }
 0x105   : > { %v4557_v45 = vpop.f32.mrb[4].mxu0  ;;  %v5792_v48 = vadd.f32 %v4602_v42, %v870_v35 }
 0x106   : > { %v4558_v46 = vpop.f32.mrb[5].mxu0 }
 0x107   : > { %v4559_v50 = vadd.f32 %v4558_v46, %v4557_v45  ;;  %v4560_v51 = vpop.f32.mrb[6].mxu0  ;;  %v4603_v52 = vpop.f32.mrb[4].mxu1 }
 0x108   : > { %v4561_v37 = vpop.f32.mrb[7].mxu0  ;;  %v4604_v56 = vpop.f32.mrb[5].mxu1 }
 0x109   : > { %v875_v54 = vadd.f32 %v4559_v50, %v5786_v27  ;;  %v4562_v55 = vadd.f32 %v4561_v37, %v4560_v51  ;;  %v4605_v57 = vadd.f32 %v4604_v56, %v4603_v52  ;;  %v4606_v43 = vpop.f32.mrb[6].mxu1 }
 0x10a   : > { %v4607_v59 = vpop.f32.mrb[7].mxu1 }
 0x10b   : > { %v878_v58 = vadd.f32 %v4562_v55, %v5786_v27  ;;  %v4608_v61 = vadd.f32 %v4607_v59, %v4606_v43  ;;  %v948_v62 = vadd.f32 %v4605_v57, %v875_v54 }
 0x10d   : > { %v4563_v63 = vpop.f32.mrb[8].mxu0  ;;  %v951_v38 = vadd.f32 %v4608_v61, %v878_v58 }
 0x10e   : > { %v4564_v0 = vpop.f32.mrb[9].mxu0 }
 0x10f   : > { %v4565_v1 = vadd.f32 %v4564_v0, %v4563_v63  ;;  %v4566_v47 = vpop.f32.mrb[10].mxu0  ;;  %v4609_v2 = vpop.f32.mrb[8].mxu1 }
 0x110   : > { %v4567_v3 = vpop.f32.mrb[11].mxu0  ;;  %v4610_v7 = vpop.f32.mrb[9].mxu1 }
 0x111   : > { %v883_v4 = vadd.f32 %v4565_v1, %v5786_v27  ;;  %v4568_v53 = vadd.f32 %v4567_v3, %v4566_v47  ;;  %v4611_v8 = vadd.f32 %v4610_v7, %v4609_v2  ;;  %v4612_v9 = vpop.f32.mrb[10].mxu1 }
 0x112   : > { %v4613_v11 = vpop.f32.mrb[11].mxu1 }
 0x113   : > { %v886_v10 = vadd.f32 %v4568_v53, %v5786_v27  ;;  %v4614_v49 = vadd.f32 %v4613_v11, %v4612_v9  ;;  %v956_v5 = vadd.f32 %v4611_v8, %v883_v4 }
 0x115   : > { %v4569_v13 = vpop.f32.mrb[12].mxu0  ;;  %v959_v15 = vadd.f32 %v4614_v49, %v886_v10 }
 0x116   : > { %v4570_v12 = vpop.f32.mrb[13].mxu0 }
 0x117   : > { %v4571_v16 = vadd.f32 %v4570_v12, %v4569_v13  ;;  %v4572_v17 = vpop.f32.mrb[14].mxu0  ;;  %v4615_v6 = vpop.f32.mrb[12].mxu1 }
 0x118   : > { %v4573_v18 = vpop.f32.mrb[15].mxu0  ;;  %v4616_v30 = vpop.f32.mrb[13].mxu1 }
 0x119   : > { %v891_v20 = vadd.f32 %v4571_v16, %v5786_v27  ;;  %v4574_v21 = vadd.f32 %v4573_v18, %v4572_v17  ;;  %v4617_v14 = vadd.f32 %v4616_v30, %v4615_v6  ;;  %v4618_v19 = vpop.f32.mrb[14].mxu1 }
 0x11a   : > { %v4619_v60 = vpop.f32.mrb[15].mxu1 }
 0x11b   : > { %v894_v22 = vadd.f32 %v4574_v21, %v5786_v27  ;;  %v4620_v25 = vadd.f32 %v4619_v60, %v4618_v19  ;;  %v964_v26 = vadd.f32 %v4617_v14, %v891_v20 }
 0x11d   : > { %v4575_v28 = vpop.f32.mrb[16].mxu0  ;;  %v967_v29 = vadd.f32 %v4620_v25, %v894_v22 }
 0x11e   : > { %v4576_v24 = vpop.f32.mrb[17].mxu0 }
 0x11f   : > { %v4577_v31 = vadd.f32 %v4576_v24, %v4575_v28  ;;  %v4578_v32 = vpop.f32.mrb[18].mxu0  ;;  %v4621_v33 = vpop.f32.mrb[16].mxu1 }
 0x120   : > { %v4579_v34 = vpop.f32.mrb[19].mxu0  ;;  %v4622_v23 = vpop.f32.mrb[17].mxu1 }
 0x121   : > { %v899_v40 = vadd.f32 %v4577_v31, %v5786_v27  ;;  %v4580_v35 = vadd.f32 %v4579_v34, %v4578_v32  ;;  %v4623_v41 = vadd.f32 %v4622_v23, %v4621_v33  ;;  %v4624_v36 = vpop.f32.mrb[18].mxu1  ;;  %v1108_v23 = vstv (%p5489_p8), %s1107_s24 }
 0x122   : > { %v4625_v45 = vpop.f32.mrb[19].mxu1 }
 0x123   : > { %v902_v42 = vadd.f32 %v4580_v35, %v5786_v27  ;;  %v4626_v46 = vadd.f32 %v4625_v45, %v4624_v36  ;;  %v972_v50 = vadd.f32 %v4623_v41, %v899_v40  ;;  %v1096_v35 = vlaneseq (%p5489_p8) }
 0x125   : > { %v1012_v51 = vpop.f32.mrb[20].mxu0  ;;  %v975_v54 = vadd.f32 %v4626_v46, %v902_v42  ;;  %v1097_v41 = vshrl.u32 (%p5489_p8), %v1096_v35, 7 }
 0x126   : > { %v1013_v52 = vadd.f32 %v1012_v51, %v5790_v44  ;;  %v4948_v37 = vpop.f32.mrb[21].mxu0 }
 0x127   : > { %v1015_v55 = vpop.f32.mrb[22].mxu0  ;;  %v1098_v36 = vadd.s32 (%p5489_p8), 8, %v1097_v41  ;;  %v1109_v42 = vadd.s32 (%p5489_p8), %v1108_v23, %v1097_v41  ;;  %v1099_v45 = vadd.s32 (%p5489_p8), 16, %v1097_v41  ;;  %v1100_v46 = vadd.s32 (%p5489_p8), 24, %v1097_v41 }
 0x128   : > { %v1016_v56 = vadd.f32 %v1015_v55, %v5792_v48  ;;  %v4949_v57 = vpop.f32.mrb[23].mxu0  ;;  %5162 = vtanh.f32 %v1013_v52  ;;  %v1102_v51 = vadd.s32 (%p5489_p8), 40, %v1097_v41  ;;  %v1103_v52 = vadd.s32 (%p5489_p8), 48, %v1097_v41 }
 0x129   : > { %v1104_v37 = vadd.s32 (%p5489_p8), 56, %v1097_v41  ;;  %vm1119_vm7 = vcmp.ge.s32.totalorder (%p5489_p8), %v1109_v42, 0  ;;  %vm1129_vm8 = vcmp.lt.s32.totalorder (%p5489_p8), %v1109_v42, 40  ;;  %v1111_v55 = vadd.s32 (%p5489_p8), %v1108_v23, %v1099_v45 }
 0x12a   : > { %5164 = vtanh.f32 %v1016_v56  ;;  %vm5841_vm9 = vmand (%p5489_p8), %vm1119_vm7, %vm1129_vm8  ;;  %v1112_v57 = vadd.s32 (%p5489_p8), %v1108_v23, %v1100_v46 }
 0x12b   : > { %vm1121_vm12 = vcmp.ge.s32.totalorder (%p5489_p8), %v1111_v55, 0  ;;  %vm1131_vm15 = vcmp.lt.s32.totalorder (%p5489_p8), %v1111_v55, 40 }
 0x12c   : > { %vm1122_vm14 = vcmp.ge.s32.totalorder (%p5489_p8), %v1112_v57, 0  ;;  %vm1132_vm1 = vcmp.lt.s32.totalorder (%p5489_p8), %v1112_v57, 40  ;;  %vm1141_vm4 = vmand (%p5489_p8), %vm1121_vm12, %vm1131_vm15 }
 0x12d   : > { %v1020_v43 = vpop.f32.mrb[24].mxu0  ;;  %vm1142_vm0 = vmand (%p5489_p8), %vm1122_vm14, %vm1132_vm1 }
 0x12e   : > { %v1021_v58 = vadd.f32 %v1020_v43, %v948_v62  ;;  %v4952_v59 = vpop.f32.mrb[25].mxu0 }
 0x12f   : > { %v1023_v61 = vpop.f32.mrb[26].mxu0  ;;  %v1115_v59 = vadd.s32 (%p5489_p8), %v1108_v23, %v1103_v52 }
 0x130   : > { %v1024_v63 = vadd.f32 %v1023_v61, %v951_v38  ;;  %v4953_v27 = vpop.f32.mrb[27].mxu0  ;;  %5166 = vtanh.f32 %v1021_v58  ;;  %v1114_v58 = vadd.s32 (%p5489_p8), %v1108_v23, %v1102_v51 }
 0x131   : > { %vm1125_vm2 = vcmp.ge.s32.totalorder (%p5489_p8), %v1115_v59, 0 }
 0x132   : > { %5168 = vtanh.f32 %v1024_v63  ;;  %v5804_v0 = vpop.eup %5162  ;;  %vm1124_vm7 = vcmp.ge.s32.totalorder (%p5489_p8), %v1114_v58, 0  ;;  %vm1134_vm5 = vcmp.lt.s32.totalorder (%p5489_p8), %v1114_v58, 40 }
 0x133   : > { %v1169_v61 = vsel (%p5489_p8), %vm5841_vm9, %v5804_v0, 0.0 }
 0x134   : > { %v5806_v1 = vpop.eup %5164 }
 0x135   : > { %v1061_v44 = vpack.c.bf16 %v5806_v1, %v5804_v0  ;;  %v1028_v47 = vpop.f32.mrb[28].mxu0 }
 0x136   : > { %v1029_v48 = vadd.f32 %v1028_v47, %v956_v5  ;;  %v4956_v2 = vpop.f32.mrb[29].mxu0  ;;  %v1116_v47 = vadd.s32 (%p5489_p8), %v1108_v23, %v1104_v37 }
 0x137   : > { %v1072_v3 = vrot.slane %v1061_v44, 4  ;;  %v1031_v4 = vpop.f32.mrb[30].mxu0  ;;  %v1105_v2 = vadd.s32 (%p5489_p8), 64, %v1097_v41 }
 0x138   : > { %v1032_v53 = vadd.f32 %v1031_v4, %v959_v15  ;;  %v4957_v62 = vpop.f32.mrb[31].mxu0  ;;  %5170 = vtanh.f32 %v1029_v48  ;;  %vm1126_vm12 = vcmp.ge.s32.totalorder (%p5489_p8), %v1116_v47, 0 }
 0x139   : > { %1087 = vst [vmem:[#allocation2] sm:$0xf0] %v1072_v3 }
 0x13a   : > { %5172 = vtanh.f32 %v1032_v53  ;;  %v5810_v38 = vpop.eup %5166 }
 0x13b   : > { %v1171_v44 = vsel (%p5489_p8), %vm1141_vm4, %v5810_v38, 0.0 }
 0x13c   : > { %v5812_v7 = vpop.eup %5168 }
 0x13d   : > { %v1062_v8 = vpack.c.bf16 %v5812_v7, %v5810_v38  ;;  %v1036_v9 = vpop.f32.mrb[32].mxu0  ;;  %v1172_v0 = vsel (%p5489_p8), %vm1142_vm0, %v5812_v7, 0.0  ;;  %v1117_v38 = vadd.s32 (%p5489_p8), %v1108_v23, %v1105_v2 }
 0x13e   : > { %v1037_v10 = vadd.f32 %v1036_v9, %v964_v26  ;;  %v4960_v11 = vpop.f32.mrb[33].mxu0  ;;  %v1180_v4 = vpack.c.bf16 (%p5489_p8), %v1172_v0, %v1171_v44 }
 0x13f   : > { %v1073_v49 = vrot.slane %v1062_v8, 4  ;;  %v1039_v5 = vpop.f32.mrb[34].mxu0  ;;  %vm1137_vm1 = vcmp.lt.s32.totalorder (%p5489_p8), %v1117_v38, 40 }
 0x140   : > { %v1040_v13 = vadd.f32 %v1039_v5, %v967_v29  ;;  %v4961_v12 = vpop.f32.mrb[35].mxu0  ;;  %5174 = vtanh.f32 %v1037_v10  ;;  %v1190_v8 = vrot.slane (%p5489_p8), %v1180_v4, 4 }
 0x141   : > { %v1074_v15 = vsel %vm6651_vm6, %v1072_v3, %v1073_v49  ;;  %v1106_v3 = vadd.s32 (%p5489_p8), 72, %v1097_v41 }
 0x142   : > { %1088 = vst [vmem:[#allocation2 + $0x8] sm:$0xff] %v1074_v15  ;;  %5176 = vtanh.f32 %v1040_v13  ;;  %v5817_v16 = vpop.eup %5170 }
 0x143   : > { %v1118_v7 = vadd.s32 (%p5489_p8), %v1108_v23, %v1106_v3 }
 0x144   : > { %v5819_v17 = vpop.eup %5172 }
 0x145   : > { %v1063_v6 = vpack.c.bf16 %v5819_v17, %v5817_v16  ;;  %v1044_v18 = vpop.f32.mrb[36].mxu0  ;;  %vm1128_vm15 = vcmp.ge.s32.totalorder (%p5489_p8), %v1118_v7, 0 }
 0x146   : > { %v1045_v20 = vadd.f32 %v1044_v18, %v972_v50  ;;  %v4964_v21 = vpop.f32.mrb[37].mxu0  ;;  %v1101_v50 = vadd.s32 (%p5489_p8), 32, %v1097_v41 }
 0x147   : > { %v1075_v30 = vrot.slane %v1063_v6, 4  ;;  %v1047_v14 = vpop.f32.mrb[38].mxu0 }
 0x148   : > { %v1048_v19 = vadd.f32 %v1047_v14, %v975_v54  ;;  %v4965_v22 = vpop.f32.mrb[39].mxu0  ;;  %5178 = vtanh.f32 %v1045_v20  ;;  %v1110_v54 = vadd.s32 (%p5489_p8), %v1108_v23, %v1098_v36  ;;  %v1113_v43 = vadd.s32 (%p5489_p8), %v1108_v23, %v1101_v50 }
 0x149   : > { %v1076_v60 = vsel %vm6651_vm6, %v1073_v49, %v1075_v30 }
 0x14a   : > { %1089 = vst [vmem:[#allocation2 + $0x10] sm:$0xff] %v1076_v60  ;;  %5180 = vtanh.f32 %v1048_v19  ;;  %v5824_v25 = vpop.eup %5174  ;;  %vm1120_vm10 = vcmp.ge.s32.totalorder (%p5489_p8), %v1110_v54, 0  ;;  %vm1130_vm11 = vcmp.lt.s32.totalorder (%p5489_p8), %v1110_v54, 40  ;;  %vm1123_vm3 = vcmp.ge.s32.totalorder (%p5489_p8), %v1113_v43, 0 }
 0x14b   : > { %vm1140_vm13 = vmand (%p5489_p8), %vm1120_vm10, %vm1130_vm11  ;;  %vm1133_vm8 = vcmp.lt.s32.totalorder (%p5489_p8), %v1113_v43, 40  ;;  %vm1135_vm10 = vcmp.lt.s32.totalorder (%p5489_p8), %v1115_v59, 40 }
 0x14c   : > { %v5826_v26 = vpop.eup %5176  ;;  %v1170_v63 = vsel (%p5489_p8), %vm1140_vm13, %v5806_v1, 0.0  ;;  %vm5851_vm9 = vmand (%p5489_p8), %vm1123_vm3, %vm1133_vm8  ;;  %vm1136_vm13 = vcmp.lt.s32.totalorder (%p5489_p8), %v1116_v47, 40  ;;  %vm1138_vm3 = vcmp.lt.s32.totalorder (%p5489_p8), %v1118_v7, 40 }
 0x14d   : > { %v1064_v28 = vpack.c.bf16 %v5826_v26, %v5824_v25  ;;  %v1179_v27 = vpack.c.bf16 (%p5489_p8), %v1170_v63, %v1169_v61  ;;  %vm1144_vm11 = vmand (%p5489_p8), %vm1124_vm7, %vm1134_vm5  ;;  %v1173_v53 = vsel (%p5489_p8), %vm5851_vm9, %v5817_v16, 0.0  ;;  %vm1127_vm5 = vcmp.ge.s32.totalorder (%p5489_p8), %v1117_v38, 0 }
 0x14e   : > { %v1174_v62 = vsel (%p5489_p8), %vm1144_vm11, %v5819_v17, 0.0  ;;  %vm1145_vm0 = vmand (%p5489_p8), %vm1125_vm2, %vm1135_vm10 }
 0x14f   : > { %v1077_v24 = vrot.slane %v1064_v28, 4  ;;  %v1189_v1 = vrot.slane (%p5489_p8), %v1179_v27, 4  ;;  %v1181_v9 = vpack.c.bf16 (%p5489_p8), %v1174_v62, %v1173_v53  ;;  %vm1146_vm14 = vmand (%p5489_p8), %vm1126_vm12, %vm1136_vm13  ;;  %v1175_v10 = vsel (%p5489_p8), %vm1145_vm0, %v5824_v25, 0.0 }
 0x150   : > { %v1176_v11 = vsel (%p5489_p8), %vm1146_vm14, %v5826_v26, 0.0  ;;  %vm1147_vm4 = vmand (%p5489_p8), %vm1127_vm5, %vm1137_vm1 }
 0x151   : > { %v1078_v29 = vsel %vm6651_vm6, %v1075_v30, %v1077_v24  ;;  %1204 = vst [vmem:[#allocation2] sm:$0xf0] (%p5489_p8), %v1189_v1  ;;  %v1191_v49 = vsel (%p5489_p8), %vm6651_vm6, %v1189_v1, %v1190_v8  ;;  %v1192_v5 = vrot.slane (%p5489_p8), %v1181_v9, 4  ;;  %v1182_v13 = vpack.c.bf16 (%p5489_p8), %v1176_v11, %v1175_v10  ;;  %vm1148_vm2 = vmand (%p5489_p8), %vm1128_vm15, %vm1138_vm3 }
 0x152   : > { %1090 = vst [vmem:[#allocation2 + $0x18] sm:$0xff] %v1078_v29  ;;  %v5831_v31 = vpop.eup %5178  ;;  %1205 = vst [vmem:[#allocation2 + $0x8] sm:$0xff] (%p5489_p8), %v1191_v49 }
 0x153   : > { %v1177_v12 = vsel (%p5489_p8), %vm1147_vm4, %v5831_v31, 0.0  ;;  %v1193_v15 = vsel (%p5489_p8), %vm6651_vm6, %v1190_v8, %v1192_v5  ;;  %v1194_v16 = vrot.slane (%p5489_p8), %v1182_v13, 4 }
 0x154   : > { %v5833_v32 = vpop.eup %5180  ;;  %1095 = sbr.rel (!%p5489_p8) target bundleno = 348 (0x15c), region = 36  ;;  %1206 = vst [vmem:[#allocation2 + $0x10] sm:$0xff] (%p5489_p8), %v1193_v15 }
 0x155   : > { %v1065_v33 = vpack.c.bf16 %v5833_v32, %v5831_v31  ;;  %v1178_v17 = vsel (%p5489_p8), %vm1148_vm2, %v5833_v32, 0.0  ;;  %v1195_v18 = vsel (%p5489_p8), %vm6651_vm6, %v1192_v5, %v1194_v16 }
 0x156   : > { %v1183_v6 = vpack.c.bf16 (%p5489_p8), %v1178_v17, %v1177_v12  ;;  %1207 = vst [vmem:[#allocation2 + $0x18] sm:$0xff] (%p5489_p8), %v1195_v18 }
 0x157   : > { %v1079_v34 = vrot.slane %v1065_v33, 4 }
 0x158   : > { %v1196_v20 = vrot.slane (%p5489_p8), %v1183_v6, 4 }
 0x159   : > { %v1080_v40 = vsel %vm6651_vm6, %v1077_v24, %v1079_v34  ;;  %1092 = vst [vmem:[#allocation2 + $0x28] sm:$0xf] %v1079_v34 }
 0x15a   : > { %1091 = vst [vmem:[#allocation2 + $0x20] sm:$0xff] %v1080_v40  ;;  %v1197_v21 = vsel (%p5489_p8), %vm6651_vm6, %v1194_v16, %v1196_v20  ;;  %1209 = vst [vmem:[#allocation2 + $0x28] sm:$0xf] (%p5489_p8), %v1196_v20 }
 0x15b   : > { %1208 = vst [vmem:[#allocation2 + $0x20] sm:$0xff] %v1197_v21 }
 0x15c PF: > { %v5182_v30 = vld [vmem:[%s6643_s1 + $0x180] sm:$0xff]   ;;  %v5184_v19 = vld [vmem:[%s6643_s1 + $0x188] sm:$0xff]   ;;  %v5186_v60 = vld [vmem:[%s6643_s1 + $0x190] sm:$0xff]   ;;  %vm6660_vm7 = vsmask.f32 7424  ;;  %vm6650_vm9 = vcmask 1040384  }
 0x15d   : > { %v5183_v14 = vld [vmem:[%s6643_s1 + $0x140] sm:$0xff]   ;;  %4640 = vmatprep.subr.bf16.mxu1 %v5182_v30  ;;  %v5185_v22 = vld [vmem:[%s6643_s1 + $0x148] sm:$0xff]   ;;  %v5187_v25 = vld [vmem:[%s6643_s1 + $0x150] sm:$0xff]   ;;  %vm6652_vm12 = vcmask 1045504   ;;  %vm6653_vm13 = vsmask.f32 6400 }
 0x15e   : > { %4641 = vmatpush3.bf16.msra.mxu1 %v5183_v14  ;;  %v5188_v26 = vld [vmem:[%s6643_s1 + $0x198] sm:$0xff]   ;;  %v5190_v24 = vld [vmem:[%s6643_s1 + $0x1a0] sm:$0xff]   ;;  %v5192_v31 = vld [vmem:[%s6643_s1 + $0x1a8] sm:$0xff]   ;;  %vm6654_vm0 = vcmask 1046528   ;;  %s1945_s5 = sadd.s32 (%p5489_p8), 4294967272, %s5475_s19 }
 0x15f   : > { %4642 = vmatprep.subr.bf16.mxu1 %v5184_v19  ;;  %v5189_v28 = vld [vmem:[%s6643_s1 + $0x158] sm:$0xff]   ;;  %v5191_v29 = vld [vmem:[%s6643_s1 + $0x160] sm:$0xff]   ;;  %v5901_v33 = vld [vmem:[#allocation2 + $0x8] sm:$0xff] }
 0x160   : > { %v1210_v32 = vld [vmem:[#allocation2] sm:$0x80]  ;;  %v5903_v34 = vld [vmem:[#allocation2 + $0x10] sm:$0xff]  ;;  %v1226_v35 = vshll.u32 %v5901_v33, 16  ;;  %v1230_v23 = vshrl.u32 %v5901_v33, 16  ;;  %v5193_v36 = vld [vmem:[%s6643_s1 + $0x168] sm:$0xff]  }
 0x161   : > { %v1223_v40 = vshrl.u32 %v1210_v32, 16  ;;  %v1234_v41 = vshll.u32 %v5903_v34, 16  ;;  %v5194_v46 = vld [vmem:[%s6643_s1 + $0x1b0] sm:$0xff]   ;;  %v1238_v50 = vshrl.u32 %v5903_v34, 16  ;;  %v5201_v54 = vld [vmem:[%s6643_s1 + $0x240] sm:$0xff]   ;;  %v5196_v55 = vld [vmem:[%s6643_s1 + $0x1b8] sm:$0xff]  }
 0x162   : > { %4643 = vmatpush3.bf16.msra.mxu1 %v5185_v22  ;;  %v1228_v42 = vrot.slane %v1226_v35, 1  ;;  %v5195_v51 = vld [vmem:[%s6643_s1 + $0x170] sm:$0xff]   ;;  %vm6661_vm8 = vmmov %vm6660_vm7  ;;  %4966 = vmatprep.subr.bf16.mxu0 %v5201_v54  ;;  %v5932_v43 = vld [vmem:[#allocation2 + $0x18] sm:$0xff]  ;;  %v1417_v59 = vrot.slane %v1210_v32, 7  ;;  %v1418_v0 = vrot.slane %v5901_v33, 7  ;;  %v1432_v16 = vrot.slane %v5903_v34, 7 }
 0x163   : > { %4644 = vmatprep.subr.bf16.mxu1 %v5186_v60  ;;  %v1236_v45 = vrot.slane %v1234_v41, 1  ;;  %4967 = vmatpush3.bf16.msra.mxu0 %v5201_v54  ;;  %v1242_v63 = vshll.u32 %v5932_v43, 16  ;;  %v5204_v27 = vld [vmem:[%s6643_s1 + $0x248] sm:$0xff]   ;;  %v5197_v44 = vld [vmem:[%s6643_s1 + $0x178] sm:$0xff]   ;;  %v5198_v2 = vld [vmem:[%s6643_s1 + $0x200] sm:$0xff]   ;;  %v1246_v3 = vshrl.u32 %v5932_v43, 16 }
 0x164   : > { %v1229_v52 = vsel %vm6660_vm7, %v1223_v40, %v1228_v42  ;;  %v1232_v37 = vor.u32 %v1230_v23, %v1228_v42  ;;  %4968 = vmatprep.subr.bf16.mxu0 %v5204_v27  ;;  %vm6662_vm10 = vmmov %vm6660_vm7  ;;  %v5207_v4 = vld [vmem:[%s6643_s1 + $0x250] sm:$0xff]   ;;  %v5955_v62 = vld [vmem:[#allocation2 + $0x20] sm:$0xff]  ;;  %v1419_v9 = vsel %vm6650_vm9, %v1417_v59, %v1418_v0  ;;  %v1433_v30 = vsel %vm6650_vm9, %v1418_v0, %v1432_v16 }
 0x165   : > { %v1420_v56 = vrot.slane %v1229_v52, 7  ;;  %v1240_v61 = vor.u32 %v1238_v50, %v1236_v45  ;;  %v1244_v48 = vrot.slane %v1242_v63, 1  ;;  %v5199_v38 = vld [vmem:[%s6643_s1 + $0x1c0] sm:$0xff]   ;;  %v1250_v8 = vshll.u32 %v5955_v62, 16  ;;  %v5210_v10 = vld [vmem:[%s6643_s1 + $0x258] sm:$0xff]   ;;  %v5200_v11 = vld [vmem:[%s6643_s1 + $0x208] sm:$0xff]  }
 0x166   : > { %4645 = vmatpush3.bf16.msra.mxu1 %v5187_v25  ;;  %v1237_v57 = vsel %vm6661_vm8, %v1232_v37, %v1236_v45  ;;  %vm6663_vm11 = vmmov %vm6660_vm7  ;;  %v5213_v12 = vld [vmem:[%s6643_s1 + $0x260] sm:$0xff]   ;;  %v5202_v15 = vld [vmem:[%s6643_s1 + $0x1c8] sm:$0xff]   ;;  %v1254_v18 = vshrl.u32 %v5955_v62, 16  ;;  %v1273_v19 = vrot.slane %v1230_v23, 1  ;;  %v1276_v25 = vrot.slane %v1226_v35, 2 }
 0x167   : > { %4646 = vmatprep.subr.bf16.mxu1 %v5188_v26  ;;  %v1421_v58 = vrot.slane %v1237_v57, 7  ;;  %v1245_v1 = vsel %vm6662_vm10, %v1240_v61, %v1244_v48  ;;  %4969 = vmatpush3.bf16.msra.mxu0 %v5204_v27  ;;  %v1248_v7 = vor.u32 %v1246_v3, %v1244_v48  ;;  %v1252_v5 = vrot.slane %v1250_v8, 1  ;;  %v5203_v17 = vld [vmem:[%s6643_s1 + $0x210] sm:$0xff]   ;;  %v5216_v21 = vld [vmem:[%s6643_s1 + $0x268] sm:$0xff]   ;;  %v5206_v14 = vld [vmem:[%s6643_s1 + $0x218] sm:$0xff]  }
 0x168   : > { %v1434_v53 = vrot.slane %v1245_v1, 7  ;;  %4970 = vmatprep.subr.bf16.mxu0 %v5207_v4  ;;  %v5205_v20 = vld [vmem:[%s6643_s1 + $0x1d0] sm:$0xff]   ;;  %v1281_v26 = vrot.slane %v1238_v50, 1  ;;  %v1442_v32 = vrot.slane %v5932_v43, 7  ;;  %v1221_v40 = vld [vmem:[#allocation2 + $0x8] sm:$0xfe]  ;;  %v1277_v42 = vor.u32 %v1276_v25, %v1273_v19 }
 0x169   : > { %v1422_v47 = vsel %vm6650_vm9, %v1420_v56, %v1421_v58  ;;  %v1253_v13 = vsel %vm6663_vm11, %v1248_v7, %v1252_v5  ;;  %v1256_v60 = vor.u32 %v1254_v18, %v1252_v5  ;;  %v1319_v35 = vrot.slane %v5932_v43, 2  ;;  %v5209_v23 = vld [vmem:[%s6643_s1 + $0x220] sm:$0xff]   ;;  %v6032_v27 = vld [vmem:[#allocation2 + $0x28] sm:$0x1] }
 0x16a   : > { %4647 = vmatpush3.bf16.msra.mxu1 %v5189_v28  ;;  %1754 = vmatprep.mubr.bf16.mxu1 %v1422_v47  ;;  %v1435_v49 = vsel %vm6650_vm9, %v1421_v58, %v1434_v53  ;;  %v1444_v6 = vrot.slane %v1253_v13, 7  ;;  %v5219_v28 = vld [vmem:[%s6643_s1 + $0x270] sm:$0xff]   ;;  %v1443_v37 = vsel %vm6650_vm9, %v1432_v16, %v1442_v32  ;;  %v5211_v54 = vld [vmem:[%s6643_s1 + $0x1e0] sm:$0xff]   ;;  %v1321_v61 = vrot.slane %v5955_v62, 2  ;;  %v5214_v1 = vld [vmem:[%s6643_s1 + $0x1e8] sm:$0xff]  }
 0x16b   : > { %4648 = vmatprep.subr.bf16.mxu1 %v5190_v24  ;;  %4971 = vmatpush3.bf16.msra.mxu0 %v5207_v4  ;;  %v1284_v24 = vrot.slane %v1234_v41, 2  ;;  %v1454_v41 = vrot.slane %v1256_v60, 7  ;;  %v1214_v58 = vld [vmem:[#allocation2 + $0x20] sm:$0x7f]  ;;  %v1290_v0 = vrot.slane %v1246_v3, 1  ;;  %v1293_v48 = vrot.slane %v1242_v63, 2 }
 0x16c   : > { %4972 = vmatprep.subr.bf16.mxu0 %v5210_v10  ;;  %v1445_v22 = vsel %vm6650_vm9, %v1434_v53, %v1444_v6  ;;  %v1452_v4 = vrot.slane %v1214_v58, 7  ;;  %v1426_v53 = vrot.slane %v1277_v42, 7  ;;  %v1323_v7 = vrot.slane %v6032_v27, 2  ;;  %v5215_v63 = vld [vmem:[%s6643_s1 + $0x230] sm:$0xff]  }
 0x16d   : > { %v1285_v45 = vor.u32 %v1284_v24, %v1281_v26  ;;  %v1455_v57 = vsel %vm6650_vm9, %v1444_v6, %v1454_v41  ;;  %v1265_v60 = vrot.slane %v5932_v43, 1  ;;  %v1267_v43 = vrot.slane %v5955_v62, 1 }
 0x16e   : > { %4649 = vmatpush3.bf16.msra.mxu1 %v5191_v29  ;;  %v1317_v29 = vrot.slane %v5903_v34, 2  ;;  %v1324_v13 = vsel %vm6652_vm12, %v1321_v61, %v1323_v7 }
 0x16f   : > { %4650 = vmatprep.subr.bf16.mxu1 %v5192_v31  ;;  %4973 = vmatpush3.bf16.msra.mxu0 %v5210_v10  ;;  %v5208_v31 = vld [vmem:[%s6643_s1 + $0x1d8] sm:$0xff]   ;;  %v1263_v10 = vrot.slane %v5903_v34, 1  ;;  %v1268_v41 = vsel %vm6654_vm0, %v1265_v60, %v1267_v43  ;;  %v1456_v62 = vrot.slane %v1267_v43, 7 }
 0x170   : > { %4974 = vmatprep.subr.bf16.mxu0 %v5213_v12  ;;  %v1320_v50 = vsel %vm6652_vm12, %v1317_v29, %v1319_v35 }
 0x171   : > { %v1440_v59 = vrot.slane %v1320_v50, 7 }
 0x172   : > { %4651 = vmatpush3.bf16.msra.mxu1 %v5193_v36  ;;  %v1316_v36 = vrot.slane %v1221_v40, 2 }
 0x173   : > { %4652 = vmatprep.subr.bf16.mxu1 %v5194_v46  ;;  %4975 = vmatpush3.bf16.msra.mxu0 %v5213_v12  ;;  %v5221_v46 = vld [vmem:[%s6643_s1 + $0x278] sm:$0xff]   ;;  %v1453_v12 = vsel %vm6650_vm9, %v1442_v32, %v1452_v4 }
 0x174   : > { %4976 = vmatprep.subr.bf16.mxu0 %v5216_v21  ;;  %v1429_v52 = vrot.slane %v1316_v36, 7 }
 0x176   : > { %4653 = vmatpush3.bf16.msra.mxu1 %v5195_v51  ;;  %v1318_v51 = vsel %vm6652_vm12, %v1316_v36, %v1317_v29  ;;  %v1306_v29 = vshll.u32 %v6032_v27, 16 }
 0x177   : > { %4654 = vmatprep.subr.bf16.mxu1 %v5196_v55  ;;  %4977 = vmatpush3.bf16.msra.mxu0 %v5216_v21  ;;  %v5212_v55 = vld [vmem:[%s6643_s1 + $0x228] sm:$0xff]   ;;  %v1430_v56 = vrot.slane %v1318_v51, 7  ;;  %v1302_v21 = vrot.slane %v1250_v8, 2 }
 0x178   : > { %4978 = vmatprep.subr.bf16.mxu0 %v5219_v28  ;;  %v1308_v40 = vrot.slane %v1306_v29, 2 }
 0x179   : > { %v1431_v47 = vsel %vm6650_vm9, %v1429_v52, %v1430_v56 }
 0x17a   : > { %4655 = vmatpush3.bf16.msra.mxu1 %v5197_v44  ;;  %v1286_v44 = vsel %vm6653_vm13, %v1277_v42, %v1285_v45  ;;  %4982 = vmatprep.mubr.bf16.mxu0 %v1431_v47  ;;  %v1446_v42 = vrot.slane %v1268_v41, 7 }
 0x17b   : > { %4680 = vmatprep.subr.bf16.mxu1 %v5198_v2  ;;  %4979 = vmatpush3.bf16.msra.mxu0 %v5219_v28  ;;  %v1322_v2 = vsel %vm6652_vm12, %v1319_v35, %v1321_v61  ;;  %v1427_v3 = vrot.slane %v1286_v44, 7  ;;  %v1266_v28 = vsel %vm6654_vm0, %v1263_v10, %v1265_v60 }
 0x17c   : > { %4980 = vmatprep.subr.bf16.mxu0 %v5221_v46  ;;  %v1457_v51 = vsel %vm6650_vm9, %v1446_v42, %v1456_v62 }
 0x17d   : > { %1755 = vmatmul.mubr.bf16.vlgmr.msra.gmra.mrb[20].mxu1 %v1419_v9  ;;  %v1262_v9 = vrot.slane %v5901_v33, 1  ;;  %v5218_v33 = vld [vmem:[%s6643_s1 + $0x238] sm:$0xff]   ;;  %v1428_v34 = vsel %vm6650_vm9, %v1426_v53, %v1427_v3 }
 0x17e   : > { %4681 = vmatpush3.bf16.msra.mxu1 %v5199_v38  ;;  %1762 = vmatprep.mubr.bf16.mxu1 %v1435_v49  ;;  %v1450_v38 = vrot.slane %v1322_v2, 7  ;;  %v1294_v49 = vor.u32 %v1293_v48, %v1290_v0 }
 0x17f   : > { %4682 = vmatprep.subr.bf16.mxu1 %v5200_v11  ;;  %4981 = vmatpush3.bf16.msra.mxu0 %v5221_v46  ;;  %v1441_v11 = vsel %vm6650_vm9, %v1430_v56, %v1440_v59  ;;  %v1264_v16 = vsel %vm6654_vm0, %v1262_v9, %v1263_v10 }
 0x180   : > { %v1451_v5 = vsel %vm6650_vm9, %v1440_v59, %v1450_v38  ;;  %v1295_v6 = vsel %vm6653_vm13, %v1285_v45, %v1294_v49  ;;  %v1424_v19 = vrot.slane %v1264_v16, 7 }
 0x182   : > { %4683 = vmatpush3.bf16.msra.mxu1 %v5202_v15  ;;  %v5217_v15 = vld [vmem:[%s6643_s1 + $0x1f0] sm:$0xff]   ;;  %4983 = vmatmul.mubr.bf16.vlgmr.msra.gmra.mrb[40].mxu0 %v1441_v11 }
 0x183   : > { %4684 = vmatprep.subr.bf16.mxu1 %v5203_v17  ;;  %4986 = vmatprep.mubr.bf16.mxu0 %v1451_v5  ;;  %v1460_v17 = vrot.slane %v1324_v13, 7 }
 0x185   : > { %1763 = vmatmul.mubr.bf16.gmra.mrb[24].mxu1 %v1433_v30  ;;  %v5220_v30 = vld [vmem:[%s6643_s1 + $0x1f8] sm:$0xff]   ;;  %v1461_v25 = vsel %vm6650_vm9, %v1450_v38, %v1460_v17 }
 0x186   : > { %4685 = vmatpush3.bf16.msra.mxu1 %v5205_v20  ;;  %1770 = vmatprep.mubr.bf16.mxu1 %v1445_v22  ;;  %v1299_v20 = vrot.slane %v1254_v18, 1  ;;  %v1438_v22 = vrot.slane %v1295_v6, 7 }
 0x187   : > { %4686 = vmatprep.subr.bf16.mxu1 %v5206_v14  ;;  %v1423_v14 = vrot.slane %v1262_v9, 7 }
 0x188   : > { %v1303_v26 = vor.u32 %v1302_v21, %v1299_v20  ;;  %v1439_v8 = vsel %vm6650_vm9, %v1427_v3, %v1438_v22 }
 0x189   : > { %v1425_v18 = vsel %vm6650_vm9, %v1423_v14, %v1424_v19 }
 0x18a   : > { %4687 = vmatpush3.bf16.msra.mxu1 %v5208_v31  ;;  %4987 = vmatmul.mubr.bf16.gmra.mrb[44].mxu0 %v1461_v25  ;;  %v1304_v24 = vsel %vm6653_vm13, %v1294_v49, %v1303_v26  ;;  %v1436_v31 = vrot.slane %v1266_v28, 7  ;;  %v1309_v36 = vsel %vm6653_vm13, %v1303_v26, %v1308_v40 }
 0x18b   : > { %4688 = vmatprep.subr.bf16.mxu1 %v5209_v23  ;;  %v1448_v32 = vrot.slane %v1304_v24, 7  ;;  %v1458_v45 = vrot.slane %v1309_v36, 7 }
 0x18c   : > { %v1437_v35 = vsel %vm6650_vm9, %v1424_v19, %v1436_v31  ;;  %v1447_v46 = vsel %vm6650_vm9, %v1436_v31, %v1446_v42 }
 0x18d   : > { %1771 = vmatmul.mubr.bf16.gmra.mrb[28].mxu1 %v1443_v37  ;;  %v1449_v23 = vsel %vm6650_vm9, %v1438_v22, %v1448_v32  ;;  %v1459_v50 = vsel %vm6650_vm9, %v1448_v32, %v1458_v45 }
 0x18e   : > { %4689 = vmatpush3.bf16.msra.mxu1 %v5211_v54  ;;  %1778 = vmatprep.mubr.bf16.mxu1 %v1455_v57 }
 0x18f   : > { %4690 = vmatprep.subr.bf16.mxu1 %v5212_v55 }
 0x192   : > { %4691 = vmatpush3.bf16.msra.mxu1 %v5214_v1 }
 0x193   : > { %4692 = vmatprep.subr.bf16.mxu1 %v5215_v63 }
 0x195   : > { %1779 = vmatmul.mubr.bf16.gmra.mrb[32].mxu1 %v1453_v12 }
 0x196   : > { %4693 = vmatpush3.bf16.msra.mxu1 %v5217_v15  ;;  %1819 = vmatprep.mubr.bf16.mxu1 %v1428_v34 }
 0x197   : > { %4694 = vmatprep.subr.bf16.mxu1 %v5218_v33  ;;  %v4126_v33 = vld [vmem:[%s6644_s2 + $0x1] ss:$0 sm:$0xff] }
 0x19a   : > { %4695 = vmatpush3.bf16.msra.mxu1 %v5220_v30 }
 0x19d   : > { %1820 = vmatmul.mubr.bf16.vlgmr.msra.gmra.mrb[36].mxu1 %v1425_v18 }
 0x19e   : > { %1827 = vmatprep.mubr.bf16.mxu1 %v1439_v8 }
 0x1a5   : > { %1828 = vmatmul.mubr.bf16.gmra.mrb[40].mxu1 %v1437_v35 }
 0x1a6   : > { %1835 = vmatprep.mubr.bf16.mxu1 %v1449_v23 }
 0x1ad   : > { %1836 = vmatmul.mubr.bf16.gmra.mrb[44].mxu1 %v1447_v46 }
 0x1ae   : > { %1843 = vmatprep.mubr.bf16.mxu1 %v1459_v50 }
 0x1b5   : > { %1844 = vmatmul.mubr.bf16.gmra.mrb[48].mxu1 %v1457_v51 }
 0x250   : > { %v4656_v52 = vpop.f32.mrb[20].mxu1 }
 0x251   : > { %v4657_v37 = vpop.f32.mrb[21].mxu1 }
 0x252   : > { %v4658_v54 = vadd.f32 %v4657_v37, %v4656_v52  ;;  %v4659_v55 = vpop.f32.mrb[22].mxu1 }
 0x253   : > { %v4660_v56 = vpop.f32.mrb[23].mxu1 }
 0x254   : > { %v4661_v57 = vadd.f32 %v4660_v56, %v4659_v55  ;;  %v1757_v20 = vadd.f32 %v4658_v54, %v4126_v33 }
 0x255   : > { %v4984_v38 = vpop.f32.mrb[40].mxu0 }
 0x256   : > { %v1886_v7 = vpop.f32.mrb[41].mxu0  ;;  %v1760_v19 = vadd.f32 %v4661_v57, %v4126_v33 }
 0x257   : > { %v4985_v63 = vpop.f32.mrb[42].mxu0 }
 0x258   : > { %v4662_v58 = vpop.f32.mrb[24].mxu1  ;;  %v1889_v9 = vpop.f32.mrb[43].mxu0 }
 0x259   : > { %v4663_v59 = vpop.f32.mrb[25].mxu1 }
 0x25a   : > { %v4664_v61 = vadd.f32 %v4663_v59, %v4662_v58  ;;  %v4665_v27 = vpop.f32.mrb[26].mxu1 }
 0x25b   : > { %v4666_v44 = vpop.f32.mrb[27].mxu1 }
 0x25c   : > { %v4667_v47 = vadd.f32 %v4666_v44, %v4665_v27  ;;  %v1765_v24 = vadd.f32 %v4664_v61, %v4126_v33 }
 0x25d   : > { %v6085_v12 = vpop.f32.mrb[44].mxu0 }
 0x25e   : > { %v1902_v15 = vpop.f32.mrb[45].mxu0  ;;  %v1768_v43 = vadd.f32 %v4667_v47, %v4126_v33 }
 0x25f   : > { %v6090_v34 = vpop.f32.mrb[46].mxu0 }
 0x260   : > { %v4668_v0 = vpop.f32.mrb[28].mxu1  ;;  %v1905_v17 = vpop.f32.mrb[47].mxu0 }
 0x261   : > { %v4669_v48 = vpop.f32.mrb[29].mxu1 }
 0x262   : > { %v4670_v2 = vadd.f32 %v4669_v48, %v4668_v0  ;;  %v4671_v1 = vpop.f32.mrb[30].mxu1 }
 0x263   : > { %v4672_v4 = vpop.f32.mrb[31].mxu1 }
 0x264   : > { %v4673_v53 = vadd.f32 %v4672_v4, %v4671_v1  ;;  %v1773_v46 = vadd.f32 %v4670_v2, %v4126_v33 }
 0x266   : > { %v1776_v54 = vadd.f32 %v4673_v53, %v4126_v33 }
 0x268   : > { %v4674_v3 = vpop.f32.mrb[32].mxu1 }
 0x269   : > { %v4675_v10 = vpop.f32.mrb[33].mxu1 }
 0x26a   : > { %v4676_v11 = vadd.f32 %v4675_v10, %v4674_v3  ;;  %v4677_v49 = vpop.f32.mrb[34].mxu1 }
 0x26b   : > { %v4678_v5 = vpop.f32.mrb[35].mxu1 }
 0x26c   : > { %v4679_v13 = vadd.f32 %v4678_v5, %v4677_v49  ;;  %v1781_v47 = vadd.f32 %v4676_v11, %v4126_v33 }
 0x26e   : > { %v1784_v53 = vadd.f32 %v4679_v13, %v4126_v33 }
 0x270   : > { %v4696_v16 = vpop.f32.mrb[36].mxu1 }
 0x271   : > { %v4697_v6 = vpop.f32.mrb[37].mxu1 }
 0x272   : > { %v4698_v21 = vadd.f32 %v4697_v6, %v4696_v16  ;;  %v4699_v30 = vpop.f32.mrb[38].mxu1  ;;  %v1946_v16 = vstv (%p5489_p8), %s1945_s5 }
 0x273   : > { %v4700_v14 = vpop.f32.mrb[39].mxu1 }
 0x274   : > { %v4701_v22 = vadd.f32 %v4700_v14, %v4699_v30  ;;  %v1822_v60 = vadd.f32 %v4698_v21, %v1757_v20 }
 0x276   : > { %v1887_v25 = vadd.f32 %v1886_v7, %v1822_v60  ;;  %v1825_v26 = vadd.f32 %v4701_v22, %v1760_v19 }
 0x278   : > { %v1890_v18 = vadd.f32 %v1889_v9, %v1825_v26  ;;  %v4702_v8 = vpop.f32.mrb[40].mxu1  ;;  %5222 = vtanh.f32 %v1887_v25 }
 0x279   : > { %v4703_v28 = vpop.f32.mrb[41].mxu1 }
 0x27a   : > { %5224 = vtanh.f32 %v1890_v18  ;;  %v4704_v29 = vadd.f32 %v4703_v28, %v4702_v8  ;;  %v4705_v31 = vpop.f32.mrb[42].mxu1 }
 0x27b   : > { %v4706_v32 = vpop.f32.mrb[43].mxu1 }
 0x27c   : > { %v1830_v40 = vadd.f32 %v4704_v29, %v1765_v24  ;;  %v4707_v35 = vadd.f32 %v4706_v32, %v4705_v31 }
 0x27e   : > { %v1895_v23 = vadd.f32 %v4984_v38, %v1830_v40  ;;  %v1833_v41 = vadd.f32 %v4707_v35, %v1768_v43 }
 0x280   : > { %v1898_v36 = vadd.f32 %v4985_v63, %v1833_v41  ;;  %v4708_v42 = vpop.f32.mrb[44].mxu1  ;;  %5226 = vtanh.f32 %v1895_v23 }
 0x281   : > { %v4709_v45 = vpop.f32.mrb[45].mxu1 }
 0x282   : > { %5228 = vtanh.f32 %v1898_v36  ;;  %v4710_v50 = vadd.f32 %v4709_v45, %v4708_v42  ;;  %v4711_v62 = vpop.f32.mrb[46].mxu1  ;;  %v6092_v51 = vpop.eup %5222 }
 0x283   : > { %v4712_v52 = vpop.f32.mrb[47].mxu1 }
 0x284   : > { %v6094_v37 = vpop.eup %5224  ;;  %v4713_v55 = vadd.f32 %v4712_v52, %v4711_v62  ;;  %v1838_v56 = vadd.f32 %v4710_v50, %v1773_v46 }
 0x285   : > { %v1925_v57 = vpack.c.bf16 %v6094_v37, %v6092_v51 }
 0x286   : > { %v1903_v58 = vadd.f32 %v1902_v15, %v1838_v56  ;;  %v1841_v59 = vadd.f32 %v4713_v55, %v1776_v54 }
 0x287   : > { %1929 = vst [vmem:[#allocation3 + $0x8] sm:$0xff] %v1925_v57 }
 0x288   : > { %v1906_v61 = vadd.f32 %v1905_v17, %v1841_v59  ;;  %v4714_v27 = vpop.f32.mrb[48].mxu1  ;;  %5230 = vtanh.f32 %v1903_v58 }
 0x289   : > { %v4715_v44 = vpop.f32.mrb[49].mxu1 }
 0x28a   : > { %5232 = vtanh.f32 %v1906_v61  ;;  %v4716_v0 = vadd.f32 %v4715_v44, %v4714_v27  ;;  %v4717_v48 = vpop.f32.mrb[50].mxu1  ;;  %v6098_v2 = vpop.eup %5226 }
 0x28b   : > { %v4718_v1 = vpop.f32.mrb[51].mxu1 }
 0x28c   : > { %v6100_v4 = vpop.eup %5228  ;;  %v1846_v38 = vadd.f32 %v4716_v0, %v1781_v47  ;;  %v4719_v7 = vadd.f32 %v4718_v1, %v4717_v48 }
 0x28d   : > { %v1926_v63 = vpack.c.bf16 %v6100_v4, %v6098_v2 }
 0x28e   : > { %v1911_v3 = vadd.f32 %v6085_v12, %v1846_v38  ;;  %v1849_v9 = vadd.f32 %v4719_v7, %v1784_v53  ;;  %v1936_v12 = vlaneseq (%p5489_p8) }
 0x28f   : > { %1930 = vst [vmem:[#allocation3 + $0x10] sm:$0xff] %v1926_v63 }
 0x290   : > { %v1914_v10 = vadd.f32 %v6090_v34, %v1849_v9  ;;  %5234 = vtanh.f32 %v1911_v3  ;;  %v1937_v34 = vshrl.u32 (%p5489_p8), %v1936_v12, 7 }
 0x292   : > { %5236 = vtanh.f32 %v1914_v10  ;;  %v5231_v11 = vpop.eup %5230  ;;  %v1938_v17 = vadd.s32 (%p5489_p8), 8, %v1937_v34  ;;  %v1947_v6 = vadd.s32 (%p5489_p8), %v1946_v16, %v1937_v34  ;;  %v1939_v20 = vadd.s32 (%p5489_p8), 16, %v1937_v34 }
 0x293   : > { %v1940_v21 = vadd.s32 (%p5489_p8), 24, %v1937_v34  ;;  %v1941_v30 = vadd.s32 (%p5489_p8), 32, %v1937_v34  ;;  %v1942_v14 = vadd.s32 (%p5489_p8), 40, %v1937_v34  ;;  %v1943_v19 = vadd.s32 (%p5489_p8), 48, %v1937_v34 }
 0x294   : > { %v5233_v49 = vpop.eup %5232  ;;  %v1944_v22 = vadd.s32 (%p5489_p8), 56, %v1937_v34  ;;  %v1948_v60 = vadd.s32 (%p5489_p8), %v1946_v16, %v1938_v17  ;;  %vm1955_vm14 = vcmp.ge.s32.totalorder (%p5489_p8), %v1947_v6, 0  ;;  %vm1963_vm5 = vcmp.lt.s32.totalorder (%p5489_p8), %v1947_v6, 40 }
 0x295   : > { %v1927_v5 = vpack.c.bf16 %v5233_v49, %v5231_v11  ;;  %v1949_v25 = vadd.s32 (%p5489_p8), %v1946_v16, %v1939_v20  ;;  %vm6112_vm15 = vmand (%p5489_p8), %vm1955_vm14, %vm1963_vm5  ;;  %v1950_v18 = vadd.s32 (%p5489_p8), %v1946_v16, %v1940_v21  ;;  %v1951_v8 = vadd.s32 (%p5489_p8), %v1946_v16, %v1941_v30 }
 0x296   : > { %v1952_v28 = vadd.s32 (%p5489_p8), %v1946_v16, %v1942_v14  ;;  %v1953_v24 = vadd.s32 (%p5489_p8), %v1946_v16, %v1943_v19  ;;  %vm1956_vm1 = vcmp.ge.s32.totalorder (%p5489_p8), %v1948_v60, 0  ;;  %vm1964_vm3 = vcmp.lt.s32.totalorder (%p5489_p8), %v1948_v60, 40 }
 0x297   : > { %1931 = vst [vmem:[#allocation3 + $0x18] sm:$0xff] %v1927_v5  ;;  %v1995_v29 = vsel (%p5489_p8), %vm6112_vm15, %v6092_v51, 0.0  ;;  %vm1957_vm4 = vcmp.ge.s32.totalorder (%p5489_p8), %v1949_v25, 0  ;;  %vm1972_vm2 = vmand (%p5489_p8), %vm1956_vm1, %vm1964_vm3  ;;  %vm1958_vm7 = vcmp.ge.s32.totalorder (%p5489_p8), %v1950_v18, 0  ;;  %vm1965_vm8 = vcmp.lt.s32.totalorder (%p5489_p8), %v1949_v25, 40 }
 0x298   : > { %vm1966_vm10 = vcmp.lt.s32.totalorder (%p5489_p8), %v1950_v18, 40  ;;  %vm1959_vm11 = vcmp.ge.s32.totalorder (%p5489_p8), %v1951_v8, 0  ;;  %v1996_v31 = vsel (%p5489_p8), %vm1972_vm2, %v6094_v37, 0.0  ;;  %vm1973_vm14 = vmand (%p5489_p8), %vm1957_vm4, %vm1965_vm8  ;;  %vm1960_vm5 = vcmp.ge.s32.totalorder (%p5489_p8), %v1952_v28, 0 }
 0x299   : > { %1935 = sbr.rel (!%p5489_p8) target bundleno = 674 (0x2a2), region = 40  ;;  %vm1967_vm9 = vcmp.lt.s32.totalorder (%p5489_p8), %v1951_v8, 40  ;;  %vm1968_vm6 = vcmp.lt.s32.totalorder (%p5489_p8), %v1952_v28, 40  ;;  %v2003_v32 = vpack.c.bf16 (%p5489_p8), %v1996_v31, %v1995_v29  ;;  %vm1974_vm12 = vmand (%p5489_p8), %vm1958_vm7, %vm1966_vm10  ;;  %v1997_v43 = vsel (%p5489_p8), %vm1973_vm14, %v6098_v2, 0.0 }
 0x29a   : > { %v6106_v15 = vpop.eup %5234  ;;  %v1954_v40 = vadd.s32 (%p5489_p8), %v1946_v16, %v1944_v22  ;;  %vm1961_vm13 = vcmp.ge.s32.totalorder (%p5489_p8), %v1953_v24, 0  ;;  %v1998_v35 = vsel (%p5489_p8), %vm1974_vm12, %v6100_v4, 0.0  ;;  %vm1975_vm15 = vmand (%p5489_p8), %vm1959_vm11, %vm1967_vm9  ;;  %vm1969_vm1 = vcmp.lt.s32.totalorder (%p5489_p8), %v1953_v24, 40 }
 0x29b   : > { %2007 = vst [vmem:[#allocation3 + $0x8] sm:$0xff] (%p5489_p8), %v2003_v32  ;;  %v2004_v23 = vpack.c.bf16 (%p5489_p8), %v1998_v35, %v1997_v43  ;;  %vm1976_vm3 = vmand (%p5489_p8), %vm1960_vm5, %vm1968_vm6  ;;  %v1999_v41 = vsel (%p5489_p8), %vm1975_vm15, %v5231_v11, 0.0 }
 0x29c   : > { %v5237_v13 = vpop.eup %5236  ;;  %vm1962_vm0 = vcmp.ge.s32.totalorder (%p5489_p8), %v1954_v40, 0  ;;  %vm1970_vm2 = vcmp.lt.s32.totalorder (%p5489_p8), %v1954_v40, 40  ;;  %v2000_v36 = vsel (%p5489_p8), %vm1976_vm3, %v5233_v49, 0.0  ;;  %vm1977_vm4 = vmand (%p5489_p8), %vm1961_vm13, %vm1969_vm1 }
 0x29d   : > { %v1928_v33 = vpack.c.bf16 %v5237_v13, %v6106_v15  ;;  %2008 = vst [vmem:[#allocation3 + $0x10] sm:$0xff] (%p5489_p8), %v2004_v23  ;;  %v2005_v42 = vpack.c.bf16 (%p5489_p8), %v2000_v36, %v1999_v41  ;;  %vm1978_vm8 = vmand (%p5489_p8), %vm1962_vm0, %vm1970_vm2  ;;  %v2001_v45 = vsel (%p5489_p8), %vm1977_vm4, %v6106_v15, 0.0 }
 0x29e   : > { %v2002_v46 = vsel (%p5489_p8), %vm1978_vm8, %v5237_v13, 0.0 }
 0x29f   : > { %1932 = vst [vmem:[#allocation3 + $0x20] sm:$0xff] %v1928_v33  ;;  %2009 = vst [vmem:[#allocation3 + $0x18] sm:$0xff] (%p5489_p8), %v2005_v42  ;;  %v2006_v50 = vpack.c.bf16 (%p5489_p8), %v2002_v46, %v2001_v45 }
 0x2a1   : > { %2010 = vst [vmem:[#allocation3 + $0x20] sm:$0xff] %v2006_v50 }
 0x2a2 PF: > { %v5238_v62 = vld [vmem:[%s6643_s1 + $0x2c0] sm:$0xff]   ;;  %v5242_v54 = vld [vmem:[%s6643_s1 + $0x2c8] sm:$0xff]   ;;  %v5246_v58 = vld [vmem:[%s6643_s1 + $0x2d0] sm:$0xff]   ;;  %vm6666_vm6 = vcmask 1044480   ;;  %vm6667_vm9 = vsmask.f32 7424 }
 0x2a3   : > { %v5239_v51 = vld [vmem:[%s6643_s1 + $0x280] sm:$0xff]   ;;  %4732 = vmatprep.subr.bf16.mxu1 %v5238_v62  ;;  %v5243_v55 = vld [vmem:[%s6643_s1 + $0x288] sm:$0xff]   ;;  %v5247_v59 = vld [vmem:[%s6643_s1 + $0x290] sm:$0xff]   ;;  %vm6669_vm13 = vcmask 1046528   ;;  %vm6671_vm7 = vsmask.f32 6400 }
 0x2a4   : > { %v5240_v52 = vld [vmem:[%s6643_s1 + $0x340] sm:$0xff]   ;;  %4733 = vmatpush3.bf16.msra.mxu1 %v5239_v51  ;;  %v5244_v56 = vld [vmem:[%s6643_s1 + $0x348] sm:$0xff]   ;;  %v5248_v61 = vld [vmem:[%s6643_s1 + $0x350] sm:$0xff]   ;;  %s2682_s20 = sadd.s32 (%p5489_p8), 4294967280, %s5475_s19 }
 0x2a5   : > { %v5241_v37 = vld [vmem:[%s6643_s1 + $0x300] sm:$0xff]   ;;  %4766 = vmatprep.subr.bf16.mxu0 %v5240_v52  ;;  %4734 = vmatprep.subr.bf16.mxu1 %v5242_v54  ;;  %v5245_v57 = vld [vmem:[%s6643_s1 + $0x308] sm:$0xff]   ;;  %v5249_v27 = vld [vmem:[%s6643_s1 + $0x310] sm:$0xff]  }
 0x2a6   : > { %4767 = vmatpush3.bf16.msra.mxu0 %v5241_v37  ;;  %v5250_v44 = vld [vmem:[%s6643_s1 + $0x2d8] sm:$0xff]   ;;  %v5254_v2 = vld [vmem:[%s6643_s1 + $0x2e0] sm:$0xff]   ;;  %v5258_v38 = vld [vmem:[%s6643_s1 + $0x2e8] sm:$0xff]  }
 0x2a7   : > { %4768 = vmatprep.subr.bf16.mxu0 %v5244_v56  ;;  %v5251_v47 = vld [vmem:[%s6643_s1 + $0x298] sm:$0xff]   ;;  %v5255_v1 = vld [vmem:[%s6643_s1 + $0x2a0] sm:$0xff]   ;;  %v5259_v7 = vld [vmem:[%s6643_s1 + $0x2a8] sm:$0xff]  }
 0x2a8   : > { %4735 = vmatpush3.bf16.msra.mxu1 %v5243_v55  ;;  %v5252_v0 = vld [vmem:[%s6643_s1 + $0x358] sm:$0xff]   ;;  %v5256_v4 = vld [vmem:[%s6643_s1 + $0x360] sm:$0xff]   ;;  %v5260_v63 = vld [vmem:[%s6643_s1 + $0x368] sm:$0xff]  }
 0x2a9   : > { %4736 = vmatprep.subr.bf16.mxu1 %v5246_v58  ;;  %v5253_v48 = vld [vmem:[%s6643_s1 + $0x318] sm:$0xff]   ;;  %v5257_v53 = vld [vmem:[%s6643_s1 + $0x320] sm:$0xff]   ;;  %v5261_v3 = vld [vmem:[%s6643_s1 + $0x328] sm:$0xff]  }
 0x2aa   : > { %4769 = vmatpush3.bf16.msra.mxu0 %v5245_v57  ;;  %v5262_v9 = vld [vmem:[%s6643_s1 + $0x2f0] sm:$0xff]   ;;  %v5266_v5 = vld [vmem:[%s6643_s1 + $0x2f8] sm:$0xff]   ;;  %v6216_v12 = vld [vmem:[#allocation3 + $0x10] sm:$0xff] }
 0x2ab   : > { %4770 = vmatprep.subr.bf16.mxu0 %v5248_v61  ;;  %v5263_v10 = vld [vmem:[%s6643_s1 + $0x2b0] sm:$0xff]   ;;  %v5267_v15 = vld [vmem:[%s6643_s1 + $0x2b8] sm:$0xff]   ;;  %v6218_v16 = vld [vmem:[#allocation3 + $0x18] sm:$0xff]  ;;  %v2027_v6 = vshll.u32 %v6216_v12, 16  ;;  %v2031_v20 = vshrl.u32 %v6216_v12, 16  ;;  %v2187_v19 = vrot.slane %v6216_v12, 3 }
 0x2ac   : > { %4737 = vmatpush3.bf16.msra.mxu1 %v5247_v59  ;;  %v5264_v11 = vld [vmem:[%s6643_s1 + $0x370] sm:$0xff]   ;;  %v5268_v13 = vld [vmem:[%s6643_s1 + $0x378] sm:$0xff]   ;;  %v2035_v21 = vshll.u32 %v6218_v16, 16  ;;  %v2039_v26 = vshrl.u32 %v6218_v16, 16  ;;  %vm6668_vm12 = vmmov %vm6667_vm9  ;;  %v2055_v50 = vrot.slane %v6216_v12, 1  ;;  %v2057_v57 = vrot.slane %v6218_v16, 1 }
 0x2ad   : > { %4738 = vmatprep.subr.bf16.mxu1 %v5250_v44  ;;  %v5265_v49 = vld [vmem:[%s6643_s1 + $0x330] sm:$0xff]   ;;  %v2011_v33 = vld [vmem:[#allocation3 + $0x8] sm:$0xf8]  ;;  %v2029_v60 = vrot.slane %v2027_v6, 1  ;;  %v2069_v18 = vrot.slane %v2031_v20, 1  ;;  %v2070_v43 = vrot.slane %v2027_v6, 2  ;;  %vm6670_vm0 = vmmov %vm6666_vm6 }
 0x2ae   : > { %4771 = vmatpush3.bf16.msra.mxu0 %v5249_v27  ;;  %v2020_v34 = vshrl.u32 %v2011_v33, 16  ;;  %v2022_v17 = vshll.u32 %v2011_v33, 16  ;;  %v5269_v30 = vld [vmem:[%s6643_s1 + $0x338] sm:$0xff]   ;;  %v2186_v14 = vrot.slane %v2011_v33, 3  ;;  %v2037_v8 = vrot.slane %v2035_v21, 1  ;;  %v5270_v54 = vld [vmem:[%s6643_s1 + $0x380] sm:$0xff]   ;;  %vm6672_vm10 = vmmov %vm6671_vm7 }
 0x2af   : > { %4772 = vmatprep.subr.bf16.mxu0 %v5252_v0  ;;  %v2016_v25 = vld [vmem:[#allocation3 + $0x8] sm:$0xf0]  ;;  %v2033_v32 = vor.u32 %v2031_v20, %v2029_v60  ;;  %v2073_v40 = vrot.slane %v2039_v26, 1  ;;  %v2074_v41 = vrot.slane %v2035_v21, 2  ;;  %v2071_v46 = vor.u32 %v2070_v43, %v2069_v18  ;;  %v6238_v55 = vld [vmem:[#allocation3 + $0x20] sm:$0xf]  ;;  %vm6673_vm11 = vmmov %vm6669_vm13 }
 0x2b0   : > { %4739 = vmatpush3.bf16.msra.mxu1 %v5251_v47  ;;  %v2024_v22 = vrot.slane %v2022_v17, 1  ;;  %v2188_v28 = vsel %vm6666_vm6, %v2186_v14, %v2187_v19  ;;  %v2062_v24 = vshrl.u32 %v2016_v25, 16  ;;  %v2065_v29 = vshll.u32 %v2016_v25, 16  ;;  %v6246_v0 = vld [vmem:[#allocation3 + $0x20] sm:$0x1f]  ;;  %vm6674_vm14 = vmmov %vm6670_vm0 }
 0x2b1   : > { %4740 = vmatprep.subr.bf16.mxu1 %v5254_v2  ;;  %v2054_v36 = vrot.slane %v2016_v25, 1  ;;  %v2038_v45 = vsel %vm6668_vm12, %v2033_v32, %v2037_v8  ;;  %v2075_v37 = vor.u32 %v2074_v41, %v2073_v40  ;;  %v2041_v58 = vor.u32 %v2039_v26, %v2037_v8  ;;  %vm6675_vm5 = vmmov %vm6667_vm9  ;;  %v5272_v20 = vld [vmem:[%s6643_s1 + $0x390] sm:$0xff]   ;;  %v5274_v32 = vld [vmem:[%s6643_s1 + $0x3a0] sm:$0xff]  }
 0x2b2   : > { %4773 = vmatpush3.bf16.msra.mxu0 %v5253_v48  ;;  %v2025_v31 = vor.u32 %v2024_v22, %v2020_v34  ;;  %v2064_v35 = vrot.slane %v2062_v24, 1  ;;  %v2067_v23 = vrot.slane %v2065_v29, 2  ;;  %v2190_v51 = vrot.slane %v2038_v45, 3  ;;  %vm6676_vm15 = vmmov %vm6670_vm0 }
 0x2b3   : > { %4774 = vmatprep.subr.bf16.mxu0 %v5256_v4  ;;  %v2056_v56 = vsel %vm6669_vm13, %v2054_v36, %v2055_v50  ;;  %v2043_v59 = vshll.u32 %v6238_v55, 16  ;;  %v2076_v44 = vsel %vm6672_vm10, %v2071_v46, %v2075_v37  ;;  %vm6677_vm1 = vmmov %vm6673_vm11  ;;  %v2091_v45 = vrot.slane %v6218_v16, 2 }
 0x2b4   : > { %4741 = vmatpush3.bf16.msra.mxu1 %v5255_v1  ;;  %v2030_v42 = vsel %vm6667_vm9, %v2025_v31, %v2029_v60  ;;  %v2068_v52 = vor.u32 %v2067_v23, %v2064_v35  ;;  %v2192_v47 = vrot.slane %v2056_v56, 3  ;;  %v2196_v2 = vrot.slane %v2076_v44, 3  ;;  %vm6678_vm3 = vmmov %vm6670_vm0  ;;  %v2014_v60 = vld [vmem:[#allocation3 + $0x20] sm:$0x7]  ;;  %v2018_v35 = vld [vmem:[#allocation3 + $0x8] sm:$0xe0] }
 0x2b5   : > { %4742 = vmatprep.subr.bf16.mxu1 %v5258_v38  ;;  %v2189_v62 = vrot.slane %v2030_v42, 3  ;;  %v2058_v1 = vsel %vm6673_vm11, %v2055_v50, %v2057_v57  ;;  %v2045_v4 = vrot.slane %v2043_v59, 1  ;;  %v5271_v38 = vld [vmem:[%s6643_s1 + $0x388] sm:$0xff]   ;;  %vm6679_vm2 = vmmov %vm6670_vm0  ;;  %v2211_v24 = vrot.slane %v2014_v60, 3 }
 0x2b6   : > { %4775 = vmatpush3.bf16.msra.mxu0 %v5257_v53  ;;  %v2072_v27 = vsel %vm6671_vm7, %v2068_v52, %v2071_v46  ;;  %v2193_v53 = vrot.slane %v2058_v1, 3  ;;  %vm6680_vm4 = vmmov %vm6671_vm7  ;;  %v5275_v23 = vld [vmem:[%s6643_s1 + $0x3a8] sm:$0xff]   ;;  %vm6686_vm7 = vmmov 0   ;;  %v2088_v36 = vrot.slane %v2018_v35, 2  ;;  %v5276_v46 = vld [vmem:[%s6643_s1 + $0x3b0] sm:$0xff]  }
 0x2b7   : > { %4776 = vmatprep.subr.bf16.mxu0 %v5260_v63  ;;  %v2191_v61 = vsel %vm6670_vm0, %v2189_v62, %v2190_v51  ;;  %v2195_v48 = vrot.slane %v2072_v27, 3  ;;  %v2078_v63 = vshrl.u32 %v6246_v0, 16  ;;  %vm6681_vm8 = vmmov %vm6670_vm0  ;;  %v2089_v42 = vrot.slane %v6216_v12, 2 }
 0x2b8   : > { %4743 = vmatpush3.bf16.msra.mxu1 %v5259_v7  ;;  %2508 = vmatprep.mubr.bf16.mxu1 %v2191_v61  ;;  %v2201_v7 = vrot.slane %v6218_v16, 3  ;;  %vm6682_vm6 = vmmov %vm6670_vm0  ;;  %vm6687_vm10 = vcmask 1045504   ;;  %v2093_v16 = vrot.slane %v6246_v0, 2  ;;  %v4248_v61 = vld [vmem:[%s6644_s2 + $0x2] ss:$0 sm:$0xff] }
 0x2b9   : > { %4744 = vmatprep.subr.bf16.mxu1 %v5262_v9  ;;  %v2197_v9 = vsel %vm6674_vm14, %v2195_v48, %v2196_v2  ;;  %vm6683_vm9 = vmmov %vm6670_vm0  ;;  %v2090_v50 = vsel %vm6687_vm10, %v2088_v36, %v2089_v42 }
 0x2ba   : > { %4777 = vmatpush3.bf16.msra.mxu0 %v5261_v3  ;;  %v2081_v3 = vshll.u32 %v6246_v0, 16  ;;  %2565 = vmatprep.mubr.bf16.mxu0 %v2197_v9  ;;  %v2202_v21 = vsel %vm6679_vm2, %v2187_v19, %v2201_v7  ;;  %vm6684_vm12 = vmmov %vm6670_vm0  ;;  %v2198_v12 = vrot.slane %v2090_v50, 3 }
 0x2bb   : > { %4778 = vmatprep.subr.bf16.mxu0 %v5264_v11  ;;  %v2059_v11 = vrot.slane %v6238_v55, 1  ;;  %vm6685_vm13 = vmmov %vm6670_vm0 }
 0x2bc   : > { %4745 = vmatpush3.bf16.msra.mxu1 %v5263_v10  ;;  %v2046_v10 = vsel %vm6675_vm5, %v2041_v58, %v2045_v4  ;;  %v2083_v33 = vrot.slane %v2081_v3, 2  ;;  %v2212_v43 = vsel %vm6685_vm13, %v2201_v7, %v2211_v24  ;;  %vm6688_vm11 = vmmov %vm6687_vm10 }
 0x2bd   : > { %4746 = vmatprep.subr.bf16.mxu1 %v5266_v5  ;;  %v2194_v5 = vsel %vm6676_vm15, %v2192_v47, %v2193_v53  ;;  %v2060_v34 = vsel %vm6677_vm1, %v2057_v57, %v2059_v11  ;;  %v2215_v40 = vrot.slane %v2059_v11, 3  ;;  %v2092_v62 = vsel %vm6688_vm11, %v2089_v42, %v2091_v45  ;;  %vm6689_vm14 = vmmov %vm6670_vm0 }
 0x2be   : > { %4779 = vmatpush3.bf16.msra.mxu0 %v5265_v49  ;;  %v2047_v49 = vshrl.u32 %v6238_v55, 16  ;;  %v2205_v14 = vrot.slane %v2060_v34, 3  ;;  %v2199_v52 = vrot.slane %v2092_v62, 3  ;;  %vm6690_vm5 = vmmov %vm6687_vm10  ;;  %v2219_v57 = vrot.slane %v2093_v16, 3 }
 0x2bf   : > { %4780 = vmatprep.subr.bf16.mxu0 %v5268_v13  ;;  %v2080_v13 = vrot.slane %v2078_v63, 1  ;;  %vm6691_vm15 = vmmov %vm6670_vm0 }
 0x2c0   : > { %4747 = vmatpush3.bf16.msra.mxu1 %v5267_v15  ;;  %v2203_v15 = vrot.slane %v2046_v10, 3  ;;  %v2049_v17 = vor.u32 %v2047_v49, %v2045_v4  ;;  %v2206_v19 = vsel %vm6682_vm6, %v2193_v53, %v2205_v14  ;;  %v2216_v41 = vsel %vm6670_vm0, %v2205_v14, %v2215_v40  ;;  %vm6692_vm1 = vmmov %vm6670_vm0 }
 0x2c1   : > { %4990 = vmatprep.subr.bf16.mxu1 %v5418_v39 }
 0x2c2   : > { %4781 = vmatpush3.bf16.msra.mxu0 %v5269_v30  ;;  %v2204_v6 = vsel %vm6678_vm3, %v2190_v51, %v2203_v15  ;;  %v2084_v30 = vor.u32 %v2083_v33, %v2080_v13  ;;  %v2213_v22 = vrot.slane %v2049_v17, 3  ;;  %v5277_v51 = vld [vmem:[%s6643_s1 + $0x3b8] sm:$0xff]   ;;  %vm6693_vm3 = vcmask 1043456  }
 0x2c3   : > { %2509 = vmatmul.mubr.bf16.vlgmr.msra.gmra.mrb[52].mxu1 %v2188_v28  ;;  %v5273_v28 = vld [vmem:[%s6643_s1 + $0x398] sm:$0xff]   ;;  %vm6694_vm2 = vmmov %vm6693_vm3 }
 0x2c4   : > { %4991 = vmatpush3.bf16.msra.mxu1 %v5270_v54  ;;  %2516 = vmatprep.mubr.bf16.mxu1 %v2204_v6  ;;  %v2085_v25 = vsel %vm6680_vm4, %v2075_v37, %v2084_v30  ;;  %v2214_v26 = vsel %vm6681_vm8, %v2203_v15, %v2213_v22  ;;  %v2217_v18 = vrot.slane %v2084_v30, 3  ;;  %v2200_v37 = vsel %vm6689_vm14, %v2198_v12, %v2199_v52 }
 0x2c5   : > { %4992 = vmatprep.subr.bf16.mxu1 %v5418_v39  ;;  %2566 = vmatmul.mubr.bf16.vlgmr.msra.gmra.mrb[48].mxu0 %v2194_v5  ;;  %v2207_v8 = vrot.slane %v2085_v25, 3  ;;  %v2094_v54 = vsel %vm6690_vm5, %v2091_v45, %v2093_v16 }
 0x2c6   : > { %v2209_v55 = vrot.slane %v2094_v54, 3 }
 0x2c7   : > { %v2208_v29 = vsel %vm6683_vm9, %v2196_v2, %v2207_v8  ;;  %v2218_v31 = vsel %vm6684_vm12, %v2207_v8, %v2217_v18 }
 0x2c8   : > { %4993 = vmatpush3.bf16.msra.mxu1 %v5271_v38  ;;  %2573 = vmatprep.mubr.bf16.mxu0 %v2208_v29  ;;  %v2210_v56 = vsel %vm6691_vm15, %v2199_v52, %v2209_v55  ;;  %v2220_v58 = vsel %vm6692_vm1, %v2209_v55, %v2219_v57 }
 0x2c9   : > { %4994 = vmatprep.subr.bf16.mxu1 %v5418_v39 }
 0x2cb   : > { %2517 = vmatmul.mubr.bf16.gmra.mrb[56].mxu1 %v2202_v21 }
 0x2cc   : > { %4995 = vmatpush3.bf16.msra.mxu1 %v5272_v20  ;;  %2524 = vmatprep.mubr.bf16.mxu1 %v2214_v26 }
 0x2cd   : > { %4996 = vmatprep.subr.bf16.mxu1 %v5418_v39  ;;  %2574 = vmatmul.mubr.bf16.gmra.mrb[52].mxu0 %v2206_v19 }
 0x2ce   : > { %2581 = vmatprep.mubr.bf16.mxu0 %v2218_v31 }
 0x2d0   : > { %4997 = vmatpush3.bf16.msra.mxu1 %v5273_v28 }
 0x2d1   : > { %4998 = vmatprep.subr.bf16.mxu1 %v5418_v39 }
 0x2d3   : > { %2525 = vmatmul.mubr.bf16.gmra.mrb[60].mxu1 %v2212_v43 }
 0x2d4   : > { %4999 = vmatpush3.bf16.msra.mxu1 %v5274_v32  ;;  %5006 = vmatprep.mubr.msk.bf16.mxu1 %vm6686_vm7, %v5418_v39 }
 0x2d5   : > { %5000 = vmatprep.subr.bf16.mxu1 %v5418_v39  ;;  %2582 = vmatmul.mubr.bf16.gmra.mrb[56].mxu0 %v2216_v41 }
 0x2d8   : > { %5001 = vmatpush3.bf16.msra.mxu1 %v5275_v23 }
 0x2d9   : > { %5002 = vmatprep.subr.bf16.mxu1 %v5418_v39 }
 0x2dc   : > { %5003 = vmatpush3.bf16.msra.mxu1 %v5276_v46 }
 0x2dd   : > { %5004 = vmatprep.subr.bf16.mxu1 %v5418_v39 }
 0x2e0   : > { %5005 = vmatpush3.bf16.msra.mxu1 %v5277_v51 }
 0x2e3   : > { %5007 = vmatmul.mubr.bf16.vlgmr.msra.gmra.mrb[64].mxu1 %v2200_v37 }
 0x2e4   : > { %5010 = vmatprep.mubr.msk.bf16.mxu1 %vm6686_vm7, %v5418_v39 }
 0x2eb   : > { %5011 = vmatmul.mubr.bf16.gmra.mrb[68].mxu1 %v2210_v56 }
 0x2ec   : > { %5014 = vmatprep.mubr.msk.bf16.mxu1 %vm6686_vm7, %v5418_v39 }
 0x2f3   : > { %5015 = vmatmul.mubr.bf16.gmra.mrb[72].mxu1 %v2220_v58 }
 0x396   : > { %v4748_v59 = vpop.f32.mrb[52].mxu1 }
 0x397   : > { %v4749_v27 = vpop.f32.mrb[53].mxu1 }
 0x398   : > { %v4750_v44 = vadd.f32 %v4749_v27, %v4748_v59  ;;  %v4751_v47 = vpop.f32.mrb[54].mxu1  ;;  %v4782_v0 = vpop.f32.mrb[48].mxu0 }
 0x399   : > { %v4752_v48 = vpop.f32.mrb[55].mxu1  ;;  %v4783_v4 = vpop.f32.mrb[49].mxu0 }
 0x39a   : > { %v2511_v2 = vadd.f32 %v4750_v44, %v4248_v61  ;;  %v4753_v1 = vadd.f32 %v4752_v48, %v4751_v47  ;;  %v4784_v53 = vadd.f32 %v4783_v4, %v4782_v0  ;;  %v4785_v38 = vpop.f32.mrb[50].mxu0 }
 0x39b   : > { %v4786_v63 = vpop.f32.mrb[51].mxu0 }
 0x39c   : > { %v2514_v7 = vadd.f32 %v4753_v1, %v4248_v61  ;;  %v4787_v3 = vadd.f32 %v4786_v63, %v4785_v38  ;;  %v2568_v9 = vadd.f32 %v4784_v53, %v2511_v2 }
 0x39e   : > { %v4754_v10 = vpop.f32.mrb[56].mxu1  ;;  %v2571_v49 = vadd.f32 %v4787_v3, %v2514_v7 }
 0x39f   : > { %v4755_v11 = vpop.f32.mrb[57].mxu1 }
 0x3a0   : > { %v4756_v5 = vadd.f32 %v4755_v11, %v4754_v10  ;;  %v4757_v15 = vpop.f32.mrb[58].mxu1  ;;  %v4788_v34 = vpop.f32.mrb[52].mxu0 }
 0x3a1   : > { %v4758_v13 = vpop.f32.mrb[59].mxu1  ;;  %v4789_v6 = vpop.f32.mrb[53].mxu0 }
 0x3a2   : > { %v2519_v33 = vadd.f32 %v4756_v5, %v4248_v61  ;;  %v4759_v17 = vadd.f32 %v4758_v13, %v4757_v15  ;;  %v4790_v21 = vadd.f32 %v4789_v6, %v4788_v34  ;;  %v4791_v30 = vpop.f32.mrb[54].mxu0  ;;  %v2683_v5 = vstv (%p5489_p8), %s2682_s20 }
 0x3a3   : > { %v4792_v14 = vpop.f32.mrb[55].mxu0 }
 0x3a4   : > { %v2522_v20 = vadd.f32 %v4759_v17, %v4248_v61  ;;  %v4793_v22 = vadd.f32 %v4792_v14, %v4791_v30  ;;  %v2576_v25 = vadd.f32 %v4790_v21, %v2519_v33 }
 0x3a6   : > { %v4760_v60 = vpop.f32.mrb[60].mxu1  ;;  %v2579_v28 = vadd.f32 %v4793_v22, %v2522_v20 }
 0x3a7   : > { %v4761_v26 = vpop.f32.mrb[61].mxu1 }
 0x3a8   : > { %v4762_v18 = vadd.f32 %v4761_v26, %v4760_v60  ;;  %v4763_v8 = vpop.f32.mrb[62].mxu1  ;;  %v4794_v29 = vpop.f32.mrb[56].mxu0 }
 0x3a9   : > { %v4764_v19 = vpop.f32.mrb[63].mxu1  ;;  %v4795_v32 = vpop.f32.mrb[57].mxu0 }
 0x3aa   : > { %v2527_v24 = vadd.f32 %v4762_v18, %v4248_v61  ;;  %v4765_v31 = vadd.f32 %v4764_v19, %v4763_v8  ;;  %v4796_v40 = vadd.f32 %v4795_v32, %v4794_v29  ;;  %v4797_v35 = vpop.f32.mrb[58].mxu0 }
 0x3ab   : > { %v4798_v23 = vpop.f32.mrb[59].mxu0 }
 0x3ac   : > { %v2530_v43 = vadd.f32 %v4765_v31, %v4248_v61  ;;  %v4799_v41 = vadd.f32 %v4798_v23, %v4797_v35  ;;  %v2584_v36 = vadd.f32 %v4796_v40, %v2527_v24 }
 0x3ae   : > { %v2587_v42 = vadd.f32 %v4799_v41, %v2530_v43 }
 0x3b6   : > { %v2624_v45 = vpop.f32.mrb[64].mxu1 }
 0x3b7   : > { %v2625_v46 = vadd.f32 %v2624_v45, %v2568_v9  ;;  %v5008_v50 = vpop.f32.mrb[65].mxu1 }
 0x3b8   : > { %v2627_v62 = vpop.f32.mrb[66].mxu1 }
 0x3b9   : > { %v2628_v51 = vadd.f32 %v2627_v62, %v2571_v49  ;;  %v5009_v12 = vpop.f32.mrb[67].mxu1  ;;  %5278 = vtanh.f32 %v2625_v46  ;;  %v2675_v49 = vlaneseq (%p5489_p8) }
 0x3bb   : > { %5280 = vtanh.f32 %v2628_v51  ;;  %v2676_v15 = vshrl.u32 (%p5489_p8), %v2675_v49, 7 }
 0x3bd   : > { %v2677_v13 = vadd.s32 (%p5489_p8), 8, %v2676_v15  ;;  %v2684_v33 = vadd.s32 (%p5489_p8), %v2683_v5, %v2676_v15  ;;  %v2678_v34 = vadd.s32 (%p5489_p8), 16, %v2676_v15  ;;  %v2679_v17 = vadd.s32 (%p5489_p8), 24, %v2676_v15 }
 0x3be   : > { %v2632_v52 = vpop.f32.mrb[68].mxu1  ;;  %v2680_v6 = vadd.s32 (%p5489_p8), 32, %v2676_v15  ;;  %v2681_v20 = vadd.s32 (%p5489_p8), 40, %v2676_v15 }
 0x3bf   : > { %v2633_v16 = vadd.f32 %v2632_v52, %v2576_v25  ;;  %v5012_v37 = vpop.f32.mrb[69].mxu1  ;;  %v2685_v21 = vadd.s32 (%p5489_p8), %v2683_v5, %v2677_v13  ;;  %vm2690_vm4 = vcmp.ge.s32.totalorder (%p5489_p8), %v2684_v33, 0  ;;  %vm2696_vm8 = vcmp.lt.s32.totalorder (%p5489_p8), %v2684_v33, 40 }
 0x3c0   : > { %v2635_v54 = vpop.f32.mrb[70].mxu1  ;;  %v2686_v30 = vadd.s32 (%p5489_p8), %v2683_v5, %v2678_v34  ;;  %vm6320_vm6 = vmand (%p5489_p8), %vm2690_vm4, %vm2696_vm8  ;;  %v2687_v22 = vadd.s32 (%p5489_p8), %v2683_v5, %v2679_v17  ;;  %v2688_v60 = vadd.s32 (%p5489_p8), %v2683_v5, %v2680_v6  ;;  %v2689_v25 = vadd.s32 (%p5489_p8), %v2683_v5, %v2681_v20 }
 0x3c1   : > { %v2636_v55 = vadd.f32 %v2635_v54, %v2579_v28  ;;  %v5013_v56 = vpop.f32.mrb[71].mxu1  ;;  %5282 = vtanh.f32 %v2633_v16  ;;  %vm2691_vm9 = vcmp.ge.s32.totalorder (%p5489_p8), %v2685_v21, 0  ;;  %vm2697_vm12 = vcmp.lt.s32.totalorder (%p5489_p8), %v2685_v21, 40 }
 0x3c2   : > { %vm2692_vm13 = vcmp.ge.s32.totalorder (%p5489_p8), %v2686_v30, 0  ;;  %vm2703_vm0 = vmand (%p5489_p8), %vm2691_vm9, %vm2697_vm12  ;;  %vm2693_vm7 = vcmp.ge.s32.totalorder (%p5489_p8), %v2687_v22, 0  ;;  %vm2698_vm10 = vcmp.lt.s32.totalorder (%p5489_p8), %v2686_v30, 40  ;;  %vm2699_vm11 = vcmp.lt.s32.totalorder (%p5489_p8), %v2687_v22, 40 }
 0x3c3   : > { %5284 = vtanh.f32 %v2636_v55  ;;  %v5279_v57 = vpop.eup %5278  ;;  %vm2694_vm14 = vcmp.ge.s32.totalorder (%p5489_p8), %v2688_v60, 0  ;;  %vm2704_vm5 = vmand (%p5489_p8), %vm2692_vm13, %vm2698_vm10  ;;  %vm2695_vm15 = vcmp.ge.s32.totalorder (%p5489_p8), %v2689_v25, 0  ;;  %vm2700_vm1 = vcmp.lt.s32.totalorder (%p5489_p8), %v2688_v60, 40 }
 0x3c4   : > { %v2720_v26 = vsel (%p5489_p8), %vm6320_vm6, %v5279_v57, 0.0  ;;  %vm2706_vm4 = vmand (%p5489_p8), %vm2694_vm14, %vm2700_vm1  ;;  %vm6697_vm6 = vcmask (%p5489_p8), 1043456  }
 0x3c5   : > { %v5281_v58 = vpop.eup %5280  ;;  %vm6698_vm9 = vmmov (%p5489_p8), %vm6697_vm6 }
 0x3c6   : > { %v2653_v59 = vpack.c.bf16 %v5281_v58, %v5279_v57  ;;  %v2640_v61 = vpop.f32.mrb[72].mxu1  ;;  %v2721_v18 = vsel (%p5489_p8), %vm2703_vm0, %v5281_v58, 0.0 }
 0x3c7   : > { %v2641_v27 = vadd.f32 %v2640_v61, %v2584_v36  ;;  %v5016_v44 = vpop.f32.mrb[73].mxu1  ;;  %v2726_v8 = vpack.c.bf16 (%p5489_p8), %v2721_v18, %v2720_v26 }
 0x3c8   : > { %v2659_v47 = vrot.slane %v2653_v59, 4  ;;  %v2643_v0 = vpop.f32.mrb[74].mxu1 }
 0x3c9   : > { %v2644_v48 = vadd.f32 %v2643_v0, %v2587_v42  ;;  %v5017_v2 = vpop.f32.mrb[75].mxu1  ;;  %5286 = vtanh.f32 %v2641_v27  ;;  %v2732_v24 = vrot.slane (%p5489_p8), %v2726_v8, 4 }
 0x3ca   : > { %2668 = vst [vmem:[#allocation2 + $0x8] sm:$0xf0] %v2659_v47 }
 0x3cb   : > { %5288 = vtanh.f32 %v2644_v48  ;;  %v5283_v1 = vpop.eup %5282  ;;  %2741 = vst [vmem:[#allocation2 + $0x8] sm:$0xf0] (%p5489_p8), %v2732_v24 }
 0x3cc   : > { %v2722_v28 = vsel (%p5489_p8), %vm2704_vm5, %v5283_v1, 0.0 }
 0x3cd   : > { %v5285_v4 = vpop.eup %5284 }
 0x3ce   : > { %v2654_v53 = vpack.c.bf16 %v5285_v4, %v5283_v1 }
 0x3d0   : > { %v2660_v38 = vrot.slane %v2654_v53, 4 }
 0x3d2   : > { %v2661_v7 = vsel %vm6693_vm3, %v2659_v47, %v2660_v38  ;;  %vm2701_vm3 = vcmp.lt.s32.totalorder (%p5489_p8), %v2689_v25, 40 }
 0x3d3   : > { %2669 = vst [vmem:[#allocation2 + $0x10] sm:$0xff] %v2661_v7  ;;  %v5287_v63 = vpop.eup %5286  ;;  %vm2707_vm8 = vmand (%p5489_p8), %vm2695_vm15, %vm2701_vm3 }
 0x3d4   : > { %v2724_v31 = vsel (%p5489_p8), %vm2706_vm4, %v5287_v63, 0.0 }
 0x3d5   : > { %v5289_v3 = vpop.eup %5288  ;;  %2674 = sbr.rel (!%p5489_p8) target bundleno = 994 (0x3e2), region = 44 }
 0x3d6   : > { %v2655_v9 = vpack.c.bf16 %v5289_v3, %v5287_v63  ;;  %v2725_v32 = vsel (%p5489_p8), %vm2707_vm8, %v5289_v3, 0.0 }
 0x3d7   : > { %v2728_v40 = vpack.c.bf16 (%p5489_p8), %v2725_v32, %v2724_v31 }
 0x3d8   : > { %v2662_v10 = vrot.slane %v2655_v9, 4 }
 0x3d9   : > { %v2735_v23 = vrot.slane (%p5489_p8), %v2728_v40, 4 }
 0x3da   : > { %v2663_v11 = vsel %vm6694_vm2, %v2660_v38, %v2662_v10  ;;  %2671 = vst [vmem:[#allocation2 + $0x20] sm:$0xf] %v2662_v10  ;;  %vm2705_vm2 = vmand (%p5489_p8), %vm2693_vm7, %vm2699_vm11 }
 0x3db   : > { %2670 = vst [vmem:[#allocation2 + $0x18] sm:$0xff] %v2663_v11  ;;  %v2723_v19 = vsel (%p5489_p8), %vm2705_vm2, %v5285_v4, 0.0  ;;  %2744 = vst [vmem:[#allocation2 + $0x20] sm:$0xf] (%p5489_p8), %v2735_v23 }
 0x3dc   : > { %v2727_v29 = vpack.c.bf16 %v2723_v19, %v2722_v28 }
 0x3de   : > { %v2733_v43 = vrot.slane %v2727_v29, 4 }
 0x3e0   : > { %v2734_v35 = vsel %vm6697_vm6, %v2732_v24, %v2733_v43  ;;  %v2736_v41 = vsel %vm6698_vm9, %v2733_v43, %v2735_v23 }
 0x3e1   : > { %2742 = vst [vmem:[#allocation2 + $0x10] sm:$0xff] %v2734_v35  ;;  %2743 = vst [vmem:[#allocation2 + $0x18] sm:$0xff] %v2736_v41 }
 0x3e2 PF: > { %v5290_v36 = vld [vmem:[%s6643_s1 + $0x400] sm:$0xff]   ;;  %v5294_v50 = vld [vmem:[%s6643_s1 + $0x408] sm:$0xff]   ;;  %v5298_v52 = vld [vmem:[%s6643_s1 + $0x410] sm:$0xff]   ;;  %vm6699_vm12 = vsmask.f32 7424  ;;  %vm6701_vm0 = vcmask 1046528  }
 0x3e3   : > { %v5291_v42 = vld [vmem:[%s6643_s1 + $0x3c0] sm:$0xff]   ;;  %4811 = vmatprep.subr.bf16.mxu0 %v5290_v36  ;;  %v5295_v62 = vld [vmem:[%s6643_s1 + $0x3c8] sm:$0xff]   ;;  %v5299_v16 = vld [vmem:[%s6643_s1 + $0x3d0] sm:$0xff]   ;;  %vm6702_vm7 = vcmask 1040384   ;;  %vm6704_vm11 = vsmask.f32 6400 }
 0x3e4   : > { %v5292_v45 = vld [vmem:[%s6643_s1 + $0x480] sm:$0xff]   ;;  %4812 = vmatpush3.bf16.msra.mxu0 %v5291_v42  ;;  %v5296_v51 = vld [vmem:[%s6643_s1 + $0x488] sm:$0xff]   ;;  %v5300_v37 = vld [vmem:[%s6643_s1 + $0x490] sm:$0xff]   ;;  %vm6709_vm3 = vcmask 1045504   ;;  %s3323_s28 = sadd.s32 (%p5489_p8), 4294967288, %s5475_s19 }
 0x3e5   : > { %v5293_v46 = vld [vmem:[%s6643_s1 + $0x440] sm:$0xff]   ;;  %4839 = vmatprep.subr.bf16.mxu1 %v5292_v45  ;;  %4813 = vmatprep.subr.bf16.mxu0 %v5294_v50  ;;  %v5297_v12 = vld [vmem:[%s6643_s1 + $0x448] sm:$0xff]   ;;  %v5301_v54 = vld [vmem:[%s6643_s1 + $0x450] sm:$0xff]  }
 0x3e6   : > { %4840 = vmatpush3.bf16.msra.mxu1 %v5293_v46  ;;  %v5302_v55 = vld [vmem:[%s6643_s1 + $0x418] sm:$0xff]   ;;  %v5306_v59 = vld [vmem:[%s6643_s1 + $0x420] sm:$0xff]   ;;  %v5310_v47 = vld [vmem:[%s6643_s1 + $0x428] sm:$0xff]  }
 0x3e7   : > { %4841 = vmatprep.subr.bf16.mxu1 %v5296_v51  ;;  %v5303_v56 = vld [vmem:[%s6643_s1 + $0x3d8] sm:$0xff]   ;;  %v5307_v61 = vld [vmem:[%s6643_s1 + $0x3e0] sm:$0xff]   ;;  %v5311_v0 = vld [vmem:[%s6643_s1 + $0x3e8] sm:$0xff]  }
 0x3e8   : > { %4814 = vmatpush3.bf16.msra.mxu0 %v5295_v62  ;;  %v5304_v57 = vld [vmem:[%s6643_s1 + $0x498] sm:$0xff]   ;;  %v5308_v27 = vld [vmem:[%s6643_s1 + $0x4a0] sm:$0xff]   ;;  %v5312_v48 = vld [vmem:[%s6643_s1 + $0x4a8] sm:$0xff]  }
 0x3e9   : > { %4815 = vmatprep.subr.bf16.mxu0 %v5298_v52  ;;  %v5305_v58 = vld [vmem:[%s6643_s1 + $0x458] sm:$0xff]   ;;  %v5309_v44 = vld [vmem:[%s6643_s1 + $0x460] sm:$0xff]   ;;  %v5313_v2 = vld [vmem:[%s6643_s1 + $0x468] sm:$0xff]  }
 0x3ea   : > { %4842 = vmatpush3.bf16.msra.mxu1 %v5297_v12  ;;  %v5314_v1 = vld [vmem:[%s6643_s1 + $0x430] sm:$0xff]   ;;  %v5318_v7 = vld [vmem:[%s6643_s1 + $0x438] sm:$0xff]   ;;  %v2745_v9 = vld [vmem:[#allocation2 + $0x8] sm:$0x80] }
 0x3eb   : > { %4843 = vmatprep.subr.bf16.mxu1 %v5300_v37  ;;  %v5315_v4 = vld [vmem:[%s6643_s1 + $0x3f0] sm:$0xff]   ;;  %v5319_v63 = vld [vmem:[%s6643_s1 + $0x3f8] sm:$0xff]   ;;  %v2752_v49 = vshrl.u32 %v2745_v9, 16  ;;  %v2885_v34 = vrot.slane %v2745_v9, 7  ;;  %v5322_v17 = vld [vmem:[%s6643_s1 + $0x4c0] sm:$0xff]  }
 0x3ec   : > { %4816 = vmatpush3.bf16.msra.mxu0 %v5299_v16  ;;  %v5316_v53 = vld [vmem:[%s6643_s1 + $0x4b0] sm:$0xff]   ;;  %v5320_v3 = vld [vmem:[%s6643_s1 + $0x4b8] sm:$0xff]   ;;  %vm6700_vm13 = vmmov %vm6699_vm12 }
 0x3ed   : > { %4817 = vmatprep.subr.bf16.mxu0 %v5302_v55  ;;  %v5317_v38 = vld [vmem:[%s6643_s1 + $0x470] sm:$0xff]   ;;  %v6423_v11 = vld [vmem:[#allocation2 + $0x18] sm:$0xff]  ;;  %v5323_v42 = vld [vmem:[%s6643_s1 + $0x4c8] sm:$0xff]  }
 0x3ee   : > { %4844 = vmatpush3.bf16.msra.mxu1 %v5301_v54  ;;  %v6421_v10 = vld [vmem:[#allocation2 + $0x10] sm:$0xff]  ;;  %v2763_v13 = vshll.u32 %v6423_v11, 16  ;;  %v5321_v33 = vld [vmem:[%s6643_s1 + $0x478] sm:$0xff]   ;;  %v2767_v30 = vshrl.u32 %v6423_v11, 16  ;;  %v2773_v24 = vrot.slane %v6423_v11, 1  ;;  %vm6703_vm10 = vmmov %vm6702_vm7 }
 0x3ef   : > { %4845 = vmatprep.subr.bf16.mxu1 %v5304_v57  ;;  %v2755_v5 = vshll.u32 %v6421_v10, 16  ;;  %v2759_v15 = vshrl.u32 %v6421_v10, 16  ;;  %v2886_v21 = vrot.slane %v6421_v10, 7  ;;  %v2772_v18 = vrot.slane %v6421_v10, 1  ;;  %v2747_v62 = vld [vmem:[#allocation2 + $0x18] sm:$0x7f]  ;;  %vm6705_vm14 = vmmov %vm6702_vm7 }
 0x3f0   : > { %4818 = vmatpush3.bf16.msra.mxu0 %v5303_v56  ;;  %v2765_v20 = vrot.slane %v2763_v13, 1  ;;  %v2779_v26 = vrot.slane %v2763_v13, 2  ;;  %v2778_v19 = vrot.slane %v2767_v30, 1  ;;  %v2749_v51 = vld [vmem:[#allocation2 + $0x20] sm:$0x1]  ;;  %vm6706_vm5 = vmmov %vm6702_vm7  ;;  %v2900_v55 = vrot.slane %v2747_v62, 7 }
 0x3f1   : > { %4819 = vmatprep.subr.bf16.mxu0 %v5306_v59  ;;  %v2757_v6 = vrot.slane %v2755_v5, 1  ;;  %v2775_v14 = vrot.slane %v2759_v15, 1  ;;  %v2776_v22 = vrot.slane %v2755_v5, 2  ;;  %v2774_v40 = vsel %vm6701_vm0, %v2772_v18, %v2773_v24  ;;  %vm6707_vm15 = vmmov %vm6706_vm5  ;;  %v2750_v56 = vld [vmem:[#allocation2 + $0x10] sm:$0xfe] }
 0x3f2   : > { %4846 = vmatpush3.bf16.msra.mxu1 %v5305_v58  ;;  %v2769_v31 = vor.u32 %v2767_v30, %v2765_v20  ;;  %v2780_v43 = vor.u32 %v2779_v26, %v2778_v19  ;;  %v2891_v35 = vrot.slane %v2772_v18, 7  ;;  %v2887_v23 = vsel %vm6702_vm7, %v2885_v34, %v2886_v21  ;;  %v5324_v58 = vld [vmem:[%s6643_s1 + $0x4d0] sm:$0xff]   ;;  %vm6708_vm1 = vmmov %vm6704_vm11 }
 0x3f3   : > { %4847 = vmatprep.subr.bf16.mxu1 %v5308_v27  ;;  %v2758_v60 = vsel %vm6699_vm12, %v2752_v49, %v2757_v6  ;;  %v2761_v25 = vor.u32 %v2759_v15, %v2757_v6  ;;  %v2777_v28 = vor.u32 %v2776_v22, %v2775_v14  ;;  %v2892_v36 = vrot.slane %v2774_v40, 7  ;;  %vm6710_vm2 = vmmov %vm6706_vm5  ;;  %v5328_v10 = vld [vmem:[%s6643_s1 + $0x4f0] sm:$0xff]  }
 0x3f4   : > { %4820 = vmatpush3.bf16.msra.mxu0 %v5307_v61  ;;  %v2888_v8 = vrot.slane %v2758_v60, 7  ;;  %v2902_v45 = vrot.slane %v2769_v31, 7  ;;  %v2783_v37 = vshll.u32 %v2749_v51, 16  ;;  %v2790_v57 = vrot.slane %v6423_v11, 2  ;;  %vm6711_vm4 = vmmov %vm6710_vm2  ;;  %v5329_v11 = vld [vmem:[%s6643_s1 + $0x4f8] sm:$0xff]  }
 0x3f5   : > { %4821 = vmatprep.subr.bf16.mxu0 %v5310_v47  ;;  %v2766_v29 = vsel %vm6700_vm13, %v2761_v25, %v2765_v20  ;;  %v2894_v41 = vrot.slane %v2777_v28, 7  ;;  %v2781_v50 = vsel %vm6704_vm11, %v2777_v28, %v2780_v43  ;;  %v2893_v16 = vsel %vm6706_vm5, %v2891_v35, %v2892_v36  ;;  %vm6712_vm8 = vmmov %vm6710_vm2 }
 0x3f6   : > { %4848 = vmatpush3.bf16.msra.mxu1 %v5309_v44  ;;  %v2889_v32 = vrot.slane %v2766_v29, 7  ;;  %v2895_v12 = vrot.slane %v2781_v50, 7  ;;  %v2785_v59 = vrot.slane %v2783_v37, 2  ;;  %v2789_v61 = vrot.slane %v2750_v56, 2  ;;  %vm6713_vm6 = vmmov %vm6710_vm2 }
 0x3f7   : > { %4849 = vmatprep.subr.bf16.mxu1 %v5312_v48  ;;  %v2904_v44 = vrot.slane %v2773_v24, 7  ;;  %v2901_v48 = vsel %vm6710_vm2, %v2886_v21, %v2900_v55  ;;  %v2792_v9 = vrot.slane %v2749_v51, 2  ;;  %vm6714_vm9 = vmmov %vm6709_vm3 }
 0x3f8   : > { %4822 = vmatpush3.bf16.msra.mxu0 %v5311_v0  ;;  %v2890_v46 = vsel %vm6703_vm10, %v2888_v8, %v2889_v32  ;;  %v2903_v52 = vsel %vm6705_vm14, %v2889_v32, %v2902_v45  ;;  %v2896_v54 = vsel %vm6707_vm15, %v2894_v41, %v2895_v12  ;;  %v2786_v27 = vsel %vm6708_vm1, %v2780_v43, %v2785_v59  ;;  %vm6715_vm12 = vmmov %vm6710_vm2 }
 0x3f9   : > { %4823 = vmatprep.subr.bf16.mxu0 %v5314_v1  ;;  %3192 = vmatprep.mubr.bf16.mxu0 %v2890_v46  ;;  %v2791_v47 = vsel %vm6709_vm3, %v2789_v61, %v2790_v57  ;;  %v2897_v0 = vrot.slane %v2789_v61, 7  ;;  %v2793_v49 = vsel %vm6714_vm9, %v2790_v57, %v2792_v9 }
 0x3fa   : > { %4850 = vmatpush3.bf16.msra.mxu1 %v5313_v2  ;;  %3241 = vmatprep.mubr.bf16.mxu1 %v2896_v54  ;;  %v2906_v2 = vrot.slane %v2786_v27, 7  ;;  %v2898_v1 = vrot.slane %v2791_v47, 7  ;;  %v2908_v5 = vrot.slane %v2793_v49, 7 }
 0x3fb   : > { %4851 = vmatprep.subr.bf16.mxu1 %v5316_v53 }
 0x3fc   : > { %4824 = vmatpush3.bf16.msra.mxu0 %v5315_v4  ;;  %v5325_v4 = vld [vmem:[%s6643_s1 + $0x4d8] sm:$0xff]   ;;  %v2907_v53 = vsel %vm6711_vm4, %v2895_v12, %v2906_v2  ;;  %v2909_v15 = vsel %vm6715_vm12, %v2898_v1, %v2908_v5 }
 0x3fd   : > { %4825 = vmatprep.subr.bf16.mxu0 %v5318_v7  ;;  %v2905_v7 = vsel %vm6713_vm6, %v2892_v36, %v2904_v44 }
 0x3fe   : > { %4852 = vmatpush3.bf16.msra.mxu1 %v5317_v38  ;;  %v2899_v38 = vsel %vm6712_vm8, %v2897_v0, %v2898_v1  ;;  %v3318_v0 = vlaneseq (%p5489_p8) }
 0x3ff   : > { %4853 = vmatprep.subr.bf16.mxu1 %v5320_v3  ;;  %v5327_v3 = vld [vmem:[%s6643_s1 + $0x4e8] sm:$0xff]  }
 0x400   : > { %4826 = vmatpush3.bf16.msra.mxu0 %v5319_v63  ;;  %v5326_v63 = vld [vmem:[%s6643_s1 + $0x4e0] sm:$0xff]   ;;  %v3319_v2 = vshrl.u32 (%p5489_p8), %v3318_v0, 7 }
 0x401   : > { %5018 = vmatprep.subr.bf16.mxu0 %v5322_v17 }
 0x402   : > { %4854 = vmatpush3.bf16.msra.mxu1 %v5321_v33  ;;  %v4370_v33 = vld [vmem:[%s6644_s2 + $0x3] ss:$0 sm:$0xff]  ;;  %v3320_v1 = vadd.s32 (%p5489_p8), 8, %v3319_v2 }
 0x403   : > { %3193 = vmatmul.mubr.bf16.vlgmr.msra.gmra.mrb[60].mxu0 %v2887_v23 }
 0x404   : > { %5019 = vmatpush3.bf16.msra.mxu0 %v5322_v17  ;;  %3200 = vmatprep.mubr.bf16.mxu0 %v2903_v52 }
 0x405   : > { %5020 = vmatprep.subr.bf16.mxu0 %v5323_v42  ;;  %3242 = vmatmul.mubr.bf16.vlgmr.msra.gmra.mrb[76].mxu1 %v2893_v16 }
 0x406   : > { %3249 = vmatprep.mubr.bf16.mxu1 %v2907_v53  ;;  %v3321_v53 = vadd.s32 (%p5489_p8), 16, %v3319_v2 }
 0x408   : > { %5021 = vmatpush3.bf16.msra.mxu0 %v5323_v42 }
 0x409   : > { %5022 = vmatprep.subr.bf16.mxu0 %v5324_v58 }
 0x40b   : > { %3201 = vmatmul.mubr.bf16.gmra.mrb[64].mxu0 %v2901_v48  ;;  %v3324_v48 = vstv (%p5489_p8), %s3323_s28 }
 0x40c   : > { %5023 = vmatpush3.bf16.msra.mxu0 %v5324_v58  ;;  %5034 = vmatprep.mubr.bf16.mxu0 %v2899_v38  ;;  %v3322_v38 = vadd.s32 (%p5489_p8), 24, %v3319_v2 }
 0x40d   : > { %5024 = vmatprep.subr.bf16.mxu0 %v5325_v4  ;;  %3250 = vmatmul.mubr.bf16.gmra.mrb[80].mxu1 %v2905_v7  ;;  %v3326_v7 = vadd.s32 (%p5489_p8), %v3324_v48, %v3320_v1 }
 0x40f   : > { %vm3330_vm10 = vcmp.ge.s32.totalorder (%p5489_p8), %v3326_v7, 0  ;;  %vm3334_vm11 = vcmp.lt.s32.totalorder (%p5489_p8), %v3326_v7, 40 }
 0x410   : > { %5025 = vmatpush3.bf16.msra.mxu0 %v5325_v4  ;;  %v3325_v4 = vadd.s32 (%p5489_p8), %v3324_v48, %v3319_v2  ;;  %vm3338_vm5 = vmand (%p5489_p8), %vm3330_vm10, %vm3334_vm11 }
 0x411   : > { %5026 = vmatprep.subr.bf16.mxu0 %v5326_v63 }
 0x412   : > { %vm3329_vm13 = vcmp.ge.s32.totalorder (%p5489_p8), %v3325_v4, 0  ;;  %vm3333_vm0 = vcmp.lt.s32.totalorder (%p5489_p8), %v3325_v4, 40 }
 0x413   : > { %vm3337_vm7 = vmand (%p5489_p8), %vm3329_vm13, %vm3333_vm0 }
 0x414   : > { %5027 = vmatpush3.bf16.msra.mxu0 %v5326_v63  ;;  %v3327_v63 = vadd.s32 (%p5489_p8), %v3324_v48, %v3321_v53 }
 0x415   : > { %5028 = vmatprep.subr.bf16.mxu0 %v5327_v3 }
 0x416   : > { %vm3331_vm14 = vcmp.ge.s32.totalorder (%p5489_p8), %v3327_v63, 0  ;;  %vm3335_vm1 = vcmp.lt.s32.totalorder (%p5489_p8), %v3327_v63, 40 }
 0x417   : > { %vm3339_vm2 = vmand (%p5489_p8), %vm3331_vm14, %vm3335_vm1 }
 0x418   : > { %5029 = vmatpush3.bf16.msra.mxu0 %v5327_v3  ;;  %v3328_v3 = vadd.s32 (%p5489_p8), %v3324_v48, %v3322_v38 }
 0x419   : > { %5030 = vmatprep.subr.bf16.mxu0 %v5328_v10 }
 0x41a   : > { %vm3332_vm15 = vcmp.ge.s32.totalorder (%p5489_p8), %v3328_v3, 0  ;;  %vm3336_vm3 = vcmp.lt.s32.totalorder (%p5489_p8), %v3328_v3, 40 }
 0x41b   : > { %vm3340_vm4 = vmand (%p5489_p8), %vm3332_vm15, %vm3336_vm3 }
 0x41c   : > { %5031 = vmatpush3.bf16.msra.mxu0 %v5328_v10 }
 0x41d   : > { %5032 = vmatprep.subr.bf16.mxu0 %v5329_v11 }
 0x420   : > { %5033 = vmatpush3.bf16.msra.mxu0 %v5329_v11 }
 0x423   : > { %5035 = vmatmul.mubr.bf16.vlgmr.msra.gmra.mrb[68].mxu0 %v2909_v15 }
 0x4d6   : > { %v4827_v13 = vpop.f32.mrb[60].mxu0 }
 0x4d7   : > { %v4828_v34 = vpop.f32.mrb[61].mxu0 }
 0x4d8   : > { %v4829_v17 = vadd.f32 %v4828_v34, %v4827_v13  ;;  %v4830_v6 = vpop.f32.mrb[62].mxu0  ;;  %v4855_v20 = vpop.f32.mrb[76].mxu1 }
 0x4d9   : > { %v4831_v21 = vpop.f32.mrb[63].mxu0  ;;  %v4856_v22 = vpop.f32.mrb[77].mxu1 }
 0x4da   : > { %v3195_v30 = vadd.f32 %v4829_v17, %v4370_v33  ;;  %v4832_v14 = vadd.f32 %v4831_v21, %v4830_v6  ;;  %v4857_v60 = vadd.f32 %v4856_v22, %v4855_v20  ;;  %v4858_v25 = vpop.f32.mrb[78].mxu1 }
 0x4db   : > { %v4859_v18 = vpop.f32.mrb[79].mxu1 }
 0x4dc   : > { %v3198_v26 = vadd.f32 %v4832_v14, %v4370_v33  ;;  %v4860_v8 = vadd.f32 %v4859_v18, %v4858_v25  ;;  %v3244_v28 = vadd.f32 %v4857_v60, %v3195_v30 }
 0x4de   : > { %v4833_v19 = vpop.f32.mrb[64].mxu0  ;;  %v3247_v29 = vadd.f32 %v4860_v8, %v3198_v26 }
 0x4df   : > { %v4834_v24 = vpop.f32.mrb[65].mxu0 }
 0x4e0   : > { %v4835_v31 = vadd.f32 %v4834_v24, %v4833_v19  ;;  %v4836_v32 = vpop.f32.mrb[66].mxu0  ;;  %v4861_v43 = vpop.f32.mrb[80].mxu1 }
 0x4e1   : > { %v4837_v40 = vpop.f32.mrb[67].mxu0  ;;  %v4862_v41 = vpop.f32.mrb[81].mxu1 }
 0x4e2   : > { %v3203_v35 = vadd.f32 %v4835_v31, %v4370_v33  ;;  %v4838_v23 = vadd.f32 %v4837_v40, %v4836_v32  ;;  %v4863_v36 = vadd.f32 %v4862_v41, %v4861_v43  ;;  %v4864_v42 = vpop.f32.mrb[82].mxu1 }
 0x4e3   : > { %v4865_v46 = vpop.f32.mrb[83].mxu1 }
 0x4e4   : > { %v3206_v45 = vadd.f32 %v4838_v23, %v4370_v33  ;;  %v4866_v50 = vadd.f32 %v4865_v46, %v4864_v42  ;;  %v3252_v62 = vadd.f32 %v4863_v36, %v3203_v35 }
 0x4e6   : > { %v3255_v51 = vadd.f32 %v4866_v50, %v3206_v45 }
 0x4f6   : > { %v5036_v12 = vpop.f32.mrb[68].mxu0 }
 0x4f7   : > { %v3301_v52 = vadd.f32 %v5036_v12, %v3252_v62  ;;  %v3292_v16 = vpop.f32.mrb[69].mxu0 }
 0x4f8   : > { %v3293_v37 = vadd.f32 %v3292_v16, %v3244_v28  ;;  %v5037_v54 = vpop.f32.mrb[70].mxu0 }
 0x4f9   : > { %5330 = vtanh.f32 %v3301_v52  ;;  %v3304_v55 = vadd.f32 %v5037_v54, %v3255_v51  ;;  %v3295_v56 = vpop.f32.mrb[71].mxu0 }
 0x4fa   : > { %5332 = vtanh.f32 %v3293_v37  ;;  %v3296_v57 = vadd.f32 %v3295_v56, %v3247_v29 }
 0x4fb   : > { %5334 = vtanh.f32 %v3304_v55 }
 0x4fc   : > { %5336 = vtanh.f32 %v3296_v57 }
 0x503   : > { %v5331_v58 = vpop.eup %5330  ;;  %3317 = sbr.rel (!%p5489_p8) target bundleno = 1291 (0x50b), region = 48 }
 0x504   : > { %v5333_v59 = vpop.eup %5332  ;;  %v3351_v49 = vsel (%p5489_p8), %vm3339_vm2, %v5331_v58, 0.0 }
 0x505   : > { %v5335_v61 = vpop.eup %5334  ;;  %v3349_v9 = vsel (%p5489_p8), %vm3337_vm7, %v5333_v59, 0.0 }
 0x506   : > { %v5337_v27 = vpop.eup %5336  ;;  %v3312_v44 = vpack.c.bf16 %v5335_v61, %v5331_v58  ;;  %v3352_v5 = vsel (%p5489_p8), %vm3340_vm4, %v5335_v61, 0.0 }
 0x507   : > { %v3311_v47 = vpack.c.bf16 %v5337_v27, %v5333_v59  ;;  %v3350_v10 = vsel (%p5489_p8), %vm3338_vm5, %v5337_v27, 0.0  ;;  %v3354_v15 = vpack.c.bf16 (%p5489_p8), %v3352_v5, %v3351_v49 }
 0x508   : > { %3314 = vst [vmem:[#allocation3 + $0x18] sm:$0xff] %v3312_v44  ;;  %v3353_v11 = vpack.c.bf16 (%p5489_p8), %v3350_v10, %v3349_v9 }
 0x509   : > { %3313 = vst [vmem:[#allocation3 + $0x10] sm:$0xff] %v3311_v47  ;;  %3356 = vst [vmem:[#allocation3 + $0x18] sm:$0xff] (%p5489_p8), %v3354_v15 }
 0x50a   : > { %3355 = vst [vmem:[#allocation3 + $0x10] sm:$0xff] %v3353_v11 }
 0x50b PF: > { %v5338_v13 = vld [vmem:[%s6643_s1 + $0x540] sm:$0xff]   ;;  %v5342_v6 = vld [vmem:[%s6643_s1 + $0x548] sm:$0xff]   ;;  %v5346_v14 = vld [vmem:[%s6643_s1 + $0x550] sm:$0xff]   ;;  %vm6716_vm8 = vsmask.f32 7424  ;;  %vm6717_vm6 = vcmask 1044480  }
 0x50c   : > { %v5339_v33 = vld [vmem:[%s6643_s1 + $0x500] sm:$0xff]   ;;  %4877 = vmatprep.subr.bf16.mxu1 %v5338_v13  ;;  %v5343_v20 = vld [vmem:[%s6643_s1 + $0x508] sm:$0xff]   ;;  %v5347_v22 = vld [vmem:[%s6643_s1 + $0x510] sm:$0xff]   ;;  %vm6718_vm9 = vcmask 1046528   ;;  %vm6720_vm13 = vsmask.f32 6400 }
 0x50d   : > { %v5340_v34 = vld [vmem:[%s6643_s1 + $0x5c0] sm:$0xff]   ;;  %4878 = vmatpush3.bf16.msra.mxu1 %v5339_v33  ;;  %v5344_v21 = vld [vmem:[%s6643_s1 + $0x5c8] sm:$0xff]   ;;  %v5348_v60 = vld [vmem:[%s6643_s1 + $0x5d0] sm:$0xff]   ;;  %vm6723_vm10 = vmmov 0   ;;  %vm6724_vm11 = vcmask 1045504  }
 0x50e   : > { %v5341_v17 = vld [vmem:[%s6643_s1 + $0x580] sm:$0xff]   ;;  %4899 = vmatprep.subr.bf16.mxu0 %v5340_v34  ;;  %4879 = vmatprep.subr.bf16.mxu1 %v5342_v6  ;;  %v5345_v30 = vld [vmem:[%s6643_s1 + $0x588] sm:$0xff]   ;;  %v5349_v25 = vld [vmem:[%s6643_s1 + $0x590] sm:$0xff]  }
 0x50f   : > { %4900 = vmatpush3.bf16.msra.mxu0 %v5341_v17  ;;  %v5350_v26 = vld [vmem:[%s6643_s1 + $0x558] sm:$0xff]   ;;  %v5354_v19 = vld [vmem:[%s6643_s1 + $0x560] sm:$0xff]   ;;  %v5358_v32 = vld [vmem:[%s6643_s1 + $0x568] sm:$0xff]  }
 0x510   : > { %4901 = vmatprep.subr.bf16.mxu0 %v5344_v21  ;;  %v5351_v18 = vld [vmem:[%s6643_s1 + $0x518] sm:$0xff]   ;;  %v5355_v24 = vld [vmem:[%s6643_s1 + $0x520] sm:$0xff]   ;;  %v5359_v43 = vld [vmem:[%s6643_s1 + $0x528] sm:$0xff]  }
 0x511   : > { %4880 = vmatpush3.bf16.msra.mxu1 %v5343_v20  ;;  %v5352_v8 = vld [vmem:[%s6643_s1 + $0x5d8] sm:$0xff]   ;;  %v5356_v29 = vld [vmem:[%s6643_s1 + $0x5e0] sm:$0xff]   ;;  %v5360_v40 = vld [vmem:[%s6643_s1 + $0x5e8] sm:$0xff]  }
 0x512   : > { %4881 = vmatprep.subr.bf16.mxu1 %v5346_v14  ;;  %v5353_v28 = vld [vmem:[%s6643_s1 + $0x598] sm:$0xff]   ;;  %v5357_v31 = vld [vmem:[%s6643_s1 + $0x5a0] sm:$0xff]   ;;  %v5361_v35 = vld [vmem:[%s6643_s1 + $0x5a8] sm:$0xff]  }
 0x513   : > { %4902 = vmatpush3.bf16.msra.mxu0 %v5345_v30  ;;  %v5362_v23 = vld [vmem:[%s6643_s1 + $0x570] sm:$0xff]   ;;  %v5366_v45 = vld [vmem:[%s6643_s1 + $0x578] sm:$0xff]   ;;  %v3357_v62 = vld [vmem:[#allocation3 + $0x10] sm:$0xf8] }
 0x514   : > { %4903 = vmatprep.subr.bf16.mxu0 %v5348_v60  ;;  %v5363_v41 = vld [vmem:[%s6643_s1 + $0x530] sm:$0xff]   ;;  %v5367_v46 = vld [vmem:[%s6643_s1 + $0x538] sm:$0xff]   ;;  %v3359_v51 = vld [vmem:[#allocation3 + $0x18] sm:$0xf]  ;;  %v3364_v12 = vshrl.u32 %v3357_v62, 16  ;;  %v3366_v52 = vshll.u32 %v3357_v62, 16 }
 0x515   : > { %4882 = vmatpush3.bf16.msra.mxu1 %v5347_v22  ;;  %v5364_v36 = vld [vmem:[%s6643_s1 + $0x5f0] sm:$0xff]   ;;  %v5368_v50 = vld [vmem:[%s6643_s1 + $0x5f8] sm:$0xff]   ;;  %v3371_v16 = vshll.u32 %v3359_v51, 16  ;;  %v3375_v37 = vshrl.u32 %v3359_v51, 16  ;;  %v3358_v55 = vld [vmem:[#allocation3 + $0x18] sm:$0x7] }
 0x516   : > { %4883 = vmatprep.subr.bf16.mxu1 %v5350_v26  ;;  %v5365_v42 = vld [vmem:[%s6643_s1 + $0x5b0] sm:$0xff]   ;;  %v5369_v54 = vld [vmem:[%s6643_s1 + $0x5b8] sm:$0xff]   ;;  %v3360_v56 = vld [vmem:[#allocation3 + $0x10] sm:$0xf0]  ;;  %v3368_v57 = vrot.slane %v3366_v52, 1  ;;  %v3496_v27 = vrot.slane %v3357_v62, 3 }
 0x517   : > { %4904 = vmatpush3.bf16.msra.mxu0 %v5349_v25  ;;  %v3373_v58 = vrot.slane %v3371_v16, 1  ;;  %v3361_v59 = vld [vmem:[#allocation3 + $0x18] sm:$0x1f]  ;;  %v3384_v61 = vshrl.u32 %v3360_v56, 16  ;;  %v3387_v44 = vshll.u32 %v3360_v56, 16  ;;  %v3497_v1 = vrot.slane %v3358_v55, 3  ;;  %vm6719_vm12 = vmmov %vm6717_vm6 }
 0x518   : > { %4905 = vmatprep.subr.bf16.mxu0 %v5352_v8  ;;  %v3392_v47 = vshrl.u32 %v3361_v59, 16  ;;  %v3395_v0 = vshll.u32 %v3361_v59, 16  ;;  %v3369_v48 = vor.u32 %v3368_v57, %v3364_v12  ;;  %v3380_v63 = vrot.slane %v3360_v56, 1  ;;  %v5370_v13 = vld [vmem:[%s6643_s1 + $0x600] sm:$0xff]   ;;  %vm6721_vm0 = vmmov %vm6717_vm6  ;;  %v5371_v60 = vld [vmem:[%s6643_s1 + $0x608] sm:$0xff]  }
 0x519   : > { %4884 = vmatpush3.bf16.msra.mxu1 %v5351_v18  ;;  %v3377_v2 = vor.u32 %v3375_v37, %v3373_v58  ;;  %v3386_v4 = vrot.slane %v3384_v61, 1  ;;  %v3389_v53 = vrot.slane %v3387_v44, 2  ;;  %v3381_v10 = vrot.slane %v3359_v51, 1  ;;  %vm6722_vm7 = vmmov %vm6721_vm0  ;;  %v5372_v25 = vld [vmem:[%s6643_s1 + $0x610] sm:$0xff]   ;;  %v5373_v26 = vld [vmem:[%s6643_s1 + $0x618] sm:$0xff]  }
 0x51a   : > { %4885 = vmatprep.subr.bf16.mxu1 %v5354_v19  ;;  %v3394_v38 = vrot.slane %v3392_v47, 1  ;;  %v3397_v7 = vrot.slane %v3395_v0, 2  ;;  %v3374_v3 = vsel %vm6716_vm8, %v3369_v48, %v3373_v58  ;;  %v3498_v15 = vsel %vm6717_vm6, %v3496_v27, %v3497_v1  ;;  %v5374_v18 = vld [vmem:[%s6643_s1 + $0x620] sm:$0xff]   ;;  %vm6725_vm14 = vmmov %vm6721_vm0 }
 0x51b   : > { %4906 = vmatpush3.bf16.msra.mxu0 %v5353_v28  ;;  %v3500_v9 = vrot.slane %v3377_v2, 3  ;;  %v3499_v11 = vrot.slane %v3374_v3, 3  ;;  %v3390_v49 = vor.u32 %v3389_v53, %v3386_v4  ;;  %v3382_v33 = vsel %vm6718_vm9, %v3380_v63, %v3381_v10  ;;  %v3362_v8 = vld [vmem:[#allocation3 + $0x10] sm:$0xe0]  ;;  %v5375_v28 = vld [vmem:[%s6643_s1 + $0x628] sm:$0xff]  }
 0x51c   : > { %4907 = vmatprep.subr.bf16.mxu0 %v5356_v29  ;;  %v3398_v5 = vor.u32 %v3397_v7, %v3394_v38  ;;  %v3503_v34 = vrot.slane %v3381_v10, 3  ;;  %v3502_v21 = vrot.slane %v3382_v33, 3  ;;  %v3402_v19 = vrot.slane %v3362_v8, 2  ;;  %v5376_v29 = vld [vmem:[%s6643_s1 + $0x630] sm:$0xff]  }
 0x51d   : > { %4886 = vmatpush3.bf16.msra.mxu1 %v5355_v24  ;;  %v3501_v17 = vsel %vm6719_vm12, %v3499_v11, %v3500_v9  ;;  %v3403_v24 = vrot.slane %v3361_v59, 2 }
 0x51e   : > { %4887 = vmatprep.subr.bf16.mxu1 %v5358_v32  ;;  %v3399_v6 = vsel %vm6720_vm13, %v3390_v49, %v3398_v5  ;;  %v3506_v20 = vrot.slane %v3398_v5, 3  ;;  %3788 = vmatprep.mubr.bf16.mxu1 %v3501_v17  ;;  %v3504_v14 = vsel %vm6721_vm0, %v3502_v21, %v3503_v34  ;;  %v5377_v32 = vld [vmem:[%s6643_s1 + $0x638] sm:$0xff]  }
 0x51f   : > { %4908 = vmatpush3.bf16.msra.mxu0 %v5357_v31  ;;  %v3505_v30 = vrot.slane %v3399_v6, 3  ;;  %v3404_v31 = vsel %vm6724_vm11, %v3402_v19, %v3403_v24 }
 0x520   : > { %4909 = vmatprep.subr.bf16.mxu0 %v5360_v40  ;;  %v3509_v40 = vrot.slane %v3403_v24, 3 }
 0x521   : > { %4888 = vmatpush3.bf16.msra.mxu1 %v5359_v43  ;;  %v3507_v22 = vsel %vm6722_vm7, %v3505_v30, %v3506_v20  ;;  %v3508_v43 = vrot.slane %v3404_v31, 3 }
 0x522   : > { %4889 = vmatprep.subr.bf16.mxu1 %v5362_v23  ;;  %3829 = vmatprep.mubr.bf16.mxu0 %v3507_v22 }
 0x523   : > { %4910 = vmatpush3.bf16.msra.mxu0 %v5361_v35  ;;  %v3510_v35 = vsel %vm6725_vm14, %v3508_v43, %v3509_v40 }
 0x524   : > { %4911 = vmatprep.subr.bf16.mxu0 %v5364_v36 }
 0x525   : > { %4890 = vmatpush3.bf16.msra.mxu1 %v5363_v41  ;;  %v4492_v41 = vld [vmem:[%s6644_s2 + $0x4] ss:$0 sm:$0xff] }
 0x526   : > { %4891 = vmatprep.subr.bf16.mxu1 %v5366_v45 }
 0x527   : > { %4912 = vmatpush3.bf16.msra.mxu0 %v5365_v42 }
 0x528   : > { %4913 = vmatprep.subr.bf16.mxu0 %v5368_v50 }
 0x529   : > { %4892 = vmatpush3.bf16.msra.mxu1 %v5367_v46 }
 0x52a   : > { %5038 = vmatprep.subr.bf16.mxu1 %v5418_v39 }
 0x52b   : > { %4914 = vmatpush3.bf16.msra.mxu0 %v5369_v54 }
 0x52c   : > { %3789 = vmatmul.mubr.bf16.vlgmr.msra.gmra.mrb[84].mxu1 %v3498_v15 }
 0x52d   : > { %5039 = vmatpush3.bf16.msra.mxu1 %v5370_v13  ;;  %5054 = vmatprep.mubr.msk.bf16.mxu1 %vm6723_vm10, %v5418_v39 }
 0x52e   : > { %5040 = vmatprep.subr.bf16.mxu1 %v5418_v39  ;;  %3830 = vmatmul.mubr.bf16.vlgmr.msra.gmra.mrb[72].mxu0 %v3504_v14 }
 0x531   : > { %5041 = vmatpush3.bf16.msra.mxu1 %v5371_v60 }
 0x532   : > { %5042 = vmatprep.subr.bf16.mxu1 %v5418_v39 }
 0x535   : > { %5043 = vmatpush3.bf16.msra.mxu1 %v5372_v25 }
 0x536   : > { %5044 = vmatprep.subr.bf16.mxu1 %v5418_v39 }
 0x539   : > { %5045 = vmatpush3.bf16.msra.mxu1 %v5373_v26 }
 0x53a   : > { %5046 = vmatprep.subr.bf16.mxu1 %v5418_v39 }
 0x53d   : > { %5047 = vmatpush3.bf16.msra.mxu1 %v5374_v18 }
 0x53e   : > { %5048 = vmatprep.subr.bf16.mxu1 %v5418_v39 }
 0x541   : > { %5049 = vmatpush3.bf16.msra.mxu1 %v5375_v28 }
 0x542   : > { %5050 = vmatprep.subr.bf16.mxu1 %v5418_v39 }
 0x545   : > { %5051 = vmatpush3.bf16.msra.mxu1 %v5376_v29 }
 0x546   : > { %5052 = vmatprep.subr.bf16.mxu1 %v5418_v39 }
 0x549   : > { %5053 = vmatpush3.bf16.msra.mxu1 %v5377_v32 }
 0x54c   : > { %5055 = vmatmul.mubr.bf16.vlgmr.msra.gmra.mrb[88].mxu1 %v3510_v35 }
 0x5ff   : > { %v4893_v23 = vpop.f32.mrb[84].mxu1 }
 0x600   : > { %v4894_v36 = vpop.f32.mrb[85].mxu1 }
 0x601   : > { %v4895_v42 = vadd.f32 %v4894_v36, %v4893_v23  ;;  %v4896_v45 = vpop.f32.mrb[86].mxu1  ;;  %v4915_v46 = vpop.f32.mrb[72].mxu0 }
 0x602   : > { %v4897_v50 = vpop.f32.mrb[87].mxu1  ;;  %v4916_v12 = vpop.f32.mrb[73].mxu0 }
 0x603   : > { %v3791_v62 = vadd.f32 %v4895_v42, %v4492_v41  ;;  %v4898_v51 = vadd.f32 %v4897_v50, %v4896_v45  ;;  %v4917_v39 = vadd.f32 %v4916_v12, %v4915_v46  ;;  %v4918_v52 = vpop.f32.mrb[74].mxu0 }
 0x604   : > { %v4919_v37 = vpop.f32.mrb[75].mxu0 }
 0x605   : > { %v3794_v16 = vadd.f32 %v4898_v51, %v4492_v41  ;;  %v4920_v54 = vadd.f32 %v4919_v37, %v4918_v52  ;;  %v3832_v55 = vadd.f32 %v4917_v39, %v3791_v62 }
 0x607   : > { %v3835_v56 = vadd.f32 %v4920_v54, %v3794_v16 }
 0x61f   : > { %v3872_v57 = vpop.f32.mrb[88].mxu1 }
 0x620   : > { %v3873_v58 = vadd.f32 %v3872_v57, %v3832_v55  ;;  %v5056_v59 = vpop.f32.mrb[89].mxu1 }
 0x621   : > { %v3875_v61 = vpop.f32.mrb[90].mxu1 }
 0x622   : > { %3879 = vst [vmem:[%s5540_s11] sm:$0xff] %v3873_v58  ;;  %v3876_v27 = vadd.f32 %v3875_v61, %v3835_v56  ;;  %v5057_v44 = vpop.f32.mrb[91].mxu1 }
 0x624   : > { %3880 = vst [vmem:[%s5540_s11 + $0x8] sm:$0xff] %v3876_v27 }
 0x625 PF: > { %s13_s16 = sadd.s32 1, %s5416_s16   ;;  %s6726_s12 = smov %s5408_s14 }
 0x626   : > { %p10_p10 = scmp.ge.s32.totalorder %s13_s16, 8   ;;  %s6727_s13 = smov %s5412_s15 }
 0x627   : > { %s6728_s14 = smov %s6731_s17  ;;  %s6729_s15 = smov %s6735_s18 }
 0x628   :  { %12 = sbr.rel (!%p10_p10) target bundleno = 3 (0x3), region = 86 }

// kernel: postnet_forward.1
= control target key start
LH: loop header
LB: loop body
LE: loop exit
PB: predicated region body
PF: predicated region fallthrough
CT: control target
= control target key end

     0   :  { %s5440_s12 = smov 0   ;;  %s5442_s13 = smov 0   ;;  %s6642_s0 = inlined_call_operand.vmem [shape: bf16[2,3,96,128], index: 0, kind: input, shape index: {}]   ;;  %s6643_s1 = inlined_call_operand.vmem [shape: bf16[5,640,128], index: 1, kind: input, shape index: {}]   ;;  %s6644_s2 = inlined_call_operand.vmem [shape: f32[5,1,128], index: 2, kind: input, shape index: {}]   ;;  %s6645_s3 = inlined_call_operand.vmem [shape: f32[2,3,16,128], index: 3, kind: output, shape index: {}]  }
   0x1   :  { %s5444_s14 = smov 0   ;;  %s5446_s15 = smov 0  }
   0x2   :  { %s5448_s16 = smov 0  }
   0x3 LB: > { %s22_s17 = sadd.s32 1, %s5408_s14  ;;  %s25_s18 = sadd.s32 1, %s5412_s15  ;;  %s5416_s16 = sphi %s5448_s16, %s13_s16   ;;  %s5412_s15 = sphi %s5446_s15, %s6729_s15   ;;  %s5408_s14 = sphi %s5444_s14, %s6728_s14   ;;  %s5404_s13 = sphi %s5442_s13, %s6727_s13   ;;  %s5400_s12 = sphi %s5440_s12, %s6726_s12  }
   0x4   : > { %p23_p0 = scmp.ge.s32.totalorder %s22_s17, 3  ;;  %p3980_p1 = scmp.ge.s32.totalorder %s5416_s16, 1 }
   0x5   : > { %p157_p2 = scmp.lt.s32.totalorder %s5416_s16, 7 }
   0x6   : > { %s6731_s17 = smov (%p23_p0, %s22_s17), 0  ;;  %s6733_s18 = smov (!%p23_p0, %s25_s18), %s5412_s15 }
   0x7   : > { %p158_p3 = pnand %p3980_p1, %p157_p2  ;;  %p27_p4 = scmp.ge.s32.totalorder %s6733_s18, 2 }
   0x8   : > { %s5475_s19 = sshll.u32 (!%p158_p3), %s5400_s12, 4  ;;  %v5103_v0 = vld [vmem:[%s6643_s1 + $0x40] sm:$0xff] (!%p158_p3)   ;;  %p189_p7 = scmp.lt.s32.totalorder (!%p158_p3), %s5404_s13, 1  ;;  %v5107_v4 = vld [vmem:[%s6643_s1 + $0x48] sm:$0xff] (!%p158_p3)   ;;  %v5111_v8 = vld [vmem:[%s6643_s1 + $0x50] sm:$0xff] (!%p158_p3)   ;;  %vm6648_vm0 = vcmask (!%p158_p3), 1044480  }
   0x9   : > { %s6735_s18 = smov (%p27_p4, %s6733_s18), 0  ;;  %161 = sbr.rel (%p158_p3) target bundleno = 1573 (0x625), region = 32 }
   0xa   : > { %p209_p5 = scmp.lt.s32.totalorder (!%p158_p3), %s5475_s19, 40  ;;  %s210_s22 = sadd.s32 (!%p158_p3), 56, %s5475_s19  ;;  %4535 = vmatprep.subr.bf16.mxu0 (!%p158_p3), %v5103_v0  ;;  %v5104_v1 = vld [vmem:[%s6643_s1] sm:$0xff] (!%p158_p3)   ;;  %v5108_v5 = vld [vmem:[%s6643_s1 + $0x8] sm:$0xff] (!%p158_p3)   ;;  %v5112_v9 = vld [vmem:[%s6643_s1 + $0x10] sm:$0xff] (!%p158_p3)   ;;  %vm321_vm1 = vcmask (!%p158_p3), 1042432  }
   0xb   : > { %p211_p6 = scmp.gt.s32.totalorder (!%p158_p3), %s210_s22, 40  ;;  %v5105_v2 = vld [vmem:[%s6643_s1 + $0xc0] sm:$0xff] (!%p158_p3)   ;;  %4536 = vmatpush3.bf16.msra.mxu0 (!%p158_p3), %v5104_v1  ;;  %p191_p9 = scmp.lt.s32.totalorder (!%p158_p3), %s5400_s12, 2  ;;  %v5109_v6 = vld [vmem:[%s6643_s1 + $0xc8] sm:$0xff] (!%p158_p3)   ;;  %v5113_v10 = vld [vmem:[%s6643_s1 + $0xd0] sm:$0xff] (!%p158_p3)   ;;  %v5418_v39 = vmov (!%p158_p3), 0.0  }
   0xc   : > { %v5106_v3 = vld [vmem:[%s6643_s1 + $0x80] sm:$0xff] (!%p158_p3)   ;;  %4581 = vmatprep.subr.bf16.mxu1 (!%p158_p3), %v5105_v2  ;;  %4537 = vmatprep.subr.bf16.mxu0 (!%p158_p3), %v5107_v4  ;;  %v5110_v7 = vld [vmem:[%s6643_s1 + $0x88] sm:$0xff] (!%p158_p3)   ;;  %v5114_v11 = vld [vmem:[%s6643_s1 + $0x90] sm:$0xff] (!%p158_p3)   ;;  %vm6649_vm2 = vsmask.f32 (!%p158_p3), 7424  ;;  %vm412_vm4 = vcmask (!%p158_p3), 1041408  }
   0xd   : > { %p5489_p8 = por (!%p158_p3), %p211_p6, %p209_p5  ;;  %4582 = vmatpush3.bf16.msra.mxu1 (!%p158_p3), %v5106_v3  ;;  %v5115_v12 = vld [vmem:[%s6643_s1 + $0x58] sm:$0xff] (!%p158_p3)   ;;  %v5119_v16 = vld [vmem:[%s6643_s1 + $0x60] sm:$0xff] (!%p158_p3)   ;;  %v5123_v20 = vld [vmem:[%s6643_s1 + $0x68] sm:$0xff] (!%p158_p3)   ;;  %vm359_vm3 = vsmask.f32 (!%p158_p3), 2304  ;;  %vm6646_vm5 = vmmov (!%p158_p3), 0  }
   0xe   : > { %4583 = vmatprep.subr.bf16.mxu1 (!%p158_p3), %v5109_v6  ;;  %v5116_v13 = vld [vmem:[%s6643_s1 + $0x18] sm:$0xff] (!%p158_p3)   ;;  %v5120_v17 = vld [vmem:[%s6643_s1 + $0x20] sm:$0xff] (!%p158_p3)   ;;  %v5124_v21 = vld [vmem:[%s6643_s1 + $0x28] sm:$0xff] (!%p158_p3)   ;;  %vm6651_vm6 = vcmask (!%p158_p3), 1043456  }
   0xf   : > { %4538 = vmatpush3.bf16.msra.mxu0 (!%p158_p3), %v5108_v5  ;;  %v5117_v14 = vld [vmem:[%s6643_s1 + $0xd8] sm:$0xff] (!%p158_p3)   ;;  %v5121_v18 = vld [vmem:[%s6643_s1 + $0xe0] sm:$0xff] (!%p158_p3)   ;;  %v5125_v22 = vld [vmem:[%s6643_s1 + $0xe8] sm:$0xff] (!%p158_p3)  }
  0x10   : > { %s6737_s12 = smov (!%p191_p9, %s5400_s12), 2  ;;  %s6739_s13 = smov (!%p189_p7, %s5404_s13), 1  ;;  %4539 = vmatprep.subr.bf16.mxu0 %v5111_v8  ;;  %v5118_v15 = vld [vmem:[%s6643_s1 + $0x98] sm:$0xff]   ;;  %v5122_v19 = vld [vmem:[%s6643_s1 + $0xa0] sm:$0xff]   ;;  %v5126_v23 = vld [vmem:[%s6643_s1 + $0xa8] sm:$0xff]  }
  0x11   : > { %s3982_s21 = sshll.u32 %s6737_s12, 1  ;;  %4584 = vmatpush3.bf16.msra.mxu1 %v5110_v7  ;;  %s5060_s24 = smul.u32 6, %s6739_s13  ;;  %v5127_v24 = vld [vmem:[%s6643_s1 + $0x70] sm:$0xff]   ;;  %v5131_v28 = vld [vmem:[%s6643_s1 + $0x78] sm:$0xff]  }
  0x12   : > { %4585 = vmatprep.subr.bf16.mxu1 %v5113_v10  ;;  %s5059_s26 = smul.u32 36, %s6739_s13  ;;  %v5128_v25 = vld [vmem:[%s6643_s1 + $0x30] sm:$0xff]   ;;  %v5132_v29 = vld [vmem:[%s6643_s1 + $0x38] sm:$0xff]  }
  0x13   : > { %4540 = vmatpush3.bf16.msra.mxu0 %v5112_v9  ;;  %s204_s30 = sadd.s32 %s5060_s24, %s3982_s21  ;;  %v5129_v26 = vld [vmem:[%s6643_s1 + $0xf0] sm:$0xff]   ;;  %v5133_v30 = vld [vmem:[%s6643_s1 + $0xf8] sm:$0xff]   ;;  %s1107_s24 = sadd.s32 (%p5489_p8), 4294967264, %s5475_s19 }
  0x14   : > { %s3983_s6 = sshll.u32 %s204_s30, 3  ;;  %4541 = vmatprep.subr.bf16.mxu0 %v5115_v12  ;;  %s5058_s30 = smul.u32 12, %s6737_s12  ;;  %v5130_v27 = vld [vmem:[%s6643_s1 + $0xb0] sm:$0xff]   ;;  %v5137_v43 = vld [vmem:[%s6643_s1 + $0xb8] sm:$0xff]  }
  0x15   : > { %4586 = vmatpush3.bf16.msra.mxu1 %v5114_v11  ;;  %s5540_s11 = scalar_lea.vmem %s6645_s3, %s3983_s6  ;;  %v5140_v11 = vld [vmem:[%s6643_s1 + $0x100] sm:$0xff]  }
  0x16   : > { %4587 = vmatprep.subr.bf16.mxu1 %v5117_v14  ;;  %s195_s12 = sadd.s32 %s5059_s26, %s5058_s30 }
  0x17   : > { %4542 = vmatpush3.bf16.msra.mxu0 %v5116_v13  ;;  %s3981_s28 = sshll.u32 %s195_s12, 2 }
  0x18   : > { %4543 = vmatprep.subr.bf16.mxu0 %v5119_v16  ;;  %s5589_s9 = scalar_lea.vmem %s6642_s0, %s3981_s28 }
  0x19   : > { %4588 = vmatpush3.bf16.msra.mxu1 %v5118_v15  ;;  %v213_v31 = vld [vmem:[%s5589_s9] sm:$0x8]  ;;  %v214_v32 = vld [vmem:[%s5589_s9 + $0x4] sm:$0xf]  ;;  %v215_v33 = vld [vmem:[%s5589_s9 + $0x8] sm:$0xf] }
  0x1a   : > { %4589 = vmatprep.subr.bf16.mxu1 %v5121_v18  ;;  %v216_v34 = vld [vmem:[%s5589_s9 + $0xc] sm:$0xf]  ;;  %v217_v35 = vld [vmem:[%s5589_s9 + $0x10] sm:$0xf]  ;;  %v3985_v36 = vcombine.low %v213_v31, %v214_v32  ;;  %v5606_v37 = vld [vmem:[%s5589_s9 + $0x14] sm:$0xf]  ;;  %v3992_v50 = vcombine.low %v214_v32, %v215_v33 }
  0x1b   : > { %4544 = vmatpush3.bf16.msra.mxu0 %v5120_v17  ;;  %v5608_v38 = vcombine.low %v215_v33, %v216_v34  ;;  %v5612_v40 = vcombine.low %v217_v35, %v5606_v37  ;;  %v225_v48 = vld [vmem:[%s5589_s9 + $0x4] sm:$0xf]  ;;  %v5622_v49 = vld [vmem:[%s5589_s9 + $0xc] sm:$0xff]   ;;  %v5626_v53 = vld [vmem:[%s5589_s9 + $0x8] sm:$0xf]  ;;  %v3993_v54 = vcombine.low %v216_v34, %v217_v35 }
  0x1c   : > { %4545 = vmatprep.subr.bf16.mxu0 %v5123_v20  ;;  %v270_v41 = vshrl.u32 %v3985_v36, 16  ;;  %v272_v42 = vshll.u32 %v3985_v36, 16  ;;  %v512_v44 = vrot.slane %v3985_v36, 3  ;;  %v3997_v57 = vcombine.low %v225_v48, %v5626_v53  ;;  %v5636_v6 = vld [vmem:[%s5589_s9 + $0x14] sm:$0xff]   ;;  %v220_v17 = vld [vmem:[%s5589_s9 + $0x1c] sm:$0xf] }
  0x1d   : > { %4590 = vmatpush3.bf16.msra.mxu1 %v5122_v19  ;;  %v277_v45 = vshll.u32 %v5608_v38, 16  ;;  %v281_v46 = vshrl.u32 %v5608_v38, 16  ;;  %v513_v47 = vrot.slane %v5608_v38, 3  ;;  %v285_v52 = vshll.u32 %v5612_v40, 16  ;;  %v219_v16 = vld [vmem:[%s5589_s9 + $0x18] sm:$0xf] }
  0x1e   : > { %4591 = vmatprep.subr.bf16.mxu1 %v5125_v22  ;;  %v274_v51 = vrot.slane %v272_v42, 1  ;;  %v369_v60 = vshrl.u32 %v5622_v49, 16  ;;  %v372_v61 = vshll.u32 %v5622_v49, 16  ;;  %v361_v63 = vshrl.u32 %v3997_v57, 16  ;;  %v5143_v32 = vld [vmem:[%s6643_s1 + $0x108] sm:$0xff]  }
  0x1f   : > { %4546 = vmatpush3.bf16.msra.mxu0 %v5124_v21  ;;  %v279_v55 = vrot.slane %v277_v45, 1  ;;  %v514_v56 = vsel %vm6648_vm0, %v512_v44, %v513_v47  ;;  %v287_v59 = vrot.slane %v285_v52, 1  ;;  %v364_v0 = vshll.u32 %v3997_v57, 16  ;;  %v5671_v36 = vld [vmem:[%s5589_s9 + $0x24] sm:$0xf] }
  0x20   : > { %4547 = vmatprep.subr.bf16.mxu0 %v5127_v24  ;;  %v275_v58 = vor.u32 %v274_v51, %v270_v41  ;;  %v322_v1 = vrot.slane %v3992_v50, 5  ;;  %v371_v3 = vrot.slane %v369_v60, 5  ;;  %v374_v4 = vrot.slane %v372_v61, 6  ;;  %v5694_v60 = vld [vmem:[%s5589_s9 + $0x24] sm:$0xff]  }
  0x21   : > { %4592 = vmatpush3.bf16.msra.mxu1 %v5126_v23  ;;  %v283_v62 = vor.u32 %v281_v46, %v279_v55  ;;  %v323_v5 = vrot.slane %v3993_v54, 5  ;;  %v363_v9 = vrot.slane %v361_v63, 5  ;;  %v366_v10 = vrot.slane %v364_v0, 6 }
  0x22   : > { %4593 = vmatprep.subr.bf16.mxu1 %v5129_v26  ;;  %v280_v2 = vsel %vm6649_vm2, %v275_v58, %v279_v55  ;;  %v375_v13 = vor.u32 %v374_v4, %v371_v3  ;;  %v518_v15 = vrot.slane %v322_v1, 3  ;;  %v5651_v20 = vcombine.low %v219_v16, %v220_v17 }
  0x23   : > { %4548 = vmatpush3.bf16.msra.mxu0 %v5128_v25  ;;  %v5639_v7 = vsel %vm6649_vm2, %v283_v62, %v287_v59  ;;  %v515_v8 = vrot.slane %v280_v2, 3  ;;  %v5646_v14 = vsel %vm321_vm1, %v322_v1, %v323_v5  ;;  %v367_v18 = vor.u32 %v366_v10, %v363_v9 }
  0x24   : > { %4549 = vmatprep.subr.bf16.mxu0 %v5131_v28  ;;  %v516_v12 = vrot.slane %v5639_v7, 3  ;;  %v519_v19 = vrot.slane %v5646_v14, 3  ;;  %v289_v21 = vshrl.u32 %v5612_v40, 16  ;;  %v527_v23 = vrot.slane %v5612_v40, 3 }
  0x25   : > { %4594 = vmatpush3.bf16.msra.mxu1 %v5130_v27  ;;  %v378_v24 = vshrl.u32 %v5636_v6, 16  ;;  %v381_v25 = vshll.u32 %v5636_v6, 16  ;;  %v376_v26 = vsel %vm359_vm3, %v367_v18, %v375_v13  ;;  %v521_v27 = vrot.slane %v367_v18, 3 }
  0x26   : > { %4595 = vmatprep.subr.bf16.mxu1 %v5133_v30  ;;  %v517_v22 = vsel %vm6648_vm0, %v515_v8, %v516_v12  ;;  %v520_v28 = vsel %vm6648_vm0, %v518_v15, %v519_v19  ;;  %v5664_v30 = vld [vmem:[%s5589_s9 + $0x1c] sm:$0xff]   ;;  %v522_v31 = vrot.slane %v376_v26, 3  ;;  %v291_v33 = vor.u32 %v289_v21, %v287_v59  ;;  %v224_v59 = vld [vmem:[%s5589_s9 + $0x28] sm:$0xf] }
  0x27   : > { %4550 = vmatpush3.bf16.msra.mxu0 %v5132_v29  ;;  %864 = vmatprep.mubr.bf16.mxu0 %v517_v22  ;;  %v221_v29 = vld [vmem:[%s5589_s9 + $0x20] sm:$0xf]  ;;  %v293_v34 = vshll.u32 %v5651_v20, 16  ;;  %v380_v35 = vrot.slane %v378_v24, 5  ;;  %v383_v41 = vrot.slane %v381_v25, 6  ;;  %v3994_v42 = vcombine.low %v5606_v37, %v219_v16 }
  0x28   : > { %4930 = vmatprep.subr.bf16.mxu0 %v5418_v39  ;;  %v297_v44 = vshrl.u32 %v5651_v20, 16  ;;  %v523_v45 = vsel %vm6648_vm0, %v521_v27, %v522_v31  ;;  %v3995_v48 = vcombine.low %v220_v17, %v221_v29  ;;  %v387_v37 = vshrl.u32 %v5664_v30, 16  ;;  %v5149_v17 = vld [vmem:[%s6643_s1 + $0x118] sm:$0xff]   ;;  %v5716_v24 = vld [vmem:[%s5589_s9 + $0x2c] ss:$0 sps:$4 sm:$0x11]  }
  0x29   : > { %4596 = vmatpush3.bf16.msra.mxu1 %v5137_v43  ;;  %v5675_v43 = vcombine.low %v221_v29, %v5671_v36  ;;  %v295_v46 = vrot.slane %v293_v34, 1  ;;  %937 = vmatprep.mubr.bf16.mxu1 %v523_v45  ;;  %v384_v50 = vor.u32 %v383_v41, %v380_v35  ;;  %v325_v51 = vrot.slane %v3994_v42, 5  ;;  %v5152_v34 = vld [vmem:[%s6643_s1 + $0x120] sm:$0xff]  }
  0x2a   : > { %865 = vmatmul.mubr.bf16.vlgmr.msra.gmra.mrb[0].mxu0 %v514_v56  ;;  %v528_v55 = vsel %vm6648_vm0, %v513_v47, %v527_v23  ;;  %v5147_v56 = vld [vmem:[%s6643_s1 + $0x110] sm:$0xff]   ;;  %v390_v58 = vshll.u32 %v5664_v30, 16  ;;  %v389_v47 = vrot.slane %v387_v37, 5  ;;  %v327_v7 = vrot.slane %v3995_v48, 5 }
  0x2b   : > { %4931 = vmatpush3.bf16.msra.mxu0 %v5140_v11  ;;  %v301_v52 = vshll.u32 %v5675_v43, 16  ;;  %v296_v54 = vsel %vm6649_vm2, %v291_v33, %v295_v46  ;;  %v299_v57 = vor.u32 %v297_v44, %v295_v46  ;;  %v385_v62 = vsel %vm359_vm3, %v375_v13, %v384_v50 }
  0x2c   : > { %4932 = vmatprep.subr.bf16.mxu0 %v5418_v39  ;;  %938 = vmatmul.mubr.bf16.vlgmr.msra.gmra.mrb[0].mxu1 %v520_v28  ;;  %v529_v61 = vrot.slane %v296_v54, 3  ;;  %v326_v63 = vsel %vm321_vm1, %v323_v5, %v325_v51  ;;  %v533_v38 = vrot.slane %v385_v62, 3  ;;  %v392_v2 = vrot.slane %v390_v58, 6 }
  0x2d   : > { %v303_v0 = vrot.slane %v301_v52, 1  ;;  %v531_v1 = vrot.slane %v326_v63, 3  ;;  %v3991_v8 = vcombine.low %v224_v59, %v224_v59  ;;  %v537_v11 = vrot.slane %v5651_v20, 3  ;;  %v5156_v52 = vld [vmem:[%s6643_s1 + $0x128] sm:$0xff]  }
  0x2e   : > { %v530_v3 = vsel %vm6648_vm0, %v516_v12, %v529_v61  ;;  %v534_v9 = vsel %vm6648_vm0, %v522_v31, %v533_v38  ;;  %v393_v5 = vor.u32 %v392_v2, %v389_v47  ;;  %v305_v12 = vshrl.u32 %v5675_v43, 16  ;;  %v5160_v2 = vld [vmem:[%s6643_s1 + $0x138] sm:$0xff]  }
  0x2f   : > { %4933 = vmatpush3.bf16.msra.mxu0 %v5143_v32  ;;  %v304_v4 = vsel %vm6649_vm2, %v299_v57, %v303_v0  ;;  %872 = vmatprep.mubr.bf16.mxu0 %v530_v3  ;;  %v532_v13 = vsel %vm6648_vm0, %v519_v19, %v531_v1  ;;  %v309_v15 = vshll.u32 %v3991_v8, 16  ;;  %v328_v20 = vsel %vm321_vm1, %v325_v51, %v327_v7 }
  0x30   : > { %4934 = vmatprep.subr.bf16.mxu0 %v5418_v39  ;;  %v539_v10 = vrot.slane %v304_v4, 3  ;;  %945 = vmatprep.mubr.bf16.mxu1 %v534_v9  ;;  %v394_v18 = vsel %vm359_vm3, %v384_v50, %v393_v5  ;;  %v396_v21 = vshrl.u32 %v5694_v60, 16  ;;  %v307_v19 = vor.u32 %v305_v12, %v303_v0 }
  0x31   : > { %v543_v14 = vrot.slane %v394_v18, 3  ;;  %v311_v22 = vrot.slane %v309_v15, 1  ;;  %v538_v25 = vsel %vm6648_vm0, %v527_v23, %v537_v11  ;;  %v399_v27 = vshll.u32 %v5694_v60, 16 }
  0x32   : > { %873 = vmatmul.mubr.bf16.gmra.mrb[4].mxu0 %v528_v55  ;;  %v540_v16 = vsel %vm6648_vm0, %v529_v61, %v539_v10  ;;  %v398_v26 = vrot.slane %v396_v21, 5  ;;  %v3996_v28 = vcombine.low %v5671_v36, %v224_v59  ;;  %v541_v31 = vrot.slane %v328_v20, 3  ;;  %v5157_v59 = vld [vmem:[%s6643_s1 + $0x130] sm:$0xff]   ;;  %v5158_v61 = vld [vmem:[%s5589_s9 + $0x28] ss:$0 sps:$4 sm:$0x77]  }
  0x33   : > { %4935 = vmatpush3.bf16.msra.mxu0 %v5147_v56  ;;  %880 = vmatprep.mubr.bf16.mxu0 %v540_v16  ;;  %v544_v29 = vsel %vm6648_vm0, %v533_v38, %v543_v14  ;;  %v312_v32 = vsel %vm6649_vm2, %v307_v19, %v311_v22  ;;  %v313_v33 = vshrl.u32 %v3991_v8, 16  ;;  %v401_v35 = vrot.slane %v399_v27, 6  ;;  %v236_v56 = vld [vmem:[%s5589_s9 + $0x4] sm:$0xe]  ;;  %v5786_v27 = vld [vmem:[%s6644_s2] ss:$0 sm:$0xff] }
  0x34   : > { %4936 = vmatprep.subr.bf16.mxu0 %v5418_v39  ;;  %946 = vmatmul.mubr.bf16.gmra.mrb[4].mxu1 %v532_v13  ;;  %v549_v40 = vrot.slane %v312_v32, 3  ;;  %v329_v23 = vrot.slane %v3996_v28, 5  ;;  %v405_v41 = vshll.u32 %v5716_v24, 16  ;;  %v542_v46 = vsel %vm6648_vm0, %v531_v1, %v541_v31 }
  0x35   : > { %953 = vmatprep.mubr.bf16.mxu1 %v544_v29  ;;  %v315_v36 = vor.u32 %v313_v33, %v311_v22  ;;  %v402_v44 = vor.u32 %v401_v35, %v398_v26  ;;  %v547_v48 = vrot.slane %v5675_v43, 3  ;;  %v4003_v0 = vcombine.low %v236_v56, %v5626_v53 }
  0x36   : > { %v550_v42 = vsel %vm6648_vm0, %v539_v10, %v549_v40  ;;  %v407_v45 = vrot.slane %v405_v41, 6  ;;  %v330_v51 = vsel %vm321_vm1, %v327_v7, %v329_v23  ;;  %v557_v1 = vrot.slane %v5158_v61, 3 }
  0x37   : > { %4937 = vmatpush3.bf16.msra.mxu0 %v5149_v17  ;;  %v403_v50 = vsel %vm359_vm3, %v393_v5, %v402_v44  ;;  %v559_v54 = vrot.slane %v315_v36, 3  ;;  %v551_v43 = vrot.slane %v330_v51, 3  ;;  %v548_v58 = vsel %vm6648_vm0, %v537_v11, %v547_v48 }
  0x38   : > { %4938 = vmatprep.subr.bf16.mxu0 %v5418_v39  ;;  %v553_v37 = vrot.slane %v403_v50, 3  ;;  %v408_v55 = vsel %vm359_vm3, %v402_v44, %v407_v45  ;;  %v413_v3 = vrot.slane %v4003_v0, 6  ;;  %v414_v4 = vrot.slane %v5622_v49, 6 }
  0x39   : > { %v563_v62 = vrot.slane %v408_v55, 3  ;;  %v560_v63 = vsel %vm6648_vm0, %v549_v40, %v559_v54  ;;  %v552_v38 = vsel %vm6648_vm0, %v541_v31, %v551_v43  ;;  %v561_v53 = vrot.slane %v329_v23, 3 }
  0x3a   : > { %881 = vmatmul.mubr.bf16.gmra.mrb[8].mxu0 %v538_v25  ;;  %v554_v57 = vsel %vm6648_vm0, %v543_v14, %v553_v37  ;;  %v558_v7 = vsel %vm6648_vm0, %v547_v48, %v557_v1  ;;  %v415_v8 = vsel %vm412_vm4, %v413_v3, %v414_v4  ;;  %v524_v10 = vrot.slane %v413_v3, 3 }
  0x3b   : > { %4939 = vmatpush3.bf16.msra.mxu0 %v5152_v34  ;;  %888 = vmatprep.mubr.bf16.mxu0 %v550_v42  ;;  %v564_v47 = vsel %vm6648_vm0, %v553_v37, %v563_v62  ;;  %v562_v9 = vsel %vm6648_vm0, %v551_v43, %v561_v53  ;;  %v525_v11 = vrot.slane %v415_v8, 3  ;;  %v416_v49 = vrot.slane %v5636_v6, 6 }
  0x3c   : > { %4940 = vmatprep.subr.bf16.mxu0 %v5418_v39  ;;  %954 = vmatmul.mubr.bf16.gmra.mrb[8].mxu1 %v542_v46  ;;  %v418_v15 = vrot.slane %v5664_v30, 6  ;;  %v420_v18 = vrot.slane %v5694_v60, 6  ;;  %v422_v14 = vrot.slane %v5716_v24, 6 }
  0x3d   : > { %961 = vmatprep.mubr.bf16.mxu1 %v554_v57  ;;  %v526_v5 = vsel %vm6648_vm0, %v524_v10, %v525_v11  ;;  %v417_v13 = vsel %vm412_vm4, %v414_v4, %v416_v49 }
  0x3e   : > { %v535_v12 = vrot.slane %v417_v13, 3  ;;  %v419_v17 = vsel %vm412_vm4, %v416_v49, %v418_v15  ;;  %v421_v21 = vsel %vm412_vm4, %v418_v15, %v420_v18  ;;  %v423_v22 = vsel %vm412_vm4, %v420_v18, %v422_v14 }
  0x3f   : > { %4941 = vmatpush3.bf16.msra.mxu0 %v5156_v52  ;;  %v545_v6 = vrot.slane %v419_v17, 3  ;;  %v555_v30 = vrot.slane %v421_v21, 3  ;;  %v565_v60 = vrot.slane %v423_v22, 3 }
  0x40   : > { %4942 = vmatprep.subr.bf16.mxu0 %v5418_v39  ;;  %v536_v16 = vsel %vm6648_vm0, %v525_v11, %v535_v12 }
  0x41   : > { %v546_v20 = vsel %vm6648_vm0, %v535_v12, %v545_v6  ;;  %v556_v19 = vsel %vm6648_vm0, %v545_v6, %v555_v30  ;;  %v566_v25 = vsel %vm6648_vm0, %v555_v30, %v565_v60 }
  0x42   : > { %889 = vmatmul.mubr.bf16.gmra.mrb[12].mxu0 %v548_v58 }
  0x43   : > { %896 = vmatprep.mubr.bf16.mxu0 %v560_v63  ;;  %4943 = vmatpush3.bf16.msra.mxu0 %v5157_v59 }
  0x44   : > { %4944 = vmatprep.subr.bf16.mxu0 %v5418_v39  ;;  %962 = vmatmul.mubr.bf16.gmra.mrb[12].mxu1 %v552_v38 }
  0x45   : > { %969 = vmatprep.mubr.bf16.mxu1 %v564_v47 }
  0x47   : > { %4945 = vmatpush3.bf16.msra.mxu0 %v5160_v2 }
  0x4a   : > { %897 = vmatmul.mubr.bf16.gmra.mrb[16].mxu0 %v558_v7 }
  0x4b   : > { %4946 = vmatprep.mubr.msk.bf16.mxu0 %vm6646_vm5, %v5418_v39 }
  0x4c   : > { %970 = vmatmul.mubr.bf16.gmra.mrb[16].mxu1 %v562_v9 }
  0x52   : > { %4947 = vmatmul.mubr.bf16.vlgmr.msra.gmra.mrb[20].mxu0 %v526_v5 }
  0x53   : > { %4950 = vmatprep.mubr.msk.bf16.mxu0 %vm6646_vm5, %v5418_v39 }
  0x5a   : > { %4951 = vmatmul.mubr.bf16.gmra.mrb[24].mxu0 %v536_v16 }
  0x5b   : > { %4954 = vmatprep.mubr.msk.bf16.mxu0 %vm6646_vm5, %v5418_v39 }
  0x62   : > { %4955 = vmatmul.mubr.bf16.gmra.mrb[28].mxu0 %v546_v20 }
  0x63   : > { %4958 = vmatprep.mubr.msk.bf16.mxu0 %vm6646_vm5, %v5418_v39 }
  0x6a   : > { %4959 = vmatmul.mubr.bf16.gmra.mrb[32].mxu0 %v556_v19 }
  0x6b   : > { %4962 = vmatprep.mubr.msk.bf16.mxu0 %vm6646_vm5, %v5418_v39 }
  0x72   : > { %4963 = vmatmul.mubr.bf16.gmra.mrb[36].mxu0 %v566_v25 }
  0xfd   : > { %v4551_v26 = vpop.f32.mrb[0].mxu0 }
  0xfe   : > { %v4552_v28 = vpop.f32.mrb[1].mxu0 }
  0xff   : > { %v4553_v24 = vadd.f32 %v4552_v28, %v4551_v26  ;;  %v4554_v29 = vpop.f32.mrb[2].mxu0  ;;  %v4597_v33 = vpop.f32.mrb[0].mxu1 }
 0x100   : > { %v4555_v31 = vpop.f32.mrb[3].mxu0  ;;  %v4598_v40 = vpop.f32.mrb[1].mxu1 }
 0x101   : > { %v867_v32 = vadd.f32 %v4553_v24, %v5786_v27  ;;  %v4556_v34 = vadd.f32 %v4555_v31, %v4554_v29  ;;  %v4599_v23 = vadd.f32 %v4598_v40, %v4597_v33  ;;  %v4600_v41 = vpop.f32.mrb[2].mxu1 }
 0x102   : > { %v4601_v36 = vpop.f32.mrb[3].mxu1 }
 0x103   : > { %v870_v35 = vadd.f32 %v4556_v34, %v5786_v27  ;;  %v4602_v42 = vadd.f32 %v4601_v36, %v4600_v41  ;;  %v5790_v44 = vadd.f32 %v4599_v23, %v867_v32 }
 0x105   : > { %v4557_v45 = vpop.f32.mrb[4].mxu0  ;;  %v5792_v48 = vadd.f32 %v4602_v42, %v870_v35 }
 0x106   : > { %v4558_v46 = vpop.f32.mrb[5].mxu0 }
 0x107   : > { %v4559_v50 = vadd.f32 %v4558_v46, %v4557_v45  ;;  %v4560_v51 = vpop.f32.mrb[6].mxu0  ;;  %v4603_v52 = vpop.f32.mrb[4].mxu1 }
 0x108   : > { %v4561_v37 = vpop.f32.mrb[7].mxu0  ;;  %v4604_v56 = vpop.f32.mrb[5].mxu1 }
 0x109   : > { %v875_v54 = vadd.f32 %v4559_v50, %v5786_v27  ;;  %v4562_v55 = vadd.f32 %v4561_v37, %v4560_v51  ;;  %v4605_v57 = vadd.f32 %v4604_v56, %v4603_v52  ;;  %v4606_v43 = vpop.f32.mrb[6].mxu1 }
 0x10a   : > { %v4607_v59 = vpop.f32.mrb[7].mxu1 }
 0x10b   : > { %v878_v58 = vadd.f32 %v4562_v55, %v5786_v27  ;;  %v4608_v61 = vadd.f32 %v4607_v59, %v4606_v43  ;;  %v948_v62 = vadd.f32 %v4605_v57, %v875_v54 }
 0x10d   : > { %v4563_v63 = vpop.f32.mrb[8].mxu0  ;;  %v951_v38 = vadd.f32 %v4608_v61, %v878_v58 }
 0x10e   : > { %v4564_v0 = vpop.f32.mrb[9].mxu0 }
 0x10f   : > { %v4565_v1 = vadd.f32 %v4564_v0, %v4563_v63  ;;  %v4566_v47 = vpop.f32.mrb[10].mxu0  ;;  %v4609_v2 = vpop.f32.mrb[8].mxu1 }
 0x110   : > { %v4567_v3 = vpop.f32.mrb[11].mxu0  ;;  %v4610_v7 = vpop.f32.mrb[9].mxu1 }
 0x111   : > { %v883_v4 = vadd.f32 %v4565_v1, %v5786_v27  ;;  %v4568_v53 = vadd.f32 %v4567_v3, %v4566_v47  ;;  %v4611_v8 = vadd.f32 %v4610_v7, %v4609_v2  ;;  %v4612_v9 = vpop.f32.mrb[10].mxu1 }
 0x112   : > { %v4613_v11 = vpop.f32.mrb[11].mxu1 }
 0x113   : > { %v886_v10 = vadd.f32 %v4568_v53, %v5786_v27  ;;  %v4614_v49 = vadd.f32 %v4613_v11, %v4612_v9  ;;  %v956_v5 = vadd.f32 %v4611_v8, %v883_v4 }
 0x115   : > { %v4569_v13 = vpop.f32.mrb[12].mxu0  ;;  %v959_v15 = vadd.f32 %v4614_v49, %v886_v10 }
 0x116   : > { %v4570_v12 = vpop.f32.mrb[13].mxu0 }
 0x117   : > { %v4571_v16 = vadd.f32 %v4570_v12, %v4569_v13  ;;  %v4572_v17 = vpop.f32.mrb[14].mxu0  ;;  %v4615_v6 = vpop.f32.mrb[12].mxu1 }
 0x118   : > { %v4573_v18 = vpop.f32.mrb[15].mxu0  ;;  %v4616_v30 = vpop.f32.mrb[13].mxu1 }
 0x119   : > { %v891_v20 = vadd.f32 %v4571_v16, %v5786_v27  ;;  %v4574_v21 = vadd.f32 %v4573_v18, %v4572_v17  ;;  %v4617_v14 = vadd.f32 %v4616_v30, %v4615_v6  ;;  %v4618_v19 = vpop.f32.mrb[14].mxu1 }
 0x11a   : > { %v4619_v60 = vpop.f32.mrb[15].mxu1 }
 0x11b   : > { %v894_v22 = vadd.f32 %v4574_v21, %v5786_v27  ;;  %v4620_v25 = vadd.f32 %v4619_v60, %v4618_v19  ;;  %v964_v26 = vadd.f32 %v4617_v14, %v891_v20 }
 0x11d   : > { %v4575_v28 = vpop.f32.mrb[16].mxu0  ;;  %v967_v29 = vadd.f32 %v4620_v25, %v894_v22 }
 0x11e   : > { %v4576_v24 = vpop.f32.mrb[17].mxu0 }
 0x11f   : > { %v4577_v31 = vadd.f32 %v4576_v24, %v4575_v28  ;;  %v4578_v32 = vpop.f32.mrb[18].mxu0  ;;  %v4621_v33 = vpop.f32.mrb[16].mxu1 }
 0x120   : > { %v4579_v34 = vpop.f32.mrb[19].mxu0  ;;  %v4622_v23 = vpop.f32.mrb[17].mxu1 }
 0x121   : > { %v899_v40 = vadd.f32 %v4577_v31, %v5786_v27  ;;  %v4580_v35 = vadd.f32 %v4579_v34, %v4578_v32  ;;  %v4623_v41 = vadd.f32 %v4622_v23, %v4621_v33  ;;  %v4624_v36 = vpop.f32.mrb[18].mxu1  ;;  %v1108_v23 = vstv (%p5489_p8), %s1107_s24 }
 0x122   : > { %v4625_v45 = vpop.f32.mrb[19].mxu1 }
 0x123   : > { %v902_v42 = vadd.f32 %v4580_v35, %v5786_v27  ;;  %v4626_v46 = vadd.f32 %v4625_v45, %v4624_v36  ;;  %v972_v50 = vadd.f32 %v4623_v41, %v899_v40  ;;  %v1096_v35 = vlaneseq (%p5489_p8) }
 0x125   : > { %v1012_v51 = vpop.f32.mrb[20].mxu0  ;;  %v975_v54 = vadd.f32 %v4626_v46, %v902_v42  ;;  %v1097_v41 = vshrl.u32 (%p5489_p8), %v1096_v35, 7 }
 0x126   : > { %v1013_v52 = vadd.f32 %v1012_v51, %v5790_v44  ;;  %v4948_v37 = vpop.f32.mrb[21].mxu0 }
 0x127   : > { %v1015_v55 = vpop.f32.mrb[22].mxu0  ;;  %v1098_v36 = vadd.s32 (%p5489_p8), 8, %v1097_v41  ;;  %v1109_v42 = vadd.s32 (%p5489_p8), %v1108_v23, %v1097_v41  ;;  %v1099_v45 = vadd.s32 (%p5489_p8), 16, %v1097_v41  ;;  %v1100_v46 = vadd.s32 (%p5489_p8), 24, %v1097_v41 }
 0x128   : > { %v1016_v56 = vadd.f32 %v1015_v55, %v5792_v48  ;;  %v4949_v57 = vpop.f32.mrb[23].mxu0  ;;  %5162 = vtanh.f32 %v1013_v52  ;;  %v1102_v51 = vadd.s32 (%p5489_p8), 40, %v1097_v41  ;;  %v1103_v52 = vadd.s32 (%p5489_p8), 48, %v1097_v41 }
 0x129   : > { %v1104_v37 = vadd.s32 (%p5489_p8), 56, %v1097_v41  ;;  %vm1119_vm7 = vcmp.ge.s32.totalorder (%p5489_p8), %v1109_v42, 0  ;;  %vm1129_vm8 = vcmp.lt.s32.totalorder (%p5489_p8), %v1109_v42, 40  ;;  %v1111_v55 = vadd.s32 (%p5489_p8), %v1108_v23, %v1099_v45 }
 0x12a   : > { %5164 = vtanh.f32 %v1016_v56  ;;  %vm5841_vm9 = vmand (%p5489_p8), %vm1119_vm7, %vm1129_vm8  ;;  %v1112_v57 = vadd.s32 (%p5489_p8), %v1108_v23, %v1100_v46 }
 0x12b   : > { %vm1121_vm12 = vcmp.ge.s32.totalorder (%p5489_p8), %v1111_v55, 0  ;;  %vm1131_vm15 = vcmp.lt.s32.totalorder (%p5489_p8), %v1111_v55, 40 }
 0x12c   : > { %vm1122_vm14 = vcmp.ge.s32.totalorder (%p5489_p8), %v1112_v57, 0  ;;  %vm1132_vm1 = vcmp.lt.s32.totalorder (%p5489_p8), %v1112_v57, 40  ;;  %vm1141_vm4 = vmand (%p5489_p8), %vm1121_vm12, %vm1131_vm15 }
 0x12d   : > { %v1020_v43 = vpop.f32.mrb[24].mxu0  ;;  %vm1142_vm0 = vmand (%p5489_p8), %vm1122_vm14, %vm1132_vm1 }
 0x12e   : > { %v1021_v58 = vadd.f32 %v1020_v43, %v948_v62  ;;  %v4952_v59 = vpop.f32.mrb[25].mxu0 }
 0x12f   : > { %v1023_v61 = vpop.f32.mrb[26].mxu0  ;;  %v1115_v59 = vadd.s32 (%p5489_p8), %v1108_v23, %v1103_v52 }
 0x130   : > { %v1024_v63 = vadd.f32 %v1023_v61, %v951_v38  ;;  %v4953_v27 = vpop.f32.mrb[27].mxu0  ;;  %5166 = vtanh.f32 %v1021_v58  ;;  %v1114_v58 = vadd.s32 (%p5489_p8), %v1108_v23, %v1102_v51 }
 0x131   : > { %vm1125_vm2 = vcmp.ge.s32.totalorder (%p5489_p8), %v1115_v59, 0 }
 0x132   : > { %5168 = vtanh.f32 %v1024_v63  ;;  %v5804_v0 = vpop.eup %5162  ;;  %vm1124_vm7 = vcmp.ge.s32.totalorder (%p5489_p8), %v1114_v58, 0  ;;  %vm1134_vm5 = vcmp.lt.s32.totalorder (%p5489_p8), %v1114_v58, 40 }
 0x133   : > { %v1169_v61 = vsel (%p5489_p8), %vm5841_vm9, %v5804_v0, 0.0 }
 0x134   : > { %v5806_v1 = vpop.eup %5164 }
 0x135   : > { %v1061_v44 = vpack.c.bf16 %v5806_v1, %v5804_v0  ;;  %v1028_v47 = vpop.f32.mrb[28].mxu0 }
 0x136   : > { %v1029_v48 = vadd.f32 %v1028_v47, %v956_v5  ;;  %v4956_v2 = vpop.f32.mrb[29].mxu0  ;;  %v1116_v47 = vadd.s32 (%p5489_p8), %v1108_v23, %v1104_v37 }
 0x137   : > { %v1072_v3 = vrot.slane %v1061_v44, 4  ;;  %v1031_v4 = vpop.f32.mrb[30].mxu0  ;;  %v1105_v2 = vadd.s32 (%p5489_p8), 64, %v1097_v41 }
 0x138   : > { %v1032_v53 = vadd.f32 %v1031_v4, %v959_v15  ;;  %v4957_v62 = vpop.f32.mrb[31].mxu0  ;;  %5170 = vtanh.f32 %v1029_v48  ;;  %vm1126_vm12 = vcmp.ge.s32.totalorder (%p5489_p8), %v1116_v47, 0 }
 0x139   : > { %1087 = vst [vmem:[#allocation2] sm:$0xf0] %v1072_v3 }
 0x13a   : > { %5172 = vtanh.f32 %v1032_v53  ;;  %v5810_v38 = vpop.eup %5166 }
 0x13b   : > { %v1171_v44 = vsel (%p5489_p8), %vm1141_vm4, %v5810_v38, 0.0 }
 0x13c   : > { %v5812_v7 = vpop.eup %5168 }
 0x13d   : > { %v1062_v8 = vpack.c.bf16 %v5812_v7, %v5810_v38  ;;  %v1036_v9 = vpop.f32.mrb[32].mxu0  ;;  %v1172_v0 = vsel (%p5489_p8), %vm1142_vm0, %v5812_v7, 0.0  ;;  %v1117_v38 = vadd.s32 (%p5489_p8), %v1108_v23, %v1105_v2 }
 0x13e   : > { %v1037_v10 = vadd.f32 %v1036_v9, %v964_v26  ;;  %v4960_v11 = vpop.f32.mrb[33].mxu0  ;;  %v1180_v4 = vpack.c.bf16 (%p5489_p8), %v1172_v0, %v1171_v44 }
 0x13f   : > { %v1073_v49 = vrot.slane %v1062_v8, 4  ;;  %v1039_v5 = vpop.f32.mrb[34].mxu0  ;;  %vm1137_vm1 = vcmp.lt.s32.totalorder (%p5489_p8), %v1117_v38, 40 }
 0x140   : > { %v1040_v13 = vadd.f32 %v1039_v5, %v967_v29  ;;  %v4961_v12 = vpop.f32.mrb[35].mxu0  ;;  %5174 = vtanh.f32 %v1037_v10  ;;  %v1190_v8 = vrot.slane (%p5489_p8), %v1180_v4, 4 }
 0x141   : > { %v1074_v15 = vsel %vm6651_vm6, %v1072_v3, %v1073_v49  ;;  %v1106_v3 = vadd.s32 (%p5489_p8), 72, %v1097_v41 }
 0x142   : > { %1088 = vst [vmem:[#allocation2 + $0x8] sm:$0xff] %v1074_v15  ;;  %5176 = vtanh.f32 %v1040_v13  ;;  %v5817_v16 = vpop.eup %5170 }
 0x143   : > { %v1118_v7 = vadd.s32 (%p5489_p8), %v1108_v23, %v1106_v3 }
 0x144   : > { %v5819_v17 = vpop.eup %5172 }
 0x145   : > { %v1063_v6 = vpack.c.bf16 %v5819_v17, %v5817_v16  ;;  %v1044_v18 = vpop.f32.mrb[36].mxu0  ;;  %vm1128_vm15 = vcmp.ge.s32.totalorder (%p5489_p8), %v1118_v7, 0 }
 0x146   : > { %v1045_v20 = vadd.f32 %v1044_v18, %v972_v50  ;;  %v4964_v21 = vpop.f32.mrb[37].mxu0  ;;  %v1101_v50 = vadd.s32 (%p5489_p8), 32, %v1097_v41 }
 0x147   : > { %v1075_v30 = vrot.slane %v1063_v6, 4  ;;  %v1047_v14 = vpop.f32.mrb[38].mxu0 }
 0x148   : > { %v1048_v19 = vadd.f32 %v1047_v14, %v975_v54  ;;  %v4965_v22 = vpop.f32.mrb[39].mxu0  ;;  %5178 = vtanh.f32 %v1045_v20  ;;  %v1110_v54 = vadd.s32 (%p5489_p8), %v1108_v23, %v1098_v36  ;;  %v1113_v43 = vadd.s32 (%p5489_p8), %v1108_v23, %v1101_v50 }
 0x149   : > { %v1076_v60 = vsel %vm6651_vm6, %v1073_v49, %v1075_v30 }
 0x14a   : > { %1089 = vst [vmem:[#allocation2 + $0x10] sm:$0xff] %v1076_v60  ;;  %5180 = vtanh.f32 %v1048_v19  ;;  %v5824_v25 = vpop.eup %5174  ;;  %vm1120_vm10 = vcmp.ge.s32.totalorder (%p5489_p8), %v1110_v54, 0  ;;  %vm1130_vm11 = vcmp.lt.s32.totalorder (%p5489_p8), %v1110_v54, 40  ;;  %vm1123_vm3 = vcmp.ge.s32.totalorder (%p5489_p8), %v1113_v43, 0 }
 0x14b   : > { %vm1140_vm13 = vmand (%p5489_p8), %vm1120_vm10, %vm1130_vm11  ;;  %vm1133_vm8 = vcmp.lt.s32.totalorder (%p5489_p8), %v1113_v43, 40  ;;  %vm1135_vm10 = vcmp.lt.s32.totalorder (%p5489_p8), %v1115_v59, 40 }
 0x14c   : > { %v5826_v26 = vpop.eup %5176  ;;  %v1170_v63 = vsel (%p5489_p8), %vm1140_vm13, %v5806_v1, 0.0  ;;  %vm5851_vm9 = vmand (%p5489_p8), %vm1123_vm3, %vm1133_vm8  ;;  %vm1136_vm13 = vcmp.lt.s32.totalorder (%p5489_p8), %v1116_v47, 40  ;;  %vm1138_vm3 = vcmp.lt.s32.totalorder (%p5489_p8), %v1118_v7, 40 }
 0x14d   : > { %v1064_v28 = vpack.c.bf16 %v5826_v26, %v5824_v25  ;;  %v1179_v27 = vpack.c.bf16 (%p5489_p8), %v1170_v63, %v1169_v61  ;;  %vm1144_vm11 = vmand (%p5489_p8), %vm1124_vm7, %vm1134_vm5  ;;  %v1173_v53 = vsel (%p5489_p8), %vm5851_vm9, %v5817_v16, 0.0  ;;  %vm1127_vm5 = vcmp.ge.s32.totalorder (%p5489_p8), %v1117_v38, 0 }
 0x14e   : > { %v1174_v62 = vsel (%p5489_p8), %vm1144_vm11, %v5819_v17, 0.0  ;;  %vm1145_vm0 = vmand (%p5489_p8), %vm1125_vm2, %vm1135_vm10 }
 0x14f   : > { %v1077_v24 = vrot.slane %v1064_v28, 4  ;;  %v1189_v1 = vrot.slane (%p5489_p8), %v1179_v27, 4  ;;  %v1181_v9 = vpack.c.bf16 (%p5489_p8), %v1174_v62, %v1173_v53  ;;  %vm1146_vm14 = vmand (%p5489_p8), %vm1126_vm12, %vm1136_vm13  ;;  %v1175_v10 = vsel (%p5489_p8), %vm1145_vm0, %v5824_v25, 0.0 }
 0x150   : > { %v1176_v11 = vsel (%p5489_p8), %vm1146_vm14, %v5826_v26, 0.0  ;;  %vm1147_vm4 = vmand (%p5489_p8), %vm1127_vm5, %vm1137_vm1 }
 0x151   : > { %v1078_v29 = vsel %vm6651_vm6, %v1075_v30, %v1077_v24  ;;  %1204 = vst [vmem:[#allocation2] sm:$0xf0] (%p5489_p8), %v1189_v1  ;;  %v1191_v49 = vsel (%p5489_p8), %vm6651_vm6, %v1189_v1, %v1190_v8  ;;  %v1192_v5 = vrot.slane (%p5489_p8), %v1181_v9, 4  ;;  %v1182_v13 = vpack.c.bf16 (%p5489_p8), %v1176_v11, %v1175_v10  ;;  %vm1148_vm2 = vmand (%p5489_p8), %vm1128_vm15, %vm1138_vm3 }
 0x152   : > { %1090 = vst [vmem:[#allocation2 + $0x18] sm:$0xff] %v1078_v29  ;;  %v5831_v31 = vpop.eup %5178  ;;  %1205 = vst [vmem:[#allocation2 + $0x8] sm:$0xff] (%p5489_p8), %v1191_v49 }
 0x153   : > { %v1177_v12 = vsel (%p5489_p8), %vm1147_vm4, %v5831_v31, 0.0  ;;  %v1193_v15 = vsel (%p5489_p8), %vm6651_vm6, %v1190_v8, %v1192_v5  ;;  %v1194_v16 = vrot.slane (%p5489_p8), %v1182_v13, 4 }
 0x154   : > { %v5833_v32 = vpop.eup %5180  ;;  %1095 = sbr.rel (!%p5489_p8) target bundleno = 348 (0x15c), region = 36  ;;  %1206 = vst [vmem:[#allocation2 + $0x10] sm:$0xff] (%p5489_p8), %v1193_v15 }
 0x155   : > { %v1065_v33 = vpack.c.bf16 %v5833_v32, %v5831_v31  ;;  %v1178_v17 = vsel (%p5489_p8), %vm1148_vm2, %v5833_v32, 0.0  ;;  %v1195_v18 = vsel (%p5489_p8), %vm6651_vm6, %v1192_v5, %v1194_v16 }
 0x156   : > { %v1183_v6 = vpack.c.bf16 (%p5489_p8), %v1178_v17, %v1177_v12  ;;  %1207 = vst [vmem:[#allocation2 + $0x18] sm:$0xff] (%p5489_p8), %v1195_v18 }
 0x157   : > { %v1079_v34 = vrot.slane %v1065_v33, 4 }
 0x158   : > { %v1196_v20 = vrot.slane (%p5489_p8), %v1183_v6, 4 }
 0x159   : > { %v1080_v40 = vsel %vm6651_vm6, %v1077_v24, %v1079_v34  ;;  %1092 = vst [vmem:[#allocation2 + $0x28] sm:$0xf] %v1079_v34 }
 0x15a   : > { %1091 = vst [vmem:[#allocation2 + $0x20] sm:$0xff] %v1080_v40  ;;  %v1197_v21 = vsel (%p5489_p8), %vm6651_vm6, %v1194_v16, %v1196_v20  ;;  %1209 = vst [vmem:[#allocation2 + $0x28] sm:$0xf] (%p5489_p8), %v1196_v20 }
 0x15b   : > { %1208 = vst [vmem:[#allocation2 + $0x20] sm:$0xff] %v1197_v21 }
 0x15c PF: > { %v5182_v30 = vld [vmem:[%s6643_s1 + $0x180] sm:$0xff]   ;;  %v5184_v19 = vld [vmem:[%s6643_s1 + $0x188] sm:$0xff]   ;;  %v5186_v60 = vld [vmem:[%s6643_s1 + $0x190] sm:$0xff]   ;;  %vm6660_vm7 = vsmask.f32 7424  ;;  %vm6650_vm9 = vcmask 1040384  }
 0x15d   : > { %v5183_v14 = vld [vmem:[%s6643_s1 + $0x140] sm:$0xff]   ;;  %4640 = vmatprep.subr.bf16.mxu1 %v5182_v30  ;;  %v5185_v22 = vld [vmem:[%s6643_s1 + $0x148] sm:$0xff]   ;;  %v5187_v25 = vld [vmem:[%s6643_s1 + $0x150] sm:$0xff]   ;;  %vm6652_vm12 = vcmask 1045504   ;;  %vm6653_vm13 = vsmask.f32 6400 }
 0x15e   : > { %4641 = vmatpush3.bf16.msra.mxu1 %v5183_v14  ;;  %v5188_v26 = vld [vmem:[%s6643_s1 + $0x198] sm:$0xff]   ;;  %v5190_v24 = vld [vmem:[%s6643_s1 + $0x1a0] sm:$0xff]   ;;  %v5192_v31 = vld [vmem:[%s6643_s1 + $0x1a8] sm:$0xff]   ;;  %vm6654_vm0 = vcmask 1046528   ;;  %s1945_s5 = sadd.s32 (%p5489_p8), 4294967272, %s5475_s19 }
 0x15f   : > { %4642 = vmatprep.subr.bf16.mxu1 %v5184_v19  ;;  %v5189_v28 = vld [vmem:[%s6643_s1 + $0x158] sm:$0xff]   ;;  %v5191_v29 = vld [vmem:[%s6643_s1 + $0x160] sm:$0xff]   ;;  %v5901_v33 = vld [vmem:[#allocation2 + $0x8] sm:$0xff] }
 0x160   : > { %v1210_v32 = vld [vmem:[#allocation2] sm:$0x80]  ;;  %v5903_v34 = vld [vmem:[#allocation2 + $0x10] sm:$0xff]  ;;  %v1226_v35 = vshll.u32 %v5901_v33, 16  ;;  %v1230_v23 = vshrl.u32 %v5901_v33, 16  ;;  %v5193_v36 = vld [vmem:[%s6643_s1 + $0x168] sm:$0xff]  }
 0x161   : > { %v1223_v40 = vshrl.u32 %v1210_v32, 16  ;;  %v1234_v41 = vshll.u32 %v5903_v34, 16  ;;  %v5194_v46 = vld [vmem:[%s6643_s1 + $0x1b0] sm:$0xff]   ;;  %v1238_v50 = vshrl.u32 %v5903_v34, 16  ;;  %v5201_v54 = vld [vmem:[%s6643_s1 + $0x240] sm:$0xff]   ;;  %v5196_v55 = vld [vmem:[%s6643_s1 + $0x1b8] sm:$0xff]  }
 0x162   : > { %4643 = vmatpush3.bf16.msra.mxu1 %v5185_v22  ;;  %v1228_v42 = vrot.slane %v1226_v35, 1  ;;  %v5195_v51 = vld [vmem:[%s6643_s1 + $0x170] sm:$0xff]   ;;  %vm6661_vm8 = vmmov %vm6660_vm7  ;;  %4966 = vmatprep.subr.bf16.mxu0 %v5201_v54  ;;  %v5932_v43 = vld [vmem:[#allocation2 + $0x18] sm:$0xff]  ;;  %v1417_v59 = vrot.slane %v1210_v32, 7  ;;  %v1418_v0 = vrot.slane %v5901_v33, 7  ;;  %v1432_v16 = vrot.slane %v5903_v34, 7 }
 0x163   : > { %4644 = vmatprep.subr.bf16.mxu1 %v5186_v60  ;;  %v1236_v45 = vrot.slane %v1234_v41, 1  ;;  %4967 = vmatpush3.bf16.msra.mxu0 %v5201_v54  ;;  %v1242_v63 = vshll.u32 %v5932_v43, 16  ;;  %v5204_v27 = vld [vmem:[%s6643_s1 + $0x248] sm:$0xff]   ;;  %v5197_v44 = vld [vmem:[%s6643_s1 + $0x178] sm:$0xff]   ;;  %v5198_v2 = vld [vmem:[%s6643_s1 + $0x200] sm:$0xff]   ;;  %v1246_v3 = vshrl.u32 %v5932_v43, 16 }
 0x164   : > { %v1229_v52 = vsel %vm6660_vm7, %v1223_v40, %v1228_v42  ;;  %v1232_v37 = vor.u32 %v1230_v23, %v1228_v42  ;;  %4968 = vmatprep.subr.bf16.mxu0 %v5204_v27  ;;  %vm6662_vm10 = vmmov %vm6660_vm7  ;;  %v5207_v4 = vld [vmem:[%s6643_s1 + $0x250] sm:$0xff]   ;;  %v5955_v62 = vld [vmem:[#allocation2 + $0x20] sm:$0xff]  ;;  %v1419_v9 = vsel %vm6650_vm9, %v1417_v59, %v1418_v0  ;;  %v1433_v30 = vsel %vm6650_vm9, %v1418_v0, %v1432_v16 }
 0x165   : > { %v1420_v56 = vrot.slane %v1229_v52, 7  ;;  %v1240_v61 = vor.u32 %v1238_v50, %v1236_v45  ;;  %v1244_v48 = vrot.slane %v1242_v63, 1  ;;  %v5199_v38 = vld [vmem:[%s6643_s1 + $0x1c0] sm:$0xff]   ;;  %v1250_v8 = vshll.u32 %v5955_v62, 16  ;;  %v5210_v10 = vld [vmem:[%s6643_s1 + $0x258] sm:$0xff]   ;;  %v5200_v11 = vld [vmem:[%s6643_s1 + $0x208] sm:$0xff]  }
 0x166   : > { %4645 = vmatpush3.bf16.msra.mxu1 %v5187_v25  ;;  %v1237_v57 = vsel %vm6661_vm8, %v1232_v37, %v1236_v45  ;;  %vm6663_vm11 = vmmov %vm6660_vm7  ;;  %v5213_v12 = vld [vmem:[%s6643_s1 + $0x260] sm:$0xff]   ;;  %v5202_v15 = vld [vmem:[%s6643_s1 + $0x1c8] sm:$0xff]   ;;  %v1254_v18 = vshrl.u32 %v5955_v62, 16  ;;  %v1273_v19 = vrot.slane %v1230_v23, 1  ;;  %v1276_v25 = vrot.slane %v1226_v35, 2 }
 0x167   : > { %4646 = vmatprep.subr.bf16.mxu1 %v5188_v26  ;;  %v1421_v58 = vrot.slane %v1237_v57, 7  ;;  %v1245_v1 = vsel %vm6662_vm10, %v1240_v61, %v1244_v48  ;;  %4969 = vmatpush3.bf16.msra.mxu0 %v5204_v27  ;;  %v1248_v7 = vor.u32 %v1246_v3, %v1244_v48  ;;  %v1252_v5 = vrot.slane %v1250_v8, 1  ;;  %v5203_v17 = vld [vmem:[%s6643_s1 + $0x210] sm:$0xff]   ;;  %v5216_v21 = vld [vmem:[%s6643_s1 + $0x268] sm:$0xff]   ;;  %v5206_v14 = vld [vmem:[%s6643_s1 + $0x218] sm:$0xff]  }
 0x168   : > { %v1434_v53 = vrot.slane %v1245_v1, 7  ;;  %4970 = vmatprep.subr.bf16.mxu0 %v5207_v4  ;;  %v5205_v20 = vld [vmem:[%s6643_s1 + $0x1d0] sm:$0xff]   ;;  %v1281_v26 = vrot.slane %v1238_v50, 1  ;;  %v1442_v32 = vrot.slane %v5932_v43, 7  ;;  %v1221_v40 = vld [vmem:[#allocation2 + $0x8] sm:$0xfe]  ;;  %v1277_v42 = vor.u32 %v1276_v25, %v1273_v19 }
 0x169   : > { %v1422_v47 = vsel %vm6650_vm9, %v1420_v56, %v1421_v58  ;;  %v1253_v13 = vsel %vm6663_vm11, %v1248_v7, %v1252_v5  ;;  %v1256_v60 = vor.u32 %v1254_v18, %v1252_v5  ;;  %v1319_v35 = vrot.slane %v5932_v43, 2  ;;  %v5209_v23 = vld [vmem:[%s6643_s1 + $0x220] sm:$0xff]   ;;  %v6032_v27 = vld [vmem:[#allocation2 + $0x28] sm:$0x1] }
 0x16a   : > { %4647 = vmatpush3.bf16.msra.mxu1 %v5189_v28  ;;  %1754 = vmatprep.mubr.bf16.mxu1 %v1422_v47  ;;  %v1435_v49 = vsel %vm6650_vm9, %v1421_v58, %v1434_v53  ;;  %v1444_v6 = vrot.slane %v1253_v13, 7  ;;  %v5219_v28 = vld [vmem:[%s6643_s1 + $0x270] sm:$0xff]   ;;  %v1443_v37 = vsel %vm6650_vm9, %v1432_v16, %v1442_v32  ;;  %v5211_v54 = vld [vmem:[%s6643_s1 + $0x1e0] sm:$0xff]   ;;  %v1321_v61 = vrot.slane %v5955_v62, 2  ;;  %v5214_v1 = vld [vmem:[%s6643_s1 + $0x1e8] sm:$0xff]  }
 0x16b   : > { %4648 = vmatprep.subr.bf16.mxu1 %v5190_v24  ;;  %4971 = vmatpush3.bf16.msra.mxu0 %v5207_v4  ;;  %v1284_v24 = vrot.slane %v1234_v41, 2  ;;  %v1454_v41 = vrot.slane %v1256_v60, 7  ;;  %v1214_v58 = vld [vmem:[#allocation2 + $0x20] sm:$0x7f]  ;;  %v1290_v0 = vrot.slane %v1246_v3, 1  ;;  %v1293_v48 = vrot.slane %v1242_v63, 2 }
 0x16c   : > { %4972 = vmatprep.subr.bf16.mxu0 %v5210_v10  ;;  %v1445_v22 = vsel %vm6650_vm9, %v1434_v53, %v1444_v6  ;;  %v1452_v4 = vrot.slane %v1214_v58, 7  ;;  %v1426_v53 = vrot.slane %v1277_v42, 7  ;;  %v1323_v7 = vrot.slane %v6032_v27, 2  ;;  %v5215_v63 = vld [vmem:[%s6643_s1 + $0x230] sm:$0xff]  }
 0x16d   : > { %v1285_v45 = vor.u32 %v1284_v24, %v1281_v26  ;;  %v1455_v57 = vsel %vm6650_vm9, %v1444_v6, %v1454_v41  ;;  %v1265_v60 = vrot.slane %v5932_v43, 1  ;;  %v1267_v43 = vrot.slane %v5955_v62, 1 }
 0x16e   : > { %4649 = vmatpush3.bf16.msra.mxu1 %v5191_v29  ;;  %v1317_v29 = vrot.slane %v5903_v34, 2  ;;  %v1324_v13 = vsel %vm6652_vm12, %v1321_v61, %v1323_v7 }
 0x16f   : > { %4650 = vmatprep.subr.bf16.mxu1 %v5192_v31  ;;  %4973 = vmatpush3.bf16.msra.mxu0 %v5210_v10  ;;  %v5208_v31 = vld [vmem:[%s6643_s1 + $0x1d8] sm:$0xff]   ;;  %v1263_v10 = vrot.slane %v5903_v34, 1  ;;  %v1268_v41 = vsel %vm6654_vm0, %v1265_v60, %v1267_v43  ;;  %v1456_v62 = vrot.slane %v1267_v43, 7 }
 0x170   : > { %4974 = vmatprep.subr.bf16.mxu0 %v5213_v12  ;;  %v1320_v50 = vsel %vm6652_vm12, %v1317_v29, %v1319_v35 }
 0x171   : > { %v1440_v59 = vrot.slane %v1320_v50, 7 }
 0x172   : > { %4651 = vmatpush3.bf16.msra.mxu1 %v5193_v36  ;;  %v1316_v36 = vrot.slane %v1221_v40, 2 }
 0x173   : > { %4652 = vmatprep.subr.bf16.mxu1 %v5194_v46  ;;  %4975 = vmatpush3.bf16.msra.mxu0 %v5213_v12  ;;  %v5221_v46 = vld [vmem:[%s6643_s1 + $0x278] sm:$0xff]   ;;  %v1453_v12 = vsel %vm6650_vm9, %v1442_v32, %v1452_v4 }
 0x174   : > { %4976 = vmatprep.subr.bf16.mxu0 %v5216_v21  ;;  %v1429_v52 = vrot.slane %v1316_v36, 7 }
 0x176   : > { %4653 = vmatpush3.bf16.msra.mxu1 %v5195_v51  ;;  %v1318_v51 = vsel %vm6652_vm12, %v1316_v36, %v1317_v29  ;;  %v1306_v29 = vshll.u32 %v6032_v27, 16 }
 0x177   : > { %4654 = vmatprep.subr.bf16.mxu1 %v5196_v55  ;;  %4977 = vmatpush3.bf16.msra.mxu0 %v5216_v21  ;;  %v5212_v55 = vld [vmem:[%s6643_s1 + $0x228] sm:$0xff]   ;;  %v1430_v56 = vrot.slane %v1318_v51, 7  ;;  %v1302_v21 = vrot.slane %v1250_v8, 2 }
 0x178   : > { %4978 = vmatprep.subr.bf16.mxu0 %v5219_v28  ;;  %v1308_v40 = vrot.slane %v1306_v29, 2 }
 0x179   : > { %v1431_v47 = vsel %vm6650_vm9, %v1429_v52, %v1430_v56 }
 0x17a   : > { %4655 = vmatpush3.bf16.msra.mxu1 %v5197_v44  ;;  %v1286_v44 = vsel %vm6653_vm13, %v1277_v42, %v1285_v45  ;;  %4982 = vmatprep.mubr.bf16.mxu0 %v1431_v47  ;;  %v1446_v42 = vrot.slane %v1268_v41, 7 }
 0x17b   : > { %4680 = vmatprep.subr.bf16.mxu1 %v5198_v2  ;;  %4979 = vmatpush3.bf16.msra.mxu0 %v5219_v28  ;;  %v1322_v2 = vsel %vm6652_vm12, %v1319_v35, %v1321_v61  ;;  %v1427_v3 = vrot.slane %v1286_v44, 7  ;;  %v1266_v28 = vsel %vm6654_vm0, %v1263_v10, %v1265_v60 }
 0x17c   : > { %4980 = vmatprep.subr.bf16.mxu0 %v5221_v46  ;;  %v1457_v51 = vsel %vm6650_vm9, %v1446_v42, %v1456_v62 }
 0x17d   : > { %1755 = vmatmul.mubr.bf16.vlgmr.msra.gmra.mrb[20].mxu1 %v1419_v9  ;;  %v1262_v9 = vrot.slane %v5901_v33, 1  ;;  %v5218_v33 = vld [vmem:[%s6643_s1 + $0x238] sm:$0xff]   ;;  %v1428_v34 = vsel %vm6650_vm9, %v1426_v53, %v1427_v3 }
 0x17e   : > { %4681 = vmatpush3.bf16.msra.mxu1 %v5199_v38  ;;  %1762 = vmatprep.mubr.bf16.mxu1 %v1435_v49  ;;  %v1450_v38 = vrot.slane %v1322_v2, 7  ;;  %v1294_v49 = vor.u32 %v1293_v48, %v1290_v0 }
 0x17f   : > { %4682 = vmatprep.subr.bf16.mxu1 %v5200_v11  ;;  %4981 = vmatpush3.bf16.msra.mxu0 %v5221_v46  ;;  %v1441_v11 = vsel %vm6650_vm9, %v1430_v56, %v1440_v59  ;;  %v1264_v16 = vsel %vm6654_vm0, %v1262_v9, %v1263_v10 }
 0x180   : > { %v1451_v5 = vsel %vm6650_vm9, %v1440_v59, %v1450_v38  ;;  %v1295_v6 = vsel %vm6653_vm13, %v1285_v45, %v1294_v49  ;;  %v1424_v19 = vrot.slane %v1264_v16, 7 }
 0x182   : > { %4683 = vmatpush3.bf16.msra.mxu1 %v5202_v15  ;;  %v5217_v15 = vld [vmem:[%s6643_s1 + $0x1f0] sm:$0xff]   ;;  %4983 = vmatmul.mubr.bf16.vlgmr.msra.gmra.mrb[40].mxu0 %v1441_v11 }
 0x183   : > { %4684 = vmatprep.subr.bf16.mxu1 %v5203_v17  ;;  %4986 = vmatprep.mubr.bf16.mxu0 %v1451_v5  ;;  %v1460_v17 = vrot.slane %v1324_v13, 7 }
 0x185   : > { %1763 = vmatmul.mubr.bf16.gmra.mrb[24].mxu1 %v1433_v30  ;;  %v5220_v30 = vld [vmem:[%s6643_s1 + $0x1f8] sm:$0xff]   ;;  %v1461_v25 = vsel %vm6650_vm9, %v1450_v38, %v1460_v17 }
 0x186   : > { %4685 = vmatpush3.bf16.msra.mxu1 %v5205_v20  ;;  %1770 = vmatprep.mubr.bf16.mxu1 %v1445_v22  ;;  %v1299_v20 = vrot.slane %v1254_v18, 1  ;;  %v1438_v22 = vrot.slane %v1295_v6, 7 }
 0x187   : > { %4686 = vmatprep.subr.bf16.mxu1 %v5206_v14  ;;  %v1423_v14 = vrot.slane %v1262_v9, 7 }
 0x188   : > { %v1303_v26 = vor.u32 %v1302_v21, %v1299_v20  ;;  %v1439_v8 = vsel %vm6650_vm9, %v1427_v3, %v1438_v22 }
 0x189   : > { %v1425_v18 = vsel %vm6650_vm9, %v1423_v14, %v1424_v19 }
 0x18a   : > { %4687 = vmatpush3.bf16.msra.mxu1 %v5208_v31  ;;  %4987 = vmatmul.mubr.bf16.gmra.mrb[44].mxu0 %v1461_v25  ;;  %v1304_v24 = vsel %vm6653_vm13, %v1294_v49, %v1303_v26  ;;  %v1436_v31 = vrot.slane %v1266_v28, 7  ;;  %v1309_v36 = vsel %vm6653_vm13, %v1303_v26, %v1308_v40 }
 0x18b   : > { %4688 = vmatprep.subr.bf16.mxu1 %v5209_v23  ;;  %v1448_v32 = vrot.slane %v1304_v24, 7  ;;  %v1458_v45 = vrot.slane %v1309_v36, 7 }
 0x18c   : > { %v1437_v35 = vsel %vm6650_vm9, %v1424_v19, %v1436_v31  ;;  %v1447_v46 = vsel %vm6650_vm9, %v1436_v31, %v1446_v42 }
 0x18d   : > { %1771 = vmatmul.mubr.bf16.gmra.mrb[28].mxu1 %v1443_v37  ;;  %v1449_v23 = vsel %vm6650_vm9, %v1438_v22, %v1448_v32  ;;  %v1459_v50 = vsel %vm6650_vm9, %v1448_v32, %v1458_v45 }
 0x18e   : > { %4689 = vmatpush3.bf16.msra.mxu1 %v5211_v54  ;;  %1778 = vmatprep.mubr.bf16.mxu1 %v1455_v57 }
 0x18f   : > { %4690 = vmatprep.subr.bf16.mxu1 %v5212_v55 }
 0x192   : > { %4691 = vmatpush3.bf16.msra.mxu1 %v5214_v1 }
 0x193   : > { %4692 = vmatprep.subr.bf16.mxu1 %v5215_v63 }
 0x195   : > { %1779 = vmatmul.mubr.bf16.gmra.mrb[32].mxu1 %v1453_v12 }
 0x196   : > { %4693 = vmatpush3.bf16.msra.mxu1 %v5217_v15  ;;  %1819 = vmatprep.mubr.bf16.mxu1 %v1428_v34 }
 0x197   : > { %4694 = vmatprep.subr.bf16.mxu1 %v5218_v33  ;;  %v4126_v33 = vld [vmem:[%s6644_s2 + $0x1] ss:$0 sm:$0xff] }
 0x19a   : > { %4695 = vmatpush3.bf16.msra.mxu1 %v5220_v30 }
 0x19d   : > { %1820 = vmatmul.mubr.bf16.vlgmr.msra.gmra.mrb[36].mxu1 %v1425_v18 }
 0x19e   : > { %1827 = vmatprep.mubr.bf16.mxu1 %v1439_v8 }
 0x1a5   : > { %1828 = vmatmul.mubr.bf16.gmra.mrb[40].mxu1 %v1437_v35 }
 0x1a6   : > { %1835 = vmatprep.mubr.bf16.mxu1 %v1449_v23 }
 0x1ad   : > { %1836 = vmatmul.mubr.bf16.gmra.mrb[44].mxu1 %v1447_v46 }
 0x1ae   : > { %1843 = vmatprep.mubr.bf16.mxu1 %v1459_v50 }
 0x1b5   : > { %1844 = vmatmul.mubr.bf16.gmra.mrb[48].mxu1 %v1457_v51 }
 0x250   : > { %v4656_v52 = vpop.f32.mrb[20].mxu1 }
 0x251   : > { %v4657_v37 = vpop.f32.mrb[21].mxu1 }
 0x252   : > { %v4658_v54 = vadd.f32 %v4657_v37, %v4656_v52  ;;  %v4659_v55 = vpop.f32.mrb[22].mxu1 }
 0x253   : > { %v4660_v56 = vpop.f32.mrb[23].mxu1 }
 0x254   : > { %v4661_v57 = vadd.f32 %v4660_v56, %v4659_v55  ;;  %v1757_v20 = vadd.f32 %v4658_v54, %v4126_v33 }
 0x255   : > { %v4984_v38 = vpop.f32.mrb[40].mxu0 }
 0x256   : > { %v1886_v7 = vpop.f32.mrb[41].mxu0  ;;  %v1760_v19 = vadd.f32 %v4661_v57, %v4126_v33 }
 0x257   : > { %v4985_v63 = vpop.f32.mrb[42].mxu0 }
 0x258   : > { %v4662_v58 = vpop.f32.mrb[24].mxu1  ;;  %v1889_v9 = vpop.f32.mrb[43].mxu0 }
 0x259   : > { %v4663_v59 = vpop.f32.mrb[25].mxu1 }
 0x25a   : > { %v4664_v61 = vadd.f32 %v4663_v59, %v4662_v58  ;;  %v4665_v27 = vpop.f32.mrb[26].mxu1 }
 0x25b   : > { %v4666_v44 = vpop.f32.mrb[27].mxu1 }
 0x25c   : > { %v4667_v47 = vadd.f32 %v4666_v44, %v4665_v27  ;;  %v1765_v24 = vadd.f32 %v4664_v61, %v4126_v33 }
 0x25d   : > { %v6085_v12 = vpop.f32.mrb[44].mxu0 }
 0x25e   : > { %v1902_v15 = vpop.f32.mrb[45].mxu0  ;;  %v1768_v43 = vadd.f32 %v4667_v47, %v4126_v33 }
 0x25f   : > { %v6090_v34 = vpop.f32.mrb[46].mxu0 }
 0x260   : > { %v4668_v0 = vpop.f32.mrb[28].mxu1  ;;  %v1905_v17 = vpop.f32.mrb[47].mxu0 }
 0x261   : > { %v4669_v48 = vpop.f32.mrb[29].mxu1 }
 0x262   : > { %v4670_v2 = vadd.f32 %v4669_v48, %v4668_v0  ;;  %v4671_v1 = vpop.f32.mrb[30].mxu1 }
 0x263   : > { %v4672_v4 = vpop.f32.mrb[31].mxu1 }
 0x264   : > { %v4673_v53 = vadd.f32 %v4672_v4, %v4671_v1  ;;  %v1773_v46 = vadd.f32 %v4670_v2, %v4126_v33 }
 0x266   : > { %v1776_v54 = vadd.f32 %v4673_v53, %v4126_v33 }
 0x268   : > { %v4674_v3 = vpop.f32.mrb[32].mxu1 }
 0x269   : > { %v4675_v10 = vpop.f32.mrb[33].mxu1 }
 0x26a   : > { %v4676_v11 = vadd.f32 %v4675_v10, %v4674_v3  ;;  %v4677_v49 = vpop.f32.mrb[34].mxu1 }
 0x26b   : > { %v4678_v5 = vpop.f32.mrb[35].mxu1 }
 0x26c   : > { %v4679_v13 = vadd.f32 %v4678_v5, %v4677_v49  ;;  %v1781_v47 = vadd.f32 %v4676_v11, %v4126_v33 }
 0x26e   : > { %v1784_v53 = vadd.f32 %v4679_v13, %v4126_v33 }
 0x270   : > { %v4696_v16 = vpop.f32.mrb[36].mxu1 }
 0x271   : > { %v4697_v6 = vpop.f32.mrb[37].mxu1 }
 0x272   : > { %v4698_v21 = vadd.f32 %v4697_v6, %v4696_v16  ;;  %v4699_v30 = vpop.f32.mrb[38].mxu1  ;;  %v1946_v16 = vstv (%p5489_p8), %s1945_s5 }
 0x273   : > { %v4700_v14 = vpop.f32.mrb[39].mxu1 }
 0x274   : > { %v4701_v22 = vadd.f32 %v4700_v14, %v4699_v30  ;;  %v1822_v60 = vadd.f32 %v4698_v21, %v1757_v20 }
 0x276   : > { %v1887_v25 = vadd.f32 %v1886_v7, %v1822_v60  ;;  %v1825_v26 = vadd.f32 %v4701_v22, %v1760_v19 }
 0x278   : > { %v1890_v18 = vadd.f32 %v1889_v9, %v1825_v26  ;;  %v4702_v8 = vpop.f32.mrb[40].mxu1  ;;  %5222 = vtanh.f32 %v1887_v25 }
 0x279   : > { %v4703_v28 = vpop.f32.mrb[41].mxu1 }
 0x27a   : > { %5224 = vtanh.f32 %v1890_v18  ;;  %v4704_v29 = vadd.f32 %v4703_v28, %v4702_v8  ;;  %v4705_v31 = vpop.f32.mrb[42].mxu1 }
 0x27b   : > { %v4706_v32 = vpop.f32.mrb[43].mxu1 }
 0x27c   : > { %v1830_v40 = vadd.f32 %v4704_v29, %v1765_v24  ;;  %v4707_v35 = vadd.f32 %v4706_v32, %v4705_v31 }
 0x27e   : > { %v1895_v23 = vadd.f32 %v4984_v38, %v1830_v40  ;;  %v1833_v41 = vadd.f32 %v4707_v35, %v1768_v43 }
 0x280   : > { %v1898_v36 = vadd.f32 %v4985_v63, %v1833_v41  ;;  %v4708_v42 = vpop.f32.mrb[44].mxu1  ;;  %5226 = vtanh.f32 %v1895_v23 }
 0x281   : > { %v4709_v45 = vpop.f32.mrb[45].mxu1 }
 0x282   : > { %5228 = vtanh.f32 %v1898_v36  ;;  %v4710_v50 = vadd.f32 %v4709_v45, %v4708_v42  ;;  %v4711_v62 = vpop.f32.mrb[46].mxu1  ;;  %v6092_v51 = vpop.eup %5222 }
 0x283   : > { %v4712_v52 = vpop.f32.mrb[47].mxu1 }
 0x284   : > { %v6094_v37 = vpop.eup %5224  ;;  %v4713_v55 = vadd.f32 %v4712_v52, %v4711_v62  ;;  %v1838_v56 = vadd.f32 %v4710_v50, %v1773_v46 }
 0x285   : > { %v1925_v57 = vpack.c.bf16 %v6094_v37, %v6092_v51 }
 0x286   : > { %v1903_v58 = vadd.f32 %v1902_v15, %v1838_v56  ;;  %v1841_v59 = vadd.f32 %v4713_v55, %v1776_v54 }
 0x287   : > { %1929 = vst [vmem:[#allocation3 + $0x8] sm:$0xff] %v1925_v57 }
 0x288   : > { %v1906_v61 = vadd.f32 %v1905_v17, %v1841_v59  ;;  %v4714_v27 = vpop.f32.mrb[48].mxu1  ;;  %5230 = vtanh.f32 %v1903_v58 }
 0x289   : > { %v4715_v44 = vpop.f32.mrb[49].mxu1 }
 0x28a   : > { %5232 = vtanh.f32 %v1906_v61  ;;  %v4716_v0 = vadd.f32 %v4715_v44, %v4714_v27  ;;  %v4717_v48 = vpop.f32.mrb[50].mxu1  ;;  %v6098_v2 = vpop.eup %5226 }
 0x28b   : > { %v4718_v1 = vpop.f32.mrb[51].mxu1 }
 0x28c   : > { %v6100_v4 = vpop.eup %5228  ;;  %v1846_v38 = vadd.f32 %v4716_v0, %v1781_v47  ;;  %v4719_v7 = vadd.f32 %v4718_v1, %v4717_v48 }
 0x28d   : > { %v1926_v63 = vpack.c.bf16 %v6100_v4, %v6098_v2 }
 0x28e   : > { %v1911_v3 = vadd.f32 %v6085_v12, %v1846_v38  ;;  %v1849_v9 = vadd.f32 %v4719_v7, %v1784_v53  ;;  %v1936_v12 = vlaneseq (%p5489_p8) }
 0x28f   : > { %1930 = vst [vmem:[#allocation3 + $0x10] sm:$0xff] %v1926_v63 }
 0x290   : > { %v1914_v10 = vadd.f32 %v6090_v34, %v1849_v9  ;;  %5234 = vtanh.f32 %v1911_v3  ;;  %v1937_v34 = vshrl.u32 (%p5489_p8), %v1936_v12, 7 }
 0x292   : > { %5236 = vtanh.f32 %v1914_v10  ;;  %v5231_v11 = vpop.eup %5230  ;;  %v1938_v17 = vadd.s32 (%p5489_p8), 8, %v1937_v34  ;;  %v1947_v6 = vadd.s32 (%p5489_p8), %v1946_v16, %v1937_v34  ;;  %v1939_v20 = vadd.s32 (%p5489_p8), 16, %v1937_v34 }
 0x293   : > { %v1940_v21 = vadd.s32 (%p5489_p8), 24, %v1937_v34  ;;  %v1941_v30 = vadd.s32 (%p5489_p8), 32, %v1937_v34  ;;  %v1942_v14 = vadd.s32 (%p5489_p8), 40, %v1937_v34  ;;  %v1943_v19 = vadd.s32 (%p5489_p8), 48, %v1937_v34 }
 0x294   : > { %v5233_v49 = vpop.eup %5232  ;;  %v1944_v22 = vadd.s32 (%p5489_p8), 56, %v1937_v34  ;;  %v1948_v60 = vadd.s32 (%p5489_p8), %v1946_v16, %v1938_v17  ;;  %vm1955_vm14 = vcmp.ge.s32.totalorder (%p5489_p8), %v1947_v6, 0  ;;  %vm1963_vm5 = vcmp.lt.s32.totalorder (%p5489_p8), %v1947_v6, 40 }
 0x295   : > { %v1927_v5 = vpack.c.bf16 %v5233_v49, %v5231_v11  ;;  %v1949_v25 = vadd.s32 (%p5489_p8), %v1946_v16, %v1939_v20  ;;  %vm6112_vm15 = vmand (%p5489_p8), %vm1955_vm14, %vm1963_vm5  ;;  %v1950_v18 = vadd.s32 (%p5489_p8), %v1946_v16, %v1940_v21  ;;  %v1951_v8 = vadd.s32 (%p5489_p8), %v1946_v16, %v1941_v30 }
 0x296   : > { %v1952_v28 = vadd.s32 (%p5489_p8), %v1946_v16, %v1942_v14  ;;  %v1953_v24 = vadd.s32 (%p5489_p8), %v1946_v16, %v1943_v19  ;;  %vm1956_vm1 = vcmp.ge.s32.totalorder (%p5489_p8), %v1948_v60, 0  ;;  %vm1964_vm3 = vcmp.lt.s32.totalorder (%p5489_p8), %v1948_v60, 40 }
 0x297   : > { %1931 = vst [vmem:[#allocation3 + $0x18] sm:$0xff] %v1927_v5  ;;  %v1995_v29 = vsel (%p5489_p8), %vm6112_vm15, %v6092_v51, 0.0  ;;  %vm1957_vm4 = vcmp.ge.s32.totalorder (%p5489_p8), %v1949_v25, 0  ;;  %vm1972_vm2 = vmand (%p5489_p8), %vm1956_vm1, %vm1964_vm3  ;;  %vm1958_vm7 = vcmp.ge.s32.totalorder (%p5489_p8), %v1950_v18, 0  ;;  %vm1965_vm8 = vcmp.lt.s32.totalorder (%p5489_p8), %v1949_v25, 40 }
 0x298   : > { %vm1966_vm10 = vcmp.lt.s32.totalorder (%p5489_p8), %v1950_v18, 40  ;;  %vm1959_vm11 = vcmp.ge.s32.totalorder (%p5489_p8), %v1951_v8, 0  ;;  %v1996_v31 = vsel (%p5489_p8), %vm1972_vm2, %v6094_v37, 0.0  ;;  %vm1973_vm14 = vmand (%p5489_p8), %vm1957_vm4, %vm1965_vm8  ;;  %vm1960_vm5 = vcmp.ge.s32.totalorder (%p5489_p8), %v1952_v28, 0 }
 0x299   : > { %1935 = sbr.rel (!%p5489_p8) target bundleno = 674 (0x2a2), region = 40  ;;  %vm1967_vm9 = vcmp.lt.s32.totalorder (%p5489_p8), %v1951_v8, 40  ;;  %vm1968_vm6 = vcmp.lt.s32.totalorder (%p5489_p8), %v1952_v28, 40  ;;  %v2003_v32 = vpack.c.bf16 (%p5489_p8), %v1996_v31, %v1995_v29  ;;  %vm1974_vm12 = vmand (%p5489_p8), %vm1958_vm7, %vm1966_vm10  ;;  %v1997_v43 = vsel (%p5489_p8), %vm1973_vm14, %v6098_v2, 0.0 }
 0x29a   : > { %v6106_v15 = vpop.eup %5234  ;;  %v1954_v40 = vadd.s32 (%p5489_p8), %v1946_v16, %v1944_v22  ;;  %vm1961_vm13 = vcmp.ge.s32.totalorder (%p5489_p8), %v1953_v24, 0  ;;  %v1998_v35 = vsel (%p5489_p8), %vm1974_vm12, %v6100_v4, 0.0  ;;  %vm1975_vm15 = vmand (%p5489_p8), %vm1959_vm11, %vm1967_vm9  ;;  %vm1969_vm1 = vcmp.lt.s32.totalorder (%p5489_p8), %v1953_v24, 40 }
 0x29b   : > { %2007 = vst [vmem:[#allocation3 + $0x8] sm:$0xff] (%p5489_p8), %v2003_v32  ;;  %v2004_v23 = vpack.c.bf16 (%p5489_p8), %v1998_v35, %v1997_v43  ;;  %vm1976_vm3 = vmand (%p5489_p8), %vm1960_vm5, %vm1968_vm6  ;;  %v1999_v41 = vsel (%p5489_p8), %vm1975_vm15, %v5231_v11, 0.0 }
 0x29c   : > { %v5237_v13 = vpop.eup %5236  ;;  %vm1962_vm0 = vcmp.ge.s32.totalorder (%p5489_p8), %v1954_v40, 0  ;;  %vm1970_vm2 = vcmp.lt.s32.totalorder (%p5489_p8), %v1954_v40, 40  ;;  %v2000_v36 = vsel (%p5489_p8), %vm1976_vm3, %v5233_v49, 0.0  ;;  %vm1977_vm4 = vmand (%p5489_p8), %vm1961_vm13, %vm1969_vm1 }
 0x29d   : > { %v1928_v33 = vpack.c.bf16 %v5237_v13, %v6106_v15  ;;  %2008 = vst [vmem:[#allocation3 + $0x10] sm:$0xff] (%p5489_p8), %v2004_v23  ;;  %v2005_v42 = vpack.c.bf16 (%p5489_p8), %v2000_v36, %v1999_v41  ;;  %vm1978_vm8 = vmand (%p5489_p8), %vm1962_vm0, %vm1970_vm2  ;;  %v2001_v45 = vsel (%p5489_p8), %vm1977_vm4, %v6106_v15, 0.0 }
 0x29e   : > { %v2002_v46 = vsel (%p5489_p8), %vm1978_vm8, %v5237_v13, 0.0 }
 0x29f   : > { %1932 = vst [vmem:[#allocation3 + $0x20] sm:$0xff] %v1928_v33  ;;  %2009 = vst [vmem:[#allocation3 + $0x18] sm:$0xff] (%p5489_p8), %v2005_v42  ;;  %v2006_v50 = vpack.c.bf16 (%p5489_p8), %v2002_v46, %v2001_v45 }
 0x2a1   : > { %2010 = vst [vmem:[#allocation3 + $0x20] sm:$0xff] %v2006_v50 }
 0x2a2 PF: > { %v5238_v62 = vld [vmem:[%s6643_s1 + $0x2c0] sm:$0xff]   ;;  %v5242_v54 = vld [vmem:[%s6643_s1 + $0x2c8] sm:$0xff]   ;;  %v5246_v58 = vld [vmem:[%s6643_s1 + $0x2d0] sm:$0xff]   ;;  %vm6666_vm6 = vcmask 1044480   ;;  %vm6667_vm9 = vsmask.f32 7424 }
 0x2a3   : > { %v5239_v51 = vld [vmem:[%s6643_s1 + $0x280] sm:$0xff]   ;;  %4732 = vmatprep.subr.bf16.mxu1 %v5238_v62  ;;  %v5243_v55 = vld [vmem:[%s6643_s1 + $0x288] sm:$0xff]   ;;  %v5247_v59 = vld [vmem:[%s6643_s1 + $0x290] sm:$0xff]   ;;  %vm6669_vm13 = vcmask 1046528   ;;  %vm6671_vm7 = vsmask.f32 6400 }
 0x2a4   : > { %v5240_v52 = vld [vmem:[%s6643_s1 + $0x340] sm:$0xff]   ;;  %4733 = vmatpush3.bf16.msra.mxu1 %v5239_v51  ;;  %v5244_v56 = vld [vmem:[%s6643_s1 + $0x348] sm:$0xff]   ;;  %v5248_v61 = vld [vmem:[%s6643_s1 + $0x350] sm:$0xff]   ;;  %s2682_s20 = sadd.s32 (%p5489_p8), 4294967280, %s5475_s19 }
 0x2a5   : > { %v5241_v37 = vld [vmem:[%s6643_s1 + $0x300] sm:$0xff]   ;;  %4766 = vmatprep.subr.bf16.mxu0 %v5240_v52  ;;  %4734 = vmatprep.subr.bf16.mxu1 %v5242_v54  ;;  %v5245_v57 = vld [vmem:[%s6643_s1 + $0x308] sm:$0xff]   ;;  %v5249_v27 = vld [vmem:[%s6643_s1 + $0x310] sm:$0xff]  }
 0x2a6   : > { %4767 = vmatpush3.bf16.msra.mxu0 %v5241_v37  ;;  %v5250_v44 = vld [vmem:[%s6643_s1 + $0x2d8] sm:$0xff]   ;;  %v5254_v2 = vld [vmem:[%s6643_s1 + $0x2e0] sm:$0xff]   ;;  %v5258_v38 = vld [vmem:[%s6643_s1 + $0x2e8] sm:$0xff]  }
 0x2a7   : > { %4768 = vmatprep.subr.bf16.mxu0 %v5244_v56  ;;  %v5251_v47 = vld [vmem:[%s6643_s1 + $0x298] sm:$0xff]   ;;  %v5255_v1 = vld [vmem:[%s6643_s1 + $0x2a0] sm:$0xff]   ;;  %v5259_v7 = vld [vmem:[%s6643_s1 + $0x2a8] sm:$0xff]  }
 0x2a8   : > { %4735 = vmatpush3.bf16.msra.mxu1 %v5243_v55  ;;  %v5252_v0 = vld [vmem:[%s6643_s1 + $0x358] sm:$0xff]   ;;  %v5256_v4 = vld [vmem:[%s6643_s1 + $0x360] sm:$0xff]   ;;  %v5260_v63 = vld [vmem:[%s6643_s1 + $0x368] sm:$0xff]  }
 0x2a9   : > { %4736 = vmatprep.subr.bf16.mxu1 %v5246_v58  ;;  %v5253_v48 = vld [vmem:[%s6643_s1 + $0x318] sm:$0xff]   ;;  %v5257_v53 = vld [vmem:[%s6643_s1 + $0x320] sm:$0xff]   ;;  %v5261_v3 = vld [vmem:[%s6643_s1 + $0x328] sm:$0xff]  }
 0x2aa   : > { %4769 = vmatpush3.bf16.msra.mxu0 %v5245_v57  ;;  %v5262_v9 = vld [vmem:[%s6643_s1 + $0x2f0] sm:$0xff]   ;;  %v5266_v5 = vld [vmem:[%s6643_s1 + $0x2f8] sm:$0xff]   ;;  %v6216_v12 = vld [vmem:[#allocation3 + $0x10] sm:$0xff] }
 0x2ab   : > { %4770 = vmatprep.subr.bf16.mxu0 %v5248_v61  ;;  %v5263_v10 = vld [vmem:[%s6643_s1 + $0x2b0] sm:$0xff]   ;;  %v5267_v15 = vld [vmem:[%s6643_s1 + $0x2b8] sm:$0xff]   ;;  %v6218_v16 = vld [vmem:[#allocation3 + $0x18] sm:$0xff]  ;;  %v2027_v6 = vshll.u32 %v6216_v12, 16  ;;  %v2031_v20 = vshrl.u32 %v6216_v12, 16  ;;  %v2187_v19 = vrot.slane %v6216_v12, 3 }
 0x2ac   : > { %4737 = vmatpush3.bf16.msra.mxu1 %v5247_v59  ;;  %v5264_v11 = vld [vmem:[%s6643_s1 + $0x370] sm:$0xff]   ;;  %v5268_v13 = vld [vmem:[%s6643_s1 + $0x378] sm:$0xff]   ;;  %v2035_v21 = vshll.u32 %v6218_v16, 16  ;;  %v2039_v26 = vshrl.u32 %v6218_v16, 16  ;;  %vm6668_vm12 = vmmov %vm6667_vm9  ;;  %v2055_v50 = vrot.slane %v6216_v12, 1  ;;  %v2057_v57 = vrot.slane %v6218_v16, 1 }
 0x2ad   : > { %4738 = vmatprep.subr.bf16.mxu1 %v5250_v44  ;;  %v5265_v49 = vld [vmem:[%s6643_s1 + $0x330] sm:$0xff]   ;;  %v2011_v33 = vld [vmem:[#allocation3 + $0x8] sm:$0xf8]  ;;  %v2029_v60 = vrot.slane %v2027_v6, 1  ;;  %v2069_v18 = vrot.slane %v2031_v20, 1  ;;  %v2070_v43 = vrot.slane %v2027_v6, 2  ;;  %vm6670_vm0 = vmmov %vm6666_vm6 }
 0x2ae   : > { %4771 = vmatpush3.bf16.msra.mxu0 %v5249_v27  ;;  %v2020_v34 = vshrl.u32 %v2011_v33, 16  ;;  %v2022_v17 = vshll.u32 %v2011_v33, 16  ;;  %v5269_v30 = vld [vmem:[%s6643_s1 + $0x338] sm:$0xff]   ;;  %v2186_v14 = vrot.slane %v2011_v33, 3  ;;  %v2037_v8 = vrot.slane %v2035_v21, 1  ;;  %v5270_v54 = vld [vmem:[%s6643_s1 + $0x380] sm:$0xff]   ;;  %vm6672_vm10 = vmmov %vm6671_vm7 }
 0x2af   : > { %4772 = vmatprep.subr.bf16.mxu0 %v5252_v0  ;;  %v2016_v25 = vld [vmem:[#allocation3 + $0x8] sm:$0xf0]  ;;  %v2033_v32 = vor.u32 %v2031_v20, %v2029_v60  ;;  %v2073_v40 = vrot.slane %v2039_v26, 1  ;;  %v2074_v41 = vrot.slane %v2035_v21, 2  ;;  %v2071_v46 = vor.u32 %v2070_v43, %v2069_v18  ;;  %v6238_v55 = vld [vmem:[#allocation3 + $0x20] sm:$0xf]  ;;  %vm6673_vm11 = vmmov %vm6669_vm13 }
 0x2b0   : > { %4739 = vmatpush3.bf16.msra.mxu1 %v5251_v47  ;;  %v2024_v22 = vrot.slane %v2022_v17, 1  ;;  %v2188_v28 = vsel %vm6666_vm6, %v2186_v14, %v2187_v19  ;;  %v2062_v24 = vshrl.u32 %v2016_v25, 16  ;;  %v2065_v29 = vshll.u32 %v2016_v25, 16  ;;  %v6246_v0 = vld [vmem:[#allocation3 + $0x20] sm:$0x1f]  ;;  %vm6674_vm14 = vmmov %vm6670_vm0 }
 0x2b1   : > { %4740 = vmatprep.subr.bf16.mxu1 %v5254_v2  ;;  %v2054_v36 = vrot.slane %v2016_v25, 1  ;;  %v2038_v45 = vsel %vm6668_vm12, %v2033_v32, %v2037_v8  ;;  %v2075_v37 = vor.u32 %v2074_v41, %v2073_v40  ;;  %v2041_v58 = vor.u32 %v2039_v26, %v2037_v8  ;;  %vm6675_vm5 = vmmov %vm6667_vm9  ;;  %v5272_v20 = vld [vmem:[%s6643_s1 + $0x390] sm:$0xff]   ;;  %v5274_v32 = vld [vmem:[%s6643_s1 + $0x3a0] sm:$0xff]  }
 0x2b2   : > { %4773 = vmatpush3.bf16.msra.mxu0 %v5253_v48  ;;  %v2025_v31 = vor.u32 %v2024_v22, %v2020_v34  ;;  %v2064_v35 = vrot.slane %v2062_v24, 1  ;;  %v2067_v23 = vrot.slane %v2065_v29, 2  ;;  %v2190_v51 = vrot.slane %v2038_v45, 3  ;;  %vm6676_vm15 = vmmov %vm6670_vm0 }
 0x2b3   : > { %4774 = vmatprep.subr.bf16.mxu0 %v5256_v4  ;;  %v2056_v56 = vsel %vm6669_vm13, %v2054_v36, %v2055_v50  ;;  %v2043_v59 = vshll.u32 %v6238_v55, 16  ;;  %v2076_v44 = vsel %vm6672_vm10, %v2071_v46, %v2075_v37  ;;  %vm6677_vm1 = vmmov %vm6673_vm11  ;;  %v2091_v45 = vrot.slane %v6218_v16, 2 }
 0x2b4   : > { %4741 = vmatpush3.bf16.msra.mxu1 %v5255_v1  ;;  %v2030_v42 = vsel %vm6667_vm9, %v2025_v31, %v2029_v60  ;;  %v2068_v52 = vor.u32 %v2067_v23, %v2064_v35  ;;  %v2192_v47 = vrot.slane %v2056_v56, 3  ;;  %v2196_v2 = vrot.slane %v2076_v44, 3  ;;  %vm6678_vm3 = vmmov %vm6670_vm0  ;;  %v2014_v60 = vld [vmem:[#allocation3 + $0x20] sm:$0x7]  ;;  %v2018_v35 = vld [vmem:[#allocation3 + $0x8] sm:$0xe0] }
 0x2b5   : > { %4742 = vmatprep.subr.bf16.mxu1 %v5258_v38  ;;  %v2189_v62 = vrot.slane %v2030_v42, 3  ;;  %v2058_v1 = vsel %vm6673_vm11, %v2055_v50, %v2057_v57  ;;  %v2045_v4 = vrot.slane %v2043_v59, 1  ;;  %v5271_v38 = vld [vmem:[%s6643_s1 + $0x388] sm:$0xff]   ;;  %vm6679_vm2 = vmmov %vm6670_vm0  ;;  %v2211_v24 = vrot.slane %v2014_v60, 3 }
 0x2b6   : > { %4775 = vmatpush3.bf16.msra.mxu0 %v5257_v53  ;;  %v2072_v27 = vsel %vm6671_vm7, %v2068_v52, %v2071_v46  ;;  %v2193_v53 = vrot.slane %v2058_v1, 3  ;;  %vm6680_vm4 = vmmov %vm6671_vm7  ;;  %v5275_v23 = vld [vmem:[%s6643_s1 + $0x3a8] sm:$0xff]   ;;  %vm6686_vm7 = vmmov 0   ;;  %v2088_v36 = vrot.slane %v2018_v35, 2  ;;  %v5276_v46 = vld [vmem:[%s6643_s1 + $0x3b0] sm:$0xff]  }
 0x2b7   : > { %4776 = vmatprep.subr.bf16.mxu0 %v5260_v63  ;;  %v2191_v61 = vsel %vm6670_vm0, %v2189_v62, %v2190_v51  ;;  %v2195_v48 = vrot.slane %v2072_v27, 3  ;;  %v2078_v63 = vshrl.u32 %v6246_v0, 16  ;;  %vm6681_vm8 = vmmov %vm6670_vm0  ;;  %v2089_v42 = vrot.slane %v6216_v12, 2 }
 0x2b8   : > { %4743 = vmatpush3.bf16.msra.mxu1 %v5259_v7  ;;  %2508 = vmatprep.mubr.bf16.mxu1 %v2191_v61  ;;  %v2201_v7 = vrot.slane %v6218_v16, 3  ;;  %vm6682_vm6 = vmmov %vm6670_vm0  ;;  %vm6687_vm10 = vcmask 1045504   ;;  %v2093_v16 = vrot.slane %v6246_v0, 2  ;;  %v4248_v61 = vld [vmem:[%s6644_s2 + $0x2] ss:$0 sm:$0xff] }
 0x2b9   : > { %4744 = vmatprep.subr.bf16.mxu1 %v5262_v9  ;;  %v2197_v9 = vsel %vm6674_vm14, %v2195_v48, %v2196_v2  ;;  %vm6683_vm9 = vmmov %vm6670_vm0  ;;  %v2090_v50 = vsel %vm6687_vm10, %v2088_v36, %v2089_v42 }
 0x2ba   : > { %4777 = vmatpush3.bf16.msra.mxu0 %v5261_v3  ;;  %v2081_v3 = vshll.u32 %v6246_v0, 16  ;;  %2565 = vmatprep.mubr.bf16.mxu0 %v2197_v9  ;;  %v2202_v21 = vsel %vm6679_vm2, %v2187_v19, %v2201_v7  ;;  %vm6684_vm12 = vmmov %vm6670_vm0  ;;  %v2198_v12 = vrot.slane %v2090_v50, 3 }
 0x2bb   : > { %4778 = vmatprep.subr.bf16.mxu0 %v5264_v11  ;;  %v2059_v11 = vrot.slane %v6238_v55, 1  ;;  %vm6685_vm13 = vmmov %vm6670_vm0 }
 0x2bc   : > { %4745 = vmatpush3.bf16.msra.mxu1 %v5263_v10  ;;  %v2046_v10 = vsel %vm6675_vm5, %v2041_v58, %v2045_v4  ;;  %v2083_v33 = vrot.slane %v2081_v3, 2  ;;  %v2212_v43 = vsel %vm6685_vm13, %v2201_v7, %v2211_v24  ;;  %vm6688_vm11 = vmmov %vm6687_vm10 }
 0x2bd   : > { %4746 = vmatprep.subr.bf16.mxu1 %v5266_v5  ;;  %v2194_v5 = vsel %vm6676_vm15, %v2192_v47, %v2193_v53  ;;  %v2060_v34 = vsel %vm6677_vm1, %v2057_v57, %v2059_v11  ;;  %v2215_v40 = vrot.slane %v2059_v11, 3  ;;  %v2092_v62 = vsel %vm6688_vm11, %v2089_v42, %v2091_v45  ;;  %vm6689_vm14 = vmmov %vm6670_vm0 }
 0x2be   : > { %4779 = vmatpush3.bf16.msra.mxu0 %v5265_v49  ;;  %v2047_v49 = vshrl.u32 %v6238_v55, 16  ;;  %v2205_v14 = vrot.slane %v2060_v34, 3  ;;  %v2199_v52 = vrot.slane %v2092_v62, 3  ;;  %vm6690_vm5 = vmmov %vm6687_vm10  ;;  %v2219_v57 = vrot.slane %v2093_v16, 3 }
 0x2bf   : > { %4780 = vmatprep.subr.bf16.mxu0 %v5268_v13  ;;  %v2080_v13 = vrot.slane %v2078_v63, 1  ;;  %vm6691_vm15 = vmmov %vm6670_vm0 }
 0x2c0   : > { %4747 = vmatpush3.bf16.msra.mxu1 %v5267_v15  ;;  %v2203_v15 = vrot.slane %v2046_v10, 3  ;;  %v2049_v17 = vor.u32 %v2047_v49, %v2045_v4  ;;  %v2206_v19 = vsel %vm6682_vm6, %v2193_v53, %v2205_v14  ;;  %v2216_v41 = vsel %vm6670_vm0, %v2205_v14, %v2215_v40  ;;  %vm6692_vm1 = vmmov %vm6670_vm0 }
 0x2c1   : > { %4990 = vmatprep.subr.bf16.mxu1 %v5418_v39 }
 0x2c2   : > { %4781 = vmatpush3.bf16.msra.mxu0 %v5269_v30  ;;  %v2204_v6 = vsel %vm6678_vm3, %v2190_v51, %v2203_v15  ;;  %v2084_v30 = vor.u32 %v2083_v33, %v2080_v13  ;;  %v2213_v22 = vrot.slane %v2049_v17, 3  ;;  %v5277_v51 = vld [vmem:[%s6643_s1 + $0x3b8] sm:$0xff]   ;;  %vm6693_vm3 = vcmask 1043456  }
 0x2c3   : > { %2509 = vmatmul.mubr.bf16.vlgmr.msra.gmra.mrb[52].mxu1 %v2188_v28  ;;  %v5273_v28 = vld [vmem:[%s6643_s1 + $0x398] sm:$0xff]   ;;  %vm6694_vm2 = vmmov %vm6693_vm3 }
 0x2c4   : > { %4991 = vmatpush3.bf16.msra.mxu1 %v5270_v54  ;;  %2516 = vmatprep.mubr.bf16.mxu1 %v2204_v6  ;;  %v2085_v25 = vsel %vm6680_vm4, %v2075_v37, %v2084_v30  ;;  %v2214_v26 = vsel %vm6681_vm8, %v2203_v15, %v2213_v22  ;;  %v2217_v18 = vrot.slane %v2084_v30, 3  ;;  %v2200_v37 = vsel %vm6689_vm14, %v2198_v12, %v2199_v52 }
 0x2c5   : > { %4992 = vmatprep.subr.bf16.mxu1 %v5418_v39  ;;  %2566 = vmatmul.mubr.bf16.vlgmr.msra.gmra.mrb[48].mxu0 %v2194_v5  ;;  %v2207_v8 = vrot.slane %v2085_v25, 3  ;;  %v2094_v54 = vsel %vm6690_vm5, %v2091_v45, %v2093_v16 }
 0x2c6   : > { %v2209_v55 = vrot.slane %v2094_v54, 3 }
 0x2c7   : > { %v2208_v29 = vsel %vm6683_vm9, %v2196_v2, %v2207_v8  ;;  %v2218_v31 = vsel %vm6684_vm12, %v2207_v8, %v2217_v18 }
 0x2c8   : > { %4993 = vmatpush3.bf16.msra.mxu1 %v5271_v38  ;;  %2573 = vmatprep.mubr.bf16.mxu0 %v2208_v29  ;;  %v2210_v56 = vsel %vm6691_vm15, %v2199_v52, %v2209_v55  ;;  %v2220_v58 = vsel %vm6692_vm1, %v2209_v55, %v2219_v57 }
 0x2c9   : > { %4994 = vmatprep.subr.bf16.mxu1 %v5418_v39 }
 0x2cb   : > { %2517 = vmatmul.mubr.bf16.gmra.mrb[56].mxu1 %v2202_v21 }
 0x2cc   : > { %4995 = vmatpush3.bf16.msra.mxu1 %v5272_v20  ;;  %2524 = vmatprep.mubr.bf16.mxu1 %v2214_v26 }
 0x2cd   : > { %4996 = vmatprep.subr.bf16.mxu1 %v5418_v39  ;;  %2574 = vmatmul.mubr.bf16.gmra.mrb[52].mxu0 %v2206_v19 }
 0x2ce   : > { %2581 = vmatprep.mubr.bf16.mxu0 %v2218_v31 }
 0x2d0   : > { %4997 = vmatpush3.bf16.msra.mxu1 %v5273_v28 }
 0x2d1   : > { %4998 = vmatprep.subr.bf16.mxu1 %v5418_v39 }
 0x2d3   : > { %2525 = vmatmul.mubr.bf16.gmra.mrb[60].mxu1 %v2212_v43 }
 0x2d4   : > { %4999 = vmatpush3.bf16.msra.mxu1 %v5274_v32  ;;  %5006 = vmatprep.mubr.msk.bf16.mxu1 %vm6686_vm7, %v5418_v39 }
 0x2d5   : > { %5000 = vmatprep.subr.bf16.mxu1 %v5418_v39  ;;  %2582 = vmatmul.mubr.bf16.gmra.mrb[56].mxu0 %v2216_v41 }
 0x2d8   : > { %5001 = vmatpush3.bf16.msra.mxu1 %v5275_v23 }
 0x2d9   : > { %5002 = vmatprep.subr.bf16.mxu1 %v5418_v39 }
 0x2dc   : > { %5003 = vmatpush3.bf16.msra.mxu1 %v5276_v46 }
 0x2dd   : > { %5004 = vmatprep.subr.bf16.mxu1 %v5418_v39 }
 0x2e0   : > { %5005 = vmatpush3.bf16.msra.mxu1 %v5277_v51 }
 0x2e3   : > { %5007 = vmatmul.mubr.bf16.vlgmr.msra.gmra.mrb[64].mxu1 %v2200_v37 }
 0x2e4   : > { %5010 = vmatprep.mubr.msk.bf16.mxu1 %vm6686_vm7, %v5418_v39 }
 0x2eb   : > { %5011 = vmatmul.mubr.bf16.gmra.mrb[68].mxu1 %v2210_v56 }
 0x2ec   : > { %5014 = vmatprep.mubr.msk.bf16.mxu1 %vm6686_vm7, %v5418_v39 }
 0x2f3   : > { %5015 = vmatmul.mubr.bf16.gmra.mrb[72].mxu1 %v2220_v58 }
 0x396   : > { %v4748_v59 = vpop.f32.mrb[52].mxu1 }
 0x397   : > { %v4749_v27 = vpop.f32.mrb[53].mxu1 }
 0x398   : > { %v4750_v44 = vadd.f32 %v4749_v27, %v4748_v59  ;;  %v4751_v47 = vpop.f32.mrb[54].mxu1  ;;  %v4782_v0 = vpop.f32.mrb[48].mxu0 }
 0x399   : > { %v4752_v48 = vpop.f32.mrb[55].mxu1  ;;  %v4783_v4 = vpop.f32.mrb[49].mxu0 }
 0x39a   : > { %v2511_v2 = vadd.f32 %v4750_v44, %v4248_v61  ;;  %v4753_v1 = vadd.f32 %v4752_v48, %v4751_v47  ;;  %v4784_v53 = vadd.f32 %v4783_v4, %v4782_v0  ;;  %v4785_v38 = vpop.f32.mrb[50].mxu0 }
 0x39b   : > { %v4786_v63 = vpop.f32.mrb[51].mxu0 }
 0x39c   : > { %v2514_v7 = vadd.f32 %v4753_v1, %v4248_v61  ;;  %v4787_v3 = vadd.f32 %v4786_v63, %v4785_v38  ;;  %v2568_v9 = vadd.f32 %v4784_v53, %v2511_v2 }
 0x39e   : > { %v4754_v10 = vpop.f32.mrb[56].mxu1  ;;  %v2571_v49 = vadd.f32 %v4787_v3, %v2514_v7 }
 0x39f   : > { %v4755_v11 = vpop.f32.mrb[57].mxu1 }
 0x3a0   : > { %v4756_v5 = vadd.f32 %v4755_v11, %v4754_v10  ;;  %v4757_v15 = vpop.f32.mrb[58].mxu1  ;;  %v4788_v34 = vpop.f32.mrb[52].mxu0 }
 0x3a1   : > { %v4758_v13 = vpop.f32.mrb[59].mxu1  ;;  %v4789_v6 = vpop.f32.mrb[53].mxu0 }
 0x3a2   : > { %v2519_v33 = vadd.f32 %v4756_v5, %v4248_v61  ;;  %v4759_v17 = vadd.f32 %v4758_v13, %v4757_v15  ;;  %v4790_v21 = vadd.f32 %v4789_v6, %v4788_v34  ;;  %v4791_v30 = vpop.f32.mrb[54].mxu0  ;;  %v2683_v5 = vstv (%p5489_p8), %s2682_s20 }
 0x3a3   : > { %v4792_v14 = vpop.f32.mrb[55].mxu0 }
 0x3a4   : > { %v2522_v20 = vadd.f32 %v4759_v17, %v4248_v61  ;;  %v4793_v22 = vadd.f32 %v4792_v14, %v4791_v30  ;;  %v2576_v25 = vadd.f32 %v4790_v21, %v2519_v33 }
 0x3a6   : > { %v4760_v60 = vpop.f32.mrb[60].mxu1  ;;  %v2579_v28 = vadd.f32 %v4793_v22, %v2522_v20 }
 0x3a7   : > { %v4761_v26 = vpop.f32.mrb[61].mxu1 }
 0x3a8   : > { %v4762_v18 = vadd.f32 %v4761_v26, %v4760_v60  ;;  %v4763_v8 = vpop.f32.mrb[62].mxu1  ;;  %v4794_v29 = vpop.f32.mrb[56].mxu0 }
 0x3a9   : > { %v4764_v19 = vpop.f32.mrb[63].mxu1  ;;  %v4795_v32 = vpop.f32.mrb[57].mxu0 }
 0x3aa   : > { %v2527_v24 = vadd.f32 %v4762_v18, %v4248_v61  ;;  %v4765_v31 = vadd.f32 %v4764_v19, %v4763_v8  ;;  %v4796_v40 = vadd.f32 %v4795_v32, %v4794_v29  ;;  %v4797_v35 = vpop.f32.mrb[58].mxu0 }
 0x3ab   : > { %v4798_v23 = vpop.f32.mrb[59].mxu0 }
 0x3ac   : > { %v2530_v43 = vadd.f32 %v4765_v31, %v4248_v61  ;;  %v4799_v41 = vadd.f32 %v4798_v23, %v4797_v35  ;;  %v2584_v36 = vadd.f32 %v4796_v40, %v2527_v24 }
 0x3ae   : > { %v2587_v42 = vadd.f32 %v4799_v41, %v2530_v43 }
 0x3b6   : > { %v2624_v45 = vpop.f32.mrb[64].mxu1 }
 0x3b7   : > { %v2625_v46 = vadd.f32 %v2624_v45, %v2568_v9  ;;  %v5008_v50 = vpop.f32.mrb[65].mxu1 }
 0x3b8   : > { %v2627_v62 = vpop.f32.mrb[66].mxu1 }
 0x3b9   : > { %v2628_v51 = vadd.f32 %v2627_v62, %v2571_v49  ;;  %v5009_v12 = vpop.f32.mrb[67].mxu1  ;;  %5278 = vtanh.f32 %v2625_v46  ;;  %v2675_v49 = vlaneseq (%p5489_p8) }
 0x3bb   : > { %5280 = vtanh.f32 %v2628_v51  ;;  %v2676_v15 = vshrl.u32 (%p5489_p8), %v2675_v49, 7 }
 0x3bd   : > { %v2677_v13 = vadd.s32 (%p5489_p8), 8, %v2676_v15  ;;  %v2684_v33 = vadd.s32 (%p5489_p8), %v2683_v5, %v2676_v15  ;;  %v2678_v34 = vadd.s32 (%p5489_p8), 16, %v2676_v15  ;;  %v2679_v17 = vadd.s32 (%p5489_p8), 24, %v2676_v15 }
 0x3be   : > { %v2632_v52 = vpop.f32.mrb[68].mxu1  ;;  %v2680_v6 = vadd.s32 (%p5489_p8), 32, %v2676_v15  ;;  %v2681_v20 = vadd.s32 (%p5489_p8), 40, %v2676_v15 }
 0x3bf   : > { %v2633_v16 = vadd.f32 %v2632_v52, %v2576_v25  ;;  %v5012_v37 = vpop.f32.mrb[69].mxu1  ;;  %v2685_v21 = vadd.s32 (%p5489_p8), %v2683_v5, %v2677_v13  ;;  %vm2690_vm4 = vcmp.ge.s32.totalorder (%p5489_p8), %v2684_v33, 0  ;;  %vm2696_vm8 = vcmp.lt.s32.totalorder (%p5489_p8), %v2684_v33, 40 }
 0x3c0   : > { %v2635_v54 = vpop.f32.mrb[70].mxu1  ;;  %v2686_v30 = vadd.s32 (%p5489_p8), %v2683_v5, %v2678_v34  ;;  %vm6320_vm6 = vmand (%p5489_p8), %vm2690_vm4, %vm2696_vm8  ;;  %v2687_v22 = vadd.s32 (%p5489_p8), %v2683_v5, %v2679_v17  ;;  %v2688_v60 = vadd.s32 (%p5489_p8), %v2683_v5, %v2680_v6  ;;  %v2689_v25 = vadd.s32 (%p5489_p8), %v2683_v5, %v2681_v20 }
 0x3c1   : > { %v2636_v55 = vadd.f32 %v2635_v54, %v2579_v28  ;;  %v5013_v56 = vpop.f32.mrb[71].mxu1  ;;  %5282 = vtanh.f32 %v2633_v16  ;;  %vm2691_vm9 = vcmp.ge.s32.totalorder (%p5489_p8), %v2685_v21, 0  ;;  %vm2697_vm12 = vcmp.lt.s32.totalorder (%p5489_p8), %v2685_v21, 40 }
 0x3c2   : > { %vm2692_vm13 = vcmp.ge.s32.totalorder (%p5489_p8), %v2686_v30, 0  ;;  %vm2703_vm0 = vmand (%p5489_p8), %vm2691_vm9, %vm2697_vm12  ;;  %vm2693_vm7 = vcmp.ge.s32.totalorder (%p5489_p8), %v2687_v22, 0  ;;  %vm2698_vm10 = vcmp.lt.s32.totalorder (%p5489_p8), %v2686_v30, 40  ;;  %vm2699_vm11 = vcmp.lt.s32.totalorder (%p5489_p8), %v2687_v22, 40 }
 0x3c3   : > { %5284 = vtanh.f32 %v2636_v55  ;;  %v5279_v57 = vpop.eup %5278  ;;  %vm2694_vm14 = vcmp.ge.s32.totalorder (%p5489_p8), %v2688_v60, 0  ;;  %vm2704_vm5 = vmand (%p5489_p8), %vm2692_vm13, %vm2698_vm10  ;;  %vm2695_vm15 = vcmp.ge.s32.totalorder (%p5489_p8), %v2689_v25, 0  ;;  %vm2700_vm1 = vcmp.lt.s32.totalorder (%p5489_p8), %v2688_v60, 40 }
 0x3c4   : > { %v2720_v26 = vsel (%p5489_p8), %vm6320_vm6, %v5279_v57, 0.0  ;;  %vm2706_vm4 = vmand (%p5489_p8), %vm2694_vm14, %vm2700_vm1  ;;  %vm6697_vm6 = vcmask (%p5489_p8), 1043456  }
 0x3c5   : > { %v5281_v58 = vpop.eup %5280  ;;  %vm6698_vm9 = vmmov (%p5489_p8), %vm6697_vm6 }
 0x3c6   : > { %v2653_v59 = vpack.c.bf16 %v5281_v58, %v5279_v57  ;;  %v2640_v61 = vpop.f32.mrb[72].mxu1  ;;  %v2721_v18 = vsel (%p5489_p8), %vm2703_vm0, %v5281_v58, 0.0 }
 0x3c7   : > { %v2641_v27 = vadd.f32 %v2640_v61, %v2584_v36  ;;  %v5016_v44 = vpop.f32.mrb[73].mxu1  ;;  %v2726_v8 = vpack.c.bf16 (%p5489_p8), %v2721_v18, %v2720_v26 }
 0x3c8   : > { %v2659_v47 = vrot.slane %v2653_v59, 4  ;;  %v2643_v0 = vpop.f32.mrb[74].mxu1 }
 0x3c9   : > { %v2644_v48 = vadd.f32 %v2643_v0, %v2587_v42  ;;  %v5017_v2 = vpop.f32.mrb[75].mxu1  ;;  %5286 = vtanh.f32 %v2641_v27  ;;  %v2732_v24 = vrot.slane (%p5489_p8), %v2726_v8, 4 }
 0x3ca   : > { %2668 = vst [vmem:[#allocation2 + $0x8] sm:$0xf0] %v2659_v47 }
 0x3cb   : > { %5288 = vtanh.f32 %v2644_v48  ;;  %v5283_v1 = vpop.eup %5282  ;;  %2741 = vst [vmem:[#allocation2 + $0x8] sm:$0xf0] (%p5489_p8), %v2732_v24 }
 0x3cc   : > { %v2722_v28 = vsel (%p5489_p8), %vm2704_vm5, %v5283_v1, 0.0 }
 0x3cd   : > { %v5285_v4 = vpop.eup %5284 }
 0x3ce   : > { %v2654_v53 = vpack.c.bf16 %v5285_v4, %v5283_v1 }
 0x3d0   : > { %v2660_v38 = vrot.slane %v2654_v53, 4 }
 0x3d2   : > { %v2661_v7 = vsel %vm6693_vm3, %v2659_v47, %v2660_v38  ;;  %vm2701_vm3 = vcmp.lt.s32.totalorder (%p5489_p8), %v2689_v25, 40 }
 0x3d3   : > { %2669 = vst [vmem:[#allocation2 + $0x10] sm:$0xff] %v2661_v7  ;;  %v5287_v63 = vpop.eup %5286  ;;  %vm2707_vm8 = vmand (%p5489_p8), %vm2695_vm15, %vm2701_vm3 }
 0x3d4   : > { %v2724_v31 = vsel (%p5489_p8), %vm2706_vm4, %v5287_v63, 0.0 }
 0x3d5   : > { %v5289_v3 = vpop.eup %5288  ;;  %2674 = sbr.rel (!%p5489_p8) target bundleno = 994 (0x3e2), region = 44 }
 0x3d6   : > { %v2655_v9 = vpack.c.bf16 %v5289_v3, %v5287_v63  ;;  %v2725_v32 = vsel (%p5489_p8), %vm2707_vm8, %v5289_v3, 0.0 }
 0x3d7   : > { %v2728_v40 = vpack.c.bf16 (%p5489_p8), %v2725_v32, %v2724_v31 }
 0x3d8   : > { %v2662_v10 = vrot.slane %v2655_v9, 4 }
 0x3d9   : > { %v2735_v23 = vrot.slane (%p5489_p8), %v2728_v40, 4 }
 0x3da   : > { %v2663_v11 = vsel %vm6694_vm2, %v2660_v38, %v2662_v10  ;;  %2671 = vst [vmem:[#allocation2 + $0x20] sm:$0xf] %v2662_v10  ;;  %vm2705_vm2 = vmand (%p5489_p8), %vm2693_vm7, %vm2699_vm11 }
 0x3db   : > { %2670 = vst [vmem:[#allocation2 + $0x18] sm:$0xff] %v2663_v11  ;;  %v2723_v19 = vsel (%p5489_p8), %vm2705_vm2, %v5285_v4, 0.0  ;;  %2744 = vst [vmem:[#allocation2 + $0x20] sm:$0xf] (%p5489_p8), %v2735_v23 }
 0x3dc   : > { %v2727_v29 = vpack.c.bf16 %v2723_v19, %v2722_v28 }
 0x3de   : > { %v2733_v43 = vrot.slane %v2727_v29, 4 }
 0x3e0   : > { %v2734_v35 = vsel %vm6697_vm6, %v2732_v24, %v2733_v43  ;;  %v2736_v41 = vsel %vm6698_vm9, %v2733_v43, %v2735_v23 }
 0x3e1   : > { %2742 = vst [vmem:[#allocation2 + $0x10] sm:$0xff] %v2734_v35  ;;  %2743 = vst [vmem:[#allocation2 + $0x18] sm:$0xff] %v2736_v41 }
 0x3e2 PF: > { %v5290_v36 = vld [vmem:[%s6643_s1 + $0x400] sm:$0xff]   ;;  %v5294_v50 = vld [vmem:[%s6643_s1 + $0x408] sm:$0xff]   ;;  %v5298_v52 = vld [vmem:[%s6643_s1 + $0x410] sm:$0xff]   ;;  %vm6699_vm12 = vsmask.f32 7424  ;;  %vm6701_vm0 = vcmask 1046528  }
 0x3e3   : > { %v5291_v42 = vld [vmem:[%s6643_s1 + $0x3c0] sm:$0xff]   ;;  %4811 = vmatprep.subr.bf16.mxu0 %v5290_v36  ;;  %v5295_v62 = vld [vmem:[%s6643_s1 + $0x3c8] sm:$0xff]   ;;  %v5299_v16 = vld [vmem:[%s6643_s1 + $0x3d0] sm:$0xff]   ;;  %vm6702_vm7 = vcmask 1040384   ;;  %vm6704_vm11 = vsmask.f32 6400 }
 0x3e4   : > { %v5292_v45 = vld [vmem:[%s6643_s1 + $0x480] sm:$0xff]   ;;  %4812 = vmatpush3.bf16.msra.mxu0 %v5291_v42  ;;  %v5296_v51 = vld [vmem:[%s6643_s1 + $0x488] sm:$0xff]   ;;  %v5300_v37 = vld [vmem:[%s6643_s1 + $0x490] sm:$0xff]   ;;  %vm6709_vm3 = vcmask 1045504   ;;  %s3323_s28 = sadd.s32 (%p5489_p8), 4294967288, %s5475_s19 }
 0x3e5   : > { %v5293_v46 = vld [vmem:[%s6643_s1 + $0x440] sm:$0xff]   ;;  %4839 = vmatprep.subr.bf16.mxu1 %v5292_v45  ;;  %4813 = vmatprep.subr.bf16.mxu0 %v5294_v50  ;;  %v5297_v12 = vld [vmem:[%s6643_s1 + $0x448] sm:$0xff]   ;;  %v5301_v54 = vld [vmem:[%s6643_s1 + $0x450] sm:$0xff]  }
 0x3e6   : > { %4840 = vmatpush3.bf16.msra.mxu1 %v5293_v46  ;;  %v5302_v55 = vld [vmem:[%s6643_s1 + $0x418] sm:$0xff]   ;;  %v5306_v59 = vld [vmem:[%s6643_s1 + $0x420] sm:$0xff]   ;;  %v5310_v47 = vld [vmem:[%s6643_s1 + $0x428] sm:$0xff]  }
 0x3e7   : > { %4841 = vmatprep.subr.bf16.mxu1 %v5296_v51  ;;  %v5303_v56 = vld [vmem:[%s6643_s1 + $0x3d8] sm:$0xff]   ;;  %v5307_v61 = vld [vmem:[%s6643_s1 + $0x3e0] sm:$0xff]   ;;  %v5311_v0 = vld [vmem:[%s6643_s1 + $0x3e8] sm:$0xff]  }
 0x3e8   : > { %4814 = vmatpush3.bf16.msra.mxu0 %v5295_v62  ;;  %v5304_v57 = vld [vmem:[%s6643_s1 + $0x498] sm:$0xff]   ;;  %v5308_v27 = vld [vmem:[%s6643_s1 + $0x4a0] sm:$0xff]   ;;  %v5312_v48 = vld [vmem:[%s6643_s1 + $0x4a8] sm:$0xff]  }
 0x3e9   : > { %4815 = vmatprep.subr.bf16.mxu0 %v5298_v52  ;;  %v5305_v58 = vld [vmem:[%s6643_s1 + $0x458] sm:$0xff]   ;;  %v5309_v44 = vld [vmem:[%s6643_s1 + $0x460] sm:$0xff]   ;;  %v5313_v2 = vld [vmem:[%s6643_s1 + $0x468] sm:$0xff]  }
 0x3ea   : > { %4842 = vmatpush3.bf16.msra.mxu1 %v5297_v12  ;;  %v5314_v1 = vld [vmem:[%s6643_s1 + $0x430] sm:$0xff]   ;;  %v5318_v7 = vld [vmem:[%s6643_s1 + $0x438] sm:$0xff]   ;;  %v2745_v9 = vld [vmem:[#allocation2 + $0x8] sm:$0x80] }
 0x3eb   : > { %4843 = vmatprep.subr.bf16.mxu1 %v5300_v37  ;;  %v5315_v4 = vld [vmem:[%s6643_s1 + $0x3f0] sm:$0xff]   ;;  %v5319_v63 = vld [vmem:[%s6643_s1 + $0x3f8] sm:$0xff]   ;;  %v2752_v49 = vshrl.u32 %v2745_v9, 16  ;;  %v2885_v34 = vrot.slane %v2745_v9, 7  ;;  %v5322_v17 = vld [vmem:[%s6643_s1 + $0x4c0] sm:$0xff]  }
 0x3ec   : > { %4816 = vmatpush3.bf16.msra.mxu0 %v5299_v16  ;;  %v5316_v53 = vld [vmem:[%s6643_s1 + $0x4b0] sm:$0xff]   ;;  %v5320_v3 = vld [vmem:[%s6643_s1 + $0x4b8] sm:$0xff]   ;;  %vm6700_vm13 = vmmov %vm6699_vm12 }
 0x3ed   : > { %4817 = vmatprep.subr.bf16.mxu0 %v5302_v55  ;;  %v5317_v38 = vld [vmem:[%s6643_s1 + $0x470] sm:$0xff]   ;;  %v6423_v11 = vld [vmem:[#allocation2 + $0x18] sm:$0xff]  ;;  %v5323_v42 = vld [vmem:[%s6643_s1 + $0x4c8] sm:$0xff]  }
 0x3ee   : > { %4844 = vmatpush3.bf16.msra.mxu1 %v5301_v54  ;;  %v6421_v10 = vld [vmem:[#allocation2 + $0x10] sm:$0xff]  ;;  %v2763_v13 = vshll.u32 %v6423_v11, 16  ;;  %v5321_v33 = vld [vmem:[%s6643_s1 + $0x478] sm:$0xff]   ;;  %v2767_v30 = vshrl.u32 %v6423_v11, 16  ;;  %v2773_v24 = vrot.slane %v6423_v11, 1  ;;  %vm6703_vm10 = vmmov %vm6702_vm7 }
 0x3ef   : > { %4845 = vmatprep.subr.bf16.mxu1 %v5304_v57  ;;  %v2755_v5 = vshll.u32 %v6421_v10, 16  ;;  %v2759_v15 = vshrl.u32 %v6421_v10, 16  ;;  %v2886_v21 = vrot.slane %v6421_v10, 7  ;;  %v2772_v18 = vrot.slane %v6421_v10, 1  ;;  %v2747_v62 = vld [vmem:[#allocation2 + $0x18] sm:$0x7f]  ;;  %vm6705_vm14 = vmmov %vm6702_vm7 }
 0x3f0   : > { %4818 = vmatpush3.bf16.msra.mxu0 %v5303_v56  ;;  %v2765_v20 = vrot.slane %v2763_v13, 1  ;;  %v2779_v26 = vrot.slane %v2763_v13, 2  ;;  %v2778_v19 = vrot.slane %v2767_v30, 1  ;;  %v2749_v51 = vld [vmem:[#allocation2 + $0x20] sm:$0x1]  ;;  %vm6706_vm5 = vmmov %vm6702_vm7  ;;  %v2900_v55 = vrot.slane %v2747_v62, 7 }
 0x3f1   : > { %4819 = vmatprep.subr.bf16.mxu0 %v5306_v59  ;;  %v2757_v6 = vrot.slane %v2755_v5, 1  ;;  %v2775_v14 = vrot.slane %v2759_v15, 1  ;;  %v2776_v22 = vrot.slane %v2755_v5, 2  ;;  %v2774_v40 = vsel %vm6701_vm0, %v2772_v18, %v2773_v24  ;;  %vm6707_vm15 = vmmov %vm6706_vm5  ;;  %v2750_v56 = vld [vmem:[#allocation2 + $0x10] sm:$0xfe] }
 0x3f2   : > { %4846 = vmatpush3.bf16.msra.mxu1 %v5305_v58  ;;  %v2769_v31 = vor.u32 %v2767_v30, %v2765_v20  ;;  %v2780_v43 = vor.u32 %v2779_v26, %v2778_v19  ;;  %v2891_v35 = vrot.slane %v2772_v18, 7  ;;  %v2887_v23 = vsel %vm6702_vm7, %v2885_v34, %v2886_v21  ;;  %v5324_v58 = vld [vmem:[%s6643_s1 + $0x4d0] sm:$0xff]   ;;  %vm6708_vm1 = vmmov %vm6704_vm11 }
 0x3f3   : > { %4847 = vmatprep.subr.bf16.mxu1 %v5308_v27  ;;  %v2758_v60 = vsel %vm6699_vm12, %v2752_v49, %v2757_v6  ;;  %v2761_v25 = vor.u32 %v2759_v15, %v2757_v6  ;;  %v2777_v28 = vor.u32 %v2776_v22, %v2775_v14  ;;  %v2892_v36 = vrot.slane %v2774_v40, 7  ;;  %vm6710_vm2 = vmmov %vm6706_vm5  ;;  %v5328_v10 = vld [vmem:[%s6643_s1 + $0x4f0] sm:$0xff]  }
 0x3f4   : > { %4820 = vmatpush3.bf16.msra.mxu0 %v5307_v61  ;;  %v2888_v8 = vrot.slane %v2758_v60, 7  ;;  %v2902_v45 = vrot.slane %v2769_v31, 7  ;;  %v2783_v37 = vshll.u32 %v2749_v51, 16  ;;  %v2790_v57 = vrot.slane %v6423_v11, 2  ;;  %vm6711_vm4 = vmmov %vm6710_vm2  ;;  %v5329_v11 = vld [vmem:[%s6643_s1 + $0x4f8] sm:$0xff]  }
 0x3f5   : > { %4821 = vmatprep.subr.bf16.mxu0 %v5310_v47  ;;  %v2766_v29 = vsel %vm6700_vm13, %v2761_v25, %v2765_v20  ;;  %v2894_v41 = vrot.slane %v2777_v28, 7  ;;  %v2781_v50 = vsel %vm6704_vm11, %v2777_v28, %v2780_v43  ;;  %v2893_v16 = vsel %vm6706_vm5, %v2891_v35, %v2892_v36  ;;  %vm6712_vm8 = vmmov %vm6710_vm2 }
 0x3f6   : > { %4848 = vmatpush3.bf16.msra.mxu1 %v5309_v44  ;;  %v2889_v32 = vrot.slane %v2766_v29, 7  ;;  %v2895_v12 = vrot.slane %v2781_v50, 7  ;;  %v2785_v59 = vrot.slane %v2783_v37, 2  ;;  %v2789_v61 = vrot.slane %v2750_v56, 2  ;;  %vm6713_vm6 = vmmov %vm6710_vm2 }
 0x3f7   : > { %4849 = vmatprep.subr.bf16.mxu1 %v5312_v48  ;;  %v2904_v44 = vrot.slane %v2773_v24, 7  ;;  %v2901_v48 = vsel %vm6710_vm2, %v2886_v21, %v2900_v55  ;;  %v2792_v9 = vrot.slane %v2749_v51, 2  ;;  %vm6714_vm9 = vmmov %vm6709_vm3 }
 0x3f8   : > { %4822 = vmatpush3.bf16.msra.mxu0 %v5311_v0  ;;  %v2890_v46 = vsel %vm6703_vm10, %v2888_v8, %v2889_v32  ;;  %v2903_v52 = vsel %vm6705_vm14, %v2889_v32, %v2902_v45  ;;  %v2896_v54 = vsel %vm6707_vm15, %v2894_v41, %v2895_v12  ;;  %v2786_v27 = vsel %vm6708_vm1, %v2780_v43, %v2785_v59  ;;  %vm6715_vm12 = vmmov %vm6710_vm2 }
 0x3f9   : > { %4823 = vmatprep.subr.bf16.mxu0 %v5314_v1  ;;  %3192 = vmatprep.mubr.bf16.mxu0 %v2890_v46  ;;  %v2791_v47 = vsel %vm6709_vm3, %v2789_v61, %v2790_v57  ;;  %v2897_v0 = vrot.slane %v2789_v61, 7  ;;  %v2793_v49 = vsel %vm6714_vm9, %v2790_v57, %v2792_v9 }
 0x3fa   : > { %4850 = vmatpush3.bf16.msra.mxu1 %v5313_v2  ;;  %3241 = vmatprep.mubr.bf16.mxu1 %v2896_v54  ;;  %v2906_v2 = vrot.slane %v2786_v27, 7  ;;  %v2898_v1 = vrot.slane %v2791_v47, 7  ;;  %v2908_v5 = vrot.slane %v2793_v49, 7 }
 0x3fb   : > { %4851 = vmatprep.subr.bf16.mxu1 %v5316_v53 }
 0x3fc   : > { %4824 = vmatpush3.bf16.msra.mxu0 %v5315_v4  ;;  %v5325_v4 = vld [vmem:[%s6643_s1 + $0x4d8] sm:$0xff]   ;;  %v2907_v53 = vsel %vm6711_vm4, %v2895_v12, %v2906_v2  ;;  %v2909_v15 = vsel %vm6715_vm12, %v2898_v1, %v2908_v5 }
 0x3fd   : > { %4825 = vmatprep.subr.bf16.mxu0 %v5318_v7  ;;  %v2905_v7 = vsel %vm6713_vm6, %v2892_v36, %v2904_v44 }
 0x3fe   : > { %4852 = vmatpush3.bf16.msra.mxu1 %v5317_v38  ;;  %v2899_v38 = vsel %vm6712_vm8, %v2897_v0, %v2898_v1  ;;  %v3318_v0 = vlaneseq (%p5489_p8) }
 0x3ff   : > { %4853 = vmatprep.subr.bf16.mxu1 %v5320_v3  ;;  %v5327_v3 = vld [vmem:[%s6643_s1 + $0x4e8] sm:$0xff]  }
 0x400   : > { %4826 = vmatpush3.bf16.msra.mxu0 %v5319_v63  ;;  %v5326_v63 = vld [vmem:[%s6643_s1 + $0x4e0] sm:$0xff]   ;;  %v3319_v2 = vshrl.u32 (%p5489_p8), %v3318_v0, 7 }
 0x401   : > { %5018 = vmatprep.subr.bf16.mxu0 %v5322_v17 }
 0x402   : > { %4854 = vmatpush3.bf16.msra.mxu1 %v5321_v33  ;;  %v4370_v33 = vld [vmem:[%s6644_s2 + $0x3] ss:$0 sm:$0xff]  ;;  %v3320_v1 = vadd.s32 (%p5489_p8), 8, %v3319_v2 }
 0x403   : > { %3193 = vmatmul.mubr.bf16.vlgmr.msra.gmra.mrb[60].mxu0 %v2887_v23 }
 0x404   : > { %5019 = vmatpush3.bf16.msra.mxu0 %v5322_v17  ;;  %3200 = vmatprep.mubr.bf16.mxu0 %v2903_v52 }
 0x405   : > { %5020 = vmatprep.subr.bf16.mxu0 %v5323_v42  ;;  %3242 = vmatmul.mubr.bf16.vlgmr.msra.gmra.mrb[76].mxu1 %v2893_v16 }
 0x406   : > { %3249 = vmatprep.mubr.bf16.mxu1 %v2907_v53  ;;  %v3321_v53 = vadd.s32 (%p5489_p8), 16, %v3319_v2 }
 0x408   : > { %5021 = vmatpush3.bf16.msra.mxu0 %v5323_v42 }
 0x409   : > { %5022 = vmatprep.subr.bf16.mxu0 %v5324_v58 }
 0x40b   : > { %3201 = vmatmul.mubr.bf16.gmra.mrb[64].mxu0 %v2901_v48  ;;  %v3324_v48 = vstv (%p5489_p8), %s3323_s28 }
 0x40c   : > { %5023 = vmatpush3.bf16.msra.mxu0 %v5324_v58  ;;  %5034 = vmatprep.mubr.bf16.mxu0 %v2899_v38  ;;  %v3322_v38 = vadd.s32 (%p5489_p8), 24, %v3319_v2 }
 0x40d   : > { %5024 = vmatprep.subr.bf16.mxu0 %v5325_v4  ;;  %3250 = vmatmul.mubr.bf16.gmra.mrb[80].mxu1 %v2905_v7  ;;  %v3326_v7 = vadd.s32 (%p5489_p8), %v3324_v48, %v3320_v1 }
 0x40f   : > { %vm3330_vm10 = vcmp.ge.s32.totalorder (%p5489_p8), %v3326_v7, 0  ;;  %vm3334_vm11 = vcmp.lt.s32.totalorder (%p5489_p8), %v3326_v7, 40 }
 0x410   : > { %5025 = vmatpush3.bf16.msra.mxu0 %v5325_v4  ;;  %v3325_v4 = vadd.s32 (%p5489_p8), %v3324_v48, %v3319_v2  ;;  %vm3338_vm5 = vmand (%p5489_p8), %vm3330_vm10, %vm3334_vm11 }
 0x411   : > { %5026 = vmatprep.subr.bf16.mxu0 %v5326_v63 }
 0x412   : > { %vm3329_vm13 = vcmp.ge.s32.totalorder (%p5489_p8), %v3325_v4, 0  ;;  %vm3333_vm0 = vcmp.lt.s32.totalorder (%p5489_p8), %v3325_v4, 40 }
 0x413   : > { %vm3337_vm7 = vmand (%p5489_p8), %vm3329_vm13, %vm3333_vm0 }
 0x414   : > { %5027 = vmatpush3.bf16.msra.mxu0 %v5326_v63  ;;  %v3327_v63 = vadd.s32 (%p5489_p8), %v3324_v48, %v3321_v53 }
 0x415   : > { %5028 = vmatprep.subr.bf16.mxu0 %v5327_v3 }
 0x416   : > { %vm3331_vm14 = vcmp.ge.s32.totalorder (%p5489_p8), %v3327_v63, 0  ;;  %vm3335_vm1 = vcmp.lt.s32.totalorder (%p5489_p8), %v3327_v63, 40 }
 0x417   : > { %vm3339_vm2 = vmand (%p5489_p8), %vm3331_vm14, %vm3335_vm1 }
 0x418   : > { %5029 = vmatpush3.bf16.msra.mxu0 %v5327_v3  ;;  %v3328_v3 = vadd.s32 (%p5489_p8), %v3324_v48, %v3322_v38 }
 0x419   : > { %5030 = vmatprep.subr.bf16.mxu0 %v5328_v10 }
 0x41a   : > { %vm3332_vm15 = vcmp.ge.s32.totalorder (%p5489_p8), %v3328_v3, 0  ;;  %vm3336_vm3 = vcmp.lt.s32.totalorder (%p5489_p8), %v3328_v3, 40 }
 0x41b   : > { %vm3340_vm4 = vmand (%p5489_p8), %vm3332_vm15, %vm3336_vm3 }
 0x41c   : > { %5031 = vmatpush3.bf16.msra.mxu0 %v5328_v10 }
 0x41d   : > { %5032 = vmatprep.subr.bf16.mxu0 %v5329_v11 }
 0x420   : > { %5033 = vmatpush3.bf16.msra.mxu0 %v5329_v11 }
 0x423   : > { %5035 = vmatmul.mubr.bf16.vlgmr.msra.gmra.mrb[68].mxu0 %v2909_v15 }
 0x4d6   : > { %v4827_v13 = vpop.f32.mrb[60].mxu0 }
 0x4d7   : > { %v4828_v34 = vpop.f32.mrb[61].mxu0 }
 0x4d8   : > { %v4829_v17 = vadd.f32 %v4828_v34, %v4827_v13  ;;  %v4830_v6 = vpop.f32.mrb[62].mxu0  ;;  %v4855_v20 = vpop.f32.mrb[76].mxu1 }
 0x4d9   : > { %v4831_v21 = vpop.f32.mrb[63].mxu0  ;;  %v4856_v22 = vpop.f32.mrb[77].mxu1 }
 0x4da   : > { %v3195_v30 = vadd.f32 %v4829_v17, %v4370_v33  ;;  %v4832_v14 = vadd.f32 %v4831_v21, %v4830_v6  ;;  %v4857_v60 = vadd.f32 %v4856_v22, %v4855_v20  ;;  %v4858_v25 = vpop.f32.mrb[78].mxu1 }
 0x4db   : > { %v4859_v18 = vpop.f32.mrb[79].mxu1 }
 0x4dc   : > { %v3198_v26 = vadd.f32 %v4832_v14, %v4370_v33  ;;  %v4860_v8 = vadd.f32 %v4859_v18, %v4858_v25  ;;  %v3244_v28 = vadd.f32 %v4857_v60, %v3195_v30 }
 0x4de   : > { %v4833_v19 = vpop.f32.mrb[64].mxu0  ;;  %v3247_v29 = vadd.f32 %v4860_v8, %v3198_v26 }
 0x4df   : > { %v4834_v24 = vpop.f32.mrb[65].mxu0 }
 0x4e0   : > { %v4835_v31 = vadd.f32 %v4834_v24, %v4833_v19  ;;  %v4836_v32 = vpop.f32.mrb[66].mxu0  ;;  %v4861_v43 = vpop.f32.mrb[80].mxu1 }
 0x4e1   : > { %v4837_v40 = vpop.f32.mrb[67].mxu0  ;;  %v4862_v41 = vpop.f32.mrb[81].mxu1 }
 0x4e2   : > { %v3203_v35 = vadd.f32 %v4835_v31, %v4370_v33  ;;  %v4838_v23 = vadd.f32 %v4837_v40, %v4836_v32  ;;  %v4863_v36 = vadd.f32 %v4862_v41, %v4861_v43  ;;  %v4864_v42 = vpop.f32.mrb[82].mxu1 }
 0x4e3   : > { %v4865_v46 = vpop.f32.mrb[83].mxu1 }
 0x4e4   : > { %v3206_v45 = vadd.f32 %v4838_v23, %v4370_v33  ;;  %v4866_v50 = vadd.f32 %v4865_v46, %v4864_v42  ;;  %v3252_v62 = vadd.f32 %v4863_v36, %v3203_v35 }
 0x4e6   : > { %v3255_v51 = vadd.f32 %v4866_v50, %v3206_v45 }
 0x4f6   : > { %v5036_v12 = vpop.f32.mrb[68].mxu0 }
 0x4f7   : > { %v3301_v52 = vadd.f32 %v5036_v12, %v3252_v62  ;;  %v3292_v16 = vpop.f32.mrb[69].mxu0 }
 0x4f8   : > { %v3293_v37 = vadd.f32 %v3292_v16, %v3244_v28  ;;  %v5037_v54 = vpop.f32.mrb[70].mxu0 }
 0x4f9   : > { %5330 = vtanh.f32 %v3301_v52  ;;  %v3304_v55 = vadd.f32 %v5037_v54, %v3255_v51  ;;  %v3295_v56 = vpop.f32.mrb[71].mxu0 }
 0x4fa   : > { %5332 = vtanh.f32 %v3293_v37  ;;  %v3296_v57 = vadd.f32 %v3295_v56, %v3247_v29 }
 0x4fb   : > { %5334 = vtanh.f32 %v3304_v55 }
 0x4fc   : > { %5336 = vtanh.f32 %v3296_v57 }
 0x503   : > { %v5331_v58 = vpop.eup %5330  ;;  %3317 = sbr.rel (!%p5489_p8) target bundleno = 1291 (0x50b), region = 48 }
 0x504   : > { %v5333_v59 = vpop.eup %5332  ;;  %v3351_v49 = vsel (%p5489_p8), %vm3339_vm2, %v5331_v58, 0.0 }
 0x505   : > { %v5335_v61 = vpop.eup %5334  ;;  %v3349_v9 = vsel (%p5489_p8), %vm3337_vm7, %v5333_v59, 0.0 }
 0x506   : > { %v5337_v27 = vpop.eup %5336  ;;  %v3312_v44 = vpack.c.bf16 %v5335_v61, %v5331_v58  ;;  %v3352_v5 = vsel (%p5489_p8), %vm3340_vm4, %v5335_v61, 0.0 }
 0x507   : > { %v3311_v47 = vpack.c.bf16 %v5337_v27, %v5333_v59  ;;  %v3350_v10 = vsel (%p5489_p8), %vm3338_vm5, %v5337_v27, 0.0  ;;  %v3354_v15 = vpack.c.bf16 (%p5489_p8), %v3352_v5, %v3351_v49 }
 0x508   : > { %3314 = vst [vmem:[#allocation3 + $0x18] sm:$0xff] %v3312_v44  ;;  %v3353_v11 = vpack.c.bf16 (%p5489_p8), %v3350_v10, %v3349_v9 }
 0x509   : > { %3313 = vst [vmem:[#allocation3 + $0x10] sm:$0xff] %v3311_v47  ;;  %3356 = vst [vmem:[#allocation3 + $0x18] sm:$0xff] (%p5489_p8), %v3354_v15 }
 0x50a   : > { %3355 = vst [vmem:[#allocation3 + $0x10] sm:$0xff] %v3353_v11 }
 0x50b PF: > { %v5338_v13 = vld [vmem:[%s6643_s1 + $0x540] sm:$0xff]   ;;  %v5342_v6 = vld [vmem:[%s6643_s1 + $0x548] sm:$0xff]   ;;  %v5346_v14 = vld [vmem:[%s6643_s1 + $0x550] sm:$0xff]   ;;  %vm6716_vm8 = vsmask.f32 7424  ;;  %vm6717_vm6 = vcmask 1044480  }
 0x50c   : > { %v5339_v33 = vld [vmem:[%s6643_s1 + $0x500] sm:$0xff]   ;;  %4877 = vmatprep.subr.bf16.mxu1 %v5338_v13  ;;  %v5343_v20 = vld [vmem:[%s6643_s1 + $0x508] sm:$0xff]   ;;  %v5347_v22 = vld [vmem:[%s6643_s1 + $0x510] sm:$0xff]   ;;  %vm6718_vm9 = vcmask 1046528   ;;  %vm6720_vm13 = vsmask.f32 6400 }
 0x50d   : > { %v5340_v34 = vld [vmem:[%s6643_s1 + $0x5c0] sm:$0xff]   ;;  %4878 = vmatpush3.bf16.msra.mxu1 %v5339_v33  ;;  %v5344_v21 = vld [vmem:[%s6643_s1 + $0x5c8] sm:$0xff]   ;;  %v5348_v60 = vld [vmem:[%s6643_s1 + $0x5d0] sm:$0xff]   ;;  %vm6723_vm10 = vmmov 0   ;;  %vm6724_vm11 = vcmask 1045504  }
 0x50e   : > { %v5341_v17 = vld [vmem:[%s6643_s1 + $0x580] sm:$0xff]   ;;  %4899 = vmatprep.subr.bf16.mxu0 %v5340_v34  ;;  %4879 = vmatprep.subr.bf16.mxu1 %v5342_v6  ;;  %v5345_v30 = vld [vmem:[%s6643_s1 + $0x588] sm:$0xff]   ;;  %v5349_v25 = vld [vmem:[%s6643_s1 + $0x590] sm:$0xff]  }
 0x50f   : > { %4900 = vmatpush3.bf16.msra.mxu0 %v5341_v17  ;;  %v5350_v26 = vld [vmem:[%s6643_s1 + $0x558] sm:$0xff]   ;;  %v5354_v19 = vld [vmem:[%s6643_s1 + $0x560] sm:$0xff]   ;;  %v5358_v32 = vld [vmem:[%s6643_s1 + $0x568] sm:$0xff]  }
 0x510   : > { %4901 = vmatprep.subr.bf16.mxu0 %v5344_v21  ;;  %v5351_v18 = vld [vmem:[%s6643_s1 + $0x518] sm:$0xff]   ;;  %v5355_v24 = vld [vmem:[%s6643_s1 + $0x520] sm:$0xff]   ;;  %v5359_v43 = vld [vmem:[%s6643_s1 + $0x528] sm:$0xff]  }
 0x511   : > { %4880 = vmatpush3.bf16.msra.mxu1 %v5343_v20  ;;  %v5352_v8 = vld [vmem:[%s6643_s1 + $0x5d8] sm:$0xff]   ;;  %v5356_v29 = vld [vmem:[%s6643_s1 + $0x5e0] sm:$0xff]   ;;  %v5360_v40 = vld [vmem:[%s6643_s1 + $0x5e8] sm:$0xff]  }
 0x512   : > { %4881 = vmatprep.subr.bf16.mxu1 %v5346_v14  ;;  %v5353_v28 = vld [vmem:[%s6643_s1 + $0x598] sm:$0xff]   ;;  %v5357_v31 = vld [vmem:[%s6643_s1 + $0x5a0] sm:$0xff]   ;;  %v5361_v35 = vld [vmem:[%s6643_s1 + $0x5a8] sm:$0xff]  }
 0x513   : > { %4902 = vmatpush3.bf16.msra.mxu0 %v5345_v30  ;;  %v5362_v23 = vld [vmem:[%s6643_s1 + $0x570] sm:$0xff]   ;;  %v5366_v45 = vld [vmem:[%s6643_s1 + $0x578] sm:$0xff]   ;;  %v3357_v62 = vld [vmem:[#allocation3 + $0x10] sm:$0xf8] }
 0x514   : > { %4903 = vmatprep.subr.bf16.mxu0 %v5348_v60  ;;  %v5363_v41 = vld [vmem:[%s6643_s1 + $0x530] sm:$0xff]   ;;  %v5367_v46 = vld [vmem:[%s6643_s1 + $0x538] sm:$0xff]   ;;  %v3359_v51 = vld [vmem:[#allocation3 + $0x18] sm:$0xf]  ;;  %v3364_v12 = vshrl.u32 %v3357_v62, 16  ;;  %v3366_v52 = vshll.u32 %v3357_v62, 16 }
 0x515   : > { %4882 = vmatpush3.bf16.msra.mxu1 %v5347_v22  ;;  %v5364_v36 = vld [vmem:[%s6643_s1 + $0x5f0] sm:$0xff]   ;;  %v5368_v50 = vld [vmem:[%s6643_s1 + $0x5f8] sm:$0xff]   ;;  %v3371_v16 = vshll.u32 %v3359_v51, 16  ;;  %v3375_v37 = vshrl.u32 %v3359_v51, 16  ;;  %v3358_v55 = vld [vmem:[#allocation3 + $0x18] sm:$0x7] }
 0x516   : > { %4883 = vmatprep.subr.bf16.mxu1 %v5350_v26  ;;  %v5365_v42 = vld [vmem:[%s6643_s1 + $0x5b0] sm:$0xff]   ;;  %v5369_v54 = vld [vmem:[%s6643_s1 + $0x5b8] sm:$0xff]   ;;  %v3360_v56 = vld [vmem:[#allocation3 + $0x10] sm:$0xf0]  ;;  %v3368_v57 = vrot.slane %v3366_v52, 1  ;;  %v3496_v27 = vrot.slane %v3357_v62, 3 }
 0x517   : > { %4904 = vmatpush3.bf16.msra.mxu0 %v5349_v25  ;;  %v3373_v58 = vrot.slane %v3371_v16, 1  ;;  %v3361_v59 = vld [vmem:[#allocation3 + $0x18] sm:$0x1f]  ;;  %v3384_v61 = vshrl.u32 %v3360_v56, 16  ;;  %v3387_v44 = vshll.u32 %v3360_v56, 16  ;;  %v3497_v1 = vrot.slane %v3358_v55, 3  ;;  %vm6719_vm12 = vmmov %vm6717_vm6 }
 0x518   : > { %4905 = vmatprep.subr.bf16.mxu0 %v5352_v8  ;;  %v3392_v47 = vshrl.u32 %v3361_v59, 16  ;;  %v3395_v0 = vshll.u32 %v3361_v59, 16  ;;  %v3369_v48 = vor.u32 %v3368_v57, %v3364_v12  ;;  %v3380_v63 = vrot.slane %v3360_v56, 1  ;;  %v5370_v13 = vld [vmem:[%s6643_s1 + $0x600] sm:$0xff]   ;;  %vm6721_vm0 = vmmov %vm6717_vm6  ;;  %v5371_v60 = vld [vmem:[%s6643_s1 + $0x608] sm:$0xff]  }
 0x519   : > { %4884 = vmatpush3.bf16.msra.mxu1 %v5351_v18  ;;  %v3377_v2 = vor.u32 %v3375_v37, %v3373_v58  ;;  %v3386_v4 = vrot.slane %v3384_v61, 1  ;;  %v3389_v53 = vrot.slane %v3387_v44, 2  ;;  %v3381_v10 = vrot.slane %v3359_v51, 1  ;;  %vm6722_vm7 = vmmov %vm6721_vm0  ;;  %v5372_v25 = vld [vmem:[%s6643_s1 + $0x610] sm:$0xff]   ;;  %v5373_v26 = vld [vmem:[%s6643_s1 + $0x618] sm:$0xff]  }
 0x51a   : > { %4885 = vmatprep.subr.bf16.mxu1 %v5354_v19  ;;  %v3394_v38 = vrot.slane %v3392_v47, 1  ;;  %v3397_v7 = vrot.slane %v3395_v0, 2  ;;  %v3374_v3 = vsel %vm6716_vm8, %v3369_v48, %v3373_v58  ;;  %v3498_v15 = vsel %vm6717_vm6, %v3496_v27, %v3497_v1  ;;  %v5374_v18 = vld [vmem:[%s6643_s1 + $0x620] sm:$0xff]   ;;  %vm6725_vm14 = vmmov %vm6721_vm0 }
 0x51b   : > { %4906 = vmatpush3.bf16.msra.mxu0 %v5353_v28  ;;  %v3500_v9 = vrot.slane %v3377_v2, 3  ;;  %v3499_v11 = vrot.slane %v3374_v3, 3  ;;  %v3390_v49 = vor.u32 %v3389_v53, %v3386_v4  ;;  %v3382_v33 = vsel %vm6718_vm9, %v3380_v63, %v3381_v10  ;;  %v3362_v8 = vld [vmem:[#allocation3 + $0x10] sm:$0xe0]  ;;  %v5375_v28 = vld [vmem:[%s6643_s1 + $0x628] sm:$0xff]  }
 0x51c   : > { %4907 = vmatprep.subr.bf16.mxu0 %v5356_v29  ;;  %v3398_v5 = vor.u32 %v3397_v7, %v3394_v38  ;;  %v3503_v34 = vrot.slane %v3381_v10, 3  ;;  %v3502_v21 = vrot.slane %v3382_v33, 3  ;;  %v3402_v19 = vrot.slane %v3362_v8, 2  ;;  %v5376_v29 = vld [vmem:[%s6643_s1 + $0x630] sm:$0xff]  }
 0x51d   : > { %4886 = vmatpush3.bf16.msra.mxu1 %v5355_v24  ;;  %v3501_v17 = vsel %vm6719_vm12, %v3499_v11, %v3500_v9  ;;  %v3403_v24 = vrot.slane %v3361_v59, 2 }
 0x51e   : > { %4887 = vmatprep.subr.bf16.mxu1 %v5358_v32  ;;  %v3399_v6 = vsel %vm6720_vm13, %v3390_v49, %v3398_v5  ;;  %v3506_v20 = vrot.slane %v3398_v5, 3  ;;  %3788 = vmatprep.mubr.bf16.mxu1 %v3501_v17  ;;  %v3504_v14 = vsel %vm6721_vm0, %v3502_v21, %v3503_v34  ;;  %v5377_v32 = vld [vmem:[%s6643_s1 + $0x638] sm:$0xff]  }
 0x51f   : > { %4908 = vmatpush3.bf16.msra.mxu0 %v5357_v31  ;;  %v3505_v30 = vrot.slane %v3399_v6, 3  ;;  %v3404_v31 = vsel %vm6724_vm11, %v3402_v19, %v3403_v24 }
 0x520   : > { %4909 = vmatprep.subr.bf16.mxu0 %v5360_v40  ;;  %v3509_v40 = vrot.slane %v3403_v24, 3 }
 0x521   : > { %4888 = vmatpush3.bf16.msra.mxu1 %v5359_v43  ;;  %v3507_v22 = vsel %vm6722_vm7, %v3505_v30, %v3506_v20  ;;  %v3508_v43 = vrot.slane %v3404_v31, 3 }
 0x522   : > { %4889 = vmatprep.subr.bf16.mxu1 %v5362_v23  ;;  %3829 = vmatprep.mubr.bf16.mxu0 %v3507_v22 }
 0x523   : > { %4910 = vmatpush3.bf16.msra.mxu0 %v5361_v35  ;;  %v3510_v35 = vsel %vm6725_vm14, %v3508_v43, %v3509_v40 }
 0x524   : > { %4911 = vmatprep.subr.bf16.mxu0 %v5364_v36 }
 0x525   : > { %4890 = vmatpush3.bf16.msra.mxu1 %v5363_v41  ;;  %v4492_v41 = vld [vmem:[%s6644_s2 + $0x4] ss:$0 sm:$0xff] }
 0x526   : > { %4891 = vmatprep.subr.bf16.mxu1 %v5366_v45 }
 0x527   : > { %4912 = vmatpush3.bf16.msra.mxu0 %v5365_v42 }
 0x528   : > { %4913 = vmatprep.subr.bf16.mxu0 %v5368_v50 }
 0x529   : > { %4892 = vmatpush3.bf16.msra.mxu1 %v5367_v46 }
 0x52a   : > { %5038 = vmatprep.subr.bf16.mxu1 %v5418_v39 }
 0x52b   : > { %4914 = vmatpush3.bf16.msra.mxu0 %v5369_v54 }
 0x52c   : > { %3789 = vmatmul.mubr.bf16.vlgmr.msra.gmra.mrb[84].mxu1 %v3498_v15 }
 0x52d   : > { %5039 = vmatpush3.bf16.msra.mxu1 %v5370_v13  ;;  %5054 = vmatprep.mubr.msk.bf16.mxu1 %vm6723_vm10, %v5418_v39 }
 0x52e   : > { %5040 = vmatprep.subr.bf16.mxu1 %v5418_v39  ;;  %3830 = vmatmul.mubr.bf16.vlgmr.msra.gmra.mrb[72].mxu0 %v3504_v14 }
 0x531   : > { %5041 = vmatpush3.bf16.msra.mxu1 %v5371_v60 }
 0x532   : > { %5042 = vmatprep.subr.bf16.mxu1 %v5418_v39 }
 0x535   : > { %5043 = vmatpush3.bf16.msra.mxu1 %v5372_v25 }
 0x536   : > { %5044 = vmatprep.subr.bf16.mxu1 %v5418_v39 }
 0x539   : > { %5045 = vmatpush3.bf16.msra.mxu1 %v5373_v26 }
 0x53a   : > { %5046 = vmatprep.subr.bf16.mxu1 %v5418_v39 }
 0x53d   : > { %5047 = vmatpush3.bf16.msra.mxu1 %v5374_v18 }
 0x53e   : > { %5048 = vmatprep.subr.bf16.mxu1 %v5418_v39 }
 0x541   : > { %5049 = vmatpush3.bf16.msra.mxu1 %v5375_v28 }
 0x542   : > { %5050 = vmatprep.subr.bf16.mxu1 %v5418_v39 }
 0x545   : > { %5051 = vmatpush3.bf16.msra.mxu1 %v5376_v29 }
 0x546   : > { %5052 = vmatprep.subr.bf16.mxu1 %v5418_v39 }
 0x549   : > { %5053 = vmatpush3.bf16.msra.mxu1 %v5377_v32 }
 0x54c   : > { %5055 = vmatmul.mubr.bf16.vlgmr.msra.gmra.mrb[88].mxu1 %v3510_v35 }
 0x5ff   : > { %v4893_v23 = vpop.f32.mrb[84].mxu1 }
 0x600   : > { %v4894_v36 = vpop.f32.mrb[85].mxu1 }
 0x601   : > { %v4895_v42 = vadd.f32 %v4894_v36, %v4893_v23  ;;  %v4896_v45 = vpop.f32.mrb[86].mxu1  ;;  %v4915_v46 = vpop.f32.mrb[72].mxu0 }
 0x602   : > { %v4897_v50 = vpop.f32.mrb[87].mxu1  ;;  %v4916_v12 = vpop.f32.mrb[73].mxu0 }
 0x603   : > { %v3791_v62 = vadd.f32 %v4895_v42, %v4492_v41  ;;  %v4898_v51 = vadd.f32 %v4897_v50, %v4896_v45  ;;  %v4917_v39 = vadd.f32 %v4916_v12, %v4915_v46  ;;  %v4918_v52 = vpop.f32.mrb[74].mxu0 }
 0x604   : > { %v4919_v37 = vpop.f32.mrb[75].mxu0 }
 0x605   : > { %v3794_v16 = vadd.f32 %v4898_v51, %v4492_v41  ;;  %v4920_v54 = vadd.f32 %v4919_v37, %v4918_v52  ;;  %v3832_v55 = vadd.f32 %v4917_v39, %v3791_v62 }
 0x607   : > { %v3835_v56 = vadd.f32 %v4920_v54, %v3794_v16 }
 0x61f   : > { %v3872_v57 = vpop.f32.mrb[88].mxu1 }
 0x620   : > { %v3873_v58 = vadd.f32 %v3872_v57, %v3832_v55  ;;  %v5056_v59 = vpop.f32.mrb[89].mxu1 }
 0x621   : > { %v3875_v61 = vpop.f32.mrb[90].mxu1 }
 0x622   : > { %3879 = vst [vmem:[%s5540_s11] sm:$0xff] %v3873_v58  ;;  %v3876_v27 = vadd.f32 %v3875_v61, %v3835_v56  ;;  %v5057_v44 = vpop.f32.mrb[91].mxu1 }
 0x624   : > { %3880 = vst [vmem:[%s5540_s11 + $0x8] sm:$0xff] %v3876_v27 }
 0x625 PF: > { %s13_s16 = sadd.s32 1, %s5416_s16   ;;  %s6726_s12 = smov %s5408_s14 }
 0x626   : > { %p10_p10 = scmp.ge.s32.totalorder %s13_s16, 8   ;;  %s6727_s13 = smov %s5412_s15 }
 0x627   : > { %s6728_s14 = smov %s6731_s17  ;;  %s6729_s15 = smov %s6735_s18 }
 0x628   :  { %12 = sbr.rel (!%p10_p10) target bundleno = 3 (0x3), region = 86 }

</bundles_post_ra>
